<compile_context>
chip_gen: v7x
topology: tpu7x:2x2x1
jax: 0.10.0
libtpu: 0.0.40
codegen_flags: <defaults>
</compile_context>

<pallas_src>
import functools

import jax
import jax.numpy as jnp
from jax import lax
from jax.experimental import pallas as pl
from jax.experimental.pallas import tpu as pltpu


def _round_up(x, m):
    return (x + m - 1) // m * m


# ----------------------------------------------------------------------------
# Kernel
# ----------------------------------------------------------------------------
def stacked_gru_kernel(x_ref,
                       w_ih0, w_hh0, b_gi0, b_hn0,
                       w_ih1, w_hh1, b_gi1, b_hn1,
                       w_ih2, w_hh2, b_gi2, b_hn2,
                       w_fc, b_fc,
                       out_ref,
                       buf0, buf1,
                       *, use_bf16):
    # x_ref: (T, D_pad) for the current batch element (batch axis is the grid).
    T = x_ref.shape[0]
    HP = w_hh0.shape[0]            # lane-padded hidden size (128)

    def in_proj(x, w_ref, b_ref):
        # One batched MXU matmul over the whole sequence (hoisted out of the
        # recurrence).  Biases (b_ih + b_hh_r/z) are pre-folded into b_ref.
        w = w_ref[...]
        if use_bf16:
            x = x.astype(jnp.bfloat16)
            w = w.astype(jnp.bfloat16)
        return jnp.dot(x, w, preferred_element_type=jnp.float32) + b_ref[...]

    def run_layer(gi_all, w_hh_ref, b_hn_ref, out_buf):
        # gi_all: (T, 3*HP) precomputed input projection for this layer.
        w_hh = w_hh_ref[...]                         # hoisted loads
        b_hn = b_hn_ref[...]
        gi_r = gi_all[:, 0 * HP:1 * HP]              # 128-aligned gate slabs
        gi_z = gi_all[:, 1 * HP:2 * HP]
        gi_n = gi_all[:, 2 * HP:3 * HP]
        h = jnp.zeros((1, HP), jnp.float32)
        for t in range(T):                           # fully unrolled (T static)
            gh = jnp.dot(h, w_hh, preferred_element_type=jnp.float32)
            r = jax.nn.sigmoid(gi_r[t:t + 1, :] + gh[:, 0 * HP:1 * HP])
            z = jax.nn.sigmoid(gi_z[t:t + 1, :] + gh[:, 1 * HP:2 * HP])
            n = jnp.tanh(gi_n[t:t + 1, :] + r * (gh[:, 2 * HP:3 * HP] + b_hn))
            h = (1.0 - z) * n + z * h
            if out_buf is not None:
                # time-major, lane-dense slab write
                out_buf[pl.ds(t, 1), :] = h
        return h

    # ---- Layer 0 -------------------------------------------------------------
    gi0 = in_proj(x_ref[...], w_ih0, b_gi0)          # (T, 3*HP)
    run_layer(gi0, w_hh0, b_hn0, buf0)

    # ---- Layer 1 -------------------------------------------------------------
    gi1 = in_proj(buf0[...], w_ih1, b_gi1)
    run_layer(gi1, w_hh1, b_hn1, buf1)

    # ---- Layer 2 (last layer: only the final hidden state is needed) ---------
    gi2 = in_proj(buf1[...], w_ih2, b_gi2)
    h_last = run_layer(gi2, w_hh2, b_hn2, None)

    # ---- FC on the last timestep (lane-padded output) -------------------------
    out = jnp.dot(h_last, w_fc[...], preferred_element_type=jnp.float32) + b_fc[...]
    out_ref[...] = out.astype(out_ref.dtype)


# ----------------------------------------------------------------------------
# Wrapper
# ----------------------------------------------------------------------------
@functools.partial(jax.jit, static_argnums=(2, 3))
def stacked_gru_forward(x, packed, output_size, use_bf16=False):
    """x: (B, T, input_size) f32; packed: lane-padded params; returns (B, output_size)."""
    B, T, D = x.shape
    HP = packed["w_hh0"].shape[0]
    OP = packed["w_fc"].shape[1]
    D_p = packed["w_ih0"].shape[0]

    x = x.astype(jnp.float32)
    if D_p != D:
        x = jnp.pad(x, ((0, 0), (0, 0), (0, D_p - D)))

    weight_args = [
        packed["w_ih0"], packed["w_hh0"], packed["b_gi0"], packed["b_hn0"],
        packed["w_ih1"], packed["w_hh1"], packed["b_gi1"], packed["b_hn1"],
        packed["w_ih2"], packed["w_hh2"], packed["b_gi2"], packed["b_hn2"],
        packed["w_fc"], packed["b_fc"],
    ]

    kernel = functools.partial(stacked_gru_kernel, use_bf16=use_bf16)
    out = pl.pallas_call(
        kernel,
        out_shape=jax.ShapeDtypeStruct((B, 1, OP), jnp.float32),
        grid=(B,),
        in_specs=[pl.BlockSpec((None, T, D_p), lambda b: (b, 0, 0))]
                 + [pl.BlockSpec(w.shape, lambda b: (0, 0)) for w in weight_args],
        out_specs=pl.BlockSpec((None, 1, OP), lambda b: (b, 0, 0)),
        scratch_shapes=[
            pltpu.VMEM((T, HP), jnp.float32),   # layer-0 outputs, time-major
            pltpu.VMEM((T, HP), jnp.float32),   # layer-1 outputs, time-major
        ],
        compiler_params=pltpu.CompilerParams(
            dimension_semantics=("parallel",),          # v7x: one batch elem per TC
            vmem_limit_bytes=32 * 1024 * 1024,
        ),
    )(x, *weight_args)
    return out[:, 0, :output_size]


# ----------------------------------------------------------------------------
# Parameter init (PyTorch-style uniform(-1/sqrt(H), 1/sqrt(H))) — logical layout
# ----------------------------------------------------------------------------
def init_params(key, input_size, hidden, num_layers, output_size):
    params = {}
    bound = 1.0 / float(hidden) ** 0.5
    keys = jax.random.split(key, num_layers * 4 + 2)
    ki = 0
    for l in range(num_layers):
        d_in = input_size if l == 0 else hidden
        params[f"w_ih{l}"] = jax.random.uniform(
            keys[ki], (d_in, 3 * hidden), jnp.float32, -bound, bound); ki += 1
        params[f"w_hh{l}"] = jax.random.uniform(
            keys[ki], (hidden, 3 * hidden), jnp.float32, -bound, bound); ki += 1
        params[f"b_ih{l}"] = jax.random.uniform(
            keys[ki], (3 * hidden,), jnp.float32, -bound, bound); ki += 1
        params[f"b_hh{l}"] = jax.random.uniform(
            keys[ki], (3 * hidden,), jnp.float32, -bound, bound); ki += 1
    params["w_fc"] = jax.random.uniform(
        keys[ki], (hidden, output_size), jnp.float32, -bound, bound); ki += 1
    params["b_fc"] = jax.random.uniform(
        keys[ki], (output_size,), jnp.float32, -bound, bound)
    return params


# ----------------------------------------------------------------------------
# Pack logical params into lane-padded, gate-aligned kernel layout
# ----------------------------------------------------------------------------
def pack_params(p, num_layers, hidden, lane=128):
    H = hidden
    HP = _round_up(H, lane)
    packed = {}
    for l in range(num_layers):
        w_ih, w_hh = p[f"w_ih{l}"], p[f"w_hh{l}"]       # (d_in,3H), (H,3H)
        b_ih, b_hh = p[f"b_ih{l}"], p[f"b_hh{l}"]       # (3H,), (3H,)
        d_in = w_ih.shape[0]
        d_in_p = _round_up(d_in, lane) if l == 0 else HP
        wi = jnp.zeros((d_in_p, 3 * HP), jnp.float32)
        wh = jnp.zeros((HP, 3 * HP), jnp.float32)
        bgi = jnp.zeros((1, 3 * HP), jnp.float32)
        for g in range(3):                               # gates at 128-aligned slabs
            wi = wi.at[:d_in, g * HP:g * HP + H].set(w_ih[:, g * H:(g + 1) * H])
            wh = wh.at[:H, g * HP:g * HP + H].set(w_hh[:, g * H:(g + 1) * H])
            bgi = bgi.at[0, g * HP:g * HP + H].set(b_ih[g * H:(g + 1) * H])
        for g in range(2):                               # fold b_hh_r, b_hh_z
            bgi = bgi.at[0, g * HP:g * HP + H].add(b_hh[g * H:(g + 1) * H])
        bhn = jnp.zeros((1, HP), jnp.float32).at[0, :H].set(b_hh[2 * H:3 * H])
        packed[f"w_ih{l}"] = wi
        packed[f"w_hh{l}"] = wh
        packed[f"b_gi{l}"] = bgi
        packed[f"b_hn{l}"] = bhn
    out_dim = p["w_fc"].shape[1]
    OP = _round_up(out_dim, lane)
    packed["w_fc"] = jnp.zeros((HP, OP), jnp.float32).at[:H, :out_dim].set(p["w_fc"])
    packed["b_fc"] = jnp.zeros((1, OP), jnp.float32).at[0, :out_dim].set(p["b_fc"])
    return packed


# ----------------------------------------------------------------------------
# Pure-JAX reference (mirrors torch.nn.GRU(batch_first=True) + Linear on last step)
# ----------------------------------------------------------------------------
def ref_forward(x, p, num_layers=3):
    seq = x.astype(jnp.float32)                          # (B, T, D)
    for l in range(num_layers):
        w_ih, w_hh = p[f"w_ih{l}"], p[f"w_hh{l}"]
        b_ih, b_hh = p[f"b_ih{l}"], p[f"b_hh{l}"]
        H = w_hh.shape[0]

        def step(h, x_t):
            gi = x_t @ w_ih + b_ih
            gh = h @ w_hh + b_hh
            r = jax.nn.sigmoid(gi[:, :H] + gh[:, :H])
            z = jax.nn.sigmoid(gi[:, H:2 * H] + gh[:, H:2 * H])
            n = jnp.tanh(gi[:, 2 * H:] + r * gh[:, 2 * H:])
            h_new = (1.0 - z) * n + z * h
            return h_new, h_new

        h0 = jnp.zeros((seq.shape[0], H), jnp.float32)
        _, ys = lax.scan(step, h0, jnp.swapaxes(seq, 0, 1))
        seq = jnp.swapaxes(ys, 0, 1)
    last = seq[:, -1, :]
    return last @ p["w_fc"] + p["b_fc"]


# ----------------------------------------------------------------------------
if __name__ == "__main__":
    # TODO(synk): nn.GRU inter-layer dropout (active only in training mode) is
    # not implemented — this is an inference kernel, where dropout is identity.
    B, T = 2, 8
    input_size = 4 * 16 * 16          # e.g. flattened (channels=4, spatial=16x16)
    hidden, num_layers, output_size = 32, 3, 3

    key = jax.random.PRNGKey(0)
    k_x, k_p = jax.random.split(key)
    x = jax.random.normal(k_x, (B, T, input_size), jnp.float32)
    params = init_params(k_p, input_size, hidden, num_layers, output_size)
    packed = pack_params(params, num_layers, hidden)

    # use_bf16=True is available for extra MXU throughput on v5e/v6e/v7x (loosen
    # the tolerance accordingly); default f32 keeps the 1e-4 match below.
    out = stacked_gru_forward(x, packed, output_size, False)
    out = jax.block_until_ready(out)

    ref = ref_forward(x, params, num_layers)
    assert out.shape == (B, output_size), out.shape
    err = jnp.max(jnp.abs(out - ref))
    assert jnp.allclose(out, ref, rtol=1e-4, atol=1e-4), f"max abs err = {err}"

    print("KERNEL_OK")
</pallas_src>

<mosaic_0001>
module attributes {stable_mosaic.version = 11 : i64} {
  func.func @stacked_gru_kernel(%arg0: i32, %arg1: memref<1x8x1024xf32, #tpu.memory_space<vmem>>, %arg2: memref<1024x384xf32, #tpu.memory_space<vmem>>, %arg3: memref<128x384xf32, #tpu.memory_space<vmem>>, %arg4: memref<1x384xf32, #tpu.memory_space<vmem>>, %arg5: memref<1x128xf32, #tpu.memory_space<vmem>>, %arg6: memref<128x384xf32, #tpu.memory_space<vmem>>, %arg7: memref<128x384xf32, #tpu.memory_space<vmem>>, %arg8: memref<1x384xf32, #tpu.memory_space<vmem>>, %arg9: memref<1x128xf32, #tpu.memory_space<vmem>>, %arg10: memref<128x384xf32, #tpu.memory_space<vmem>>, %arg11: memref<128x384xf32, #tpu.memory_space<vmem>>, %arg12: memref<1x384xf32, #tpu.memory_space<vmem>>, %arg13: memref<1x128xf32, #tpu.memory_space<vmem>>, %arg14: memref<128x128xf32, #tpu.memory_space<vmem>>, %arg15: memref<1x128xf32, #tpu.memory_space<vmem>>, %arg16: memref<1x1x128xf32, #tpu.memory_space<vmem>>, %arg17: memref<8x128xf32, #tpu.memory_space<vmem>>, %arg18: memref<8x128xf32, #tpu.memory_space<vmem>>) attributes {dimension_semantics = [#tpu.dimension_semantics<parallel>], iteration_bounds = array<i64: 2>, scalar_prefetch = 0 : i64, scratch_operands = 2 : i64, tpu.core_type = #tpu.core_type<tc>, window_params = [{transform_indices = @transform_0, window_bounds = array<i64: 1, 8, 1024>}, {pipeline_mode = #tpu.pipeline_mode<synchronous>, transform_indices = @transform_1, window_bounds = array<i64: 1024, 384>}, {pipeline_mode = #tpu.pipeline_mode<synchronous>, transform_indices = @transform_2, window_bounds = array<i64: 128, 384>}, {pipeline_mode = #tpu.pipeline_mode<synchronous>, transform_indices = @transform_3, window_bounds = array<i64: 1, 384>}, {pipeline_mode = #tpu.pipeline_mode<synchronous>, transform_indices = @transform_4, window_bounds = array<i64: 1, 128>}, {pipeline_mode = #tpu.pipeline_mode<synchronous>, transform_indices = @transform_5, window_bounds = array<i64: 128, 384>}, {pipeline_mode = #tpu.pipeline_mode<synchronous>, transform_indices = @transform_6, window_bounds = array<i64: 128, 384>}, {pipeline_mode = #tpu.pipeline_mode<synchronous>, transform_indices = @transform_7, window_bounds = array<i64: 1, 384>}, {pipeline_mode = #tpu.pipeline_mode<synchronous>, transform_indices = @transform_8, window_bounds = array<i64: 1, 128>}, {pipeline_mode = #tpu.pipeline_mode<synchronous>, transform_indices = @transform_9, window_bounds = array<i64: 128, 384>}, {pipeline_mode = #tpu.pipeline_mode<synchronous>, transform_indices = @transform_10, window_bounds = array<i64: 128, 384>}, {pipeline_mode = #tpu.pipeline_mode<synchronous>, transform_indices = @transform_11, window_bounds = array<i64: 1, 384>}, {pipeline_mode = #tpu.pipeline_mode<synchronous>, transform_indices = @transform_12, window_bounds = array<i64: 1, 128>}, {pipeline_mode = #tpu.pipeline_mode<synchronous>, transform_indices = @transform_13, window_bounds = array<i64: 128, 128>}, {pipeline_mode = #tpu.pipeline_mode<synchronous>, transform_indices = @transform_14, window_bounds = array<i64: 1, 128>}, {transform_indices = @transform_15, window_bounds = array<i64: 1, 1, 128>}]} {
    %c0 = arith.constant 0 : index
    %c0_0 = arith.constant 0 : index
    %c0_1 = arith.constant 0 : index
    %0 = vector.load %arg1[%c0, %c0_0, %c0_1] : memref<1x8x1024xf32, #tpu.memory_space<vmem>>, vector<1x8x1024xf32>
    %1 = vector.shape_cast %0 : vector<1x8x1024xf32> to vector<8x1024xf32>
    %c0_2 = arith.constant 0 : index
    %c0_3 = arith.constant 0 : index
    %2 = vector.load %arg2[%c0_2, %c0_3] : memref<1024x384xf32, #tpu.memory_space<vmem>>, vector<1024x384xf32>
    %cst = arith.constant dense<0.000000e+00> : vector<8x384xf32>
    %3 = tpu.matmul %1, %2, %cst {dimension_numbers = #tpu.dot_dimension_numbers<[1], [0], [0], [1], [0, 0, 1, 1], [], []>} : vector<8x1024xf32>, vector<1024x384xf32>, vector<8x384xf32> -> vector<8x384xf32>
    %c0_4 = arith.constant 0 : index
    %c0_5 = arith.constant 0 : index
    %4 = vector.load %arg4[%c0_4, %c0_5] : memref<1x384xf32, #tpu.memory_space<vmem>>, vector<1x384xf32>
    %5 = vector.broadcast %4 : vector<1x384xf32> to vector<8x384xf32>
    %6 = arith.addf %3, %5 : vector<8x384xf32>
    %c0_6 = arith.constant 0 : index
    %c0_7 = arith.constant 0 : index
    %7 = vector.load %arg3[%c0_6, %c0_7] : memref<128x384xf32, #tpu.memory_space<vmem>>, vector<128x384xf32>
    %c0_8 = arith.constant 0 : index
    %c0_9 = arith.constant 0 : index
    %8 = vector.load %arg5[%c0_8, %c0_9] : memref<1x128xf32, #tpu.memory_space<vmem>>, vector<1x128xf32>
    %9 = vector.extract_strided_slice %6 {offsets = [0, 0], sizes = [8, 128], strides = [1, 1]} : vector<8x384xf32> to vector<8x128xf32>
    %10 = vector.extract_strided_slice %6 {offsets = [0, 128], sizes = [8, 128], strides = [1, 1]} : vector<8x384xf32> to vector<8x128xf32>
    %11 = vector.extract_strided_slice %6 {offsets = [0, 256], sizes = [8, 128], strides = [1, 1]} : vector<8x384xf32> to vector<8x128xf32>
    %cst_10 = arith.constant 0.000000e+00 : f32
    %12 = vector.broadcast %cst_10 : f32 to vector<1x128xf32>
    %cst_11 = arith.constant dense<0.000000e+00> : vector<1x384xf32>
    %13 = tpu.matmul %12, %7, %cst_11 {dimension_numbers = #tpu.dot_dimension_numbers<[1], [0], [0], [1], [0, 0, 1, 1], [], []>} : vector<1x128xf32>, vector<128x384xf32>, vector<1x384xf32> -> vector<1x384xf32>
    %14 = vector.extract_strided_slice %9 {offsets = [0, 0], sizes = [1, 128], strides = [1, 1]} : vector<8x128xf32> to vector<1x128xf32>
    %15 = vector.extract_strided_slice %13 {offsets = [0, 0], sizes = [1, 128], strides = [1, 1]} : vector<1x384xf32> to vector<1x128xf32>
    %16 = arith.addf %14, %15 : vector<1x128xf32>
    %17 = arith.negf %16 : vector<1x128xf32>
    %18 = math.exp %17 : vector<1x128xf32>
    %cst_12 = arith.constant 1.000000e+00 : f32
    %19 = vector.broadcast %cst_12 : f32 to vector<1x128xf32>
    %20 = arith.addf %19, %18 : vector<1x128xf32>
    %21 = arith.divf %19, %20 : vector<1x128xf32>
    %22 = vector.extract_strided_slice %10 {offsets = [0, 0], sizes = [1, 128], strides = [1, 1]} : vector<8x128xf32> to vector<1x128xf32>
    %23 = vector.extract_strided_slice %13 {offsets = [0, 128], sizes = [1, 128], strides = [1, 1]} : vector<1x384xf32> to vector<1x128xf32>
    %24 = arith.addf %22, %23 : vector<1x128xf32>
    %25 = arith.negf %24 : vector<1x128xf32>
    %26 = math.exp %25 : vector<1x128xf32>
    %cst_13 = arith.constant 1.000000e+00 : f32
    %27 = vector.broadcast %cst_13 : f32 to vector<1x128xf32>
    %28 = arith.addf %27, %26 : vector<1x128xf32>
    %29 = arith.divf %27, %28 : vector<1x128xf32>
    %30 = vector.extract_strided_slice %11 {offsets = [0, 0], sizes = [1, 128], strides = [1, 1]} : vector<8x128xf32> to vector<1x128xf32>
    %31 = vector.extract_strided_slice %13 {offsets = [0, 256], sizes = [1, 128], strides = [1, 1]} : vector<1x384xf32> to vector<1x128xf32>
    %32 = arith.addf %31, %8 : vector<1x128xf32>
    %33 = arith.mulf %21, %32 : vector<1x128xf32>
    %34 = arith.addf %30, %33 : vector<1x128xf32>
    %35 = math.tanh %34 : vector<1x128xf32>
    %cst_14 = arith.constant 1.000000e+00 : f32
    %36 = vector.broadcast %cst_14 : f32 to vector<1x128xf32>
    %37 = arith.subf %36, %29 : vector<1x128xf32>
    %38 = arith.mulf %37, %35 : vector<1x128xf32>
    %39 = arith.mulf %29, %12 : vector<1x128xf32>
    %40 = arith.addf %38, %39 : vector<1x128xf32>
    %c0_15 = arith.constant 0 : index
    %c0_16 = arith.constant 0 : index
    %41 = vector.load %arg17[%c0_15, %c0_16] : memref<8x128xf32, #tpu.memory_space<vmem>>, vector<1x128xf32>
    tpu.vector_store %arg17[%c0_15, %c0_16], %40 {strides = array<i32>} : memref<8x128xf32, #tpu.memory_space<vmem>>, vector<1x128xf32>,
    %cst_17 = arith.constant dense<0.000000e+00> : vector<1x384xf32>
    %42 = tpu.matmul %40, %7, %cst_17 {dimension_numbers = #tpu.dot_dimension_numbers<[1], [0], [0], [1], [0, 0, 1, 1], [], []>} : vector<1x128xf32>, vector<128x384xf32>, vector<1x384xf32> -> vector<1x384xf32>
    %43 = vector.extract_strided_slice %9 {offsets = [1, 0], sizes = [1, 128], strides = [1, 1]} : vector<8x128xf32> to vector<1x128xf32>
    %44 = vector.extract_strided_slice %42 {offsets = [0, 0], sizes = [1, 128], strides = [1, 1]} : vector<1x384xf32> to vector<1x128xf32>
    %45 = arith.addf %43, %44 : vector<1x128xf32>
    %46 = arith.negf %45 : vector<1x128xf32>
    %47 = math.exp %46 : vector<1x128xf32>
    %cst_18 = arith.constant 1.000000e+00 : f32
    %48 = vector.broadcast %cst_18 : f32 to vector<1x128xf32>
    %49 = arith.addf %48, %47 : vector<1x128xf32>
    %50 = arith.divf %48, %49 : vector<1x128xf32>
    %51 = vector.extract_strided_slice %10 {offsets = [1, 0], sizes = [1, 128], strides = [1, 1]} : vector<8x128xf32> to vector<1x128xf32>
    %52 = vector.extract_strided_slice %42 {offsets = [0, 128], sizes = [1, 128], strides = [1, 1]} : vector<1x384xf32> to vector<1x128xf32>
    %53 = arith.addf %51, %52 : vector<1x128xf32>
    %54 = arith.negf %53 : vector<1x128xf32>
    %55 = math.exp %54 : vector<1x128xf32>
    %cst_19 = arith.constant 1.000000e+00 : f32
    %56 = vector.broadcast %cst_19 : f32 to vector<1x128xf32>
    %57 = arith.addf %56, %55 : vector<1x128xf32>
    %58 = arith.divf %56, %57 : vector<1x128xf32>
    %59 = vector.extract_strided_slice %11 {offsets = [1, 0], sizes = [1, 128], strides = [1, 1]} : vector<8x128xf32> to vector<1x128xf32>
    %60 = vector.extract_strided_slice %42 {offsets = [0, 256], sizes = [1, 128], strides = [1, 1]} : vector<1x384xf32> to vector<1x128xf32>
    %61 = arith.addf %60, %8 : vector<1x128xf32>
    %62 = arith.mulf %50, %61 : vector<1x128xf32>
    %63 = arith.addf %59, %62 : vector<1x128xf32>
    %64 = math.tanh %63 : vector<1x128xf32>
    %cst_20 = arith.constant 1.000000e+00 : f32
    %65 = vector.broadcast %cst_20 : f32 to vector<1x128xf32>
    %66 = arith.subf %65, %58 : vector<1x128xf32>
    %67 = arith.mulf %66, %64 : vector<1x128xf32>
    %68 = arith.mulf %58, %40 : vector<1x128xf32>
    %69 = arith.addf %67, %68 : vector<1x128xf32>
    %c1 = arith.constant 1 : index
    %c0_21 = arith.constant 0 : index
    %70 = vector.load %arg17[%c1, %c0_21] : memref<8x128xf32, #tpu.memory_space<vmem>>, vector<1x128xf32>
    tpu.vector_store %arg17[%c1, %c0_21], %69 {strides = array<i32>} : memref<8x128xf32, #tpu.memory_space<vmem>>, vector<1x128xf32>,
    %cst_22 = arith.constant dense<0.000000e+00> : vector<1x384xf32>
    %71 = tpu.matmul %69, %7, %cst_22 {dimension_numbers = #tpu.dot_dimension_numbers<[1], [0], [0], [1], [0, 0, 1, 1], [], []>} : vector<1x128xf32>, vector<128x384xf32>, vector<1x384xf32> -> vector<1x384xf32>
    %72 = vector.extract_strided_slice %9 {offsets = [2, 0], sizes = [1, 128], strides = [1, 1]} : vector<8x128xf32> to vector<1x128xf32>
    %73 = vector.extract_strided_slice %71 {offsets = [0, 0], sizes = [1, 128], strides = [1, 1]} : vector<1x384xf32> to vector<1x128xf32>
    %74 = arith.addf %72, %73 : vector<1x128xf32>
    %75 = arith.negf %74 : vector<1x128xf32>
    %76 = math.exp %75 : vector<1x128xf32>
    %cst_23 = arith.constant 1.000000e+00 : f32
    %77 = vector.broadcast %cst_23 : f32 to vector<1x128xf32>
    %78 = arith.addf %77, %76 : vector<1x128xf32>
    %79 = arith.divf %77, %78 : vector<1x128xf32>
    %80 = vector.extract_strided_slice %10 {offsets = [2, 0], sizes = [1, 128], strides = [1, 1]} : vector<8x128xf32> to vector<1x128xf32>
    %81 = vector.extract_strided_slice %71 {offsets = [0, 128], sizes = [1, 128], strides = [1, 1]} : vector<1x384xf32> to vector<1x128xf32>
    %82 = arith.addf %80, %81 : vector<1x128xf32>
    %83 = arith.negf %82 : vector<1x128xf32>
    %84 = math.exp %83 : vector<1x128xf32>
    %cst_24 = arith.constant 1.000000e+00 : f32
    %85 = vector.broadcast %cst_24 : f32 to vector<1x128xf32>
    %86 = arith.addf %85, %84 : vector<1x128xf32>
    %87 = arith.divf %85, %86 : vector<1x128xf32>
    %88 = vector.extract_strided_slice %11 {offsets = [2, 0], sizes = [1, 128], strides = [1, 1]} : vector<8x128xf32> to vector<1x128xf32>
    %89 = vector.extract_strided_slice %71 {offsets = [0, 256], sizes = [1, 128], strides = [1, 1]} : vector<1x384xf32> to vector<1x128xf32>
    %90 = arith.addf %89, %8 : vector<1x128xf32>
    %91 = arith.mulf %79, %90 : vector<1x128xf32>
    %92 = arith.addf %88, %91 : vector<1x128xf32>
    %93 = math.tanh %92 : vector<1x128xf32>
    %cst_25 = arith.constant 1.000000e+00 : f32
    %94 = vector.broadcast %cst_25 : f32 to vector<1x128xf32>
    %95 = arith.subf %94, %87 : vector<1x128xf32>
    %96 = arith.mulf %95, %93 : vector<1x128xf32>
    %97 = arith.mulf %87, %69 : vector<1x128xf32>
    %98 = arith.addf %96, %97 : vector<1x128xf32>
    %c2 = arith.constant 2 : index
    %c0_26 = arith.constant 0 : index
    %99 = vector.load %arg17[%c2, %c0_26] : memref<8x128xf32, #tpu.memory_space<vmem>>, vector<1x128xf32>
    tpu.vector_store %arg17[%c2, %c0_26], %98 {strides = array<i32>} : memref<8x128xf32, #tpu.memory_space<vmem>>, vector<1x128xf32>,
    %cst_27 = arith.constant dense<0.000000e+00> : vector<1x384xf32>
    %100 = tpu.matmul %98, %7, %cst_27 {dimension_numbers = #tpu.dot_dimension_numbers<[1], [0], [0], [1], [0, 0, 1, 1], [], []>} : vector<1x128xf32>, vector<128x384xf32>, vector<1x384xf32> -> vector<1x384xf32>
    %101 = vector.extract_strided_slice %9 {offsets = [3, 0], sizes = [1, 128], strides = [1, 1]} : vector<8x128xf32> to vector<1x128xf32>
    %102 = vector.extract_strided_slice %100 {offsets = [0, 0], sizes = [1, 128], strides = [1, 1]} : vector<1x384xf32> to vector<1x128xf32>
    %103 = arith.addf %101, %102 : vector<1x128xf32>
    %104 = arith.negf %103 : vector<1x128xf32>
    %105 = math.exp %104 : vector<1x128xf32>
    %cst_28 = arith.constant 1.000000e+00 : f32
    %106 = vector.broadcast %cst_28 : f32 to vector<1x128xf32>
    %107 = arith.addf %106, %105 : vector<1x128xf32>
    %108 = arith.divf %106, %107 : vector<1x128xf32>
    %109 = vector.extract_strided_slice %10 {offsets = [3, 0], sizes = [1, 128], strides = [1, 1]} : vector<8x128xf32> to vector<1x128xf32>
    %110 = vector.extract_strided_slice %100 {offsets = [0, 128], sizes = [1, 128], strides = [1, 1]} : vector<1x384xf32> to vector<1x128xf32>
    %111 = arith.addf %109, %110 : vector<1x128xf32>
    %112 = arith.negf %111 : vector<1x128xf32>
    %113 = math.exp %112 : vector<1x128xf32>
    %cst_29 = arith.constant 1.000000e+00 : f32
    %114 = vector.broadcast %cst_29 : f32 to vector<1x128xf32>
    %115 = arith.addf %114, %113 : vector<1x128xf32>
    %116 = arith.divf %114, %115 : vector<1x128xf32>
    %117 = vector.extract_strided_slice %11 {offsets = [3, 0], sizes = [1, 128], strides = [1, 1]} : vector<8x128xf32> to vector<1x128xf32>
    %118 = vector.extract_strided_slice %100 {offsets = [0, 256], sizes = [1, 128], strides = [1, 1]} : vector<1x384xf32> to vector<1x128xf32>
    %119 = arith.addf %118, %8 : vector<1x128xf32>
    %120 = arith.mulf %108, %119 : vector<1x128xf32>
    %121 = arith.addf %117, %120 : vector<1x128xf32>
    %122 = math.tanh %121 : vector<1x128xf32>
    %cst_30 = arith.constant 1.000000e+00 : f32
    %123 = vector.broadcast %cst_30 : f32 to vector<1x128xf32>
    %124 = arith.subf %123, %116 : vector<1x128xf32>
    %125 = arith.mulf %124, %122 : vector<1x128xf32>
    %126 = arith.mulf %116, %98 : vector<1x128xf32>
    %127 = arith.addf %125, %126 : vector<1x128xf32>
    %c3 = arith.constant 3 : index
    %c0_31 = arith.constant 0 : index
    %128 = vector.load %arg17[%c3, %c0_31] : memref<8x128xf32, #tpu.memory_space<vmem>>, vector<1x128xf32>
    tpu.vector_store %arg17[%c3, %c0_31], %127 {strides = array<i32>} : memref<8x128xf32, #tpu.memory_space<vmem>>, vector<1x128xf32>,
    %cst_32 = arith.constant dense<0.000000e+00> : vector<1x384xf32>
    %129 = tpu.matmul %127, %7, %cst_32 {dimension_numbers = #tpu.dot_dimension_numbers<[1], [0], [0], [1], [0, 0, 1, 1], [], []>} : vector<1x128xf32>, vector<128x384xf32>, vector<1x384xf32> -> vector<1x384xf32>
    %130 = vector.extract_strided_slice %9 {offsets = [4, 0], sizes = [1, 128], strides = [1, 1]} : vector<8x128xf32> to vector<1x128xf32>
    %131 = vector.extract_strided_slice %129 {offsets = [0, 0], sizes = [1, 128], strides = [1, 1]} : vector<1x384xf32> to vector<1x128xf32>
    %132 = arith.addf %130, %131 : vector<1x128xf32>
    %133 = arith.negf %132 : vector<1x128xf32>
    %134 = math.exp %133 : vector<1x128xf32>
    %cst_33 = arith.constant 1.000000e+00 : f32
    %135 = vector.broadcast %cst_33 : f32 to vector<1x128xf32>
    %136 = arith.addf %135, %134 : vector<1x128xf32>
    %137 = arith.divf %135, %136 : vector<1x128xf32>
    %138 = vector.extract_strided_slice %10 {offsets = [4, 0], sizes = [1, 128], strides = [1, 1]} : vector<8x128xf32> to vector<1x128xf32>
    %139 = vector.extract_strided_slice %129 {offsets = [0, 128], sizes = [1, 128], strides = [1, 1]} : vector<1x384xf32> to vector<1x128xf32>
    %140 = arith.addf %138, %139 : vector<1x128xf32>
    %141 = arith.negf %140 : vector<1x128xf32>
    %142 = math.exp %141 : vector<1x128xf32>
    %cst_34 = arith.constant 1.000000e+00 : f32
    %143 = vector.broadcast %cst_34 : f32 to vector<1x128xf32>
    %144 = arith.addf %143, %142 : vector<1x128xf32>
    %145 = arith.divf %143, %144 : vector<1x128xf32>
    %146 = vector.extract_strided_slice %11 {offsets = [4, 0], sizes = [1, 128], strides = [1, 1]} : vector<8x128xf32> to vector<1x128xf32>
    %147 = vector.extract_strided_slice %129 {offsets = [0, 256], sizes = [1, 128], strides = [1, 1]} : vector<1x384xf32> to vector<1x128xf32>
    %148 = arith.addf %147, %8 : vector<1x128xf32>
    %149 = arith.mulf %137, %148 : vector<1x128xf32>
    %150 = arith.addf %146, %149 : vector<1x128xf32>
    %151 = math.tanh %150 : vector<1x128xf32>
    %cst_35 = arith.constant 1.000000e+00 : f32
    %152 = vector.broadcast %cst_35 : f32 to vector<1x128xf32>
    %153 = arith.subf %152, %145 : vector<1x128xf32>
    %154 = arith.mulf %153, %151 : vector<1x128xf32>
    %155 = arith.mulf %145, %127 : vector<1x128xf32>
    %156 = arith.addf %154, %155 : vector<1x128xf32>
    %c4 = arith.constant 4 : index
    %c0_36 = arith.constant 0 : index
    %157 = vector.load %arg17[%c4, %c0_36] : memref<8x128xf32, #tpu.memory_space<vmem>>, vector<1x128xf32>
    tpu.vector_store %arg17[%c4, %c0_36], %156 {strides = array<i32>} : memref<8x128xf32, #tpu.memory_space<vmem>>, vector<1x128xf32>,
    %cst_37 = arith.constant dense<0.000000e+00> : vector<1x384xf32>
    %158 = tpu.matmul %156, %7, %cst_37 {dimension_numbers = #tpu.dot_dimension_numbers<[1], [0], [0], [1], [0, 0, 1, 1], [], []>} : vector<1x128xf32>, vector<128x384xf32>, vector<1x384xf32> -> vector<1x384xf32>
    %159 = vector.extract_strided_slice %9 {offsets = [5, 0], sizes = [1, 128], strides = [1, 1]} : vector<8x128xf32> to vector<1x128xf32>
    %160 = vector.extract_strided_slice %158 {offsets = [0, 0], sizes = [1, 128], strides = [1, 1]} : vector<1x384xf32> to vector<1x128xf32>
    %161 = arith.addf %159, %160 : vector<1x128xf32>
    %162 = arith.negf %161 : vector<1x128xf32>
    %163 = math.exp %162 : vector<1x128xf32>
    %cst_38 = arith.constant 1.000000e+00 : f32
    %164 = vector.broadcast %cst_38 : f32 to vector<1x128xf32>
    %165 = arith.addf %164, %163 : vector<1x128xf32>
    %166 = arith.divf %164, %165 : vector<1x128xf32>
    %167 = vector.extract_strided_slice %10 {offsets = [5, 0], sizes = [1, 128], strides = [1, 1]} : vector<8x128xf32> to vector<1x128xf32>
    %168 = vector.extract_strided_slice %158 {offsets = [0, 128], sizes = [1, 128], strides = [1, 1]} : vector<1x384xf32> to vector<1x128xf32>
    %169 = arith.addf %167, %168 : vector<1x128xf32>
    %170 = arith.negf %169 : vector<1x128xf32>
    %171 = math.exp %170 : vector<1x128xf32>
    %cst_39 = arith.constant 1.000000e+00 : f32
    %172 = vector.broadcast %cst_39 : f32 to vector<1x128xf32>
    %173 = arith.addf %172, %171 : vector<1x128xf32>
    %174 = arith.divf %172, %173 : vector<1x128xf32>
    %175 = vector.extract_strided_slice %11 {offsets = [5, 0], sizes = [1, 128], strides = [1, 1]} : vector<8x128xf32> to vector<1x128xf32>
    %176 = vector.extract_strided_slice %158 {offsets = [0, 256], sizes = [1, 128], strides = [1, 1]} : vector<1x384xf32> to vector<1x128xf32>
    %177 = arith.addf %176, %8 : vector<1x128xf32>
    %178 = arith.mulf %166, %177 : vector<1x128xf32>
    %179 = arith.addf %175, %178 : vector<1x128xf32>
    %180 = math.tanh %179 : vector<1x128xf32>
    %cst_40 = arith.constant 1.000000e+00 : f32
    %181 = vector.broadcast %cst_40 : f32 to vector<1x128xf32>
    %182 = arith.subf %181, %174 : vector<1x128xf32>
    %183 = arith.mulf %182, %180 : vector<1x128xf32>
    %184 = arith.mulf %174, %156 : vector<1x128xf32>
    %185 = arith.addf %183, %184 : vector<1x128xf32>
    %c5 = arith.constant 5 : index
    %c0_41 = arith.constant 0 : index
    %186 = vector.load %arg17[%c5, %c0_41] : memref<8x128xf32, #tpu.memory_space<vmem>>, vector<1x128xf32>
    tpu.vector_store %arg17[%c5, %c0_41], %185 {strides = array<i32>} : memref<8x128xf32, #tpu.memory_space<vmem>>, vector<1x128xf32>,
    %cst_42 = arith.constant dense<0.000000e+00> : vector<1x384xf32>
    %187 = tpu.matmul %185, %7, %cst_42 {dimension_numbers = #tpu.dot_dimension_numbers<[1], [0], [0], [1], [0, 0, 1, 1], [], []>} : vector<1x128xf32>, vector<128x384xf32>, vector<1x384xf32> -> vector<1x384xf32>
    %188 = vector.extract_strided_slice %9 {offsets = [6, 0], sizes = [1, 128], strides = [1, 1]} : vector<8x128xf32> to vector<1x128xf32>
    %189 = vector.extract_strided_slice %187 {offsets = [0, 0], sizes = [1, 128], strides = [1, 1]} : vector<1x384xf32> to vector<1x128xf32>
    %190 = arith.addf %188, %189 : vector<1x128xf32>
    %191 = arith.negf %190 : vector<1x128xf32>
    %192 = math.exp %191 : vector<1x128xf32>
    %cst_43 = arith.constant 1.000000e+00 : f32
    %193 = vector.broadcast %cst_43 : f32 to vector<1x128xf32>
    %194 = arith.addf %193, %192 : vector<1x128xf32>
    %195 = arith.divf %193, %194 : vector<1x128xf32>
    %196 = vector.extract_strided_slice %10 {offsets = [6, 0], sizes = [1, 128], strides = [1, 1]} : vector<8x128xf32> to vector<1x128xf32>
    %197 = vector.extract_strided_slice %187 {offsets = [0, 128], sizes = [1, 128], strides = [1, 1]} : vector<1x384xf32> to vector<1x128xf32>
    %198 = arith.addf %196, %197 : vector<1x128xf32>
    %199 = arith.negf %198 : vector<1x128xf32>
    %200 = math.exp %199 : vector<1x128xf32>
    %cst_44 = arith.constant 1.000000e+00 : f32
    %201 = vector.broadcast %cst_44 : f32 to vector<1x128xf32>
    %202 = arith.addf %201, %200 : vector<1x128xf32>
    %203 = arith.divf %201, %202 : vector<1x128xf32>
    %204 = vector.extract_strided_slice %11 {offsets = [6, 0], sizes = [1, 128], strides = [1, 1]} : vector<8x128xf32> to vector<1x128xf32>
    %205 = vector.extract_strided_slice %187 {offsets = [0, 256], sizes = [1, 128], strides = [1, 1]} : vector<1x384xf32> to vector<1x128xf32>
    %206 = arith.addf %205, %8 : vector<1x128xf32>
    %207 = arith.mulf %195, %206 : vector<1x128xf32>
    %208 = arith.addf %204, %207 : vector<1x128xf32>
    %209 = math.tanh %208 : vector<1x128xf32>
    %cst_45 = arith.constant 1.000000e+00 : f32
    %210 = vector.broadcast %cst_45 : f32 to vector<1x128xf32>
    %211 = arith.subf %210, %203 : vector<1x128xf32>
    %212 = arith.mulf %211, %209 : vector<1x128xf32>
    %213 = arith.mulf %203, %185 : vector<1x128xf32>
    %214 = arith.addf %212, %213 : vector<1x128xf32>
    %c6 = arith.constant 6 : index
    %c0_46 = arith.constant 0 : index
    %215 = vector.load %arg17[%c6, %c0_46] : memref<8x128xf32, #tpu.memory_space<vmem>>, vector<1x128xf32>
    tpu.vector_store %arg17[%c6, %c0_46], %214 {strides = array<i32>} : memref<8x128xf32, #tpu.memory_space<vmem>>, vector<1x128xf32>,
    %cst_47 = arith.constant dense<0.000000e+00> : vector<1x384xf32>
    %216 = tpu.matmul %214, %7, %cst_47 {dimension_numbers = #tpu.dot_dimension_numbers<[1], [0], [0], [1], [0, 0, 1, 1], [], []>} : vector<1x128xf32>, vector<128x384xf32>, vector<1x384xf32> -> vector<1x384xf32>
    %217 = vector.extract_strided_slice %9 {offsets = [7, 0], sizes = [1, 128], strides = [1, 1]} : vector<8x128xf32> to vector<1x128xf32>
    %218 = vector.extract_strided_slice %216 {offsets = [0, 0], sizes = [1, 128], strides = [1, 1]} : vector<1x384xf32> to vector<1x128xf32>
    %219 = arith.addf %217, %218 : vector<1x128xf32>
    %220 = arith.negf %219 : vector<1x128xf32>
    %221 = math.exp %220 : vector<1x128xf32>
    %cst_48 = arith.constant 1.000000e+00 : f32
    %222 = vector.broadcast %cst_48 : f32 to vector<1x128xf32>
    %223 = arith.addf %222, %221 : vector<1x128xf32>
    %224 = arith.divf %222, %223 : vector<1x128xf32>
    %225 = vector.extract_strided_slice %10 {offsets = [7, 0], sizes = [1, 128], strides = [1, 1]} : vector<8x128xf32> to vector<1x128xf32>
    %226 = vector.extract_strided_slice %216 {offsets = [0, 128], sizes = [1, 128], strides = [1, 1]} : vector<1x384xf32> to vector<1x128xf32>
    %227 = arith.addf %225, %226 : vector<1x128xf32>
    %228 = arith.negf %227 : vector<1x128xf32>
    %229 = math.exp %228 : vector<1x128xf32>
    %cst_49 = arith.constant 1.000000e+00 : f32
    %230 = vector.broadcast %cst_49 : f32 to vector<1x128xf32>
    %231 = arith.addf %230, %229 : vector<1x128xf32>
    %232 = arith.divf %230, %231 : vector<1x128xf32>
    %233 = vector.extract_strided_slice %11 {offsets = [7, 0], sizes = [1, 128], strides = [1, 1]} : vector<8x128xf32> to vector<1x128xf32>
    %234 = vector.extract_strided_slice %216 {offsets = [0, 256], sizes = [1, 128], strides = [1, 1]} : vector<1x384xf32> to vector<1x128xf32>
    %235 = arith.addf %234, %8 : vector<1x128xf32>
    %236 = arith.mulf %224, %235 : vector<1x128xf32>
    %237 = arith.addf %233, %236 : vector<1x128xf32>
    %238 = math.tanh %237 : vector<1x128xf32>
    %cst_50 = arith.constant 1.000000e+00 : f32
    %239 = vector.broadcast %cst_50 : f32 to vector<1x128xf32>
    %240 = arith.subf %239, %232 : vector<1x128xf32>
    %241 = arith.mulf %240, %238 : vector<1x128xf32>
    %242 = arith.mulf %232, %214 : vector<1x128xf32>
    %243 = arith.addf %241, %242 : vector<1x128xf32>
    %c7 = arith.constant 7 : index
    %c0_51 = arith.constant 0 : index
    %244 = vector.load %arg17[%c7, %c0_51] : memref<8x128xf32, #tpu.memory_space<vmem>>, vector<1x128xf32>
    tpu.vector_store %arg17[%c7, %c0_51], %243 {strides = array<i32>} : memref<8x128xf32, #tpu.memory_space<vmem>>, vector<1x128xf32>,
    %c0_52 = arith.constant 0 : index
    %c0_53 = arith.constant 0 : index
    %245 = vector.load %arg17[%c0_52, %c0_53] : memref<8x128xf32, #tpu.memory_space<vmem>>, vector<8x128xf32>
    %c0_54 = arith.constant 0 : index
    %c0_55 = arith.constant 0 : index
    %246 = vector.load %arg6[%c0_54, %c0_55] : memref<128x384xf32, #tpu.memory_space<vmem>>, vector<128x384xf32>
    %cst_56 = arith.constant dense<0.000000e+00> : vector<8x384xf32>
    %247 = tpu.matmul %245, %246, %cst_56 {dimension_numbers = #tpu.dot_dimension_numbers<[1], [0], [0], [1], [0, 0, 1, 1], [], []>} : vector<8x128xf32>, vector<128x384xf32>, vector<8x384xf32> -> vector<8x384xf32>
    %c0_57 = arith.constant 0 : index
    %c0_58 = arith.constant 0 : index
    %248 = vector.load %arg8[%c0_57, %c0_58] : memref<1x384xf32, #tpu.memory_space<vmem>>, vector<1x384xf32>
    %249 = vector.broadcast %248 : vector<1x384xf32> to vector<8x384xf32>
    %250 = arith.addf %247, %249 : vector<8x384xf32>
    %c0_59 = arith.constant 0 : index
    %c0_60 = arith.constant 0 : index
    %251 = vector.load %arg7[%c0_59, %c0_60] : memref<128x384xf32, #tpu.memory_space<vmem>>, vector<128x384xf32>
    %c0_61 = arith.constant 0 : index
    %c0_62 = arith.constant 0 : index
    %252 = vector.load %arg9[%c0_61, %c0_62] : memref<1x128xf32, #tpu.memory_space<vmem>>, vector<1x128xf32>
    %253 = vector.extract_strided_slice %250 {offsets = [0, 0], sizes = [8, 128], strides = [1, 1]} : vector<8x384xf32> to vector<8x128xf32>
    %254 = vector.extract_strided_slice %250 {offsets = [0, 128], sizes = [8, 128], strides = [1, 1]} : vector<8x384xf32> to vector<8x128xf32>
    %255 = vector.extract_strided_slice %250 {offsets = [0, 256], sizes = [8, 128], strides = [1, 1]} : vector<8x384xf32> to vector<8x128xf32>
    %cst_63 = arith.constant 0.000000e+00 : f32
    %256 = vector.broadcast %cst_63 : f32 to vector<1x128xf32>
    %cst_64 = arith.constant dense<0.000000e+00> : vector<1x384xf32>
    %257 = tpu.matmul %256, %251, %cst_64 {dimension_numbers = #tpu.dot_dimension_numbers<[1], [0], [0], [1], [0, 0, 1, 1], [], []>} : vector<1x128xf32>, vector<128x384xf32>, vector<1x384xf32> -> vector<1x384xf32>
    %258 = vector.extract_strided_slice %253 {offsets = [0, 0], sizes = [1, 128], strides = [1, 1]} : vector<8x128xf32> to vector<1x128xf32>
    %259 = vector.extract_strided_slice %257 {offsets = [0, 0], sizes = [1, 128], strides = [1, 1]} : vector<1x384xf32> to vector<1x128xf32>
    %260 = arith.addf %258, %259 : vector<1x128xf32>
    %261 = arith.negf %260 : vector<1x128xf32>
    %262 = math.exp %261 : vector<1x128xf32>
    %cst_65 = arith.constant 1.000000e+00 : f32
    %263 = vector.broadcast %cst_65 : f32 to vector<1x128xf32>
    %264 = arith.addf %263, %262 : vector<1x128xf32>
    %265 = arith.divf %263, %264 : vector<1x128xf32>
    %266 = vector.extract_strided_slice %254 {offsets = [0, 0], sizes = [1, 128], strides = [1, 1]} : vector<8x128xf32> to vector<1x128xf32>
    %267 = vector.extract_strided_slice %257 {offsets = [0, 128], sizes = [1, 128], strides = [1, 1]} : vector<1x384xf32> to vector<1x128xf32>
    %268 = arith.addf %266, %267 : vector<1x128xf32>
    %269 = arith.negf %268 : vector<1x128xf32>
    %270 = math.exp %269 : vector<1x128xf32>
    %cst_66 = arith.constant 1.000000e+00 : f32
    %271 = vector.broadcast %cst_66 : f32 to vector<1x128xf32>
    %272 = arith.addf %271, %270 : vector<1x128xf32>
    %273 = arith.divf %271, %272 : vector<1x128xf32>
    %274 = vector.extract_strided_slice %255 {offsets = [0, 0], sizes = [1, 128], strides = [1, 1]} : vector<8x128xf32> to vector<1x128xf32>
    %275 = vector.extract_strided_slice %257 {offsets = [0, 256], sizes = [1, 128], strides = [1, 1]} : vector<1x384xf32> to vector<1x128xf32>
    %276 = arith.addf %275, %252 : vector<1x128xf32>
    %277 = arith.mulf %265, %276 : vector<1x128xf32>
    %278 = arith.addf %274, %277 : vector<1x128xf32>
    %279 = math.tanh %278 : vector<1x128xf32>
    %cst_67 = arith.constant 1.000000e+00 : f32
    %280 = vector.broadcast %cst_67 : f32 to vector<1x128xf32>
    %281 = arith.subf %280, %273 : vector<1x128xf32>
    %282 = arith.mulf %281, %279 : vector<1x128xf32>
    %283 = arith.mulf %273, %256 : vector<1x128xf32>
    %284 = arith.addf %282, %283 : vector<1x128xf32>
    %c0_68 = arith.constant 0 : index
    %c0_69 = arith.constant 0 : index
    %285 = vector.load %arg18[%c0_68, %c0_69] : memref<8x128xf32, #tpu.memory_space<vmem>>, vector<1x128xf32>
    tpu.vector_store %arg18[%c0_68, %c0_69], %284 {strides = array<i32>} : memref<8x128xf32, #tpu.memory_space<vmem>>, vector<1x128xf32>,
    %cst_70 = arith.constant dense<0.000000e+00> : vector<1x384xf32>
    %286 = tpu.matmul %284, %251, %cst_70 {dimension_numbers = #tpu.dot_dimension_numbers<[1], [0], [0], [1], [0, 0, 1, 1], [], []>} : vector<1x128xf32>, vector<128x384xf32>, vector<1x384xf32> -> vector<1x384xf32>
    %287 = vector.extract_strided_slice %253 {offsets = [1, 0], sizes = [1, 128], strides = [1, 1]} : vector<8x128xf32> to vector<1x128xf32>
    %288 = vector.extract_strided_slice %286 {offsets = [0, 0], sizes = [1, 128], strides = [1, 1]} : vector<1x384xf32> to vector<1x128xf32>
    %289 = arith.addf %287, %288 : vector<1x128xf32>
    %290 = arith.negf %289 : vector<1x128xf32>
    %291 = math.exp %290 : vector<1x128xf32>
    %cst_71 = arith.constant 1.000000e+00 : f32
    %292 = vector.broadcast %cst_71 : f32 to vector<1x128xf32>
    %293 = arith.addf %292, %291 : vector<1x128xf32>
    %294 = arith.divf %292, %293 : vector<1x128xf32>
    %295 = vector.extract_strided_slice %254 {offsets = [1, 0], sizes = [1, 128], strides = [1, 1]} : vector<8x128xf32> to vector<1x128xf32>
    %296 = vector.extract_strided_slice %286 {offsets = [0, 128], sizes = [1, 128], strides = [1, 1]} : vector<1x384xf32> to vector<1x128xf32>
    %297 = arith.addf %295, %296 : vector<1x128xf32>
    %298 = arith.negf %297 : vector<1x128xf32>
    %299 = math.exp %298 : vector<1x128xf32>
    %cst_72 = arith.constant 1.000000e+00 : f32
    %300 = vector.broadcast %cst_72 : f32 to vector<1x128xf32>
    %301 = arith.addf %300, %299 : vector<1x128xf32>
    %302 = arith.divf %300, %301 : vector<1x128xf32>
    %303 = vector.extract_strided_slice %255 {offsets = [1, 0], sizes = [1, 128], strides = [1, 1]} : vector<8x128xf32> to vector<1x128xf32>
    %304 = vector.extract_strided_slice %286 {offsets = [0, 256], sizes = [1, 128], strides = [1, 1]} : vector<1x384xf32> to vector<1x128xf32>
    %305 = arith.addf %304, %252 : vector<1x128xf32>
    %306 = arith.mulf %294, %305 : vector<1x128xf32>
    %307 = arith.addf %303, %306 : vector<1x128xf32>
    %308 = math.tanh %307 : vector<1x128xf32>
    %cst_73 = arith.constant 1.000000e+00 : f32
    %309 = vector.broadcast %cst_73 : f32 to vector<1x128xf32>
    %310 = arith.subf %309, %302 : vector<1x128xf32>
    %311 = arith.mulf %310, %308 : vector<1x128xf32>
    %312 = arith.mulf %302, %284 : vector<1x128xf32>
    %313 = arith.addf %311, %312 : vector<1x128xf32>
    %c1_74 = arith.constant 1 : index
    %c0_75 = arith.constant 0 : index
    %314 = vector.load %arg18[%c1_74, %c0_75] : memref<8x128xf32, #tpu.memory_space<vmem>>, vector<1x128xf32>
    tpu.vector_store %arg18[%c1_74, %c0_75], %313 {strides = array<i32>} : memref<8x128xf32, #tpu.memory_space<vmem>>, vector<1x128xf32>,
    %cst_76 = arith.constant dense<0.000000e+00> : vector<1x384xf32>
    %315 = tpu.matmul %313, %251, %cst_76 {dimension_numbers = #tpu.dot_dimension_numbers<[1], [0], [0], [1], [0, 0, 1, 1], [], []>} : vector<1x128xf32>, vector<128x384xf32>, vector<1x384xf32> -> vector<1x384xf32>
    %316 = vector.extract_strided_slice %253 {offsets = [2, 0], sizes = [1, 128], strides = [1, 1]} : vector<8x128xf32> to vector<1x128xf32>
    %317 = vector.extract_strided_slice %315 {offsets = [0, 0], sizes = [1, 128], strides = [1, 1]} : vector<1x384xf32> to vector<1x128xf32>
    %318 = arith.addf %316, %317 : vector<1x128xf32>
    %319 = arith.negf %318 : vector<1x128xf32>
    %320 = math.exp %319 : vector<1x128xf32>
    %cst_77 = arith.constant 1.000000e+00 : f32
    %321 = vector.broadcast %cst_77 : f32 to vector<1x128xf32>
    %322 = arith.addf %321, %320 : vector<1x128xf32>
    %323 = arith.divf %321, %322 : vector<1x128xf32>
    %324 = vector.extract_strided_slice %254 {offsets = [2, 0], sizes = [1, 128], strides = [1, 1]} : vector<8x128xf32> to vector<1x128xf32>
    %325 = vector.extract_strided_slice %315 {offsets = [0, 128], sizes = [1, 128], strides = [1, 1]} : vector<1x384xf32> to vector<1x128xf32>
    %326 = arith.addf %324, %325 : vector<1x128xf32>
    %327 = arith.negf %326 : vector<1x128xf32>
    %328 = math.exp %327 : vector<1x128xf32>
    %cst_78 = arith.constant 1.000000e+00 : f32
    %329 = vector.broadcast %cst_78 : f32 to vector<1x128xf32>
    %330 = arith.addf %329, %328 : vector<1x128xf32>
    %331 = arith.divf %329, %330 : vector<1x128xf32>
    %332 = vector.extract_strided_slice %255 {offsets = [2, 0], sizes = [1, 128], strides = [1, 1]} : vector<8x128xf32> to vector<1x128xf32>
    %333 = vector.extract_strided_slice %315 {offsets = [0, 256], sizes = [1, 128], strides = [1, 1]} : vector<1x384xf32> to vector<1x128xf32>
    %334 = arith.addf %333, %252 : vector<1x128xf32>
    %335 = arith.mulf %323, %334 : vector<1x128xf32>
    %336 = arith.addf %332, %335 : vector<1x128xf32>
    %337 = math.tanh %336 : vector<1x128xf32>
    %cst_79 = arith.constant 1.000000e+00 : f32
    %338 = vector.broadcast %cst_79 : f32 to vector<1x128xf32>
    %339 = arith.subf %338, %331 : vector<1x128xf32>
    %340 = arith.mulf %339, %337 : vector<1x128xf32>
    %341 = arith.mulf %331, %313 : vector<1x128xf32>
    %342 = arith.addf %340, %341 : vector<1x128xf32>
    %c2_80 = arith.constant 2 : index
    %c0_81 = arith.constant 0 : index
    %343 = vector.load %arg18[%c2_80, %c0_81] : memref<8x128xf32, #tpu.memory_space<vmem>>, vector<1x128xf32>
    tpu.vector_store %arg18[%c2_80, %c0_81], %342 {strides = array<i32>} : memref<8x128xf32, #tpu.memory_space<vmem>>, vector<1x128xf32>,
    %cst_82 = arith.constant dense<0.000000e+00> : vector<1x384xf32>
    %344 = tpu.matmul %342, %251, %cst_82 {dimension_numbers = #tpu.dot_dimension_numbers<[1], [0], [0], [1], [0, 0, 1, 1], [], []>} : vector<1x128xf32>, vector<128x384xf32>, vector<1x384xf32> -> vector<1x384xf32>
    %345 = vector.extract_strided_slice %253 {offsets = [3, 0], sizes = [1, 128], strides = [1, 1]} : vector<8x128xf32> to vector<1x128xf32>
    %346 = vector.extract_strided_slice %344 {offsets = [0, 0], sizes = [1, 128], strides = [1, 1]} : vector<1x384xf32> to vector<1x128xf32>
    %347 = arith.addf %345, %346 : vector<1x128xf32>
    %348 = arith.negf %347 : vector<1x128xf32>
    %349 = math.exp %348 : vector<1x128xf32>
    %cst_83 = arith.constant 1.000000e+00 : f32
    %350 = vector.broadcast %cst_83 : f32 to vector<1x128xf32>
    %351 = arith.addf %350, %349 : vector<1x128xf32>
    %352 = arith.divf %350, %351 : vector<1x128xf32>
    %353 = vector.extract_strided_slice %254 {offsets = [3, 0], sizes = [1, 128], strides = [1, 1]} : vector<8x128xf32> to vector<1x128xf32>
    %354 = vector.extract_strided_slice %344 {offsets = [0, 128], sizes = [1, 128], strides = [1, 1]} : vector<1x384xf32> to vector<1x128xf32>
    %355 = arith.addf %353, %354 : vector<1x128xf32>
    %356 = arith.negf %355 : vector<1x128xf32>
    %357 = math.exp %356 : vector<1x128xf32>
    %cst_84 = arith.constant 1.000000e+00 : f32
    %358 = vector.broadcast %cst_84 : f32 to vector<1x128xf32>
    %359 = arith.addf %358, %357 : vector<1x128xf32>
    %360 = arith.divf %358, %359 : vector<1x128xf32>
    %361 = vector.extract_strided_slice %255 {offsets = [3, 0], sizes = [1, 128], strides = [1, 1]} : vector<8x128xf32> to vector<1x128xf32>
    %362 = vector.extract_strided_slice %344 {offsets = [0, 256], sizes = [1, 128], strides = [1, 1]} : vector<1x384xf32> to vector<1x128xf32>
    %363 = arith.addf %362, %252 : vector<1x128xf32>
    %364 = arith.mulf %352, %363 : vector<1x128xf32>
    %365 = arith.addf %361, %364 : vector<1x128xf32>
    %366 = math.tanh %365 : vector<1x128xf32>
    %cst_85 = arith.constant 1.000000e+00 : f32
    %367 = vector.broadcast %cst_85 : f32 to vector<1x128xf32>
    %368 = arith.subf %367, %360 : vector<1x128xf32>
    %369 = arith.mulf %368, %366 : vector<1x128xf32>
    %370 = arith.mulf %360, %342 : vector<1x128xf32>
    %371 = arith.addf %369, %370 : vector<1x128xf32>
    %c3_86 = arith.constant 3 : index
    %c0_87 = arith.constant 0 : index
    %372 = vector.load %arg18[%c3_86, %c0_87] : memref<8x128xf32, #tpu.memory_space<vmem>>, vector<1x128xf32>
    tpu.vector_store %arg18[%c3_86, %c0_87], %371 {strides = array<i32>} : memref<8x128xf32, #tpu.memory_space<vmem>>, vector<1x128xf32>,
    %cst_88 = arith.constant dense<0.000000e+00> : vector<1x384xf32>
    %373 = tpu.matmul %371, %251, %cst_88 {dimension_numbers = #tpu.dot_dimension_numbers<[1], [0], [0], [1], [0, 0, 1, 1], [], []>} : vector<1x128xf32>, vector<128x384xf32>, vector<1x384xf32> -> vector<1x384xf32>
    %374 = vector.extract_strided_slice %253 {offsets = [4, 0], sizes = [1, 128], strides = [1, 1]} : vector<8x128xf32> to vector<1x128xf32>
    %375 = vector.extract_strided_slice %373 {offsets = [0, 0], sizes = [1, 128], strides = [1, 1]} : vector<1x384xf32> to vector<1x128xf32>
    %376 = arith.addf %374, %375 : vector<1x128xf32>
    %377 = arith.negf %376 : vector<1x128xf32>
    %378 = math.exp %377 : vector<1x128xf32>
    %cst_89 = arith.constant 1.000000e+00 : f32
    %379 = vector.broadcast %cst_89 : f32 to vector<1x128xf32>
    %380 = arith.addf %379, %378 : vector<1x128xf32>
    %381 = arith.divf %379, %380 : vector<1x128xf32>
    %382 = vector.extract_strided_slice %254 {offsets = [4, 0], sizes = [1, 128], strides = [1, 1]} : vector<8x128xf32> to vector<1x128xf32>
    %383 = vector.extract_strided_slice %373 {offsets = [0, 128], sizes = [1, 128], strides = [1, 1]} : vector<1x384xf32> to vector<1x128xf32>
    %384 = arith.addf %382, %383 : vector<1x128xf32>
    %385 = arith.negf %384 : vector<1x128xf32>
    %386 = math.exp %385 : vector<1x128xf32>
    %cst_90 = arith.constant 1.000000e+00 : f32
    %387 = vector.broadcast %cst_90 : f32 to vector<1x128xf32>
    %388 = arith.addf %387, %386 : vector<1x128xf32>
    %389 = arith.divf %387, %388 : vector<1x128xf32>
    %390 = vector.extract_strided_slice %255 {offsets = [4, 0], sizes = [1, 128], strides = [1, 1]} : vector<8x128xf32> to vector<1x128xf32>
    %391 = vector.extract_strided_slice %373 {offsets = [0, 256], sizes = [1, 128], strides = [1, 1]} : vector<1x384xf32> to vector<1x128xf32>
    %392 = arith.addf %391, %252 : vector<1x128xf32>
    %393 = arith.mulf %381, %392 : vector<1x128xf32>
    %394 = arith.addf %390, %393 : vector<1x128xf32>
    %395 = math.tanh %394 : vector<1x128xf32>
    %cst_91 = arith.constant 1.000000e+00 : f32
    %396 = vector.broadcast %cst_91 : f32 to vector<1x128xf32>
    %397 = arith.subf %396, %389 : vector<1x128xf32>
    %398 = arith.mulf %397, %395 : vector<1x128xf32>
    %399 = arith.mulf %389, %371 : vector<1x128xf32>
    %400 = arith.addf %398, %399 : vector<1x128xf32>
    %c4_92 = arith.constant 4 : index
    %c0_93 = arith.constant 0 : index
    %401 = vector.load %arg18[%c4_92, %c0_93] : memref<8x128xf32, #tpu.memory_space<vmem>>, vector<1x128xf32>
    tpu.vector_store %arg18[%c4_92, %c0_93], %400 {strides = array<i32>} : memref<8x128xf32, #tpu.memory_space<vmem>>, vector<1x128xf32>,
    %cst_94 = arith.constant dense<0.000000e+00> : vector<1x384xf32>
    %402 = tpu.matmul %400, %251, %cst_94 {dimension_numbers = #tpu.dot_dimension_numbers<[1], [0], [0], [1], [0, 0, 1, 1], [], []>} : vector<1x128xf32>, vector<128x384xf32>, vector<1x384xf32> -> vector<1x384xf32>
    %403 = vector.extract_strided_slice %253 {offsets = [5, 0], sizes = [1, 128], strides = [1, 1]} : vector<8x128xf32> to vector<1x128xf32>
    %404 = vector.extract_strided_slice %402 {offsets = [0, 0], sizes = [1, 128], strides = [1, 1]} : vector<1x384xf32> to vector<1x128xf32>
    %405 = arith.addf %403, %404 : vector<1x128xf32>
    %406 = arith.negf %405 : vector<1x128xf32>
    %407 = math.exp %406 : vector<1x128xf32>
    %cst_95 = arith.constant 1.000000e+00 : f32
    %408 = vector.broadcast %cst_95 : f32 to vector<1x128xf32>
    %409 = arith.addf %408, %407 : vector<1x128xf32>
    %410 = arith.divf %408, %409 : vector<1x128xf32>
    %411 = vector.extract_strided_slice %254 {offsets = [5, 0], sizes = [1, 128], strides = [1, 1]} : vector<8x128xf32> to vector<1x128xf32>
    %412 = vector.extract_strided_slice %402 {offsets = [0, 128], sizes = [1, 128], strides = [1, 1]} : vector<1x384xf32> to vector<1x128xf32>
    %413 = arith.addf %411, %412 : vector<1x128xf32>
    %414 = arith.negf %413 : vector<1x128xf32>
    %415 = math.exp %414 : vector<1x128xf32>
    %cst_96 = arith.constant 1.000000e+00 : f32
    %416 = vector.broadcast %cst_96 : f32 to vector<1x128xf32>
    %417 = arith.addf %416, %415 : vector<1x128xf32>
    %418 = arith.divf %416, %417 : vector<1x128xf32>
    %419 = vector.extract_strided_slice %255 {offsets = [5, 0], sizes = [1, 128], strides = [1, 1]} : vector<8x128xf32> to vector<1x128xf32>
    %420 = vector.extract_strided_slice %402 {offsets = [0, 256], sizes = [1, 128], strides = [1, 1]} : vector<1x384xf32> to vector<1x128xf32>
    %421 = arith.addf %420, %252 : vector<1x128xf32>
    %422 = arith.mulf %410, %421 : vector<1x128xf32>
    %423 = arith.addf %419, %422 : vector<1x128xf32>
    %424 = math.tanh %423 : vector<1x128xf32>
    %cst_97 = arith.constant 1.000000e+00 : f32
    %425 = vector.broadcast %cst_97 : f32 to vector<1x128xf32>
    %426 = arith.subf %425, %418 : vector<1x128xf32>
    %427 = arith.mulf %426, %424 : vector<1x128xf32>
    %428 = arith.mulf %418, %400 : vector<1x128xf32>
    %429 = arith.addf %427, %428 : vector<1x128xf32>
    %c5_98 = arith.constant 5 : index
    %c0_99 = arith.constant 0 : index
    %430 = vector.load %arg18[%c5_98, %c0_99] : memref<8x128xf32, #tpu.memory_space<vmem>>, vector<1x128xf32>
    tpu.vector_store %arg18[%c5_98, %c0_99], %429 {strides = array<i32>} : memref<8x128xf32, #tpu.memory_space<vmem>>, vector<1x128xf32>,
    %cst_100 = arith.constant dense<0.000000e+00> : vector<1x384xf32>
    %431 = tpu.matmul %429, %251, %cst_100 {dimension_numbers = #tpu.dot_dimension_numbers<[1], [0], [0], [1], [0, 0, 1, 1], [], []>} : vector<1x128xf32>, vector<128x384xf32>, vector<1x384xf32> -> vector<1x384xf32>
    %432 = vector.extract_strided_slice %253 {offsets = [6, 0], sizes = [1, 128], strides = [1, 1]} : vector<8x128xf32> to vector<1x128xf32>
    %433 = vector.extract_strided_slice %431 {offsets = [0, 0], sizes = [1, 128], strides = [1, 1]} : vector<1x384xf32> to vector<1x128xf32>
    %434 = arith.addf %432, %433 : vector<1x128xf32>
    %435 = arith.negf %434 : vector<1x128xf32>
    %436 = math.exp %435 : vector<1x128xf32>
    %cst_101 = arith.constant 1.000000e+00 : f32
    %437 = vector.broadcast %cst_101 : f32 to vector<1x128xf32>
    %438 = arith.addf %437, %436 : vector<1x128xf32>
    %439 = arith.divf %437, %438 : vector<1x128xf32>
    %440 = vector.extract_strided_slice %254 {offsets = [6, 0], sizes = [1, 128], strides = [1, 1]} : vector<8x128xf32> to vector<1x128xf32>
    %441 = vector.extract_strided_slice %431 {offsets = [0, 128], sizes = [1, 128], strides = [1, 1]} : vector<1x384xf32> to vector<1x128xf32>
    %442 = arith.addf %440, %441 : vector<1x128xf32>
    %443 = arith.negf %442 : vector<1x128xf32>
    %444 = math.exp %443 : vector<1x128xf32>
    %cst_102 = arith.constant 1.000000e+00 : f32
    %445 = vector.broadcast %cst_102 : f32 to vector<1x128xf32>
    %446 = arith.addf %445, %444 : vector<1x128xf32>
    %447 = arith.divf %445, %446 : vector<1x128xf32>
    %448 = vector.extract_strided_slice %255 {offsets = [6, 0], sizes = [1, 128], strides = [1, 1]} : vector<8x128xf32> to vector<1x128xf32>
    %449 = vector.extract_strided_slice %431 {offsets = [0, 256], sizes = [1, 128], strides = [1, 1]} : vector<1x384xf32> to vector<1x128xf32>
    %450 = arith.addf %449, %252 : vector<1x128xf32>
    %451 = arith.mulf %439, %450 : vector<1x128xf32>
    %452 = arith.addf %448, %451 : vector<1x128xf32>
    %453 = math.tanh %452 : vector<1x128xf32>
    %cst_103 = arith.constant 1.000000e+00 : f32
    %454 = vector.broadcast %cst_103 : f32 to vector<1x128xf32>
    %455 = arith.subf %454, %447 : vector<1x128xf32>
    %456 = arith.mulf %455, %453 : vector<1x128xf32>
    %457 = arith.mulf %447, %429 : vector<1x128xf32>
    %458 = arith.addf %456, %457 : vector<1x128xf32>
    %c6_104 = arith.constant 6 : index
    %c0_105 = arith.constant 0 : index
    %459 = vector.load %arg18[%c6_104, %c0_105] : memref<8x128xf32, #tpu.memory_space<vmem>>, vector<1x128xf32>
    tpu.vector_store %arg18[%c6_104, %c0_105], %458 {strides = array<i32>} : memref<8x128xf32, #tpu.memory_space<vmem>>, vector<1x128xf32>,
    %cst_106 = arith.constant dense<0.000000e+00> : vector<1x384xf32>
    %460 = tpu.matmul %458, %251, %cst_106 {dimension_numbers = #tpu.dot_dimension_numbers<[1], [0], [0], [1], [0, 0, 1, 1], [], []>} : vector<1x128xf32>, vector<128x384xf32>, vector<1x384xf32> -> vector<1x384xf32>
    %461 = vector.extract_strided_slice %253 {offsets = [7, 0], sizes = [1, 128], strides = [1, 1]} : vector<8x128xf32> to vector<1x128xf32>
    %462 = vector.extract_strided_slice %460 {offsets = [0, 0], sizes = [1, 128], strides = [1, 1]} : vector<1x384xf32> to vector<1x128xf32>
    %463 = arith.addf %461, %462 : vector<1x128xf32>
    %464 = arith.negf %463 : vector<1x128xf32>
    %465 = math.exp %464 : vector<1x128xf32>
    %cst_107 = arith.constant 1.000000e+00 : f32
    %466 = vector.broadcast %cst_107 : f32 to vector<1x128xf32>
    %467 = arith.addf %466, %465 : vector<1x128xf32>
    %468 = arith.divf %466, %467 : vector<1x128xf32>
    %469 = vector.extract_strided_slice %254 {offsets = [7, 0], sizes = [1, 128], strides = [1, 1]} : vector<8x128xf32> to vector<1x128xf32>
    %470 = vector.extract_strided_slice %460 {offsets = [0, 128], sizes = [1, 128], strides = [1, 1]} : vector<1x384xf32> to vector<1x128xf32>
    %471 = arith.addf %469, %470 : vector<1x128xf32>
    %472 = arith.negf %471 : vector<1x128xf32>
    %473 = math.exp %472 : vector<1x128xf32>
    %cst_108 = arith.constant 1.000000e+00 : f32
    %474 = vector.broadcast %cst_108 : f32 to vector<1x128xf32>
    %475 = arith.addf %474, %473 : vector<1x128xf32>
    %476 = arith.divf %474, %475 : vector<1x128xf32>
    %477 = vector.extract_strided_slice %255 {offsets = [7, 0], sizes = [1, 128], strides = [1, 1]} : vector<8x128xf32> to vector<1x128xf32>
    %478 = vector.extract_strided_slice %460 {offsets = [0, 256], sizes = [1, 128], strides = [1, 1]} : vector<1x384xf32> to vector<1x128xf32>
    %479 = arith.addf %478, %252 : vector<1x128xf32>
    %480 = arith.mulf %468, %479 : vector<1x128xf32>
    %481 = arith.addf %477, %480 : vector<1x128xf32>
    %482 = math.tanh %481 : vector<1x128xf32>
    %cst_109 = arith.constant 1.000000e+00 : f32
    %483 = vector.broadcast %cst_109 : f32 to vector<1x128xf32>
    %484 = arith.subf %483, %476 : vector<1x128xf32>
    %485 = arith.mulf %484, %482 : vector<1x128xf32>
    %486 = arith.mulf %476, %458 : vector<1x128xf32>
    %487 = arith.addf %485, %486 : vector<1x128xf32>
    %c7_110 = arith.constant 7 : index
    %c0_111 = arith.constant 0 : index
    %488 = vector.load %arg18[%c7_110, %c0_111] : memref<8x128xf32, #tpu.memory_space<vmem>>, vector<1x128xf32>
    tpu.vector_store %arg18[%c7_110, %c0_111], %487 {strides = array<i32>} : memref<8x128xf32, #tpu.memory_space<vmem>>, vector<1x128xf32>,
    %c0_112 = arith.constant 0 : index
    %c0_113 = arith.constant 0 : index
    %489 = vector.load %arg18[%c0_112, %c0_113] : memref<8x128xf32, #tpu.memory_space<vmem>>, vector<8x128xf32>
    %c0_114 = arith.constant 0 : index
    %c0_115 = arith.constant 0 : index
    %490 = vector.load %arg10[%c0_114, %c0_115] : memref<128x384xf32, #tpu.memory_space<vmem>>, vector<128x384xf32>
    %cst_116 = arith.constant dense<0.000000e+00> : vector<8x384xf32>
    %491 = tpu.matmul %489, %490, %cst_116 {dimension_numbers = #tpu.dot_dimension_numbers<[1], [0], [0], [1], [0, 0, 1, 1], [], []>} : vector<8x128xf32>, vector<128x384xf32>, vector<8x384xf32> -> vector<8x384xf32>
    %c0_117 = arith.constant 0 : index
    %c0_118 = arith.constant 0 : index
    %492 = vector.load %arg12[%c0_117, %c0_118] : memref<1x384xf32, #tpu.memory_space<vmem>>, vector<1x384xf32>
    %493 = vector.broadcast %492 : vector<1x384xf32> to vector<8x384xf32>
    %494 = arith.addf %491, %493 : vector<8x384xf32>
    %c0_119 = arith.constant 0 : index
    %c0_120 = arith.constant 0 : index
    %495 = vector.load %arg11[%c0_119, %c0_120] : memref<128x384xf32, #tpu.memory_space<vmem>>, vector<128x384xf32>
    %c0_121 = arith.constant 0 : index
    %c0_122 = arith.constant 0 : index
    %496 = vector.load %arg13[%c0_121, %c0_122] : memref<1x128xf32, #tpu.memory_space<vmem>>, vector<1x128xf32>
    %497 = vector.extract_strided_slice %494 {offsets = [0, 0], sizes = [8, 128], strides = [1, 1]} : vector<8x384xf32> to vector<8x128xf32>
    %498 = vector.extract_strided_slice %494 {offsets = [0, 128], sizes = [8, 128], strides = [1, 1]} : vector<8x384xf32> to vector<8x128xf32>
    %499 = vector.extract_strided_slice %494 {offsets = [0, 256], sizes = [8, 128], strides = [1, 1]} : vector<8x384xf32> to vector<8x128xf32>
    %cst_123 = arith.constant 0.000000e+00 : f32
    %500 = vector.broadcast %cst_123 : f32 to vector<1x128xf32>
    %cst_124 = arith.constant dense<0.000000e+00> : vector<1x384xf32>
    %501 = tpu.matmul %500, %495, %cst_124 {dimension_numbers = #tpu.dot_dimension_numbers<[1], [0], [0], [1], [0, 0, 1, 1], [], []>} : vector<1x128xf32>, vector<128x384xf32>, vector<1x384xf32> -> vector<1x384xf32>
    %502 = vector.extract_strided_slice %497 {offsets = [0, 0], sizes = [1, 128], strides = [1, 1]} : vector<8x128xf32> to vector<1x128xf32>
    %503 = vector.extract_strided_slice %501 {offsets = [0, 0], sizes = [1, 128], strides = [1, 1]} : vector<1x384xf32> to vector<1x128xf32>
    %504 = arith.addf %502, %503 : vector<1x128xf32>
    %505 = arith.negf %504 : vector<1x128xf32>
    %506 = math.exp %505 : vector<1x128xf32>
    %cst_125 = arith.constant 1.000000e+00 : f32
    %507 = vector.broadcast %cst_125 : f32 to vector<1x128xf32>
    %508 = arith.addf %507, %506 : vector<1x128xf32>
    %509 = arith.divf %507, %508 : vector<1x128xf32>
    %510 = vector.extract_strided_slice %498 {offsets = [0, 0], sizes = [1, 128], strides = [1, 1]} : vector<8x128xf32> to vector<1x128xf32>
    %511 = vector.extract_strided_slice %501 {offsets = [0, 128], sizes = [1, 128], strides = [1, 1]} : vector<1x384xf32> to vector<1x128xf32>
    %512 = arith.addf %510, %511 : vector<1x128xf32>
    %513 = arith.negf %512 : vector<1x128xf32>
    %514 = math.exp %513 : vector<1x128xf32>
    %cst_126 = arith.constant 1.000000e+00 : f32
    %515 = vector.broadcast %cst_126 : f32 to vector<1x128xf32>
    %516 = arith.addf %515, %514 : vector<1x128xf32>
    %517 = arith.divf %515, %516 : vector<1x128xf32>
    %518 = vector.extract_strided_slice %499 {offsets = [0, 0], sizes = [1, 128], strides = [1, 1]} : vector<8x128xf32> to vector<1x128xf32>
    %519 = vector.extract_strided_slice %501 {offsets = [0, 256], sizes = [1, 128], strides = [1, 1]} : vector<1x384xf32> to vector<1x128xf32>
    %520 = arith.addf %519, %496 : vector<1x128xf32>
    %521 = arith.mulf %509, %520 : vector<1x128xf32>
    %522 = arith.addf %518, %521 : vector<1x128xf32>
    %523 = math.tanh %522 : vector<1x128xf32>
    %cst_127 = arith.constant 1.000000e+00 : f32
    %524 = vector.broadcast %cst_127 : f32 to vector<1x128xf32>
    %525 = arith.subf %524, %517 : vector<1x128xf32>
    %526 = arith.mulf %525, %523 : vector<1x128xf32>
    %527 = arith.mulf %517, %500 : vector<1x128xf32>
    %528 = arith.addf %526, %527 : vector<1x128xf32>
    %cst_128 = arith.constant dense<0.000000e+00> : vector<1x384xf32>
    %529 = tpu.matmul %528, %495, %cst_128 {dimension_numbers = #tpu.dot_dimension_numbers<[1], [0], [0], [1], [0, 0, 1, 1], [], []>} : vector<1x128xf32>, vector<128x384xf32>, vector<1x384xf32> -> vector<1x384xf32>
    %530 = vector.extract_strided_slice %497 {offsets = [1, 0], sizes = [1, 128], strides = [1, 1]} : vector<8x128xf32> to vector<1x128xf32>
    %531 = vector.extract_strided_slice %529 {offsets = [0, 0], sizes = [1, 128], strides = [1, 1]} : vector<1x384xf32> to vector<1x128xf32>
    %532 = arith.addf %530, %531 : vector<1x128xf32>
    %533 = arith.negf %532 : vector<1x128xf32>
    %534 = math.exp %533 : vector<1x128xf32>
    %cst_129 = arith.constant 1.000000e+00 : f32
    %535 = vector.broadcast %cst_129 : f32 to vector<1x128xf32>
    %536 = arith.addf %535, %534 : vector<1x128xf32>
    %537 = arith.divf %535, %536 : vector<1x128xf32>
    %538 = vector.extract_strided_slice %498 {offsets = [1, 0], sizes = [1, 128], strides = [1, 1]} : vector<8x128xf32> to vector<1x128xf32>
    %539 = vector.extract_strided_slice %529 {offsets = [0, 128], sizes = [1, 128], strides = [1, 1]} : vector<1x384xf32> to vector<1x128xf32>
    %540 = arith.addf %538, %539 : vector<1x128xf32>
    %541 = arith.negf %540 : vector<1x128xf32>
    %542 = math.exp %541 : vector<1x128xf32>
    %cst_130 = arith.constant 1.000000e+00 : f32
    %543 = vector.broadcast %cst_130 : f32 to vector<1x128xf32>
    %544 = arith.addf %543, %542 : vector<1x128xf32>
    %545 = arith.divf %543, %544 : vector<1x128xf32>
    %546 = vector.extract_strided_slice %499 {offsets = [1, 0], sizes = [1, 128], strides = [1, 1]} : vector<8x128xf32> to vector<1x128xf32>
    %547 = vector.extract_strided_slice %529 {offsets = [0, 256], sizes = [1, 128], strides = [1, 1]} : vector<1x384xf32> to vector<1x128xf32>
    %548 = arith.addf %547, %496 : vector<1x128xf32>
    %549 = arith.mulf %537, %548 : vector<1x128xf32>
    %550 = arith.addf %546, %549 : vector<1x128xf32>
    %551 = math.tanh %550 : vector<1x128xf32>
    %cst_131 = arith.constant 1.000000e+00 : f32
    %552 = vector.broadcast %cst_131 : f32 to vector<1x128xf32>
    %553 = arith.subf %552, %545 : vector<1x128xf32>
    %554 = arith.mulf %553, %551 : vector<1x128xf32>
    %555 = arith.mulf %545, %528 : vector<1x128xf32>
    %556 = arith.addf %554, %555 : vector<1x128xf32>
    %cst_132 = arith.constant dense<0.000000e+00> : vector<1x384xf32>
    %557 = tpu.matmul %556, %495, %cst_132 {dimension_numbers = #tpu.dot_dimension_numbers<[1], [0], [0], [1], [0, 0, 1, 1], [], []>} : vector<1x128xf32>, vector<128x384xf32>, vector<1x384xf32> -> vector<1x384xf32>
    %558 = vector.extract_strided_slice %497 {offsets = [2, 0], sizes = [1, 128], strides = [1, 1]} : vector<8x128xf32> to vector<1x128xf32>
    %559 = vector.extract_strided_slice %557 {offsets = [0, 0], sizes = [1, 128], strides = [1, 1]} : vector<1x384xf32> to vector<1x128xf32>
    %560 = arith.addf %558, %559 : vector<1x128xf32>
    %561 = arith.negf %560 : vector<1x128xf32>
    %562 = math.exp %561 : vector<1x128xf32>
    %cst_133 = arith.constant 1.000000e+00 : f32
    %563 = vector.broadcast %cst_133 : f32 to vector<1x128xf32>
    %564 = arith.addf %563, %562 : vector<1x128xf32>
    %565 = arith.divf %563, %564 : vector<1x128xf32>
    %566 = vector.extract_strided_slice %498 {offsets = [2, 0], sizes = [1, 128], strides = [1, 1]} : vector<8x128xf32> to vector<1x128xf32>
    %567 = vector.extract_strided_slice %557 {offsets = [0, 128], sizes = [1, 128], strides = [1, 1]} : vector<1x384xf32> to vector<1x128xf32>
    %568 = arith.addf %566, %567 : vector<1x128xf32>
    %569 = arith.negf %568 : vector<1x128xf32>
    %570 = math.exp %569 : vector<1x128xf32>
    %cst_134 = arith.constant 1.000000e+00 : f32
    %571 = vector.broadcast %cst_134 : f32 to vector<1x128xf32>
    %572 = arith.addf %571, %570 : vector<1x128xf32>
    %573 = arith.divf %571, %572 : vector<1x128xf32>
    %574 = vector.extract_strided_slice %499 {offsets = [2, 0], sizes = [1, 128], strides = [1, 1]} : vector<8x128xf32> to vector<1x128xf32>
    %575 = vector.extract_strided_slice %557 {offsets = [0, 256], sizes = [1, 128], strides = [1, 1]} : vector<1x384xf32> to vector<1x128xf32>
    %576 = arith.addf %575, %496 : vector<1x128xf32>
    %577 = arith.mulf %565, %576 : vector<1x128xf32>
    %578 = arith.addf %574, %577 : vector<1x128xf32>
    %579 = math.tanh %578 : vector<1x128xf32>
    %cst_135 = arith.constant 1.000000e+00 : f32
    %580 = vector.broadcast %cst_135 : f32 to vector<1x128xf32>
    %581 = arith.subf %580, %573 : vector<1x128xf32>
    %582 = arith.mulf %581, %579 : vector<1x128xf32>
    %583 = arith.mulf %573, %556 : vector<1x128xf32>
    %584 = arith.addf %582, %583 : vector<1x128xf32>
    %cst_136 = arith.constant dense<0.000000e+00> : vector<1x384xf32>
    %585 = tpu.matmul %584, %495, %cst_136 {dimension_numbers = #tpu.dot_dimension_numbers<[1], [0], [0], [1], [0, 0, 1, 1], [], []>} : vector<1x128xf32>, vector<128x384xf32>, vector<1x384xf32> -> vector<1x384xf32>
    %586 = vector.extract_strided_slice %497 {offsets = [3, 0], sizes = [1, 128], strides = [1, 1]} : vector<8x128xf32> to vector<1x128xf32>
    %587 = vector.extract_strided_slice %585 {offsets = [0, 0], sizes = [1, 128], strides = [1, 1]} : vector<1x384xf32> to vector<1x128xf32>
    %588 = arith.addf %586, %587 : vector<1x128xf32>
    %589 = arith.negf %588 : vector<1x128xf32>
    %590 = math.exp %589 : vector<1x128xf32>
    %cst_137 = arith.constant 1.000000e+00 : f32
    %591 = vector.broadcast %cst_137 : f32 to vector<1x128xf32>
    %592 = arith.addf %591, %590 : vector<1x128xf32>
    %593 = arith.divf %591, %592 : vector<1x128xf32>
    %594 = vector.extract_strided_slice %498 {offsets = [3, 0], sizes = [1, 128], strides = [1, 1]} : vector<8x128xf32> to vector<1x128xf32>
    %595 = vector.extract_strided_slice %585 {offsets = [0, 128], sizes = [1, 128], strides = [1, 1]} : vector<1x384xf32> to vector<1x128xf32>
    %596 = arith.addf %594, %595 : vector<1x128xf32>
    %597 = arith.negf %596 : vector<1x128xf32>
    %598 = math.exp %597 : vector<1x128xf32>
    %cst_138 = arith.constant 1.000000e+00 : f32
    %599 = vector.broadcast %cst_138 : f32 to vector<1x128xf32>
    %600 = arith.addf %599, %598 : vector<1x128xf32>
    %601 = arith.divf %599, %600 : vector<1x128xf32>
    %602 = vector.extract_strided_slice %499 {offsets = [3, 0], sizes = [1, 128], strides = [1, 1]} : vector<8x128xf32> to vector<1x128xf32>
    %603 = vector.extract_strided_slice %585 {offsets = [0, 256], sizes = [1, 128], strides = [1, 1]} : vector<1x384xf32> to vector<1x128xf32>
    %604 = arith.addf %603, %496 : vector<1x128xf32>
    %605 = arith.mulf %593, %604 : vector<1x128xf32>
    %606 = arith.addf %602, %605 : vector<1x128xf32>
    %607 = math.tanh %606 : vector<1x128xf32>
    %cst_139 = arith.constant 1.000000e+00 : f32
    %608 = vector.broadcast %cst_139 : f32 to vector<1x128xf32>
    %609 = arith.subf %608, %601 : vector<1x128xf32>
    %610 = arith.mulf %609, %607 : vector<1x128xf32>
    %611 = arith.mulf %601, %584 : vector<1x128xf32>
    %612 = arith.addf %610, %611 : vector<1x128xf32>
    %cst_140 = arith.constant dense<0.000000e+00> : vector<1x384xf32>
    %613 = tpu.matmul %612, %495, %cst_140 {dimension_numbers = #tpu.dot_dimension_numbers<[1], [0], [0], [1], [0, 0, 1, 1], [], []>} : vector<1x128xf32>, vector<128x384xf32>, vector<1x384xf32> -> vector<1x384xf32>
    %614 = vector.extract_strided_slice %497 {offsets = [4, 0], sizes = [1, 128], strides = [1, 1]} : vector<8x128xf32> to vector<1x128xf32>
    %615 = vector.extract_strided_slice %613 {offsets = [0, 0], sizes = [1, 128], strides = [1, 1]} : vector<1x384xf32> to vector<1x128xf32>
    %616 = arith.addf %614, %615 : vector<1x128xf32>
    %617 = arith.negf %616 : vector<1x128xf32>
    %618 = math.exp %617 : vector<1x128xf32>
    %cst_141 = arith.constant 1.000000e+00 : f32
    %619 = vector.broadcast %cst_141 : f32 to vector<1x128xf32>
    %620 = arith.addf %619, %618 : vector<1x128xf32>
    %621 = arith.divf %619, %620 : vector<1x128xf32>
    %622 = vector.extract_strided_slice %498 {offsets = [4, 0], sizes = [1, 128], strides = [1, 1]} : vector<8x128xf32> to vector<1x128xf32>
    %623 = vector.extract_strided_slice %613 {offsets = [0, 128], sizes = [1, 128], strides = [1, 1]} : vector<1x384xf32> to vector<1x128xf32>
    %624 = arith.addf %622, %623 : vector<1x128xf32>
    %625 = arith.negf %624 : vector<1x128xf32>
    %626 = math.exp %625 : vector<1x128xf32>
    %cst_142 = arith.constant 1.000000e+00 : f32
    %627 = vector.broadcast %cst_142 : f32 to vector<1x128xf32>
    %628 = arith.addf %627, %626 : vector<1x128xf32>
    %629 = arith.divf %627, %628 : vector<1x128xf32>
    %630 = vector.extract_strided_slice %499 {offsets = [4, 0], sizes = [1, 128], strides = [1, 1]} : vector<8x128xf32> to vector<1x128xf32>
    %631 = vector.extract_strided_slice %613 {offsets = [0, 256], sizes = [1, 128], strides = [1, 1]} : vector<1x384xf32> to vector<1x128xf32>
    %632 = arith.addf %631, %496 : vector<1x128xf32>
    %633 = arith.mulf %621, %632 : vector<1x128xf32>
    %634 = arith.addf %630, %633 : vector<1x128xf32>
    %635 = math.tanh %634 : vector<1x128xf32>
    %cst_143 = arith.constant 1.000000e+00 : f32
    %636 = vector.broadcast %cst_143 : f32 to vector<1x128xf32>
    %637 = arith.subf %636, %629 : vector<1x128xf32>
    %638 = arith.mulf %637, %635 : vector<1x128xf32>
    %639 = arith.mulf %629, %612 : vector<1x128xf32>
    %640 = arith.addf %638, %639 : vector<1x128xf32>
    %cst_144 = arith.constant dense<0.000000e+00> : vector<1x384xf32>
    %641 = tpu.matmul %640, %495, %cst_144 {dimension_numbers = #tpu.dot_dimension_numbers<[1], [0], [0], [1], [0, 0, 1, 1], [], []>} : vector<1x128xf32>, vector<128x384xf32>, vector<1x384xf32> -> vector<1x384xf32>
    %642 = vector.extract_strided_slice %497 {offsets = [5, 0], sizes = [1, 128], strides = [1, 1]} : vector<8x128xf32> to vector<1x128xf32>
    %643 = vector.extract_strided_slice %641 {offsets = [0, 0], sizes = [1, 128], strides = [1, 1]} : vector<1x384xf32> to vector<1x128xf32>
    %644 = arith.addf %642, %643 : vector<1x128xf32>
    %645 = arith.negf %644 : vector<1x128xf32>
    %646 = math.exp %645 : vector<1x128xf32>
    %cst_145 = arith.constant 1.000000e+00 : f32
    %647 = vector.broadcast %cst_145 : f32 to vector<1x128xf32>
    %648 = arith.addf %647, %646 : vector<1x128xf32>
    %649 = arith.divf %647, %648 : vector<1x128xf32>
    %650 = vector.extract_strided_slice %498 {offsets = [5, 0], sizes = [1, 128], strides = [1, 1]} : vector<8x128xf32> to vector<1x128xf32>
    %651 = vector.extract_strided_slice %641 {offsets = [0, 128], sizes = [1, 128], strides = [1, 1]} : vector<1x384xf32> to vector<1x128xf32>
    %652 = arith.addf %650, %651 : vector<1x128xf32>
    %653 = arith.negf %652 : vector<1x128xf32>
    %654 = math.exp %653 : vector<1x128xf32>
    %cst_146 = arith.constant 1.000000e+00 : f32
    %655 = vector.broadcast %cst_146 : f32 to vector<1x128xf32>
    %656 = arith.addf %655, %654 : vector<1x128xf32>
    %657 = arith.divf %655, %656 : vector<1x128xf32>
    %658 = vector.extract_strided_slice %499 {offsets = [5, 0], sizes = [1, 128], strides = [1, 1]} : vector<8x128xf32> to vector<1x128xf32>
    %659 = vector.extract_strided_slice %641 {offsets = [0, 256], sizes = [1, 128], strides = [1, 1]} : vector<1x384xf32> to vector<1x128xf32>
    %660 = arith.addf %659, %496 : vector<1x128xf32>
    %661 = arith.mulf %649, %660 : vector<1x128xf32>
    %662 = arith.addf %658, %661 : vector<1x128xf32>
    %663 = math.tanh %662 : vector<1x128xf32>
    %cst_147 = arith.constant 1.000000e+00 : f32
    %664 = vector.broadcast %cst_147 : f32 to vector<1x128xf32>
    %665 = arith.subf %664, %657 : vector<1x128xf32>
    %666 = arith.mulf %665, %663 : vector<1x128xf32>
    %667 = arith.mulf %657, %640 : vector<1x128xf32>
    %668 = arith.addf %666, %667 : vector<1x128xf32>
    %cst_148 = arith.constant dense<0.000000e+00> : vector<1x384xf32>
    %669 = tpu.matmul %668, %495, %cst_148 {dimension_numbers = #tpu.dot_dimension_numbers<[1], [0], [0], [1], [0, 0, 1, 1], [], []>} : vector<1x128xf32>, vector<128x384xf32>, vector<1x384xf32> -> vector<1x384xf32>
    %670 = vector.extract_strided_slice %497 {offsets = [6, 0], sizes = [1, 128], strides = [1, 1]} : vector<8x128xf32> to vector<1x128xf32>
    %671 = vector.extract_strided_slice %669 {offsets = [0, 0], sizes = [1, 128], strides = [1, 1]} : vector<1x384xf32> to vector<1x128xf32>
    %672 = arith.addf %670, %671 : vector<1x128xf32>
    %673 = arith.negf %672 : vector<1x128xf32>
    %674 = math.exp %673 : vector<1x128xf32>
    %cst_149 = arith.constant 1.000000e+00 : f32
    %675 = vector.broadcast %cst_149 : f32 to vector<1x128xf32>
    %676 = arith.addf %675, %674 : vector<1x128xf32>
    %677 = arith.divf %675, %676 : vector<1x128xf32>
    %678 = vector.extract_strided_slice %498 {offsets = [6, 0], sizes = [1, 128], strides = [1, 1]} : vector<8x128xf32> to vector<1x128xf32>
    %679 = vector.extract_strided_slice %669 {offsets = [0, 128], sizes = [1, 128], strides = [1, 1]} : vector<1x384xf32> to vector<1x128xf32>
    %680 = arith.addf %678, %679 : vector<1x128xf32>
    %681 = arith.negf %680 : vector<1x128xf32>
    %682 = math.exp %681 : vector<1x128xf32>
    %cst_150 = arith.constant 1.000000e+00 : f32
    %683 = vector.broadcast %cst_150 : f32 to vector<1x128xf32>
    %684 = arith.addf %683, %682 : vector<1x128xf32>
    %685 = arith.divf %683, %684 : vector<1x128xf32>
    %686 = vector.extract_strided_slice %499 {offsets = [6, 0], sizes = [1, 128], strides = [1, 1]} : vector<8x128xf32> to vector<1x128xf32>
    %687 = vector.extract_strided_slice %669 {offsets = [0, 256], sizes = [1, 128], strides = [1, 1]} : vector<1x384xf32> to vector<1x128xf32>
    %688 = arith.addf %687, %496 : vector<1x128xf32>
    %689 = arith.mulf %677, %688 : vector<1x128xf32>
    %690 = arith.addf %686, %689 : vector<1x128xf32>
    %691 = math.tanh %690 : vector<1x128xf32>
    %cst_151 = arith.constant 1.000000e+00 : f32
    %692 = vector.broadcast %cst_151 : f32 to vector<1x128xf32>
    %693 = arith.subf %692, %685 : vector<1x128xf32>
    %694 = arith.mulf %693, %691 : vector<1x128xf32>
    %695 = arith.mulf %685, %668 : vector<1x128xf32>
    %696 = arith.addf %694, %695 : vector<1x128xf32>
    %cst_152 = arith.constant dense<0.000000e+00> : vector<1x384xf32>
    %697 = tpu.matmul %696, %495, %cst_152 {dimension_numbers = #tpu.dot_dimension_numbers<[1], [0], [0], [1], [0, 0, 1, 1], [], []>} : vector<1x128xf32>, vector<128x384xf32>, vector<1x384xf32> -> vector<1x384xf32>
    %698 = vector.extract_strided_slice %497 {offsets = [7, 0], sizes = [1, 128], strides = [1, 1]} : vector<8x128xf32> to vector<1x128xf32>
    %699 = vector.extract_strided_slice %697 {offsets = [0, 0], sizes = [1, 128], strides = [1, 1]} : vector<1x384xf32> to vector<1x128xf32>
    %700 = arith.addf %698, %699 : vector<1x128xf32>
    %701 = arith.negf %700 : vector<1x128xf32>
    %702 = math.exp %701 : vector<1x128xf32>
    %cst_153 = arith.constant 1.000000e+00 : f32
    %703 = vector.broadcast %cst_153 : f32 to vector<1x128xf32>
    %704 = arith.addf %703, %702 : vector<1x128xf32>
    %705 = arith.divf %703, %704 : vector<1x128xf32>
    %706 = vector.extract_strided_slice %498 {offsets = [7, 0], sizes = [1, 128], strides = [1, 1]} : vector<8x128xf32> to vector<1x128xf32>
    %707 = vector.extract_strided_slice %697 {offsets = [0, 128], sizes = [1, 128], strides = [1, 1]} : vector<1x384xf32> to vector<1x128xf32>
    %708 = arith.addf %706, %707 : vector<1x128xf32>
    %709 = arith.negf %708 : vector<1x128xf32>
    %710 = math.exp %709 : vector<1x128xf32>
    %cst_154 = arith.constant 1.000000e+00 : f32
    %711 = vector.broadcast %cst_154 : f32 to vector<1x128xf32>
    %712 = arith.addf %711, %710 : vector<1x128xf32>
    %713 = arith.divf %711, %712 : vector<1x128xf32>
    %714 = vector.extract_strided_slice %499 {offsets = [7, 0], sizes = [1, 128], strides = [1, 1]} : vector<8x128xf32> to vector<1x128xf32>
    %715 = vector.extract_strided_slice %697 {offsets = [0, 256], sizes = [1, 128], strides = [1, 1]} : vector<1x384xf32> to vector<1x128xf32>
    %716 = arith.addf %715, %496 : vector<1x128xf32>
    %717 = arith.mulf %705, %716 : vector<1x128xf32>
    %718 = arith.addf %714, %717 : vector<1x128xf32>
    %719 = math.tanh %718 : vector<1x128xf32>
    %cst_155 = arith.constant 1.000000e+00 : f32
    %720 = vector.broadcast %cst_155 : f32 to vector<1x128xf32>
    %721 = arith.subf %720, %713 : vector<1x128xf32>
    %722 = arith.mulf %721, %719 : vector<1x128xf32>
    %723 = arith.mulf %713, %696 : vector<1x128xf32>
    %724 = arith.addf %722, %723 : vector<1x128xf32>
    %c0_156 = arith.constant 0 : index
    %c0_157 = arith.constant 0 : index
    %725 = vector.load %arg14[%c0_156, %c0_157] : memref<128x128xf32, #tpu.memory_space<vmem>>, vector<128x128xf32>
    %cst_158 = arith.constant dense<0.000000e+00> : vector<1x128xf32>
    %726 = tpu.matmul %724, %725, %cst_158 {dimension_numbers = #tpu.dot_dimension_numbers<[1], [0], [0], [1], [0, 0, 1, 1], [], []>} : vector<1x128xf32>, vector<128x128xf32>, vector<1x128xf32> -> vector<1x128xf32>
    %c0_159 = arith.constant 0 : index
    %c0_160 = arith.constant 0 : index
    %727 = vector.load %arg15[%c0_159, %c0_160] : memref<1x128xf32, #tpu.memory_space<vmem>>, vector<1x128xf32>
    %728 = arith.addf %726, %727 : vector<1x128xf32>
    %c0_161 = arith.constant 0 : index
    %c0_162 = arith.constant 0 : index
    %c0_163 = arith.constant 0 : index
    %729 = vector.load %arg16[%c0_161, %c0_162, %c0_163] : memref<1x1x128xf32, #tpu.memory_space<vmem>>, vector<1x1x128xf32>
    %730 = vector.shape_cast %729 : vector<1x1x128xf32> to vector<1x128xf32>
    %731 = vector.shape_cast %728 : vector<1x128xf32> to vector<1x1x128xf32>
    tpu.vector_store %arg16[%c0_161, %c0_162, %c0_163], %731 {strides = array<i32>} : memref<1x1x128xf32, #tpu.memory_space<vmem>>, vector<1x1x128xf32>,
    return
  }
  func.func @transform_0(%arg0: i32) -> (i32, i32, i32) {
    %c0_i32 = arith.constant 0 : i32
    %c0_i32_0 = arith.constant 0 : i32
    %c0_i32_1 = arith.constant 0 : i32
    return %arg0, %c0_i32, %c0_i32_0 : i32, i32, i32
  }
  func.func @transform_1(%arg0: i32) -> (i32, i32) {
    %c0_i32 = arith.constant 0 : i32
    %c0_i32_0 = arith.constant 0 : i32
    %c0_i32_1 = arith.constant 0 : i32
    return %c0_i32, %c0_i32_0 : i32, i32
  }
  func.func @transform_2(%arg0: i32) -> (i32, i32) {
    %c0_i32 = arith.constant 0 : i32
    %c0_i32_0 = arith.constant 0 : i32
    %c0_i32_1 = arith.constant 0 : i32
    return %c0_i32, %c0_i32_0 : i32, i32
  }
  func.func @transform_3(%arg0: i32) -> (i32, i32) {
    %c0_i32 = arith.constant 0 : i32
    %c0_i32_0 = arith.constant 0 : i32
    %c0_i32_1 = arith.constant 0 : i32
    return %c0_i32, %c0_i32_0 : i32, i32
  }
  func.func @transform_4(%arg0: i32) -> (i32, i32) {
    %c0_i32 = arith.constant 0 : i32
    %c0_i32_0 = arith.constant 0 : i32
    %c0_i32_1 = arith.constant 0 : i32
    return %c0_i32, %c0_i32_0 : i32, i32
  }
  func.func @transform_5(%arg0: i32) -> (i32, i32) {
    %c0_i32 = arith.constant 0 : i32
    %c0_i32_0 = arith.constant 0 : i32
    %c0_i32_1 = arith.constant 0 : i32
    return %c0_i32, %c0_i32_0 : i32, i32
  }
  func.func @transform_6(%arg0: i32) -> (i32, i32) {
    %c0_i32 = arith.constant 0 : i32
    %c0_i32_0 = arith.constant 0 : i32
    %c0_i32_1 = arith.constant 0 : i32
    return %c0_i32, %c0_i32_0 : i32, i32
  }
  func.func @transform_7(%arg0: i32) -> (i32, i32) {
    %c0_i32 = arith.constant 0 : i32
    %c0_i32_0 = arith.constant 0 : i32
    %c0_i32_1 = arith.constant 0 : i32
    return %c0_i32, %c0_i32_0 : i32, i32
  }
  func.func @transform_8(%arg0: i32) -> (i32, i32) {
    %c0_i32 = arith.constant 0 : i32
    %c0_i32_0 = arith.constant 0 : i32
    %c0_i32_1 = arith.constant 0 : i32
    return %c0_i32, %c0_i32_0 : i32, i32
  }
  func.func @transform_9(%arg0: i32) -> (i32, i32) {
    %c0_i32 = arith.constant 0 : i32
    %c0_i32_0 = arith.constant 0 : i32
    %c0_i32_1 = arith.constant 0 : i32
    return %c0_i32, %c0_i32_0 : i32, i32
  }
  func.func @transform_10(%arg0: i32) -> (i32, i32) {
    %c0_i32 = arith.constant 0 : i32
    %c0_i32_0 = arith.constant 0 : i32
    %c0_i32_1 = arith.constant 0 : i32
    return %c0_i32, %c0_i32_0 : i32, i32
  }
  func.func @transform_11(%arg0: i32) -> (i32, i32) {
    %c0_i32 = arith.constant 0 : i32
    %c0_i32_0 = arith.constant 0 : i32
    %c0_i32_1 = arith.constant 0 : i32
    return %c0_i32, %c0_i32_0 : i32, i32
  }
  func.func @transform_12(%arg0: i32) -> (i32, i32) {
    %c0_i32 = arith.constant 0 : i32
    %c0_i32_0 = arith.constant 0 : i32
    %c0_i32_1 = arith.constant 0 : i32
    return %c0_i32, %c0_i32_0 : i32, i32
  }
  func.func @transform_13(%arg0: i32) -> (i32, i32) {
    %c0_i32 = arith.constant 0 : i32
    %c0_i32_0 = arith.constant 0 : i32
    %c0_i32_1 = arith.constant 0 : i32
    return %c0_i32, %c0_i32_0 : i32, i32
  }
  func.func @transform_14(%arg0: i32) -> (i32, i32) {
    %c0_i32 = arith.constant 0 : i32
    %c0_i32_0 = arith.constant 0 : i32
    %c0_i32_1 = arith.constant 0 : i32
    return %c0_i32, %c0_i32_0 : i32, i32
  }
  func.func @transform_15(%arg0: i32) -> (i32, i32, i32) {
    %c0_i32 = arith.constant 0 : i32
    %c0_i32_0 = arith.constant 0 : i32
    %c0_i32_1 = arith.constant 0 : i32
    return %arg0, %c0_i32, %c0_i32_0 : i32, i32, i32
  }
}

</mosaic_0001>

<bundles_post_ra>
// kernel: stacked_gru_forward.1
= control target key start
LH: loop header
LB: loop body
LE: loop exit
PB: predicated region body
PF: predicated region fallthrough
CT: control target
= control target key end

     0   :  { %s13092_s0 = inlined_call_operand.hbm [shape: f32[2,8,1024], index: 0, kind: input, shape index: {}]   ;;  %s13093_s1 = inlined_call_operand.hbm [shape: f32[1024,384], index: 1, kind: input, shape index: {}]   ;;  %s13094_s2 = inlined_call_operand.hbm [shape: f32[128,384], index: 2, kind: input, shape index: {}]   ;;  %s13095_s3 = inlined_call_operand.hbm [shape: f32[1,384], index: 3, kind: input, shape index: {}]   ;;  %s13096_s4 = inlined_call_operand.hbm [shape: f32[1,128], index: 4, kind: input, shape index: {}]   ;;  %s13097_s5 = inlined_call_operand.hbm [shape: f32[128,384], index: 5, kind: input, shape index: {}]   ;;  %s13098_s6 = inlined_call_operand.hbm [shape: f32[128,384], index: 6, kind: input, shape index: {}]   ;;  %s13099_s7 = inlined_call_operand.hbm [shape: f32[1,384], index: 7, kind: input, shape index: {}]   ;;  %s13100_s8 = inlined_call_operand.hbm [shape: f32[1,128], index: 8, kind: input, shape index: {}]   ;;  %s13101_s9 = inlined_call_operand.hbm [shape: f32[128,384], index: 9, kind: input, shape index: {}]   ;;  %s13102_s10 = inlined_call_operand.hbm [shape: f32[128,384], index: 10, kind: input, shape index: {}]   ;;  %s13103_s11 = inlined_call_operand.hbm [shape: f32[1,384], index: 11, kind: input, shape index: {}]   ;;  %s13104_s12 = inlined_call_operand.hbm [shape: f32[1,128], index: 12, kind: input, shape index: {}]   ;;  %s13105_s13 = inlined_call_operand.hbm [shape: f32[128,128], index: 13, kind: input, shape index: {}]   ;;  %s13106_s14 = inlined_call_operand.hbm [shape: f32[1,128], index: 14, kind: input, shape index: {}]   ;;  %s13107_s15 = inlined_call_operand.hbm [shape: f32[2,1,128], index: 15, kind: output, shape index: {}]  }
   0x1   :  { %13123 = sst [smem:[#allocation43_spill]] %s13092_s0 }
   0x2   :  { %13124 = sst [smem:[#allocation44_spill]] %s13093_s1 }
   0x3   :  { %13125 = sst [smem:[#allocation45_spill]] %s13094_s2 }
   0x4   :  { %13126 = sst [smem:[#allocation46_spill]] %s13095_s3 }
   0x5   :  { %13127 = sst [smem:[#allocation47_spill]] %s13107_s15 }
   0x6   :  { %20 = vsyncpa [#allocation5], 0 }
   0x7   :  { %22 = vsyncpa [#allocation5 + $0x1], 0 }
   0x8   :  { %23 = vsyncpa [#allocation8], 0 }
   0x9   :  { %24 = vsyncpa [#allocation11], 0 }
   0xa   :  { %25 = vsyncpa [#allocation14], 0 }
   0xb   :  { %26 = vsyncpa [#allocation17], 0 }
   0xc   :  { %27 = vsyncpa [#allocation20], 0 }
   0xd   :  { %28 = vsyncpa [#allocation23], 0 }
   0xe   :  { %29 = vsyncpa [#allocation26], 0 }
   0xf   :  { %30 = vsyncpa [#allocation6], 0 }
  0x10   :  { %32 = vsyncpa [#allocation6 + $0x1], 0  ;;  %s11313_s18 = smov 0   ;;  %s11315_s19 = smov 0  }
  0x11   :  { %s11317_s20 = smov 0   ;;  %s11319_s21 = smov 0  }
  0x12 LB: > { %13128 = sst [smem:[#allocation38_spill]] %s11196_s18  ;;  %s11210_s22 = smov [#allocation7]   ;;  %s11208_s21 = sphi %s11319_s21, %s13179_s21   ;;  %s11204_s20 = sphi %s11317_s20, %s13178_s20   ;;  %s11200_s19 = sphi %s11315_s19, %s13177_s19   ;;  %s11196_s18 = sphi %s11313_s18, %s13176_s18  }
  0x13   : > { %13129 = sst [smem:[#allocation39_spill]] %s11200_s19  ;;  %s401_s23 = sshll.u32 %s11210_s22, 4  ;;  %s11339_s23 = int_to_ptr.vmem [resolvable:$true] %s401_s23 }
  0x14   : > { %13130 = sst [smem:[#allocation40_spill]] %s11204_s20  ;;  %s11334_s24 = sadd.s32 4294967295, %s11208_s21  }
  0x15   : > { %13131 = sst [smem:[#allocation41_spill]] %s11334_s24  ;;  %p6753_p0 = scmp.ge.s32.totalorder %s11208_s21, 1 }
  0x16   : > { %p13116_p1 = scmp.eq.s32.totalorder %s11334_s24, 0  ;;  %p389_p2 = scmp.lt.s32.totalorder %s11208_s21, 3 }
  0x17   : > { %s11211_s26 = smov [#allocation10]   ;;  %s11212_s29 = smov [#allocation13]  }
  0x18   : > { %p11341_p3 = pnand %p6753_p0, %p389_p2  ;;  %s428_s27 = sshll.u32 %s11211_s26, 4  ;;  %s11354_s27 = int_to_ptr.vmem [resolvable:$true] %s428_s27 }
  0x19   : > { %s449_s30 = sshll.u32 %s11212_s29, 4  ;;  %s13135_s1 = sld [smem:[#allocation44_spill]]  ;;  %s11356_s30 = int_to_ptr.vmem [resolvable:$true] %s449_s30 }
  0x1a   : > { %s13132_s25 = scalar_select %p11341_p3, 1, 0 }
  0x1b   : > { %p10316_p5 = pneg %p11341_p3 }
  0x1c   : > { %13133 = sst [smem:[#allocation42_spill]] %s13132_s25 }
  0x1d   : > { %p11350_p6 = pnand %p10316_p5, %p13116_p1 }
  0x1f   : > { %s10692_s22 = scalar_lea.hbm %s13135_s1, 49152  ;;  %p11366_p8 = pneg %p11350_p6 }
  0x20   : > { %p10693_p7 = scmp.ne.s32.totalorder %s13135_s1, %s10692_s22  ;;  %p10699_p11 = scmp.lt.u32.totalorder %s10692_s22, %s13135_s1 }
  0x22   : > { %p10695_p9 = pnand %p11366_p8, %p10693_p7 }
  0x24   : > { %p10696_p10 = pneg %p10695_p9 }
  0x26   : > { %p10701_p12 = pnand %p10699_p11, %p10696_p10 }
  0x28   : > { %10704 = shalt.err (!%p10701_p12)
}
  0x29   : > { %s10705_s15 = scalar_lea.vmem %s11339_s23, 49152  ;;  %p10713_p5 = scmp.lt.s32.totalorder %s11339_s23, %s11339_s23 }
  0x2a   : > { %p10706_p13 = scmp.ne.s32.totalorder %s11339_s23, %s10705_s15  ;;  %p10714_p4 = scmp.lt.s32.totalorder %s10705_s15, %s10705_s15 }
  0x2c   : > { %p10708_p0 = pnand %p10706_p13, %p11366_p8  ;;  %p10715_p7 = por %p10714_p4, %p10713_p5 }
  0x2e   : > { %p10709_p2 = pneg %p10708_p0 }
  0x30   : > { %p10716_p9 = pnand %p10715_p7, %p10709_p2 }
  0x32   : > { %10719 = shalt.err (!%p10716_p9)
}
  0x33   : > { %s13118_s25 = smov 384   ;;  %s13120_s0 = smov 24  }
  0x34   : > { %10319 = dma.hbm_to_vmem [thread:$0]  (!%p11350_p6), %s13135_s1, 49152, %s11339_s23, [#allocation8], %s13118_s25, %s13118_s25, %s13120_s0  }
  0x35   : > { %s13137_s3 = sld [smem:[#allocation46_spill]] }
  0x3b   : > { %s10720_s15 = scalar_lea.hbm %s13137_s3, 48 }
  0x3c   : > { %p10721_p4 = scmp.ne.s32.totalorder %s13137_s3, %s10720_s15  ;;  %p10727_p12 = scmp.lt.u32.totalorder %s10720_s15, %s13137_s3 }
  0x3e   : > { %p10723_p10 = pnand %p10721_p4, %p11366_p8 }
  0x40   : > { %p10724_p11 = pneg %p10723_p10 }
  0x42   : > { %p10729_p13 = pnand %p10727_p12, %p10724_p11 }
  0x44   : > { %10732 = shalt.err (!%p10729_p13)
}
  0x45   : > { %s10733_s23 = scalar_lea.vmem %s11354_s27, 48  ;;  %s10740_s18 = scalar_lea.vmem %s11354_s27, 64 }
  0x46   : > { %p10734_p0 = scmp.ne.s32.totalorder %s11354_s27, %s10733_s23  ;;  %p10741_p7 = scmp.lt.s32.totalorder %s11354_s27, %s11354_s27 }
  0x47   : > { %p10742_p9 = scmp.lt.s32.totalorder %s10740_s18, %s10733_s23 }
  0x48   : > { %p10736_p2 = pnand %p10734_p0, %p11366_p8 }
  0x49   : > { %p10743_p4 = por %p10742_p9, %p10741_p7 }
  0x4a   : > { %p10737_p5 = pneg %p10736_p2 }
  0x4c   : > { %p10744_p10 = pnand %p10743_p4, %p10737_p5 }
  0x4e   : > { %10747 = shalt.err (!%p10744_p10)
}
  0x4f   : > { %10325 = dma.hbm_to_vmem [thread:$0]  (!%p11350_p6), %s13137_s3, 48, %s11354_s27, [#allocation11]  }
  0x50   : > { %s10748_s17 = scalar_lea.hbm %s13097_s5, 6144 }
  0x51   : > { %p10749_p11 = scmp.ne.s32.totalorder %s13097_s5, %s10748_s17  ;;  %p10755_p0 = scmp.lt.u32.totalorder %s10748_s17, %s13097_s5 }
  0x53   : > { %p10751_p12 = pnand %p10749_p11, %p11366_p8 }
  0x55   : > { %p10752_p13 = pneg %p10751_p12 }
  0x57   : > { %p10757_p2 = pnand %p10755_p0, %p10752_p13 }
  0x59   : > { %10760 = shalt.err (!%p10757_p2)
}
  0x5a   : > { %s10761_s27 = scalar_lea.vmem %s11356_s30, 6144  ;;  %p10769_p4 = scmp.lt.s32.totalorder %s11356_s30, %s11356_s30 }
  0x5b   : > { %p10762_p5 = scmp.ne.s32.totalorder %s11356_s30, %s10761_s27  ;;  %p10770_p10 = scmp.lt.s32.totalorder %s10761_s27, %s10761_s27 }
  0x5d   : > { %p10764_p7 = pnand %p10762_p5, %p11366_p8  ;;  %p10771_p11 = por %p10770_p10, %p10769_p4 }
  0x5f   : > { %p10765_p9 = pneg %p10764_p7 }
  0x61   : > { %p10772_p12 = pnand %p10771_p11, %p10765_p9 }
  0x63   : > { %10775 = shalt.err (!%p10772_p12)
}
  0x64   : > { %10331 = dma.hbm_to_vmem [thread:$0]  (!%p11350_p6), %s13097_s5, 6144, %s11356_s30, [#allocation14], %s13118_s25, %s13118_s25, %s13120_s0  }
  0x65   : > { %s11215_s20 = smov [#allocation16]   ;;  %s11216_s16 = smov [#allocation19]  }
  0x66   : > { %s476_s24 = sshll.u32 %s11215_s20, 4  ;;  %s497_s17 = sshll.u32 %s11216_s16, 4  ;;  %s477_s24 = int_to_ptr.vmem [resolvable:$true] %s476_s24  ;;  %s498_s17 = int_to_ptr.vmem [resolvable:$true] %s497_s17 }
  0x67   : > { %s10776_s15 = scalar_lea.hbm %s13099_s7, 48 }
  0x68   : > { %p10777_p13 = scmp.ne.s32.totalorder %s13099_s7, %s10776_s15  ;;  %p10783_p5 = scmp.lt.u32.totalorder %s10776_s15, %s13099_s7 }
  0x6a   : > { %p10779_p0 = pnand %p10777_p13, %p11366_p8 }
  0x6c   : > { %p10780_p2 = pneg %p10779_p0 }
  0x6e   : > { %p10785_p7 = pnand %p10783_p5, %p10780_p2 }
  0x70   : > { %10788 = shalt.err (!%p10785_p7)
}
  0x71   : > { %s10789_s30 = scalar_lea.vmem %s477_s24, 48  ;;  %s10796_s19 = scalar_lea.vmem %s477_s24, 64 }
  0x72   : > { %p10790_p9 = scmp.ne.s32.totalorder %s477_s24, %s10789_s30  ;;  %p10797_p11 = scmp.lt.s32.totalorder %s477_s24, %s477_s24 }
  0x73   : > { %p10798_p12 = scmp.lt.s32.totalorder %s10796_s19, %s10789_s30 }
  0x74   : > { %p10792_p4 = pnand %p10790_p9, %p11366_p8 }
  0x75   : > { %p10799_p1 = por %p10798_p12, %p10797_p11 }
  0x76   : > { %p10793_p10 = pneg %p10792_p4 }
  0x78   : > { %p10800_p3 = pnand %p10799_p1, %p10793_p10 }
  0x7a   : > { %10803 = shalt.err (!%p10800_p3)
}
  0x7b   : > { %10337 = dma.hbm_to_vmem [thread:$0]  (!%p11350_p6), %s13099_s7, 48, %s477_s24, [#allocation17]  }
  0x7c   : > { %s10804_s29 = scalar_lea.hbm %s13101_s9, 6144 }
  0x7d   : > { %p10805_p13 = scmp.ne.s32.totalorder %s13101_s9, %s10804_s29  ;;  %p10811_p3 = scmp.lt.u32.totalorder %s10804_s29, %s13101_s9 }
  0x7f   : > { %p10807_p0 = pnand %p10805_p13, %p11366_p8 }
  0x81   : > { %p10808_p1 = pneg %p10807_p0 }
  0x83   : > { %p10813_p2 = pnand %p10811_p3, %p10808_p1 }
  0x85   : > { %10816 = shalt.err (!%p10813_p2)
}
  0x86   : > { %s10817_s30 = scalar_lea.vmem %s498_s17, 6144  ;;  %p10825_p4 = scmp.lt.s32.totalorder %s498_s17, %s498_s17 }
  0x87   : > { %p10818_p5 = scmp.ne.s32.totalorder %s498_s17, %s10817_s30  ;;  %p10826_p10 = scmp.lt.s32.totalorder %s10817_s30, %s10817_s30 }
  0x89   : > { %p10820_p7 = pnand %p10818_p5, %p11366_p8  ;;  %p10827_p11 = por %p10826_p10, %p10825_p4 }
  0x8b   : > { %p10821_p9 = pneg %p10820_p7 }
  0x8d   : > { %p10828_p12 = pnand %p10827_p11, %p10821_p9 }
  0x8f   : > { %10831 = shalt.err (!%p10828_p12)
}
  0x90   : > { %10343 = dma.hbm_to_vmem [thread:$0]  (!%p11350_p6), %s13101_s9, 6144, %s498_s17, [#allocation20], %s13118_s25, %s13118_s25, %s13120_s0  }
  0x91   : > { %s11217_s20 = smov [#allocation22]   ;;  %s11218_s1 = smov [#allocation25]  }
  0x92   : > { %s524_s16 = sshll.u32 %s11217_s20, 4  ;;  %s545_s22 = sshll.u32 %s11218_s1, 4  ;;  %s525_s16 = int_to_ptr.vmem [resolvable:$true] %s524_s16  ;;  %s546_s22 = int_to_ptr.vmem [resolvable:$true] %s545_s22 }
  0x93   : > { %s10832_s23 = scalar_lea.hbm %s13103_s11, 48 }
  0x94   : > { %p10833_p13 = scmp.ne.s32.totalorder %s13103_s11, %s10832_s23  ;;  %p10839_p3 = scmp.lt.u32.totalorder %s10832_s23, %s13103_s11 }
  0x96   : > { %p10835_p0 = pnand %p10833_p13, %p11366_p8 }
  0x98   : > { %p10836_p1 = pneg %p10835_p0 }
  0x9a   : > { %p10841_p2 = pnand %p10839_p3, %p10836_p1 }
  0x9c   : > { %10844 = shalt.err (!%p10841_p2)
}
  0x9d   : > { %s10845_s17 = scalar_lea.vmem %s525_s16, 48  ;;  %s10852_s19 = scalar_lea.vmem %s525_s16, 64 }
  0x9e   : > { %p10846_p5 = scmp.ne.s32.totalorder %s525_s16, %s10845_s17  ;;  %p10853_p4 = scmp.lt.s32.totalorder %s525_s16, %s525_s16 }
  0x9f   : > { %p10854_p10 = scmp.lt.s32.totalorder %s10852_s19, %s10845_s17 }
  0xa0   : > { %p10848_p7 = pnand %p10846_p5, %p11366_p8 }
  0xa1   : > { %p10855_p11 = por %p10854_p10, %p10853_p4 }
  0xa2   : > { %p10849_p9 = pneg %p10848_p7 }
  0xa4   : > { %p10856_p12 = pnand %p10855_p11, %p10849_p9 }
  0xa6   : > { %10859 = shalt.err (!%p10856_p12)
}
  0xa7   : > { %10349 = dma.hbm_to_vmem [thread:$0]  (!%p11350_p6), %s13103_s11, 48, %s525_s16, [#allocation23]  }
  0xa8   : > { %s10860_s23 = scalar_lea.hbm %s13105_s13, 2048 }
  0xa9   : > { %p10861_p13 = scmp.ne.s32.totalorder %s13105_s13, %s10860_s23  ;;  %p10867_p3 = scmp.lt.u32.totalorder %s10860_s23, %s13105_s13 }
  0xab   : > { %p10863_p0 = pnand %p10861_p13, %p11366_p8 }
  0xad   : > { %p10864_p1 = pneg %p10863_p0 }
  0xaf   : > { %p10869_p2 = pnand %p10867_p3, %p10864_p1 }
  0xb1   : > { %10872 = shalt.err (!%p10869_p2)
}
  0xb2   : > { %s10873_s17 = scalar_lea.vmem %s546_s22, 2048  ;;  %p10881_p4 = scmp.lt.s32.totalorder %s546_s22, %s546_s22 }
  0xb3   : > { %p10874_p5 = scmp.ne.s32.totalorder %s546_s22, %s10873_s17  ;;  %p10882_p10 = scmp.lt.s32.totalorder %s10873_s17, %s10873_s17 }
  0xb5   : > { %p10876_p7 = pnand %p10874_p5, %p11366_p8  ;;  %p10883_p11 = por %p10882_p10, %p10881_p4 }
  0xb7   : > { %p10877_p9 = pneg %p10876_p7 }
  0xb9   : > { %p10884_p12 = pnand %p10883_p11, %p10877_p9 }
  0xbb   : > { %10887 = shalt.err (!%p10884_p12)
}
  0xbc   : > { %s11219_s16 = smov 128   ;;  %s11220_s19 = smov 8  }
  0xbd   : > { %10355 = dma.hbm_to_vmem [thread:$0]  (!%p11350_p6), %s13105_s13, 2048, %s546_s22, [#allocation26], %s11219_s16, %s11219_s16, %s11220_s19  }
  0xbe   : > { %s11221_s29 = smov [#allocation9]   ;;  %s11222_s23 = smov [#allocation12]  }
  0xbf   : > { %s414_s15 = sshll.u32 %s11221_s29, 4  ;;  %s439_s27 = sshll.u32 %s11222_s23, 4  ;;  %s415_s15 = int_to_ptr.vmem [resolvable:$true] %s414_s15  ;;  %s440_s27 = int_to_ptr.vmem [resolvable:$true] %s439_s27 }
  0xc0   : > { %s13138_s2 = sld [smem:[#allocation45_spill]] }
  0xc6   : > { %s10888_s24 = scalar_lea.hbm %s13138_s2, 6144 }
  0xc7   : > { %p10889_p13 = scmp.ne.s32.totalorder %s13138_s2, %s10888_s24  ;;  %p10895_p3 = scmp.lt.u32.totalorder %s10888_s24, %s13138_s2 }
  0xc9   : > { %p10891_p0 = pnand %p10889_p13, %p11366_p8 }
  0xcb   : > { %p10892_p1 = pneg %p10891_p0 }
  0xcd   : > { %p10897_p2 = pnand %p10895_p3, %p10892_p1 }
  0xcf   : > { %10900 = shalt.err (!%p10897_p2)
}
  0xd0   : > { %s10901_s22 = scalar_lea.vmem %s415_s15, 6144  ;;  %p10909_p4 = scmp.lt.s32.totalorder %s415_s15, %s415_s15 }
  0xd1   : > { %p10902_p5 = scmp.ne.s32.totalorder %s415_s15, %s10901_s22  ;;  %p10910_p10 = scmp.lt.s32.totalorder %s10901_s22, %s10901_s22 }
  0xd3   : > { %p10904_p7 = pnand %p10902_p5, %p11366_p8  ;;  %p10911_p11 = por %p10910_p10, %p10909_p4 }
  0xd5   : > { %p10905_p9 = pneg %p10904_p7 }
  0xd7   : > { %p10912_p12 = pnand %p10911_p11, %p10905_p9 }
  0xd9   : > { %10915 = shalt.err (!%p10912_p12)
}
  0xda   : > { %s13139_s25 = smov 24   ;;  %s13140_s16 = smov 384  }
  0xdb   : > { %10322 = dma.hbm_to_vmem [thread:$0]  (!%p11350_p6), %s13138_s2, 6144, %s415_s15, [#allocation8], %s13140_s16, %s13140_s16, %s13139_s25  }
  0xdc   : > { %s10916_s1 = scalar_lea.hbm %s13096_s4, 16 }
  0xdd   : > { %p10917_p13 = scmp.ne.s32.totalorder %s13096_s4, %s10916_s1  ;;  %p10923_p3 = scmp.lt.u32.totalorder %s10916_s1, %s13096_s4 }
  0xdf   : > { %p10919_p0 = pnand %p10917_p13, %p11366_p8 }
  0xe1   : > { %p10920_p1 = pneg %p10919_p0 }
  0xe3   : > { %p10925_p2 = pnand %p10923_p3, %p10920_p1 }
  0xe5   : > { %10928 = shalt.err (!%p10925_p2)
}
  0xe6   : > { %s10929_s24 = scalar_lea.vmem %s440_s27, 16  ;;  %s10936_s15 = scalar_lea.vmem %s440_s27, 32 }
  0xe7   : > { %p10930_p5 = scmp.ne.s32.totalorder %s440_s27, %s10929_s24  ;;  %p10937_p4 = scmp.lt.s32.totalorder %s440_s27, %s440_s27 }
  0xe8   : > { %p10938_p10 = scmp.lt.s32.totalorder %s10936_s15, %s10929_s24 }
  0xe9   : > { %p10932_p7 = pnand %p10930_p5, %p11366_p8 }
  0xea   : > { %p10939_p11 = por %p10938_p10, %p10937_p4 }
  0xeb   : > { %p10933_p9 = pneg %p10932_p7 }
  0xed   : > { %p10940_p12 = pnand %p10939_p11, %p10933_p9 }
  0xef   : > { %10943 = shalt.err (!%p10940_p12)
}
  0xf0   : > { %10328 = dma.hbm_to_vmem [thread:$0]  (!%p11350_p6), %s13096_s4, 16, %s440_s27, [#allocation11]  }
  0xf1   : > { %s11223_s3 = smov [#allocation15]   ;;  %s11224_s19 = smov [#allocation18]  }
  0xf2   : > { %s462_s0 = sshll.u32 %s11223_s3, 4  ;;  %s487_s20 = sshll.u32 %s11224_s19, 4  ;;  %s463_s0 = int_to_ptr.vmem [resolvable:$true] %s462_s0  ;;  %s488_s20 = int_to_ptr.vmem [resolvable:$true] %s487_s20 }
  0xf3   : > { %s10944_s23 = scalar_lea.hbm %s13098_s6, 6144 }
  0xf4   : > { %p10945_p13 = scmp.ne.s32.totalorder %s13098_s6, %s10944_s23  ;;  %p10951_p3 = scmp.lt.u32.totalorder %s10944_s23, %s13098_s6 }
  0xf6   : > { %p10947_p0 = pnand %p10945_p13, %p11366_p8 }
  0xf8   : > { %p10948_p1 = pneg %p10947_p0 }
  0xfa   : > { %p10953_p2 = pnand %p10951_p3, %p10948_p1 }
  0xfc   : > { %10956 = shalt.err (!%p10953_p2)
}
  0xfd   : > { %s10957_s27 = scalar_lea.vmem %s463_s0, 6144  ;;  %p10965_p4 = scmp.lt.s32.totalorder %s463_s0, %s463_s0 }
  0xfe   : > { %p10958_p5 = scmp.ne.s32.totalorder %s463_s0, %s10957_s27  ;;  %p10966_p10 = scmp.lt.s32.totalorder %s10957_s27, %s10957_s27 }
 0x100   : > { %p10960_p7 = pnand %p10958_p5, %p11366_p8  ;;  %p10967_p11 = por %p10966_p10, %p10965_p4 }
 0x102   : > { %p10961_p9 = pneg %p10960_p7 }
 0x104   : > { %p10968_p12 = pnand %p10967_p11, %p10961_p9 }
 0x106   : > { %10971 = shalt.err (!%p10968_p12)
}
 0x107   : > { %10334 = dma.hbm_to_vmem [thread:$0]  (!%p11350_p6), %s13098_s6, 6144, %s463_s0, [#allocation14], %s13140_s16, %s13140_s16, %s13139_s25  }
 0x108   : > { %s10972_s1 = scalar_lea.hbm %s13100_s8, 16 }
 0x109   : > { %p10973_p13 = scmp.ne.s32.totalorder %s13100_s8, %s10972_s1  ;;  %p10979_p3 = scmp.lt.u32.totalorder %s10972_s1, %s13100_s8 }
 0x10b   : > { %p10975_p0 = pnand %p10973_p13, %p11366_p8 }
 0x10d   : > { %p10976_p1 = pneg %p10975_p0 }
 0x10f   : > { %p10981_p2 = pnand %p10979_p3, %p10976_p1 }
 0x111   : > { %10984 = shalt.err (!%p10981_p2)
}
 0x112   : > { %s10985_s24 = scalar_lea.vmem %s488_s20, 16  ;;  %s10992_s0 = scalar_lea.vmem %s488_s20, 32 }
 0x113   : > { %p10986_p5 = scmp.ne.s32.totalorder %s488_s20, %s10985_s24  ;;  %p10993_p4 = scmp.lt.s32.totalorder %s488_s20, %s488_s20 }
 0x114   : > { %p10994_p10 = scmp.lt.s32.totalorder %s10992_s0, %s10985_s24 }
 0x115   : > { %p10988_p7 = pnand %p10986_p5, %p11366_p8 }
 0x116   : > { %p10995_p11 = por %p10994_p10, %p10993_p4 }
 0x117   : > { %p10989_p9 = pneg %p10988_p7 }
 0x119   : > { %p10996_p12 = pnand %p10995_p11, %p10989_p9 }
 0x11b   : > { %10999 = shalt.err (!%p10996_p12)
}
 0x11c   : > { %10340 = dma.hbm_to_vmem [thread:$0]  (!%p11350_p6), %s13100_s8, 16, %s488_s20, [#allocation17]  }
 0x11d   : > { %s11225_s17 = smov [#allocation21]   ;;  %s11226_s3 = smov [#allocation24]  }
 0x11e   : > { %s510_s22 = sshll.u32 %s11225_s17, 4  ;;  %s535_s19 = sshll.u32 %s11226_s3, 4  ;;  %s511_s22 = int_to_ptr.vmem [resolvable:$true] %s510_s22  ;;  %s536_s19 = int_to_ptr.vmem [resolvable:$true] %s535_s19 }
 0x11f   : > { %s11000_s23 = scalar_lea.hbm %s13102_s10, 6144 }
 0x120   : > { %p11001_p13 = scmp.ne.s32.totalorder %s13102_s10, %s11000_s23  ;;  %p11007_p3 = scmp.lt.u32.totalorder %s11000_s23, %s13102_s10 }
 0x122   : > { %p11003_p0 = pnand %p11001_p13, %p11366_p8 }
 0x124   : > { %p11004_p1 = pneg %p11003_p0 }
 0x126   : > { %p11009_p2 = pnand %p11007_p3, %p11004_p1 }
 0x128   : > { %11012 = shalt.err (!%p11009_p2)
}
 0x129   : > { %s11013_s20 = scalar_lea.vmem %s511_s22, 6144  ;;  %p11021_p4 = scmp.lt.s32.totalorder %s511_s22, %s511_s22 }
 0x12a   : > { %p11014_p5 = scmp.ne.s32.totalorder %s511_s22, %s11013_s20  ;;  %p11022_p10 = scmp.lt.s32.totalorder %s11013_s20, %s11013_s20 }
 0x12c   : > { %p11016_p7 = pnand %p11014_p5, %p11366_p8  ;;  %p11023_p11 = por %p11022_p10, %p11021_p4 }
 0x12e   : > { %p11017_p9 = pneg %p11016_p7 }
 0x130   : > { %p11024_p12 = pnand %p11023_p11, %p11017_p9 }
 0x132   : > { %11027 = shalt.err (!%p11024_p12)
}
 0x133   : > { %10346 = dma.hbm_to_vmem [thread:$0]  (!%p11350_p6), %s13102_s10, 6144, %s511_s22, [#allocation20], %s13140_s16, %s13140_s16, %s13139_s25  }
 0x134   : > { %s11028_s1 = scalar_lea.hbm %s13104_s12, 16 }
 0x135   : > { %p11029_p13 = scmp.ne.s32.totalorder %s13104_s12, %s11028_s1  ;;  %p11035_p3 = scmp.lt.u32.totalorder %s11028_s1, %s13104_s12 }
 0x137   : > { %p11031_p0 = pnand %p11029_p13, %p11366_p8 }
 0x139   : > { %p11032_p1 = pneg %p11031_p0 }
 0x13b   : > { %p11037_p2 = pnand %p11035_p3, %p11032_p1 }
 0x13d   : > { %11040 = shalt.err (!%p11037_p2)
}
 0x13e   : > { %s11041_s24 = scalar_lea.vmem %s536_s19, 16  ;;  %s11048_s25 = scalar_lea.vmem %s536_s19, 32 }
 0x13f   : > { %p11042_p5 = scmp.ne.s32.totalorder %s536_s19, %s11041_s24  ;;  %p11049_p4 = scmp.lt.s32.totalorder %s536_s19, %s536_s19 }
 0x140   : > { %p11050_p10 = scmp.lt.s32.totalorder %s11048_s25, %s11041_s24 }
 0x141   : > { %p11044_p7 = pnand %p11042_p5, %p11366_p8 }
 0x142   : > { %p11051_p11 = por %p11050_p10, %p11049_p4 }
 0x143   : > { %p11045_p9 = pneg %p11044_p7 }
 0x145   : > { %p11052_p12 = pnand %p11051_p11, %p11045_p9 }
 0x147   : > { %11055 = shalt.err (!%p11052_p12)
}
 0x148   : > { %10352 = dma.hbm_to_vmem [thread:$0]  (!%p11350_p6), %s13104_s12, 16, %s536_s19, [#allocation23]  }
 0x149   : > { %s11227_s0 = smov [#allocation27]   ;;  %s11056_s17 = scalar_lea.hbm %s13106_s14, 16 }
 0x14a   : > { %s559_s20 = sshll.u32 %s11227_s0, 4  ;;  %p11057_p13 = scmp.ne.s32.totalorder %s13106_s14, %s11056_s17  ;;  %s560_s20 = int_to_ptr.vmem [resolvable:$true] %s559_s20 }
 0x14b   : > { %p11063_p3 = scmp.lt.u32.totalorder %s11056_s17, %s13106_s14 }
 0x14c   : > { %p11059_p0 = pnand %p11057_p13, %p11366_p8 }
 0x14e   : > { %p11060_p1 = pneg %p11059_p0 }
 0x150   : > { %p11065_p2 = pnand %p11063_p3, %p11060_p1 }
 0x152   : > { %11068 = shalt.err (!%p11065_p2)
}
 0x153   : > { %s11069_s19 = scalar_lea.vmem %s560_s20, 16  ;;  %s11076_s18 = scalar_lea.vmem %s560_s20, 32 }
 0x154   : > { %p11070_p5 = scmp.ne.s32.totalorder %s560_s20, %s11069_s19  ;;  %p11077_p4 = scmp.lt.s32.totalorder %s560_s20, %s560_s20 }
 0x155   : > { %p11078_p10 = scmp.lt.s32.totalorder %s11076_s18, %s11069_s19 }
 0x156   : > { %p11072_p7 = pnand %p11070_p5, %p11366_p8 }
 0x157   : > { %p11079_p11 = por %p11078_p10, %p11077_p4 }
 0x158   : > { %p11073_p9 = pneg %p11072_p7 }
 0x15a   : > { %p11080_p12 = pnand %p11079_p11, %p11073_p9 }
 0x15c   : > { %11083 = shalt.err (!%p11080_p12)
}
 0x15d   : > { %s13141_s25 = sld [smem:[#allocation40_spill]]  ;;  %s13142_s16 = sld [smem:[#allocation39_spill]] }
 0x15e   : > { %s13143_s26 = sld [smem:[#allocation38_spill]]  ;;  %s13144_s22 = sld [smem:[#allocation41_spill]] }
 0x15f   : > { %10358 = dma.hbm_to_vmem [thread:$0]  (!%p11350_p6), %s13106_s14, 16, %s560_s20, [#allocation26]  }
 0x160   : > { %s6752_s0 = sadd.s32 4294967294, %s11208_s21   ;;  %s11652_s28 = sadd.s32 1, %s11208_s21  }
 0x161   : > { %s42_s15 = ssub.s32 %s11208_s21, %s11652_s28  ;;  %p53_p0 = scmp.eq.s32.totalorder %s11208_s21, 0 }
 0x162   : > { %p43_p8 = scmp.eq.s32.totalorder %s42_s15, 0  ;;  %p382_p7 = scmp.eq.s32.totalorder %s6752_s0, 1 }
 0x163   : > { %s45_s27 = sadd.s32 1, %s13141_s25  ;;  %p52_p13 = scmp.ne.s32.totalorder %s13141_s25, %s13142_s16 }
 0x164   : > { %p58_p1 = scmp.ne.s32.totalorder %s13142_s16, %s13143_s26  ;;  %p13146_p2 = scmp.eq.s32.totalorder %s13144_s22, 0 }
 0x165   : > { %s11663_s17 = scalar_select %p43_p8, %s13141_s25, %s45_s27  }
 0x166   : > { %p11665_p3 = por %p53_p0, %p52_p13  ;;  %p11671_p6 = por %p13146_p2, %p58_p1 }
 0x167   : > { %p376_p5 = scmp.eq.s32.totalorder %s13144_s22, 1  ;;  %p10381_p9 = scmp.lt.s32.totalorder %s11208_s21, 2 }
 0x168   : > { %s570_s1 = sand.u32 1, %s13141_s25   ;;  %p11682_p10 = por %p382_p7, %p58_p1 }
 0x169   : > { %p11678_p4 = por %p376_p5, %p52_p13  ;;  %s6769_s19 = sshll.u32 %s570_s1, 6 }
 0x16a   : > { %s13149_s23 = scalar_select %p11682_p10, 1, 0 }
 0x16b   : > { %s13148_s29 = scalar_select %p11678_p4, 1, 0 }
 0x16c   : > { %s6839_s18 = sshll.u32 %s11208_s21, 10  ;;  %s13150_s16 = sld [smem:[#allocation43_spill]] }
 0x16d   : > { %s574_s25 = scalar_lea.vmem [#allocation4], %s6769_s19  ;;  %p11696_p11 = pnand %p10381_p9, %p11665_p3 }
 0x16e   : > { %s582_s22 = sshll.u32 %s574_s25, 4  ;;  %s571_s15 = scalar_lea.sflag [#allocation5], %s570_s1  ;;  %s11692_s22 = int_to_ptr.vmem [resolvable:$true] %s582_s22 }
 0x16f   : > { %p11086_p8 = pneg %p11696_p11 }
 0x172   : > { %s11690_s26 = scalar_lea.hbm %s13150_s16, %s6839_s18  ;;  %s11089_s30 = scalar_lea.hbm %s13150_s16, 2048 }
 0x173   : > { %s11084_s27 = scalar_lea.hbm %s11690_s26, 1024  ;;  %p11090_p1 = scmp.lt.u32.totalorder %s11690_s26, %s13150_s16 }
 0x174   : > { %p11085_p12 = scmp.ne.s32.totalorder %s11690_s26, %s11084_s27  ;;  %p11091_p3 = scmp.lt.u32.totalorder %s11089_s30, %s11084_s27 }
 0x175   : > { %p11093_p5 = scmp.lt.u32.totalorder %s11084_s27, %s11690_s26 }
 0x176   : > { %p11087_p13 = pnand %p11086_p8, %p11085_p12  ;;  %p11092_p2 = por %p11091_p3, %p11090_p1 }
 0x178   : > { %p11088_p0 = pneg %p11087_p13  ;;  %p11094_p7 = por %p11093_p5, %p11092_p2 }
 0x17a   : > { %p11095_p9 = pnand %p11094_p7, %p11088_p0 }
 0x17c   : > { %11098 = shalt.err (!%p11095_p9)
}
 0x17d   : > { %s11099_s1 = scalar_lea.vmem %s11692_s22, 1024  ;;  %s11228_s25 = smov [#allocation4]  }
 0x17e   : > { %p11100_p12 = scmp.ne.s32.totalorder %s11692_s22, %s11099_s1  ;;  %s11104_s19 = sshll.u32 %s11228_s25, 4  ;;  %s11105_s19 = int_to_ptr.vmem [resolvable:$false] %s11104_s19 }
 0x17f   : > { %s11106_s18 = scalar_lea.vmem %s11105_s19, 2048  ;;  %p11107_p4 = scmp.lt.s32.totalorder %s11692_s22, %s11105_s19 }
 0x180   : > { %p11102_p13 = pnand %p11100_p12, %p11086_p8  ;;  %p11108_p1 = scmp.lt.s32.totalorder %s11106_s18, %s11099_s1 }
 0x182   : > { %p11103_p10 = pneg %p11102_p13  ;;  %p11109_p3 = por %p11108_p1, %p11107_p4 }
 0x184   : > { %p11110_p2 = pnand %p11109_p3, %p11103_p10 }
 0x186   : > { %11113 = shalt.err (!%p11110_p2)
}
 0x187   : > { %10362 = dma.hbm_to_vmem [thread:$0]  (!%p11696_p11), %s11690_s26, 1024, %s11692_s22, %s571_s15  }
 0x188   : > { %s13152_s27 = sld [smem:[#allocation42_spill]] }
 0x18e   : > { %p13153_p0 = scmp.ne.s32.totalorder %s13152_s27, 0 }
 0x18f   : > { %s13154_s30 = sld [smem:[#allocation39_spill]] (!%p13153_p0) }
 0x190   : > { %591 = sbr.rel (%p13153_p0) target bundleno = 7307 (0x1c8b), region = 80 }
 0x195   : > { %s11728_s3 = sand.u32 (!%p13153_p0), 1, %s13154_s30  }
 0x196   : > { %s6773_s24 = sshll.u32 (!%p13153_p0), %s11728_s3, 6  ;;  %s594_s25 = scalar_lea.sflag (!%p13153_p0), [#allocation5], %s11728_s3 }
 0x197   : > { %s11732_s1 = scalar_lea.vmem [#allocation4], %s6773_s24 }
 0x198   : > { %11159 = dma.done.wait (%p11671_p6), %s594_s25, 1024  }
 0x199   : > { %11161 = vsyncadd (%p11671_p6), %s594_s25, 4294966272  ;;  %s13155_s0 = sld [smem:[#allocation41_spill]] }
 0x19f   : > { %p13156_p4 = scmp.eq.s32.totalorder %s13155_s0, 0 }
 0x1a1   : > { %11163 = dma.done.wait (%p13156_p4), [#allocation8], 55296   ;;  %p13157_p10 = pmov %p13156_p4 }
 0x1a2   : > { %p13158_p11 = pmov %p13156_p4 }
 0x1a3   : > { %11165 = vsyncadd (%p13157_p10), [#allocation8], 4294912000 }
 0x1a4   : > { %11167 = dma.done.wait (%p13158_p11), [#allocation11], 64   ;;  %p13159_p8 = pmov %p13156_p4 }
 0x1a5   : > { %p13160_p5 = pmov %p13156_p4 }
 0x1a6   : > { %11169 = vsyncadd (%p13159_p8), [#allocation11], 4294967232 }
 0x1a7   : > { %11171 = dma.done.wait (%p13160_p5), [#allocation14], 12288   ;;  %p13161_p7 = pmov %p13156_p4 }
 0x1a8   : > { %p13162_p6 = pmov %p13156_p4 }
 0x1a9   : > { %11173 = vsyncadd (%p13161_p7), [#allocation14], 4294955008 }
 0x1aa   : > { %11175 = dma.done.wait (%p13162_p6), [#allocation17], 64   ;;  %p13163_p9 = pmov %p13156_p4 }
 0x1ab   : > { %p13164_p12 = pmov %p13156_p4 }
 0x1ac   : > { %11177 = vsyncadd (%p13163_p9), [#allocation17], 4294967232 }
 0x1ad   : > { %11179 = dma.done.wait (%p13164_p12), [#allocation20], 12288   ;;  %p13165_p13 = pmov %p13156_p4 }
 0x1ae   : > { %p13166_p1 = pmov %p13156_p4 }
 0x1af   : > { %11181 = vsyncadd (%p13165_p13), [#allocation20], 4294955008 }
 0x1b0   : > { %11183 = dma.done.wait (%p13166_p1), [#allocation23], 64   ;;  %p13167_p3 = pmov %p13166_p1 }
 0x1b1   : > { %p13168_p2 = pmov %p13166_p1 }
 0x1b2   : > { %11185 = vsyncadd (%p13167_p3), [#allocation23], 4294967232 }
 0x1b3   : > { %11187 = dma.done.wait (%p13168_p2), [#allocation26], 2064   ;;  %p13169_p0 = pmov %p13166_p1 }
 0x1b4   : > { %v708_v0 = vld [vmem:[#allocation7 + $0x8] sm:$0xff]  ;;  %v711_v1 = vld [vmem:[#allocation7 + $0x20] sm:$0xff]  ;;  %v710_v4 = vld [vmem:[#allocation7 + $0x18] sm:$0xff]  ;;  %vm11231_vm0 = vmmov 0   ;;  %s6836_s20 = sshll.u32 %s13155_s0, 4  ;;  %s698_s26 = scalar_lea.vmem [#allocation28], %s11728_s3 }
 0x1b5   : > { %11189 = vsyncadd (%p13169_p0), [#allocation26], 4294965232  ;;  %v707_v2 = vld [vmem:[#allocation7] sm:$0xff]  ;;  %v8384_v3 = vpack.c.bf16 %v711_v1, %v708_v0  ;;  %v757_v5 = vld [vmem:[#allocation7 + $0x190] sm:$0xff]  ;;  %s6553_s22 = sshll.u32 %s698_s26, 4  ;;  %s13170_s18 = sld [smem:[#allocation47_spill]]  ;;  %s13050_s22 = int_to_ptr.vmem [resolvable:$true] %s6553_s22 }
 0x1b6   : > { %v760_v6 = vld [vmem:[#allocation7 + $0x1a8] sm:$0xff]  ;;  %v8386_v7 = vpack.c.bf16 %v710_v4, %v707_v2  ;;  %v709_v9 = vld [vmem:[#allocation7 + $0x10] sm:$0xff]  ;;  %v714_v11 = vld [vmem:[#allocation7 + $0x38] sm:$0xff]  ;;  %s6541_s24 = scalar_lea.sflag [#allocation6], %s11728_s3  ;;  %s11114_s25 = scalar_lea.vmem %s13050_s22, 16 }
 0x1b7   : > { %v8640_v8 = vpack.c.bf16 %v760_v6, %v757_v5  ;;  %v712_v10 = vld [vmem:[#allocation7 + $0x28] sm:$0xff]  ;;  %8385 = vmatprep.subr.bf16.mxu0 %v8384_v3  ;;  %v717_v13 = vld [vmem:[#allocation7 + $0x50] sm:$0xff]  ;;  %v763_v18 = vld [vmem:[#allocation7 + $0x1c0] sm:$0xff]  ;;  %p11115_p4 = scmp.ne.s32.totalorder %s13050_s22, %s11114_s25  ;;  %p13172_p10 = scmp.ne.s32.totalorder %s13148_s29, 0 }
 0x1b8   : > { %v8642_v12 = vpack.c.bf16 %v712_v10, %v709_v9  ;;  %v713_v14 = vld [vmem:[#allocation7 + $0x30] sm:$0xff]  ;;  %v716_v15 = vld [vmem:[#allocation7 + $0x48] sm:$0xff]  ;;  %8387 = vmatpush1.bf16.msra.mxu0 %v8386_v7  ;;  %v8388_v16 = vpack.c.bf16 %v717_v13, %v714_v11  ;;  %v766_v19 = vld [vmem:[#allocation7 + $0x1d8] sm:$0xff] }
 0x1b9   : > { %8641 = vmatprep.subr.bf16.mxu1 %v8640_v8  ;;  %v8390_v17 = vpack.c.bf16 %v716_v15, %v713_v14  ;;  %v715_v20 = vld [vmem:[#allocation7 + $0x40] sm:$0xff]  ;;  %v8644_v21 = vpack.c.bf16 %v766_v19, %v763_v18  ;;  %v718_v22 = vld [vmem:[#allocation7 + $0x58] sm:$0xff]  ;;  %v720_v23 = vld [vmem:[#allocation7 + $0x68] sm:$0xff]  ;;  %p11116_p11 = pnand %p11115_p4, %p13172_p10 }
 0x1ba   : > { %8643 = vmatpush3.bf16.msra.mxu1 %v8642_v12  ;;  %v723_v24 = vld [vmem:[#allocation7 + $0x80] sm:$0xff]  ;;  %8389 = vmatprep.subr.bf16.mxu0 %v8388_v16  ;;  %v8646_v25 = vpack.c.bf16 %v718_v22, %v715_v20  ;;  %v722_v28 = vld [vmem:[#allocation7 + $0x78] sm:$0xff]  ;;  %v769_v29 = vld [vmem:[#allocation7 + $0x1f0] sm:$0xff] }
 0x1bb   : > { %v8392_v26 = vpack.c.bf16 %v723_v24, %v720_v23  ;;  %v719_v27 = vld [vmem:[#allocation7 + $0x60] sm:$0xff]  ;;  %8645 = vmatprep.subr.bf16.mxu1 %v8644_v21  ;;  %v772_v30 = vld [vmem:[#allocation7 + $0x208] sm:$0xff]  ;;  %v721_v31 = vld [vmem:[#allocation7 + $0x70] sm:$0xff]  ;;  %s13171_s27 = smov %s13170_s18  ;;  %s13048_s30 = scalar_lea.hbm %s13170_s18, %s6836_s20 }
 0x1bc   : > { %v724_v32 = vld [vmem:[#allocation7 + $0x88] sm:$0xff]  ;;  %8391 = vmatpush1.bf16.msra.mxu0 %v8390_v17  ;;  %v8394_v33 = vpack.c.bf16 %v722_v28, %v719_v27  ;;  %v8648_v34 = vpack.c.bf16 %v772_v30, %v769_v29  ;;  %v726_v35 = vld [vmem:[#allocation7 + $0x98] sm:$0xff]  ;;  %v729_v36 = vld [vmem:[#allocation7 + $0xb0] sm:$0xff]  ;;  %p11117_p8 = pneg %p11116_p11 }
 0x1bd   : > { %v725_v37 = vld [vmem:[#allocation7 + $0x90] sm:$0xff]  ;;  %8393 = vmatprep.subr.bf16.mxu0 %v8392_v26  ;;  %v8650_v38 = vpack.c.bf16 %v724_v32, %v721_v31  ;;  %v8396_v39 = vpack.c.bf16 %v729_v36, %v726_v35  ;;  %v728_v40 = vld [vmem:[#allocation7 + $0xa8] sm:$0xff]  ;;  %v775_v41 = vld [vmem:[#allocation7 + $0x220] sm:$0xff] }
 0x1be   : > { %8647 = vmatpush3.bf16.msra.mxu1 %v8646_v25  ;;  %v778_v42 = vld [vmem:[#allocation7 + $0x238] sm:$0xff]  ;;  %v727_v44 = vld [vmem:[#allocation7 + $0xa0] sm:$0xff]  ;;  %v732_v46 = vld [vmem:[#allocation7 + $0xc8] sm:$0xff]  ;;  %v8398_v48 = vpack.c.bf16 %v728_v40, %v725_v37 }
 0x1bf   : > { %8649 = vmatprep.subr.bf16.mxu1 %v8648_v34  ;;  %v8652_v43 = vpack.c.bf16 %v778_v42, %v775_v41  ;;  %v730_v45 = vld [vmem:[#allocation7 + $0xb8] sm:$0xff]  ;;  %v735_v47 = vld [vmem:[#allocation7 + $0xe0] sm:$0xff]  ;;  %v781_v49 = vld [vmem:[#allocation7 + $0x250] sm:$0xff] }
 0x1c0   : > { %8395 = vmatpush1.bf16.msra.mxu0 %v8394_v33  ;;  %v784_v50 = vld [vmem:[#allocation7 + $0x268] sm:$0xff]  ;;  %v8654_v51 = vpack.c.bf16 %v730_v45, %v727_v44  ;;  %v8400_v52 = vpack.c.bf16 %v735_v47, %v732_v46  ;;  %v731_v53 = vld [vmem:[#allocation7 + $0xc0] sm:$0xff]  ;;  %v734_v54 = vld [vmem:[#allocation7 + $0xd8] sm:$0xff] }
 0x1c1   : > { %8397 = vmatprep.subr.bf16.mxu0 %v8396_v39  ;;  %v733_v55 = vld [vmem:[#allocation7 + $0xd0] sm:$0xff]  ;;  %v8656_v56 = vpack.c.bf16 %v784_v50, %v781_v49  ;;  %v736_v57 = vld [vmem:[#allocation7 + $0xe8] sm:$0xff]  ;;  %v738_v58 = vld [vmem:[#allocation7 + $0xf8] sm:$0xff]  ;;  %v8402_v62 = vpack.c.bf16 %v734_v54, %v731_v53 }
 0x1c2   : > { %8651 = vmatpush3.bf16.msra.mxu1 %v8650_v38  ;;  %v741_v59 = vld [vmem:[#allocation7 + $0x110] sm:$0xff]  ;;  %v787_v60 = vld [vmem:[#allocation7 + $0x280] sm:$0xff]  ;;  %v790_v61 = vld [vmem:[#allocation7 + $0x298] sm:$0xff]  ;;  %v8658_v63 = vpack.c.bf16 %v736_v57, %v733_v55 }
 0x1c3   : > { %8653 = vmatprep.subr.bf16.mxu1 %v8652_v43  ;;  %v8404_v0 = vpack.c.bf16 %v741_v59, %v738_v58  ;;  %v737_v1 = vld [vmem:[#allocation7 + $0xf0] sm:$0xff]  ;;  %v740_v2 = vld [vmem:[#allocation7 + $0x108] sm:$0xff]  ;;  %v739_v3 = vld [vmem:[#allocation7 + $0x100] sm:$0xff]  ;;  %v8660_v4 = vpack.c.bf16 %v790_v61, %v787_v60 }
 0x1c4   : > { %8399 = vmatpush1.bf16.msra.mxu0 %v8398_v48  ;;  %v742_v5 = vld [vmem:[#allocation7 + $0x118] sm:$0xff]  ;;  %v744_v6 = vld [vmem:[#allocation7 + $0x128] sm:$0xff]  ;;  %v747_v7 = vld [vmem:[#allocation7 + $0x140] sm:$0xff]  ;;  %v8406_v10 = vpack.c.bf16 %v740_v2, %v737_v1 }
 0x1c5   : > { %8401 = vmatprep.subr.bf16.mxu0 %v8400_v52  ;;  %v793_v8 = vld [vmem:[#allocation7 + $0x2b0] sm:$0xff]  ;;  %v796_v9 = vld [vmem:[#allocation7 + $0x2c8] sm:$0xff]  ;;  %v743_v11 = vld [vmem:[#allocation7 + $0x120] sm:$0xff]  ;;  %v8662_v12 = vpack.c.bf16 %v742_v5, %v739_v3  ;;  %v8408_v13 = vpack.c.bf16 %v747_v7, %v744_v6 }
 0x1c6   : > { %8655 = vmatpush3.bf16.msra.mxu1 %v8654_v51  ;;  %v746_v14 = vld [vmem:[#allocation7 + $0x138] sm:$0xff]  ;;  %v745_v15 = vld [vmem:[#allocation7 + $0x130] sm:$0xff]  ;;  %v748_v16 = vld [vmem:[#allocation7 + $0x148] sm:$0xff]  ;;  %v8664_v17 = vpack.c.bf16 %v796_v9, %v793_v8 }
 0x1c7   : > { %8657 = vmatprep.subr.bf16.mxu1 %v8656_v56  ;;  %v750_v18 = vld [vmem:[#allocation7 + $0x158] sm:$0xff]  ;;  %v753_v19 = vld [vmem:[#allocation7 + $0x170] sm:$0xff]  ;;  %v700_v20 = vld [vmem:[%s11732_s1 + $0x8] sm:$0xff]  ;;  %v8410_v23 = vpack.c.bf16 %v746_v14, %v743_v11  ;;  %v8666_v24 = vpack.c.bf16 %v748_v16, %v745_v15 }
 0x1c8   : > { %8403 = vmatpush1.bf16.msra.mxu0 %v8402_v62  ;;  %v799_v21 = vld [vmem:[#allocation7 + $0x2e0] sm:$0xff]  ;;  %v802_v22 = vld [vmem:[#allocation7 + $0x2f8] sm:$0xff]  ;;  %1456 = vmatprep.mubr.f32.mxu1 %v700_v20  ;;  %v8412_v25 = vpack.c.bf16 %v753_v19, %v750_v18  ;;  %v749_v26 = vld [vmem:[#allocation7 + $0x150] sm:$0xff] }
 0x1c9   : > { %8405 = vmatprep.subr.bf16.mxu0 %v8404_v0  ;;  %1172 = vmatprep.mubr.f32.mxu0 %v700_v20  ;;  %v752_v27 = vld [vmem:[#allocation7 + $0x168] sm:$0xff]  ;;  %v751_v28 = vld [vmem:[#allocation7 + $0x160] sm:$0xff]  ;;  %v8668_v29 = vpack.c.bf16 %v802_v22, %v799_v21  ;;  %v754_v30 = vld [vmem:[#allocation7 + $0x178] sm:$0xff] }
 0x1ca   : > { %8659 = vmatpush3.bf16.msra.mxu1 %v8658_v63  ;;  %v756_v31 = vld [vmem:[#allocation7 + $0x188] sm:$0xff]  ;;  %v759_v32 = vld [vmem:[#allocation7 + $0x1a0] sm:$0xff]  ;;  %v853_v33 = vld [vmem:[#allocation7 + $0x490] sm:$0xff]  ;;  %v8414_v35 = vpack.c.bf16 %v752_v27, %v749_v26  ;;  %v8670_v36 = vpack.c.bf16 %v754_v30, %v751_v28 }
 0x1cb   : > { %8661 = vmatprep.subr.bf16.mxu1 %v8660_v4  ;;  %v856_v34 = vld [vmem:[#allocation7 + $0x4a8] sm:$0xff]  ;;  %v8416_v37 = vpack.c.bf16 %v759_v32, %v756_v31  ;;  %v755_v38 = vld [vmem:[#allocation7 + $0x180] sm:$0xff]  ;;  %v758_v39 = vld [vmem:[#allocation7 + $0x198] sm:$0xff] }
 0x1cc   : > { %8407 = vmatpush1.bf16.msra.mxu0 %v8406_v10  ;;  %v805_v40 = vld [vmem:[#allocation7 + $0x310] sm:$0xff]  ;;  %v8672_v41 = vpack.c.bf16 %v856_v34, %v853_v33  ;;  %v808_v42 = vld [vmem:[#allocation7 + $0x328] sm:$0xff]  ;;  %v762_v43 = vld [vmem:[#allocation7 + $0x1b8] sm:$0xff]  ;;  %v8418_v47 = vpack.c.bf16 %v758_v39, %v755_v38 }
 0x1cd   : > { %8409 = vmatprep.subr.bf16.mxu0 %v8408_v13  ;;  %v765_v44 = vld [vmem:[#allocation7 + $0x1d0] sm:$0xff]  ;;  %v859_v45 = vld [vmem:[#allocation7 + $0x4c0] sm:$0xff]  ;;  %v862_v46 = vld [vmem:[#allocation7 + $0x4d8] sm:$0xff]  ;;  %v8674_v49 = vpack.c.bf16 %v808_v42, %v805_v40 }
 0x1ce   : > { %8663 = vmatpush3.bf16.msra.mxu1 %v8662_v12  ;;  %v11768_v48 = vld [vmem:[%s11732_s1] sm:$0xff]  ;;  %v8420_v50 = vpack.c.bf16 %v765_v44, %v762_v43  ;;  %v761_v51 = vld [vmem:[#allocation7 + $0x1b0] sm:$0xff]  ;;  %v764_v52 = vld [vmem:[#allocation7 + $0x1c8] sm:$0xff]  ;;  %v8676_v54 = vpack.c.bf16 %v862_v46, %v859_v45 }
 0x1cf   : > { %8665 = vmatprep.subr.bf16.mxu1 %v8664_v17  ;;  %v811_v53 = vld [vmem:[#allocation7 + $0x340] sm:$0xff]  ;;  %v814_v55 = vld [vmem:[#allocation7 + $0x358] sm:$0xff]  ;;  %v768_v56 = vld [vmem:[#allocation7 + $0x1e8] sm:$0xff]  ;;  %v8422_v60 = vpack.c.bf16 %v764_v52, %v761_v51 }
 0x1d0   : > { %8411 = vmatpush1.bf16.msra.mxu0 %v8410_v23  ;;  %v771_v57 = vld [vmem:[#allocation7 + $0x200] sm:$0xff]  ;;  %v865_v58 = vld [vmem:[#allocation7 + $0x4f0] sm:$0xff]  ;;  %v868_v59 = vld [vmem:[#allocation7 + $0x508] sm:$0xff]  ;;  %v8678_v61 = vpack.c.bf16 %v814_v55, %v811_v53 }
 0x1d1   : > { %8413 = vmatprep.subr.bf16.mxu0 %v8412_v25  ;;  %v8424_v62 = vpack.c.bf16 %v771_v57, %v768_v56  ;;  %v767_v63 = vld [vmem:[#allocation7 + $0x1e0] sm:$0xff]  ;;  %v770_v0 = vld [vmem:[#allocation7 + $0x1f8] sm:$0xff]  ;;  %v817_v1 = vld [vmem:[#allocation7 + $0x370] sm:$0xff]  ;;  %v8680_v2 = vpack.c.bf16 %v868_v59, %v865_v58 }
 0x1d2   : > { %8667 = vmatpush3.bf16.msra.mxu1 %v8666_v24  ;;  %v820_v3 = vld [vmem:[#allocation7 + $0x388] sm:$0xff]  ;;  %v774_v4 = vld [vmem:[#allocation7 + $0x218] sm:$0xff]  ;;  %v777_v5 = vld [vmem:[#allocation7 + $0x230] sm:$0xff]  ;;  %v8426_v8 = vpack.c.bf16 %v770_v0, %v767_v63 }
 0x1d3   : > { %8669 = vmatprep.subr.bf16.mxu1 %v8668_v29  ;;  %v871_v6 = vld [vmem:[#allocation7 + $0x520] sm:$0xff]  ;;  %v874_v7 = vld [vmem:[#allocation7 + $0x538] sm:$0xff]  ;;  %v8682_v9 = vpack.c.bf16 %v820_v3, %v817_v1  ;;  %v8428_v10 = vpack.c.bf16 %v777_v5, %v774_v4  ;;  %v773_v11 = vld [vmem:[#allocation7 + $0x210] sm:$0xff] }
 0x1d4   : > { %8415 = vmatpush1.bf16.msra.mxu0 %v8414_v35  ;;  %v776_v12 = vld [vmem:[#allocation7 + $0x228] sm:$0xff]  ;;  %v823_v13 = vld [vmem:[#allocation7 + $0x3a0] sm:$0xff]  ;;  %v8684_v14 = vpack.c.bf16 %v874_v7, %v871_v6  ;;  %v826_v15 = vld [vmem:[#allocation7 + $0x3b8] sm:$0xff] }
 0x1d5   : > { %8417 = vmatprep.subr.bf16.mxu0 %v8416_v37  ;;  %v780_v16 = vld [vmem:[#allocation7 + $0x248] sm:$0xff]  ;;  %v783_v17 = vld [vmem:[#allocation7 + $0x260] sm:$0xff]  ;;  %v877_v18 = vld [vmem:[#allocation7 + $0x550] sm:$0xff]  ;;  %v8430_v20 = vpack.c.bf16 %v776_v12, %v773_v11  ;;  %v8686_v22 = vpack.c.bf16 %v826_v15, %v823_v13 }
 0x1d6   : > { %8671 = vmatpush3.bf16.msra.mxu1 %v8670_v36  ;;  %v880_v19 = vld [vmem:[#allocation7 + $0x568] sm:$0xff]  ;;  %v11772_v21 = vld [vmem:[%s11732_s1 + $0x18] sm:$0xff]  ;;  %v8432_v23 = vpack.c.bf16 %v783_v17, %v780_v16  ;;  %v779_v24 = vld [vmem:[#allocation7 + $0x240] sm:$0xff] }
 0x1d7   : > { %8673 = vmatprep.subr.bf16.mxu1 %v8672_v41  ;;  %v782_v25 = vld [vmem:[#allocation7 + $0x258] sm:$0xff]  ;;  %v829_v26 = vld [vmem:[#allocation7 + $0x3d0] sm:$0xff]  ;;  %v8688_v27 = vpack.c.bf16 %v880_v19, %v877_v18  ;;  %v832_v28 = vld [vmem:[#allocation7 + $0x3e8] sm:$0xff] }
 0x1d8   : > { %8419 = vmatpush1.bf16.msra.mxu0 %v8418_v47  ;;  %v786_v29 = vld [vmem:[#allocation7 + $0x278] sm:$0xff]  ;;  %v789_v30 = vld [vmem:[#allocation7 + $0x290] sm:$0xff]  ;;  %v883_v31 = vld [vmem:[#allocation7 + $0x580] sm:$0xff]  ;;  %v8434_v33 = vpack.c.bf16 %v782_v25, %v779_v24  ;;  %v8690_v34 = vpack.c.bf16 %v832_v28, %v829_v26 }
 0x1d9   : > { %1457 = vmatmul.mubr.f32.vlgmr.msra.gmra.mrb[0].mxu1 %v11768_v48  ;;  %8421 = vmatprep.subr.bf16.mxu0 %v8420_v50  ;;  %v886_v32 = vld [vmem:[#allocation7 + $0x598] sm:$0xff]  ;;  %v8436_v35 = vpack.c.bf16 %v789_v30, %v786_v29  ;;  %v785_v36 = vld [vmem:[#allocation7 + $0x270] sm:$0xff]  ;;  %v788_v37 = vld [vmem:[#allocation7 + $0x288] sm:$0xff] }
 0x1da   : > { %8675 = vmatpush3.bf16.msra.mxu1 %v8674_v49  ;;  %1526 = vmatprep.mubr.f32.mxu1 %v11772_v21  ;;  %v835_v38 = vld [vmem:[#allocation7 + $0x400] sm:$0xff]  ;;  %v8692_v39 = vpack.c.bf16 %v886_v32, %v883_v31  ;;  %v838_v40 = vld [vmem:[#allocation7 + $0x418] sm:$0xff]  ;;  %v792_v41 = vld [vmem:[#allocation7 + $0x2a8] sm:$0xff]  ;;  %v8438_v45 = vpack.c.bf16 %v788_v37, %v785_v36 }
 0x1db   : > { %8677 = vmatprep.subr.bf16.mxu1 %v8676_v54  ;;  %v795_v42 = vld [vmem:[#allocation7 + $0x2c0] sm:$0xff]  ;;  %v889_v43 = vld [vmem:[#allocation7 + $0x5b0] sm:$0xff]  ;;  %v892_v44 = vld [vmem:[#allocation7 + $0x5c8] sm:$0xff]  ;;  %v8694_v46 = vpack.c.bf16 %v838_v40, %v835_v38 }
 0x1dc   : > { %8423 = vmatpush1.bf16.msra.mxu0 %v8422_v60  ;;  %v8440_v47 = vpack.c.bf16 %v795_v42, %v792_v41  ;;  %v791_v49 = vld [vmem:[#allocation7 + $0x2a0] sm:$0xff]  ;;  %v794_v50 = vld [vmem:[#allocation7 + $0x2b8] sm:$0xff]  ;;  %v841_v51 = vld [vmem:[#allocation7 + $0x430] sm:$0xff]  ;;  %v8696_v52 = vpack.c.bf16 %v892_v44, %v889_v43 }
 0x1dd   : > { %8425 = vmatprep.subr.bf16.mxu0 %v8424_v62  ;;  %v844_v53 = vld [vmem:[#allocation7 + $0x448] sm:$0xff]  ;;  %v798_v54 = vld [vmem:[#allocation7 + $0x2d8] sm:$0xff]  ;;  %v801_v55 = vld [vmem:[#allocation7 + $0x2f0] sm:$0xff]  ;;  %v8442_v58 = vpack.c.bf16 %v794_v50, %v791_v49 }
 0x1de   : > { %8679 = vmatpush3.bf16.msra.mxu1 %v8678_v61  ;;  %v895_v56 = vld [vmem:[#allocation7 + $0x5e0] sm:$0xff]  ;;  %v898_v57 = vld [vmem:[#allocation7 + $0x5f8] sm:$0xff]  ;;  %v8698_v59 = vpack.c.bf16 %v844_v53, %v841_v51  ;;  %v8444_v60 = vpack.c.bf16 %v801_v55, %v798_v54  ;;  %v797_v61 = vld [vmem:[#allocation7 + $0x2d0] sm:$0xff] }
 0x1df   : > { %8681 = vmatprep.subr.bf16.mxu1 %v8680_v2  ;;  %v800_v62 = vld [vmem:[#allocation7 + $0x2e8] sm:$0xff]  ;;  %v847_v63 = vld [vmem:[#allocation7 + $0x460] sm:$0xff]  ;;  %v8700_v0 = vpack.c.bf16 %v898_v57, %v895_v56  ;;  %v850_v1 = vld [vmem:[#allocation7 + $0x478] sm:$0xff] }
 0x1e0   : > { %8427 = vmatpush1.bf16.msra.mxu0 %v8426_v8  ;;  %v804_v2 = vld [vmem:[#allocation7 + $0x308] sm:$0xff]  ;;  %v807_v3 = vld [vmem:[#allocation7 + $0x320] sm:$0xff]  ;;  %v949_v4 = vld [vmem:[#allocation7 + $0x790] sm:$0xff]  ;;  %v8446_v6 = vpack.c.bf16 %v800_v62, %v797_v61  ;;  %v8702_v7 = vpack.c.bf16 %v850_v1, %v847_v63 }
 0x1e1   : > { %8429 = vmatprep.subr.bf16.mxu0 %v8428_v10  ;;  %v952_v5 = vld [vmem:[#allocation7 + $0x7a8] sm:$0xff]  ;;  %v8448_v8 = vpack.c.bf16 %v807_v3, %v804_v2  ;;  %v806_v10 = vld [vmem:[#allocation7 + $0x318] sm:$0xff]  ;;  %v901_v11 = vld [vmem:[#allocation7 + $0x610] sm:$0xff] }
 0x1e2   : > { %8683 = vmatpush3.bf16.msra.mxu1 %v8682_v9  ;;  %v803_v9 = vld [vmem:[#allocation7 + $0x300] sm:$0xff]  ;;  %v8704_v12 = vpack.c.bf16 %v952_v5, %v949_v4  ;;  %v904_v13 = vld [vmem:[#allocation7 + $0x628] sm:$0xff]  ;;  %v813_v15 = vld [vmem:[#allocation7 + $0x350] sm:$0xff] }
 0x1e3   : > { %8685 = vmatprep.subr.bf16.mxu1 %v8684_v14  ;;  %v810_v14 = vld [vmem:[#allocation7 + $0x338] sm:$0xff]  ;;  %v955_v16 = vld [vmem:[#allocation7 + $0x7c0] sm:$0xff]  ;;  %v8450_v18 = vpack.c.bf16 %v806_v10, %v803_v9  ;;  %v11776_v19 = vld [vmem:[%s11732_s1 + $0x10] sm:$0xff] }
 0x1e4   : > { %8431 = vmatpush1.bf16.msra.mxu0 %v8430_v20  ;;  %v958_v17 = vld [vmem:[#allocation7 + $0x7d8] sm:$0xff]  ;;  %v8706_v20 = vpack.c.bf16 %v904_v13, %v901_v11  ;;  %v812_v24 = vld [vmem:[#allocation7 + $0x348] sm:$0xff]  ;;  %v907_v25 = vld [vmem:[#allocation7 + $0x640] sm:$0xff] }
 0x1e5   : > { %8433 = vmatprep.subr.bf16.mxu0 %v8432_v23  ;;  %v809_v23 = vld [vmem:[#allocation7 + $0x330] sm:$0xff]  ;;  %v8708_v26 = vpack.c.bf16 %v958_v17, %v955_v16  ;;  %v816_v28 = vld [vmem:[#allocation7 + $0x368] sm:$0xff]  ;;  %v819_v29 = vld [vmem:[#allocation7 + $0x380] sm:$0xff] }
 0x1e6   : > { %8687 = vmatpush3.bf16.msra.mxu1 %v8686_v22  ;;  %v8452_v22 = vpack.c.bf16 %v813_v15, %v810_v14  ;;  %v961_v30 = vld [vmem:[#allocation7 + $0x7f0] sm:$0xff]  ;;  %v964_v31 = vld [vmem:[#allocation7 + $0x808] sm:$0xff]  ;;  %v815_v36 = vld [vmem:[#allocation7 + $0x360] sm:$0xff] }
 0x1e7   : > { %8689 = vmatprep.subr.bf16.mxu1 %v8688_v27  ;;  %v910_v27 = vld [vmem:[#allocation7 + $0x658] sm:$0xff]  ;;  %v11780_v32 = vld [vmem:[%s11732_s1 + $0x28] sm:$0xff]  ;;  %v913_v38 = vld [vmem:[#allocation7 + $0x670] sm:$0xff] }
 0x1e8   : > { %8435 = vmatpush1.bf16.msra.mxu0 %v8434_v33  ;;  %v8454_v33 = vpack.c.bf16 %v812_v24, %v809_v23  ;;  %v818_v37 = vld [vmem:[#allocation7 + $0x378] sm:$0xff]  ;;  %v916_v40 = vld [vmem:[#allocation7 + $0x688] sm:$0xff]  ;;  %v967_v42 = vld [vmem:[#allocation7 + $0x820] sm:$0xff] }
 0x1e9   : > { %8437 = vmatprep.subr.bf16.mxu0 %v8436_v35  ;;  %v8456_v35 = vpack.c.bf16 %v819_v29, %v816_v28  ;;  %v822_v41 = vld [vmem:[#allocation7 + $0x398] sm:$0xff]  ;;  %v8458_v44 = vpack.c.bf16 %v818_v37, %v815_v36  ;;  %v824_v49 = vld [vmem:[#allocation7 + $0x3a8] sm:$0xff]  ;;  %v919_v50 = vld [vmem:[#allocation7 + $0x6a0] sm:$0xff] }
 0x1ea   : > { %8691 = vmatpush3.bf16.msra.mxu1 %v8690_v34  ;;  %v8710_v34 = vpack.c.bf16 %v910_v27, %v907_v25  ;;  %v970_v43 = vld [vmem:[#allocation7 + $0x838] sm:$0xff]  ;;  %v828_v53 = vld [vmem:[#allocation7 + $0x3c8] sm:$0xff]  ;;  %v831_v54 = vld [vmem:[#allocation7 + $0x3e0] sm:$0xff] }
 0x1eb   : > { %8693 = vmatprep.subr.bf16.mxu1 %v8692_v39  ;;  %v8712_v39 = vpack.c.bf16 %v964_v31, %v961_v30  ;;  %v8716_v51 = vpack.c.bf16 %v970_v43, %v967_v42  ;;  %v973_v55 = vld [vmem:[#allocation7 + $0x850] sm:$0xff]  ;;  %v976_v56 = vld [vmem:[#allocation7 + $0x868] sm:$0xff]  ;;  %v979_v2 = vld [vmem:[#allocation7 + $0x880] sm:$0xff] }
 0x1ec   : > { %8439 = vmatpush1.bf16.msra.mxu0 %v8438_v45  ;;  %v8714_v45 = vpack.c.bf16 %v916_v40, %v913_v38  ;;  %v925_v61 = vld [vmem:[#allocation7 + $0x6d0] sm:$0xff]  ;;  %v8720_v62 = vpack.c.bf16 %v976_v56, %v973_v55  ;;  %v928_v63 = vld [vmem:[#allocation7 + $0x6e8] sm:$0xff]  ;;  %v982_v3 = vld [vmem:[#allocation7 + $0x898] sm:$0xff] }
 0x1ed   : > { %8441 = vmatprep.subr.bf16.mxu0 %v8440_v47  ;;  %v821_v47 = vld [vmem:[#allocation7 + $0x390] sm:$0xff]  ;;  %v8722_v5 = vpack.c.bf16 %v928_v63, %v925_v61  ;;  %v931_v9 = vld [vmem:[#allocation7 + $0x700] sm:$0xff]  ;;  %v8724_v10 = vpack.c.bf16 %v982_v3, %v979_v2  ;;  %v934_v11 = vld [vmem:[#allocation7 + $0x718] sm:$0xff] }
 0x1ee   : > { %8695 = vmatpush3.bf16.msra.mxu1 %v8694_v46  ;;  %v8462_v57 = vpack.c.bf16 %v824_v49, %v821_v47  ;;  %v837_v1 = vld [vmem:[#allocation7 + $0x410] sm:$0xff]  ;;  %v843_v13 = vld [vmem:[#allocation7 + $0x440] sm:$0xff]  ;;  %v988_v15 = vld [vmem:[#allocation7 + $0x8c8] sm:$0xff]  ;;  %v8726_v17 = vpack.c.bf16 %v934_v11, %v931_v9 }
 0x1ef   : > { %8697 = vmatprep.subr.bf16.mxu1 %v8696_v52  ;;  %v922_v52 = vld [vmem:[#allocation7 + $0x6b8] sm:$0xff]  ;;  %v985_v14 = vld [vmem:[#allocation7 + $0x8b0] sm:$0xff]  ;;  %v940_v25 = vld [vmem:[#allocation7 + $0x748] sm:$0xff] }
 0x1f0   : > { %8443 = vmatpush1.bf16.msra.mxu0 %v8442_v58  ;;  %v8464_v58 = vpack.c.bf16 %v831_v54, %v828_v53  ;;  %v937_v23 = vld [vmem:[#allocation7 + $0x730] sm:$0xff]  ;;  %v8728_v24 = vpack.c.bf16 %v988_v15, %v985_v14  ;;  %v991_v28 = vld [vmem:[#allocation7 + $0x8e0] sm:$0xff]  ;;  %v994_v29 = vld [vmem:[#allocation7 + $0x8f8] sm:$0xff] }
 0x1f1   : > { %8445 = vmatprep.subr.bf16.mxu0 %v8444_v60  ;;  %v830_v60 = vld [vmem:[#allocation7 + $0x3d8] sm:$0xff]  ;;  %v849_v27 = vld [vmem:[#allocation7 + $0x470] sm:$0xff]  ;;  %v8730_v31 = vpack.c.bf16 %v940_v25, %v937_v23  ;;  %v943_v36 = vld [vmem:[#allocation7 + $0x760] sm:$0xff]  ;;  %v8732_v37 = vpack.c.bf16 %v994_v29, %v991_v28 }
 0x1f2   : > { %8699 = vmatpush3.bf16.msra.mxu1 %v8698_v59  ;;  %v827_v59 = vld [vmem:[#allocation7 + $0x3c0] sm:$0xff]  ;;  %v946_v38 = vld [vmem:[#allocation7 + $0x778] sm:$0xff]  ;;  %v997_v47 = vld [vmem:[#allocation7 + $0x910] sm:$0xff] }
 0x1f3   : > { %8701 = vmatprep.subr.bf16.mxu1 %v8700_v0  ;;  %v834_v0 = vld [vmem:[#allocation7 + $0x3f8] sm:$0xff]  ;;  %v8466_v4 = vpack.c.bf16 %v830_v60, %v827_v59  ;;  %v855_v40 = vld [vmem:[#allocation7 + $0x4a0] sm:$0xff]  ;;  %v8734_v43 = vpack.c.bf16 %v946_v38, %v943_v36  ;;  %v860_v59 = vld [vmem:[#allocation7 + $0x4c8] sm:$0xff] }
 0x1f4   : > { %8447 = vmatpush1.bf16.msra.mxu0 %v8446_v6  ;;  %v8468_v6 = vpack.c.bf16 %v837_v1, %v834_v0  ;;  %v1051_v53 = vld [vmem:[#allocation7 + $0xac0] sm:$0xff]  ;;  %v1054_v54 = vld [vmem:[#allocation7 + $0xad8] sm:$0xff]  ;;  %v864_v63 = vld [vmem:[#allocation7 + $0x4e8] sm:$0xff] }
 0x1f5   : > { %8449 = vmatprep.subr.bf16.mxu0 %v8448_v8  ;;  %v836_v8 = vld [vmem:[#allocation7 + $0x408] sm:$0xff]  ;;  %v11786_v56 = vld [vmem:[%s11732_s1 + $0x20] sm:$0xff]  ;;  %v8740_v61 = vpack.c.bf16 %v1054_v54, %v1051_v53  ;;  %v1057_v1 = vld [vmem:[#allocation7 + $0xaf0] sm:$0xff] }
 0x1f6   : > { %8703 = vmatpush3.bf16.msra.mxu1 %v8702_v7  ;;  %v833_v7 = vld [vmem:[#allocation7 + $0x3f0] sm:$0xff]  ;;  %v1003_v60 = vld [vmem:[#allocation7 + $0x940] sm:$0xff]  ;;  %v1060_v2 = vld [vmem:[#allocation7 + $0xb08] sm:$0xff] }
 0x1f7   : > { %8705 = vmatprep.subr.bf16.mxu1 %v8704_v12  ;;  %1173 = vmatmul.mubr.f32.vlgmr.msra.gmra.mrb[0].mxu0 %v11768_v48  ;;  %v825_v48 = vld [vmem:[#allocation7 + $0x3b0] sm:$0xff]  ;;  %v840_v12 = vld [vmem:[#allocation7 + $0x428] sm:$0xff]  ;;  %v8470_v16 = vpack.c.bf16 %v836_v8, %v833_v7  ;;  %v867_v0 = vld [vmem:[#allocation7 + $0x500] sm:$0xff] }
 0x1f8   : > { %8451 = vmatpush1.bf16.msra.mxu0 %v8450_v18  ;;  %1243 = vmatprep.mubr.f32.mxu0 %v11772_v21  ;;  %v8460_v46 = vpack.c.bf16 %v825_v48, %v822_v41  ;;  %v8718_v21 = vpack.c.bf16 %v922_v52, %v919_v50  ;;  %v8472_v18 = vpack.c.bf16 %v843_v13, %v840_v12  ;;  %v1045_v41 = vld [vmem:[#allocation7 + $0xa90] sm:$0xff]  ;;  %v1048_v48 = vld [vmem:[#allocation7 + $0xaa8] sm:$0xff]  ;;  %v11789_v3 = vld [vmem:[%s11732_s1 + $0x38] sm:$0xff] }
 0x1f9   : > { %1527 = vmatmul.mubr.f32.vlgmr.msra.gmra.mrb[2].mxu1 %v11776_v19  ;;  %8453 = vmatprep.subr.bf16.mxu0 %v8452_v22  ;;  %v842_v22 = vld [vmem:[#allocation7 + $0x438] sm:$0xff]  ;;  %v8736_v49 = vpack.c.bf16 %v1048_v48, %v1045_v41  ;;  %v1000_v50 = vld [vmem:[#allocation7 + $0x928] sm:$0xff]  ;;  %v861_v52 = vld [vmem:[#allocation7 + $0x4d0] sm:$0xff] }
 0x1fa   : > { %8707 = vmatpush3.bf16.msra.mxu1 %v8706_v20  ;;  %1596 = vmatprep.mubr.f32.mxu1 %v11780_v32  ;;  %v839_v20 = vld [vmem:[#allocation7 + $0x420] sm:$0xff]  ;;  %v866_v8 = vld [vmem:[#allocation7 + $0x4f8] sm:$0xff]  ;;  %v1009_v9 = vld [vmem:[#allocation7 + $0x970] sm:$0xff] }
 0x1fb   : > { %8709 = vmatprep.subr.bf16.mxu1 %v8708_v26  ;;  %v846_v26 = vld [vmem:[#allocation7 + $0x458] sm:$0xff]  ;;  %v8474_v30 = vpack.c.bf16 %v842_v22, %v839_v20  ;;  %v863_v7 = vld [vmem:[#allocation7 + $0x4e0] sm:$0xff]  ;;  %v1012_v11 = vld [vmem:[#allocation7 + $0x988] sm:$0xff] }
 0x1fc   : > { %8455 = vmatpush1.bf16.msra.mxu0 %v8454_v33  ;;  %v8476_v33 = vpack.c.bf16 %v849_v27, %v846_v26  ;;  %v870_v12 = vld [vmem:[#allocation7 + $0x518] sm:$0xff]  ;;  %v873_v13 = vld [vmem:[#allocation7 + $0x530] sm:$0xff]  ;;  %v1063_v14 = vld [vmem:[#allocation7 + $0xb20] sm:$0xff] }
 0x1fd   : > { %8457 = vmatprep.subr.bf16.mxu0 %v8456_v35  ;;  %v848_v35 = vld [vmem:[#allocation7 + $0x468] sm:$0xff]  ;;  %v1066_v15 = vld [vmem:[#allocation7 + $0xb38] sm:$0xff]  ;;  %v869_v20 = vld [vmem:[#allocation7 + $0x510] sm:$0xff] }
 0x1fe   : > { %8711 = vmatpush3.bf16.msra.mxu1 %v8710_v34  ;;  %v845_v34 = vld [vmem:[#allocation7 + $0x450] sm:$0xff]  ;;  %v872_v22 = vld [vmem:[#allocation7 + $0x528] sm:$0xff]  ;;  %v1015_v23 = vld [vmem:[#allocation7 + $0x9a0] sm:$0xff] }
 0x1ff   : > { %8713 = vmatprep.subr.bf16.mxu1 %v8712_v39  ;;  %v852_v39 = vld [vmem:[#allocation7 + $0x488] sm:$0xff]  ;;  %v8478_v42 = vpack.c.bf16 %v848_v35, %v845_v34  ;;  %v1018_v25 = vld [vmem:[#allocation7 + $0x9b8] sm:$0xff]  ;;  %v879_v27 = vld [vmem:[#allocation7 + $0x560] sm:$0xff] }
 0x200   : > { %8459 = vmatpush1.bf16.msra.mxu0 %v8458_v44  ;;  %v8480_v44 = vpack.c.bf16 %v855_v40, %v852_v39  ;;  %v876_v26 = vld [vmem:[#allocation7 + $0x548] sm:$0xff]  ;;  %v1069_v28 = vld [vmem:[#allocation7 + $0xb50] sm:$0xff]  ;;  %v875_v34 = vld [vmem:[#allocation7 + $0x540] sm:$0xff] }
 0x201   : > { %8461 = vmatprep.subr.bf16.mxu0 %v8460_v46  ;;  %v854_v46 = vld [vmem:[#allocation7 + $0x498] sm:$0xff]  ;;  %v1072_v29 = vld [vmem:[#allocation7 + $0xb68] sm:$0xff]  ;;  %v1021_v36 = vld [vmem:[#allocation7 + $0x9d0] sm:$0xff] }
 0x202   : > { %8715 = vmatpush3.bf16.msra.mxu1 %v8714_v45  ;;  %v851_v45 = vld [vmem:[#allocation7 + $0x480] sm:$0xff]  ;;  %v878_v35 = vld [vmem:[#allocation7 + $0x558] sm:$0xff]  ;;  %v1024_v38 = vld [vmem:[#allocation7 + $0x9e8] sm:$0xff] }
 0x203   : > { %8717 = vmatprep.subr.bf16.mxu1 %v8716_v51  ;;  %v858_v51 = vld [vmem:[#allocation7 + $0x4b8] sm:$0xff]  ;;  %v8482_v55 = vpack.c.bf16 %v854_v46, %v851_v45  ;;  %v885_v40 = vld [vmem:[#allocation7 + $0x590] sm:$0xff]  ;;  %v1075_v41 = vld [vmem:[#allocation7 + $0xb80] sm:$0xff] }
 0x204   : > { %8463 = vmatpush1.bf16.msra.mxu0 %v8462_v57  ;;  %v8738_v57 = vpack.c.bf16 %v1000_v50, %v997_v47  ;;  %v882_v39 = vld [vmem:[#allocation7 + $0x578] sm:$0xff]  ;;  %v881_v45 = vld [vmem:[#allocation7 + $0x570] sm:$0xff]  ;;  %v884_v46 = vld [vmem:[#allocation7 + $0x588] sm:$0xff] }
 0x205   : > { %8465 = vmatprep.subr.bf16.mxu0 %v8464_v58  ;;  %v857_v58 = vld [vmem:[#allocation7 + $0x4b0] sm:$0xff]  ;;  %v1078_v48 = vld [vmem:[#allocation7 + $0xb98] sm:$0xff]  ;;  %v1027_v47 = vld [vmem:[#allocation7 + $0xa00] sm:$0xff] }
 0x206   : > { %8719 = vmatpush3.bf16.msra.mxu1 %v8718_v21  ;;  %v8484_v21 = vpack.c.bf16 %v861_v52, %v858_v51  ;;  %v1030_v50 = vld [vmem:[#allocation7 + $0xa18] sm:$0xff]  ;;  %v888_v51 = vld [vmem:[#allocation7 + $0x5a8] sm:$0xff]  ;;  %v891_v52 = vld [vmem:[#allocation7 + $0x5c0] sm:$0xff] }
 0x207   : > { %8721 = vmatprep.subr.bf16.mxu1 %v8720_v62  ;;  %v1006_v62 = vld [vmem:[#allocation7 + $0x958] sm:$0xff]  ;;  %v1081_v53 = vld [vmem:[#allocation7 + $0xbb0] sm:$0xff]  ;;  %v1084_v54 = vld [vmem:[#allocation7 + $0xbc8] sm:$0xff] }
 0x208   : > { %8467 = vmatpush1.bf16.msra.mxu0 %v8466_v4  ;;  %v8486_v4 = vpack.c.bf16 %v860_v59, %v857_v58  ;;  %v887_v58 = vld [vmem:[#allocation7 + $0x5a0] sm:$0xff]  ;;  %v890_v59 = vld [vmem:[#allocation7 + $0x5b8] sm:$0xff] }
 0x209   : > { %8469 = vmatprep.subr.bf16.mxu0 %v8468_v6  ;;  %v8488_v6 = vpack.c.bf16 %v867_v0, %v864_v63  ;;  %v894_v63 = vld [vmem:[#allocation7 + $0x5d8] sm:$0xff]  ;;  %v897_v0 = vld [vmem:[#allocation7 + $0x5f0] sm:$0xff] }
 0x20a   : > { %8723 = vmatpush3.bf16.msra.mxu1 %v8722_v5  ;;  %v8742_v5 = vpack.c.bf16 %v1006_v62, %v1003_v60  ;;  %v1033_v60 = vld [vmem:[#allocation7 + $0xa30] sm:$0xff]  ;;  %v1036_v62 = vld [vmem:[#allocation7 + $0xa48] sm:$0xff] }
 0x20b   : > { %8725 = vmatprep.subr.bf16.mxu1 %v8724_v10  ;;  %v8744_v10 = vpack.c.bf16 %v1060_v2, %v1057_v1  ;;  %v1087_v1 = vld [vmem:[#allocation7 + $0xbe0] sm:$0xff]  ;;  %v1090_v2 = vld [vmem:[#allocation7 + $0xbf8] sm:$0xff] }
 0x20c   : > { %8471 = vmatpush1.bf16.msra.mxu0 %v8470_v16  ;;  %v8490_v16 = vpack.c.bf16 %v866_v8, %v863_v7  ;;  %v893_v7 = vld [vmem:[#allocation7 + $0x5d0] sm:$0xff]  ;;  %v896_v8 = vld [vmem:[#allocation7 + $0x5e8] sm:$0xff] }
 0x20d   : > { %8473 = vmatprep.subr.bf16.mxu0 %v8472_v18  ;;  %v8492_v18 = vpack.c.bf16 %v873_v13, %v870_v12  ;;  %v900_v12 = vld [vmem:[#allocation7 + $0x608] sm:$0xff]  ;;  %v903_v13 = vld [vmem:[#allocation7 + $0x620] sm:$0xff] }
 0x20e   : > { %8727 = vmatpush3.bf16.msra.mxu1 %v8726_v17  ;;  %v8746_v17 = vpack.c.bf16 %v1012_v11, %v1009_v9  ;;  %v1039_v9 = vld [vmem:[#allocation7 + $0xa60] sm:$0xff]  ;;  %v1042_v11 = vld [vmem:[#allocation7 + $0xa78] sm:$0xff] }
 0x20f   : > { %8729 = vmatprep.subr.bf16.mxu1 %v8728_v24  ;;  %v8748_v24 = vpack.c.bf16 %v1066_v15, %v1063_v14  ;;  %v1673_v14 = vld [vmem:[#allocation9 + $0x8] sm:$0xff]  ;;  %v1676_v15 = vld [vmem:[#allocation9 + $0x20] sm:$0xff] }
 0x210   : > { %8475 = vmatpush1.bf16.msra.mxu0 %v8474_v30  ;;  %v8494_v30 = vpack.c.bf16 %v872_v22, %v869_v20  ;;  %v899_v20 = vld [vmem:[#allocation7 + $0x600] sm:$0xff]  ;;  %v902_v22 = vld [vmem:[#allocation7 + $0x618] sm:$0xff] }
 0x211   : > { %8477 = vmatprep.subr.bf16.mxu0 %v8476_v33  ;;  %v8496_v33 = vpack.c.bf16 %v879_v27, %v876_v26  ;;  %v1672_v26 = vld [vmem:[#allocation9] sm:$0xff]  ;;  %v1675_v27 = vld [vmem:[#allocation9 + $0x18] sm:$0xff] }
 0x212   : > { %8731 = vmatpush3.bf16.msra.mxu1 %v8730_v31  ;;  %v8750_v31 = vpack.c.bf16 %v1018_v25, %v1015_v23  ;;  %v906_v23 = vld [vmem:[#allocation7 + $0x638] sm:$0xff]  ;;  %v11793_v25 = vpack.c.bf16 %v1676_v15, %v1673_v14 }
 0x213   : > { %8733 = vmatprep.subr.bf16.mxu1 %v8732_v37  ;;  %v8752_v37 = vpack.c.bf16 %v1072_v29, %v1069_v28  ;;  %v8514_v28 = vpack.c.bf16 %v902_v22, %v899_v20  ;;  %v1679_v29 = vld [vmem:[#allocation9 + $0x38] sm:$0xff]  ;;  %v932_v20 = vld [vmem:[#allocation7 + $0x708] sm:$0xff] }
 0x214   : > { %8479 = vmatpush1.bf16.msra.mxu0 %v8478_v42  ;;  %v8498_v42 = vpack.c.bf16 %v878_v35, %v875_v34  ;;  %v905_v34 = vld [vmem:[#allocation7 + $0x630] sm:$0xff]  ;;  %v908_v35 = vld [vmem:[#allocation7 + $0x648] sm:$0xff]  ;;  %v1703_v15 = vld [vmem:[#allocation9 + $0xf8] sm:$0xff] }
 0x215   : > { %8481 = vmatprep.subr.bf16.mxu0 %v8480_v44  ;;  %v8500_v44 = vpack.c.bf16 %v885_v40, %v882_v39  ;;  %v1678_v40 = vld [vmem:[#allocation9 + $0x30] sm:$0xff]  ;;  %v936_v22 = vld [vmem:[#allocation7 + $0x728] sm:$0xff] }
 0x216   : > { %8735 = vmatpush3.bf16.msra.mxu1 %v8734_v43  ;;  %v8754_v43 = vpack.c.bf16 %v1024_v38, %v1021_v36  ;;  %v912_v36 = vld [vmem:[#allocation7 + $0x668] sm:$0xff]  ;;  %v11799_v38 = vpack.c.bf16 %v1675_v27, %v1672_v26  ;;  %v1702_v27 = vld [vmem:[#allocation9 + $0xf0] sm:$0xff] }
 0x217   : > { %8737 = vmatprep.subr.bf16.mxu1 %v8736_v49  ;;  %v8756_v49 = vpack.c.bf16 %v1078_v48, %v1075_v41  ;;  %v1681_v41 = vld [vmem:[#allocation9 + $0x48] sm:$0xff]  ;;  %v8518_v48 = vpack.c.bf16 %v908_v35, %v905_v34  ;;  %v935_v35 = vld [vmem:[#allocation7 + $0x720] sm:$0xff] }
 0x218   : > { %8483 = vmatpush1.bf16.msra.mxu0 %v8482_v55  ;;  %v8502_v55 = vpack.c.bf16 %v884_v46, %v881_v45  ;;  %v911_v45 = vld [vmem:[#allocation7 + $0x660] sm:$0xff]  ;;  %v914_v46 = vld [vmem:[#allocation7 + $0x678] sm:$0xff] }
 0x219   : > { %1597 = vmatmul.mubr.f32.vlgmr.msra.gmra.mrb[4].mxu1 %v11786_v56  ;;  %8485 = vmatprep.subr.bf16.mxu0 %v8484_v21  ;;  %v8504_v21 = vpack.c.bf16 %v891_v52, %v888_v51  ;;  %v1684_v52 = vld [vmem:[#allocation9 + $0x60] sm:$0xff] }
 0x21a   : > { %8739 = vmatpush3.bf16.msra.mxu1 %v8738_v57  ;;  %1666 = vmatprep.mubr.f32.mxu1 %v11789_v3  ;;  %v8758_v57 = vpack.c.bf16 %v1030_v50, %v1027_v47  ;;  %v918_v47 = vld [vmem:[#allocation7 + $0x698] sm:$0xff]  ;;  %v11229_v50 = vmov 0.0  }
 0x21b   : > { %8741 = vmatprep.subr.bf16.mxu1 %v8740_v61  ;;  %v8760_v61 = vpack.c.bf16 %v1084_v54, %v1081_v53  ;;  %v1687_v53 = vld [vmem:[#allocation9 + $0x78] sm:$0xff]  ;;  %v8522_v54 = vpack.c.bf16 %v914_v46, %v911_v45  ;;  %v1718_v46 = vld [vmem:[#allocation9 + $0x170] sm:$0xff] }
 0x21c   : > { %8487 = vmatpush1.bf16.msra.mxu0 %v8486_v4  ;;  %v8506_v4 = vpack.c.bf16 %v890_v59, %v887_v58  ;;  %v920_v58 = vld [vmem:[#allocation7 + $0x6a8] sm:$0xff]  ;;  %v1715_v45 = vld [vmem:[#allocation9 + $0x158] sm:$0xff] }
 0x21d   : > { %8489 = vmatprep.subr.bf16.mxu0 %v8488_v6  ;;  %v8508_v6 = vpack.c.bf16 %v897_v0, %v894_v63  ;;  %v924_v59 = vld [vmem:[#allocation7 + $0x6c8] sm:$0xff]  ;;  %v1690_v63 = vld [vmem:[#allocation9 + $0x90] sm:$0xff] }
 0x21e   : > { %8743 = vmatpush3.bf16.msra.mxu1 %v8742_v5  ;;  %v8762_v5 = vpack.c.bf16 %v1036_v62, %v1033_v60  ;;  %v927_v60 = vld [vmem:[#allocation7 + $0x6e0] sm:$0xff]  ;;  %v1693_v0 = vld [vmem:[#allocation9 + $0xa8] sm:$0xff] }
 0x21f   : > { %8745 = vmatprep.subr.bf16.mxu1 %v8744_v10  ;;  %v8764_v10 = vpack.c.bf16 %v1090_v2, %v1087_v1  ;;  %v1697_v2 = vld [vmem:[#allocation9 + $0xc8] sm:$0xff] }
 0x220   : > { %8491 = vmatpush1.bf16.msra.mxu0 %v8490_v16  ;;  %v8510_v16 = vpack.c.bf16 %v896_v8, %v893_v7  ;;  %v926_v7 = vld [vmem:[#allocation7 + $0x6d8] sm:$0xff] }
 0x221   : > { %8493 = vmatprep.subr.bf16.mxu0 %v8492_v18  ;;  %v8512_v18 = vpack.c.bf16 %v903_v13, %v900_v12  ;;  %v930_v8 = vld [vmem:[#allocation7 + $0x6f8] sm:$0xff]  ;;  %v1696_v12 = vld [vmem:[#allocation9 + $0xc0] sm:$0xff] }
 0x222   : > { %8747 = vmatpush3.bf16.msra.mxu1 %v8746_v17  ;;  %v8766_v17 = vpack.c.bf16 %v1042_v11, %v1039_v9  ;;  %v933_v9 = vld [vmem:[#allocation7 + $0x710] sm:$0xff]  ;;  %v1699_v13 = vld [vmem:[#allocation9 + $0xd8] sm:$0xff] }
 0x223   : > { %8749 = vmatprep.subr.bf16.mxu1 %v8748_v24  ;;  %v909_v24 = vld [vmem:[#allocation7 + $0x650] sm:$0xff] }
 0x224   : > { %8495 = vmatpush1.bf16.msra.mxu0 %v8494_v30  ;;  %v1682_v30 = vld [vmem:[#allocation9 + $0x50] sm:$0xff] }
 0x225   : > { %8497 = vmatprep.subr.bf16.mxu0 %v8496_v33  ;;  %v8516_v33 = vpack.c.bf16 %v909_v24, %v906_v23  ;;  %v11802_v39 = vpack.c.bf16 %v1682_v30, %v1679_v29  ;;  %v939_v23 = vld [vmem:[#allocation7 + $0x740] sm:$0xff]  ;;  %v11826_v24 = vpack.c.bf16 %v1699_v13, %v1696_v12  ;;  %v1709_v30 = vld [vmem:[#allocation9 + $0x128] sm:$0xff] }
 0x226   : > { %8751 = vmatpush3.bf16.msra.mxu1 %v8750_v31  ;;  %v11796_v31 = vld [vmem:[%s11732_s1 + $0x30] sm:$0xff]  ;;  %v8536_v34 = vpack.c.bf16 %v939_v23, %v936_v22  ;;  %v960_v12 = vld [vmem:[#allocation7 + $0x7e8] sm:$0xff]  ;;  %v963_v13 = vld [vmem:[#allocation7 + $0x800] sm:$0xff]  ;;  %s11232_s1 = smov [#allocation28]  }
 0x227   : > { %8753 = vmatprep.subr.bf16.mxu1 %v8752_v37  ;;  %v915_v37 = vld [vmem:[#allocation7 + $0x680] sm:$0xff]  ;;  %v962_v23 = vld [vmem:[#allocation7 + $0x7f8] sm:$0xff]  ;;  %s11118_s0 = sshll.u32 %s11232_s1, 4  ;;  %s11119_s0 = int_to_ptr.vmem [resolvable:$false] %s11118_s0 }
 0x228   : > { %8499 = vmatpush1.bf16.msra.mxu0 %v8498_v42  ;;  %v1685_v42 = vld [vmem:[#allocation9 + $0x68] sm:$0xff]  ;;  %v959_v22 = vld [vmem:[#allocation7 + $0x7e0] sm:$0xff]  ;;  %s11120_s2 = scalar_lea.vmem %s11119_s0, 32  ;;  %p11121_p5 = scmp.lt.s32.totalorder %s13050_s22, %s11119_s0 }
 0x229   : > { %8501 = vmatprep.subr.bf16.mxu0 %v8500_v44  ;;  %v8520_v44 = vpack.c.bf16 %v915_v37, %v912_v36  ;;  %v938_v36 = vld [vmem:[#allocation7 + $0x738] sm:$0xff]  ;;  %p11122_p7 = scmp.lt.s32.totalorder %s11120_s2, %s11114_s25 }
 0x22a   : > { %8755 = vmatpush3.bf16.msra.mxu1 %v8754_v43  ;;  %v1688_v43 = vld [vmem:[#allocation9 + $0x80] sm:$0xff]  ;;  %v942_v37 = vld [vmem:[#allocation7 + $0x758] sm:$0xff] }
 0x22b   : > { %8757 = vmatprep.subr.bf16.mxu1 %v8756_v49  ;;  %v921_v49 = vld [vmem:[#allocation7 + $0x6b0] sm:$0xff]  ;;  %v11811_v51 = vpack.c.bf16 %v1688_v43, %v1685_v42  ;;  %v1708_v42 = vld [vmem:[#allocation9 + $0x120] sm:$0xff]  ;;  %v1711_v43 = vld [vmem:[#allocation9 + $0x138] sm:$0xff]  ;;  %p11123_p6 = por %p11122_p7, %p11121_p5 }
 0x22c   : > { %8503 = vmatpush1.bf16.msra.mxu0 %v8502_v55  ;;  %v1691_v55 = vld [vmem:[#allocation9 + $0x98] sm:$0xff] }
 0x22d   : > { %8505 = vmatprep.subr.bf16.mxu0 %v8504_v21  ;;  %v917_v21 = vld [vmem:[#allocation7 + $0x690] sm:$0xff]  ;;  %p11124_p9 = pnand %p11123_p6, %p11117_p8 }
 0x22e   : > { %8759 = vmatpush3.bf16.msra.mxu1 %v8758_v57  ;;  %v1694_v57 = vld [vmem:[#allocation9 + $0xb0] sm:$0xff]  ;;  %v8526_v1 = vpack.c.bf16 %v920_v58, %v917_v21  ;;  %v1717_v21 = vld [vmem:[#allocation9 + $0x168] sm:$0xff] }
 0x22f   : > { %8761 = vmatprep.subr.bf16.mxu1 %v8760_v61  ;;  %v11814_v61 = vpack.c.bf16 %v1687_v53, %v1684_v52  ;;  %v11817_v62 = vpack.c.bf16 %v1694_v57, %v1691_v55  ;;  %v944_v52 = vld [vmem:[#allocation7 + $0x768] sm:$0xff]  ;;  %v11838_v55 = vpack.c.bf16 %v1711_v43, %v1708_v42  ;;  %v11841_v57 = vpack.c.bf16 %v1718_v46, %v1715_v45  ;;  %v975_v42 = vld [vmem:[#allocation7 + $0x860] sm:$0xff]  ;;  %v1695_v45 = vld [vmem:[#allocation9 + $0xb8] sm:$0xff] }
 0x230   : > { %8507 = vmatpush1.bf16.msra.mxu0 %v8506_v4  ;;  %v1700_v4 = vld [vmem:[#allocation9 + $0xe0] sm:$0xff]  ;;  %v948_v53 = vld [vmem:[#allocation7 + $0x788] sm:$0xff] }
 0x231   : > { %8509 = vmatprep.subr.bf16.mxu0 %v8508_v6  ;;  %v923_v6 = vld [vmem:[#allocation7 + $0x6c0] sm:$0xff]  ;;  %v11823_v11 = vpack.c.bf16 %v1700_v4, %v1697_v2  ;;  %v1674_v4 = vld [vmem:[#allocation9 + $0x10] sm:$0xff] }
 0x232   : > { %8763 = vmatpush3.bf16.msra.mxu1 %v8762_v5  ;;  %v8528_v5 = vpack.c.bf16 %v927_v60, %v924_v59  ;;  %v8530_v14 = vpack.c.bf16 %v926_v7, %v923_v6  ;;  %v947_v60 = vld [vmem:[#allocation7 + $0x780] sm:$0xff] }
 0x233   : > { %8765 = vmatprep.subr.bf16.mxu1 %v8764_v10  ;;  %v11820_v10 = vpack.c.bf16 %v1693_v0, %v1690_v63  ;;  %v950_v63 = vld [vmem:[#allocation7 + $0x798] sm:$0xff] }
 0x234   : > { %8511 = vmatpush1.bf16.msra.mxu0 %v8510_v16  ;;  %v1706_v16 = vld [vmem:[#allocation9 + $0x110] sm:$0xff]  ;;  %v954_v0 = vld [vmem:[#allocation7 + $0x7b8] sm:$0xff]  ;;  %v8546_v6 = vpack.c.bf16 %v950_v63, %v947_v60 }
 0x235   : > { %8513 = vmatprep.subr.bf16.mxu0 %v8512_v18  ;;  %v929_v18 = vld [vmem:[#allocation7 + $0x6f0] sm:$0xff]  ;;  %v11829_v26 = vpack.c.bf16 %v1706_v16, %v1703_v15  ;;  %v11230_v15 = vmov 0.0|0.0   ;;  %v1680_v16 = vld [vmem:[#allocation9 + $0x40] sm:$0xff] }
 0x236   : > { %8767 = vmatpush3.bf16.msra.mxu1 %v8766_v17  ;;  %v8532_v17 = vpack.c.bf16 %v933_v9, %v930_v8  ;;  %v8534_v29 = vpack.c.bf16 %v932_v20, %v929_v18  ;;  %v953_v8 = vld [vmem:[#allocation7 + $0x7b0] sm:$0xff]  ;;  %v956_v9 = vld [vmem:[#allocation7 + $0x7c8] sm:$0xff]  ;;  %v8552_v20 = vpack.c.bf16 %v963_v13, %v960_v12  ;;  %v983_v12 = vld [vmem:[#allocation7 + $0x8a0] sm:$0xff] }
 0x237   : > { %8769 = vmatprep.subr.bf16.mxu1 %v11793_v25  ;;  %1244 = vmatmul.mubr.f32.vlgmr.msra.gmra.mrb[0].mxu0 %v11776_v19  ;;  %v11807_v19 = vpack.c.bf16 %v1681_v41, %v1678_v40  ;;  %v945_v40 = vld [vmem:[#allocation7 + $0x770] sm:$0xff]  ;;  %v8550_v18 = vpack.c.bf16 %v956_v9, %v953_v8  ;;  %v986_v13 = vld [vmem:[#allocation7 + $0x8b8] sm:$0xff] }
 0x238   : > { %8515 = vmatpush1.bf16.msra.mxu0 %v8514_v28  ;;  %1314 = vmatprep.mubr.f32.mxu0 %v11780_v32  ;;  %v8524_v32 = vpack.c.bf16 %v921_v49, %v918_v47  ;;  %v1705_v28 = vld [vmem:[#allocation9 + $0x108] sm:$0xff]  ;;  %v8540_v47 = vpack.c.bf16 %v945_v40, %v942_v37  ;;  %v941_v49 = vld [vmem:[#allocation7 + $0x750] sm:$0xff] }
 0x239   : > { %1667 = vmatmul.mubr.f32.vlgmr.msra.gmra.mrb[6].mxu1 %v11796_v31  ;;  %8517 = vmatprep.subr.bf16.mxu0 %v8516_v33  ;;  %v1712_v33 = vld [vmem:[#allocation9 + $0x140] sm:$0xff]  ;;  %v11832_v41 = vpack.c.bf16 %v1705_v28, %v1702_v27  ;;  %v8542_v58 = vpack.c.bf16 %v944_v52, %v941_v49  ;;  %v966_v27 = vld [vmem:[#allocation7 + $0x818] sm:$0xff]  ;;  %v969_v28 = vld [vmem:[#allocation7 + $0x830] sm:$0xff] }
 0x23a   : > { %8771 = vmatpush1.bf16.msra.mxu1 %v11799_v38  ;;  %1785 = vmatprep.mubr.f32.mxu1 %v11229_v50  ;;  %v968_v37 = vld [vmem:[#allocation7 + $0x828] sm:$0xff]  ;;  %v971_v49 = vld [vmem:[#allocation7 + $0x840] sm:$0xff]  ;;  %v974_v52 = vld [vmem:[#allocation7 + $0x858] sm:$0xff] }
 0x23b   : > { %8773 = vmatprep.subr.bf16.mxu1 %v11802_v39  ;;  %v972_v40 = vld [vmem:[#allocation7 + $0x848] sm:$0xff]  ;;  %v977_v63 = vld [vmem:[#allocation7 + $0x870] sm:$0xff] }
 0x23c   : > { %8519 = vmatpush1.bf16.msra.mxu0 %v8518_v48  ;;  %v11835_v48 = vpack.c.bf16 %v1712_v33, %v1709_v30  ;;  %v1686_v30 = vld [vmem:[#allocation9 + $0x70] sm:$0xff]  ;;  %v1689_v33 = vld [vmem:[#allocation9 + $0x88] sm:$0xff] }
 0x23d   : > { %8521 = vmatprep.subr.bf16.mxu0 %v8520_v44  ;;  %v8538_v44 = vpack.c.bf16 %v938_v36, %v935_v35  ;;  %v8556_v35 = vpack.c.bf16 %v969_v28, %v966_v27  ;;  %v965_v36 = vld [vmem:[#allocation7 + $0x810] sm:$0xff]  ;;  %v11859_v43 = vpack.c.bf16 %v1689_v33, %v1686_v30  ;;  %v992_v30 = vld [vmem:[#allocation7 + $0x8e8] sm:$0xff] }
 0x23e   : > { %8775 = vmatpush1.bf16.msra.mxu1 %v11807_v19  ;;  %v8558_v46 = vpack.c.bf16 %v968_v37, %v965_v36  ;;  %v989_v28 = vld [vmem:[#allocation7 + $0x8d0] sm:$0xff]  ;;  %v996_v33 = vld [vmem:[#allocation7 + $0x908] sm:$0xff]  ;;  %v1716_v36 = vld [vmem:[#allocation9 + $0x160] sm:$0xff] }
 0x23f   : > { %8777 = vmatprep.subr.bf16.mxu1 %v11811_v51  ;;  %v1719_v37 = vld [vmem:[#allocation9 + $0x178] sm:$0xff] }
 0x240   : > { %8523 = vmatpush1.bf16.msra.mxu0 %v8522_v54  ;;  %v951_v54 = vld [vmem:[#allocation7 + $0x7a0] sm:$0xff] }
 0x241   : > { %8525 = vmatprep.subr.bf16.mxu0 %v8524_v32  ;;  %v1714_v32 = vld [vmem:[#allocation9 + $0x150] sm:$0xff]  ;;  %v8544_v59 = vpack.c.bf16 %v951_v54, %v948_v53  ;;  %v978_v53 = vld [vmem:[#allocation7 + $0x878] sm:$0xff] }
 0x242   : > { %8779 = vmatpush1.bf16.msra.mxu1 %v11814_v61  ;;  %v11844_v2 = vpack.c.bf16 %v1717_v21, %v1714_v32  ;;  %v981_v54 = vld [vmem:[#allocation7 + $0x890] sm:$0xff] }
 0x243   : > { %8781 = vmatprep.subr.bf16.mxu1 %v11817_v62  ;;  %v1698_v21 = vld [vmem:[#allocation9 + $0xd0] sm:$0xff]  ;;  %v8564_v60 = vpack.c.bf16 %v981_v54, %v978_v53 }
 0x244   : > { %8527 = vmatpush1.bf16.msra.mxu0 %v8526_v1  ;;  %v957_v1 = vld [vmem:[#allocation7 + $0x7d0] sm:$0xff] }
 0x245   : > { %8529 = vmatprep.subr.bf16.mxu0 %v8528_v5  ;;  %v1677_v5 = vld [vmem:[#allocation9 + $0x28] sm:$0xff]  ;;  %v8548_v7 = vpack.c.bf16 %v957_v1, %v954_v0  ;;  %v1001_v54 = vld [vmem:[#allocation7 + $0x930] sm:$0xff] }
 0x246   : > { %8783 = vmatpush1.bf16.msra.mxu1 %v11820_v10  ;;  %v980_v0 = vld [vmem:[#allocation7 + $0x888] sm:$0xff] }
 0x247   : > { %8785 = vmatprep.subr.bf16.mxu1 %v11823_v11  ;;  %v984_v1 = vld [vmem:[#allocation7 + $0x8a8] sm:$0xff]  ;;  %v8566_v8 = vpack.c.bf16 %v980_v0, %v977_v63  ;;  %v1007_v0 = vld [vmem:[#allocation7 + $0x960] sm:$0xff] }
 0x248   : > { %8531 = vmatpush1.bf16.msra.mxu0 %v8530_v14  ;;  %v11848_v14 = vpack.c.bf16 %v1677_v5, %v1674_v4  ;;  %v987_v4 = vld [vmem:[#allocation7 + $0x8c0] sm:$0xff] }
 0x249   : > { %8533 = vmatprep.subr.bf16.mxu0 %v8532_v17  ;;  %v1683_v17 = vld [vmem:[#allocation9 + $0x58] sm:$0xff]  ;;  %v8568_v9 = vpack.c.bf16 %v987_v4, %v984_v1 }
 0x24a   : > { %8787 = vmatpush1.bf16.msra.mxu1 %v11826_v24  ;;  %v1010_v1 = vld [vmem:[#allocation7 + $0x978] sm:$0xff] }
 0x24b   : > { %8789 = vmatprep.subr.bf16.mxu1 %v11829_v26  ;;  %v1014_v4 = vld [vmem:[#allocation7 + $0x998] sm:$0xff] }
 0x24c   : > { %8535 = vmatpush1.bf16.msra.mxu0 %v8534_v29  ;;  %v11853_v29 = vpack.c.bf16 %v1683_v17, %v1680_v16  ;;  %v990_v16 = vld [vmem:[#allocation7 + $0x8d8] sm:$0xff]  ;;  %v993_v17 = vld [vmem:[#allocation7 + $0x8f0] sm:$0xff] }
 0x24d   : > { %8537 = vmatprep.subr.bf16.mxu0 %v8536_v34  ;;  %v8554_v34 = vpack.c.bf16 %v962_v23, %v959_v22  ;;  %v1713_v22 = vld [vmem:[#allocation9 + $0x148] sm:$0xff]  ;;  %v8570_v23 = vpack.c.bf16 %v986_v13, %v983_v12  ;;  %v8572_v27 = vpack.c.bf16 %v993_v17, %v990_v16  ;;  %v1023_v12 = vld [vmem:[#allocation7 + $0x9e0] sm:$0xff] }
 0x24e   : > { %8791 = vmatpush1.bf16.msra.mxu1 %v11832_v41  ;;  %v1019_v17 = vld [vmem:[#allocation7 + $0x9c0] sm:$0xff] }
 0x24f   : > { %8793 = vmatprep.subr.bf16.mxu1 %v11835_v48 }
 0x250   : > { %8539 = vmatpush1.bf16.msra.mxu0 %v8538_v44  ;;  %v1692_v44 = vld [vmem:[#allocation9 + $0xa0] sm:$0xff] }
 0x251   : > { %8541 = vmatprep.subr.bf16.mxu0 %v8540_v47  ;;  %v8560_v47 = vpack.c.bf16 %v975_v42, %v972_v40  ;;  %v11863_v32 = vpack.c.bf16 %v1695_v45, %v1692_v44  ;;  %v8574_v40 = vpack.c.bf16 %v992_v30, %v989_v28  ;;  %v995_v44 = vld [vmem:[#allocation7 + $0x900] sm:$0xff]  ;;  %v998_v45 = vld [vmem:[#allocation7 + $0x918] sm:$0xff]  ;;  %v1025_v30 = vld [vmem:[#allocation7 + $0x9f0] sm:$0xff] }
 0x252   : > { %8795 = vmatpush1.bf16.msra.mxu1 %v11838_v55 }
 0x253   : > { %8797 = vmatprep.subr.bf16.mxu1 %v11841_v57 }
 0x254   : > { %8543 = vmatpush1.bf16.msra.mxu0 %v8542_v58  ;;  %v1701_v58 = vld [vmem:[#allocation9 + $0xe8] sm:$0xff] }
 0x255   : > { %8545 = vmatprep.subr.bf16.mxu0 %v8544_v59  ;;  %v8562_v59 = vpack.c.bf16 %v974_v52, %v971_v49  ;;  %v11867_v5 = vpack.c.bf16 %v1701_v58, %v1698_v21  ;;  %v11879_v49 = vpack.c.bf16 %v1719_v37, %v1716_v36  ;;  %v8578_v52 = vpack.c.bf16 %v998_v45, %v995_v44  ;;  %v1004_v21 = vld [vmem:[#allocation7 + $0x948] sm:$0xff]  ;;  %v1035_v36 = vld [vmem:[#allocation7 + $0xa40] sm:$0xff]  ;;  %v1034_v44 = vld [vmem:[#allocation7 + $0xa38] sm:$0xff] }
 0x256   : > { %8799 = vmatpush1.bf16.msra.mxu1 %v11844_v2  ;;  %v1008_v58 = vld [vmem:[#allocation7 + $0x968] sm:$0xff]  ;;  %v1038_v45 = vld [vmem:[#allocation7 + $0xa58] sm:$0xff] }
 0x257   : > { %8800 = vmatprep.subr.bf16.mxu1 %v11230_v15 }
 0x258   : > { %8547 = vmatpush1.bf16.msra.mxu0 %v8546_v6  ;;  %v1704_v6 = vld [vmem:[#allocation9 + $0x100] sm:$0xff] }
 0x259   : > { %8549 = vmatprep.subr.bf16.mxu0 %v8548_v7  ;;  %1786 = vmatmul.mubr.f32.vlgmr.msra.gmra.mrb[8].mxu1 %v11229_v50  ;;  %v1707_v7 = vld [vmem:[#allocation9 + $0x118] sm:$0xff] }
 0x25a   : > { %8802 = vmatpush3.bf16.msra.mxu1 %v11848_v14  ;;  %7471 = vmatprep.mubr.msk.f32.mxu1 %vm11231_vm0, %v11229_v50 }
 0x25b   : > { %8803 = vmatprep.subr.bf16.mxu1 %v11230_v15 }
 0x25c   : > { %8551 = vmatpush1.bf16.msra.mxu0 %v8550_v18  ;;  %v11871_v18 = vpack.c.bf16 %v1707_v7, %v1704_v6  ;;  %v1017_v6 = vld [vmem:[#allocation7 + $0x9b0] sm:$0xff] }
 0x25d   : > { %8553 = vmatprep.subr.bf16.mxu0 %v8552_v20  ;;  %v1710_v20 = vld [vmem:[#allocation9 + $0x130] sm:$0xff]  ;;  %v8588_v7 = vpack.c.bf16 %v1017_v6, %v1014_v4 }
 0x25e   : > { %8805 = vmatpush3.bf16.msra.mxu1 %v11853_v29  ;;  %v1053_v4 = vld [vmem:[#allocation7 + $0xad0] sm:$0xff] }
 0x25f   : > { %8806 = vmatprep.subr.bf16.mxu1 %v11230_v15 }
 0x260   : > { %8555 = vmatpush1.bf16.msra.mxu0 %v8554_v34  ;;  %v999_v34 = vld [vmem:[#allocation7 + $0x920] sm:$0xff] }
 0x261   : > { %8557 = vmatprep.subr.bf16.mxu0 %v8556_v35  ;;  %v11875_v35 = vpack.c.bf16 %v1713_v22, %v1710_v20  ;;  %v8576_v42 = vpack.c.bf16 %v999_v34, %v996_v33  ;;  %v1022_v20 = vld [vmem:[#allocation7 + $0x9d8] sm:$0xff]  ;;  %v1028_v33 = vld [vmem:[#allocation7 + $0xa08] sm:$0xff] }
 0x262   : > { %8808 = vmatpush3.bf16.msra.mxu1 %v11859_v43  ;;  %v1026_v22 = vld [vmem:[#allocation7 + $0x9f8] sm:$0xff]  ;;  %v1032_v34 = vld [vmem:[#allocation7 + $0xa28] sm:$0xff]  ;;  %v8598_v37 = vpack.c.bf16 %v1028_v33, %v1025_v30 }
 0x263   : > { %8809 = vmatprep.subr.bf16.mxu1 %v11230_v15  ;;  %v1064_v30 = vld [vmem:[#allocation7 + $0xb28] sm:$0xff] }
 0x264   : > { %8559 = vmatpush1.bf16.msra.mxu0 %v8558_v46  ;;  %v1002_v46 = vld [vmem:[#allocation7 + $0x938] sm:$0xff]  ;;  %v1068_v33 = vld [vmem:[#allocation7 + $0xb48] sm:$0xff] }
 0x265   : > { %8561 = vmatprep.subr.bf16.mxu0 %v8560_v47  ;;  %v1005_v47 = vld [vmem:[#allocation7 + $0x950] sm:$0xff] }
 0x266   : > { %8811 = vmatpush3.bf16.msra.mxu1 %v11863_v32  ;;  %v8580_v53 = vpack.c.bf16 %v1005_v47, %v1002_v46  ;;  %v1041_v46 = vld [vmem:[#allocation7 + $0xa70] sm:$0xff] }
 0x267   : > { %8812 = vmatprep.subr.bf16.mxu1 %v11230_v15 }
 0x268   : > { %8563 = vmatpush1.bf16.msra.mxu0 %v8562_v59  ;;  %v1011_v59 = vld [vmem:[#allocation7 + $0x980] sm:$0xff] }
 0x269   : > { %8565 = vmatprep.subr.bf16.mxu0 %v8564_v60  ;;  %v8582_v60 = vpack.c.bf16 %v1004_v21, %v1001_v54  ;;  %v8584_v63 = vpack.c.bf16 %v1011_v59, %v1008_v58  ;;  %v1040_v54 = vld [vmem:[#allocation7 + $0xa68] sm:$0xff]  ;;  %v1047_v58 = vld [vmem:[#allocation7 + $0xaa0] sm:$0xff] }
 0x26a   : > { %8814 = vmatpush3.bf16.msra.mxu1 %v11867_v5  ;;  %v1044_v21 = vld [vmem:[#allocation7 + $0xa88] sm:$0xff] }
 0x26b   : > { %8815 = vmatprep.subr.bf16.mxu1 %v11230_v15 }
 0x26c   : > { %8567 = vmatpush1.bf16.msra.mxu0 %v8566_v8  ;;  %v1013_v8 = vld [vmem:[#allocation7 + $0x990] sm:$0xff] }
 0x26d   : > { %8569 = vmatprep.subr.bf16.mxu0 %v8568_v9  ;;  %v1020_v9 = vld [vmem:[#allocation7 + $0x9c8] sm:$0xff] }
 0x26e   : > { %8817 = vmatpush3.bf16.msra.mxu1 %v11871_v18  ;;  %v8592_v16 = vpack.c.bf16 %v1023_v12, %v1020_v9  ;;  %v1059_v9 = vld [vmem:[#allocation7 + $0xb00] sm:$0xff] }
 0x26f   : > { %8818 = vmatprep.subr.bf16.mxu1 %v11230_v15 }
 0x270   : > { %8571 = vmatpush1.bf16.msra.mxu0 %v8570_v23  ;;  %v1029_v23 = vld [vmem:[#allocation7 + $0xa10] sm:$0xff] }
 0x271   : > { %8573 = vmatprep.subr.bf16.mxu0 %v8572_v27  ;;  %v8594_v27 = vpack.c.bf16 %v1022_v20, %v1019_v17  ;;  %v8596_v28 = vpack.c.bf16 %v1029_v23, %v1026_v22  ;;  %v1058_v17 = vld [vmem:[#allocation7 + $0xaf8] sm:$0xff]  ;;  %v1065_v22 = vld [vmem:[#allocation7 + $0xb30] sm:$0xff] }
 0x272   : > { %8820 = vmatpush3.bf16.msra.mxu1 %v11875_v35  ;;  %v1062_v20 = vld [vmem:[#allocation7 + $0xb18] sm:$0xff] }
 0x273   : > { %8821 = vmatprep.subr.bf16.mxu1 %v11230_v15 }
 0x274   : > { %8575 = vmatpush1.bf16.msra.mxu0 %v8574_v40  ;;  %v8600_v40 = vpack.c.bf16 %v1035_v36, %v1032_v34  ;;  %v1071_v34 = vld [vmem:[#allocation7 + $0xb60] sm:$0xff] }
 0x275   : > { %8577 = vmatprep.subr.bf16.mxu0 %v8576_v42  ;;  %v1031_v42 = vld [vmem:[#allocation7 + $0xa20] sm:$0xff] }
 0x276   : > { %8823 = vmatpush3.bf16.msra.mxu1 %v11879_v49  ;;  %v8602_v47 = vpack.c.bf16 %v1034_v44, %v1031_v42  ;;  %v1070_v42 = vld [vmem:[#allocation7 + $0xb58] sm:$0xff] }
 0x277   : > { %1315 = vmatmul.mubr.f32.vlgmr.msra.gmra.mrb[0].mxu0 %v11786_v56  ;;  %8825 = vmatprep.subr.bf16.mxu1 %v11793_v25  ;;  %v8586_v56 = vpack.c.bf16 %v1010_v1, %v1007_v0  ;;  %v1046_v0 = vld [vmem:[#allocation7 + $0xa98] sm:$0xff] }
 0x278   : > { %8579 = vmatpush1.bf16.msra.mxu0 %v8578_v52  ;;  %1385 = vmatprep.mubr.f32.mxu0 %v11789_v3  ;;  %v1016_v3 = vld [vmem:[#allocation7 + $0x9a8] sm:$0xff]  ;;  %v8604_v52 = vpack.c.bf16 %v1041_v46, %v1038_v45  ;;  %v1050_v1 = vld [vmem:[#allocation7 + $0xab8] sm:$0xff]  ;;  %v1077_v45 = vld [vmem:[#allocation7 + $0xb90] sm:$0xff] }
 0x279   : > { %8581 = vmatprep.subr.bf16.mxu0 %v8580_v53  ;;  %7472 = vmatmul.mubr.f32.vlgmr.msra.gmra.mrb[10].mxu1 %v11229_v50  ;;  %v8590_v13 = vpack.c.bf16 %v1016_v3, %v1013_v8  ;;  %v1037_v53 = vld [vmem:[#allocation7 + $0xa50] sm:$0xff]  ;;  %v1052_v8 = vld [vmem:[#allocation7 + $0xac8] sm:$0xff]  ;;  %v1074_v44 = vld [vmem:[#allocation7 + $0xb78] sm:$0xff] }
 0x27a   : > { %8827 = vmatpush1.bf16.msra.mxu1 %v11799_v38  ;;  %1949 = vmatprep.mubr.f32.mxu1 %v11229_v50  ;;  %v8606_v59 = vpack.c.bf16 %v1040_v54, %v1037_v53  ;;  %v1056_v3 = vld [vmem:[#allocation7 + $0xae8] sm:$0xff] }
 0x27b   : > { %8829 = vmatprep.subr.bf16.mxu1 %v11802_v39  ;;  %v1076_v53 = vld [vmem:[#allocation7 + $0xb88] sm:$0xff] }
 0x27c   : > { %8583 = vmatpush1.bf16.msra.mxu0 %v8582_v60  ;;  %v8608_v60 = vpack.c.bf16 %v1047_v58, %v1044_v21  ;;  %v1080_v54 = vld [vmem:[#allocation7 + $0xba8] sm:$0xff]  ;;  %v1083_v21 = vld [vmem:[#allocation7 + $0xbc0] sm:$0xff] }
 0x27d   : > { %8585 = vmatprep.subr.bf16.mxu0 %v8584_v63  ;;  %v1043_v63 = vld [vmem:[#allocation7 + $0xa80] sm:$0xff] }
 0x27e   : > { %8831 = vmatpush1.bf16.msra.mxu1 %v11807_v19  ;;  %v8610_v6 = vpack.c.bf16 %v1046_v0, %v1043_v63  ;;  %v1082_v63 = vld [vmem:[#allocation7 + $0xbb8] sm:$0xff] }
 0x27f   : > { %8833 = vmatprep.subr.bf16.mxu1 %v11811_v51  ;;  %v1086_v0 = vld [vmem:[#allocation7 + $0xbd8] sm:$0xff] }
 0x280   : > { %8587 = vmatpush1.bf16.msra.mxu0 %v8586_v56  ;;  %v8612_v56 = vpack.c.bf16 %v1053_v4, %v1050_v1  ;;  %v1089_v1 = vld [vmem:[#allocation7 + $0xbf0] sm:$0xff] }
 0x281   : > { %8589 = vmatprep.subr.bf16.mxu0 %v8588_v7  ;;  %v1049_v7 = vld [vmem:[#allocation7 + $0xab0] sm:$0xff] }
 0x282   : > { %8835 = vmatpush1.bf16.msra.mxu1 %v11814_v61  ;;  %v8614_v12 = vpack.c.bf16 %v1052_v8, %v1049_v7  ;;  %v8636_v7 = vpack.c.bf16 %v1089_v1, %v1086_v0  ;;  %v1085_v8 = vld [vmem:[#allocation7 + $0xbd0] sm:$0xff] }
 0x283   : > { %8837 = vmatprep.subr.bf16.mxu1 %v11817_v62 }
 0x284   : > { %8591 = vmatpush1.bf16.msra.mxu0 %v8590_v13  ;;  %v8616_v13 = vpack.c.bf16 %v1059_v9, %v1056_v3  ;;  %v1088_v3 = vld [vmem:[#allocation7 + $0xbe8] sm:$0xff] }
 0x285   : > { %8593 = vmatprep.subr.bf16.mxu0 %v8592_v16  ;;  %v1055_v16 = vld [vmem:[#allocation7 + $0xae0] sm:$0xff] }
 0x286   : > { %8839 = vmatpush1.bf16.msra.mxu1 %v11820_v10  ;;  %v8618_v23 = vpack.c.bf16 %v1058_v17, %v1055_v16 }
 0x287   : > { %8841 = vmatprep.subr.bf16.mxu1 %v11823_v11 }
 0x288   : > { %8595 = vmatpush1.bf16.msra.mxu0 %v8594_v27  ;;  %v8620_v27 = vpack.c.bf16 %v1065_v22, %v1062_v20  ;;  %v1091_v20 = vld [vmem:[#allocation10] sm:$0x7] }
 0x289   : > { %8597 = vmatprep.subr.bf16.mxu0 %v8596_v28  ;;  %v1061_v28 = vld [vmem:[#allocation7 + $0xb10] sm:$0xff] }
 0x28a   : > { %8843 = vmatpush1.bf16.msra.mxu1 %v11826_v24  ;;  %v8622_v36 = vpack.c.bf16 %v1064_v30, %v1061_v28 }
 0x28b   : > { %8845 = vmatprep.subr.bf16.mxu1 %v11829_v26 }
 0x28c   : > { %8599 = vmatpush1.bf16.msra.mxu0 %v8598_v37  ;;  %v8624_v37 = vpack.c.bf16 %v1071_v34, %v1068_v33 }
 0x28d   : > { %8601 = vmatprep.subr.bf16.mxu0 %v8600_v40  ;;  %v1067_v40 = vld [vmem:[#allocation7 + $0xb40] sm:$0xff] }
 0x28e   : > { %8847 = vmatpush1.bf16.msra.mxu1 %v11832_v41  ;;  %v8626_v46 = vpack.c.bf16 %v1070_v42, %v1067_v40 }
 0x28f   : > { %8849 = vmatprep.subr.bf16.mxu1 %v11835_v48 }
 0x290   : > { %8603 = vmatpush1.bf16.msra.mxu0 %v8602_v47  ;;  %v8628_v47 = vpack.c.bf16 %v1077_v45, %v1074_v44 }
 0x291   : > { %8605 = vmatprep.subr.bf16.mxu0 %v8604_v52  ;;  %v1073_v52 = vld [vmem:[#allocation7 + $0xb70] sm:$0xff] }
 0x292   : > { %8851 = vmatpush1.bf16.msra.mxu1 %v11838_v55  ;;  %v8630_v58 = vpack.c.bf16 %v1076_v53, %v1073_v52 }
 0x293   : > { %8853 = vmatprep.subr.bf16.mxu1 %v11841_v57 }
 0x294   : > { %8607 = vmatpush1.bf16.msra.mxu0 %v8606_v59  ;;  %v8632_v59 = vpack.c.bf16 %v1083_v21, %v1080_v54 }
 0x295   : > { %8609 = vmatprep.subr.bf16.mxu0 %v8608_v60  ;;  %v1079_v60 = vld [vmem:[#allocation7 + $0xba0] sm:$0xff] }
 0x296   : > { %8855 = vmatpush1.bf16.msra.mxu1 %v11844_v2 }
 0x297   : > { %8856 = vmatprep.subr.bf16.mxu1 %v11230_v15 }
 0x298   : > { %8611 = vmatpush1.bf16.msra.mxu0 %v8610_v6  ;;  %v8634_v6 = vpack.c.bf16 %v1082_v63, %v1079_v60 }
 0x299   : > { %8613 = vmatprep.subr.bf16.mxu0 %v8612_v56 }
 0x29c   : > { %8615 = vmatpush1.bf16.msra.mxu0 %v8614_v12  ;;  %v8638_v12 = vpack.c.bf16 %v1088_v3, %v1085_v8 }
 0x29d   : > { %8617 = vmatprep.subr.bf16.mxu0 %v8616_v13  ;;  %v1093_v13 = vlaneseq }
 0x29f   : > { %v1094_v16 = vshrl.u32 %v1093_v13, 7 }
 0x2a0   : > { %8619 = vmatpush1.bf16.msra.mxu0 %v8618_v23 }
 0x2a1   : > { %8621 = vmatprep.subr.bf16.mxu0 %v8620_v27  ;;  %v11913_v17 = vsub.s32 2, %v1094_v16  ;;  %v11928_v54 = vsub.s32 0, %v1094_v16  ;;  %v11930_v21 = vsub.s32 1, %v1094_v16 }
 0x2a4   : > { %8623 = vmatpush1.bf16.msra.mxu0 %v8622_v36 }
 0x2a5   : > { %8625 = vmatprep.subr.bf16.mxu0 %v8624_v37 }
 0x2a8   : > { %8627 = vmatpush1.bf16.msra.mxu0 %v8626_v46 }
 0x2a9   : > { %8629 = vmatprep.subr.bf16.mxu0 %v8628_v47 }
 0x2ac   : > { %v6872_v4 = vpop.f32.mrb[0].mxu1  ;;  %8631 = vmatpush1.bf16.msra.mxu0 %v8630_v58  ;;  %v1096_v58 = vrot.slane %v1091_v20, %v11928_v54 }
 0x2ad   : > { %v6873_v56 = vpop.f32.mrb[1].mxu1  ;;  %8633 = vmatprep.subr.bf16.mxu0 %v8632_v59  ;;  %v1100_v59 = vrot.slane %v1091_v20, %v11930_v21 }
 0x2ae   : > { %v6874_v9 = vadd.f32 %v6873_v56, %v6872_v4 }
 0x2b0   : > { %8635 = vmatpush1.bf16.msra.mxu0 %v8634_v6 }
 0x2b1   : > { %8637 = vmatprep.subr.bf16.mxu0 %v8636_v7 }
 0x2b4   : > { %8639 = vmatpush1.bf16.msra.mxu0 %v8638_v12  ;;  %v11940_v12 = vld [vmem:[#allocation12] sm:$0x1] }
 0x2b5   : > { %8881 = vmatprep.subr.bf16.mxu0 %v11793_v25 }
 0x2b7   : > { %1386 = vmatmul.mubr.f32.vlgmr.msra.gmra.mrb[0].mxu0 %v11796_v31  ;;  %v1104_v31 = vrot.slane %v1091_v20, %v11913_v17 }
 0x2b8   : > { %8883 = vmatpush1.bf16.msra.mxu0 %v11799_v38  ;;  %2128 = vmatprep.mubr.f32.mxu0 %v11229_v50 }
 0x2b9   : > { %8885 = vmatprep.subr.bf16.mxu0 %v11802_v39  ;;  %v1459_v22 = vadd.f32 %v6874_v9, %v1104_v31 }
 0x2bc   : > { %8887 = vmatpush1.bf16.msra.mxu0 %v11807_v19 }
 0x2bd   : > { %8889 = vmatprep.subr.bf16.mxu0 %v11811_v51 }
 0x2c0   : > { %8891 = vmatpush1.bf16.msra.mxu0 %v11814_v61 }
 0x2c1   : > { %8893 = vmatprep.subr.bf16.mxu0 %v11817_v62 }
 0x2c4   : > { %8895 = vmatpush1.bf16.msra.mxu0 %v11820_v10 }
 0x2c5   : > { %8897 = vmatprep.subr.bf16.mxu0 %v11823_v11 }
 0x2c8   : > { %8899 = vmatpush1.bf16.msra.mxu0 %v11826_v24 }
 0x2c9   : > { %8901 = vmatprep.subr.bf16.mxu0 %v11829_v26 }
 0x2cc   : > { %v6907_v23 = vpop.f32.mrb[2].mxu1  ;;  %8903 = vmatpush1.bf16.msra.mxu0 %v11832_v41 }
 0x2cd   : > { %v6908_v27 = vpop.f32.mrb[3].mxu1  ;;  %8905 = vmatprep.subr.bf16.mxu0 %v11835_v48 }
 0x2ce   : > { %v6909_v28 = vadd.f32 %v6908_v27, %v6907_v23 }
 0x2d0   : > { %v1529_v30 = vadd.f32 %v6909_v28, %v1459_v22  ;;  %8907 = vmatpush1.bf16.msra.mxu0 %v11838_v55 }
 0x2d1   : > { %8909 = vmatprep.subr.bf16.mxu0 %v11841_v57 }
 0x2d4   : > { %8911 = vmatpush1.bf16.msra.mxu0 %v11844_v2 }
 0x2d5   : > { %8937 = vmatprep.subr.bf16.mxu0 %v11793_v25 }
 0x2ec   : > { %v6942_v33 = vpop.f32.mrb[4].mxu1 }
 0x2ed   : > { %v6943_v34 = vpop.f32.mrb[5].mxu1 }
 0x2ee   : > { %v6944_v36 = vadd.f32 %v6943_v34, %v6942_v33 }
 0x2f0   : > { %v1599_v37 = vadd.f32 %v6944_v36, %v1529_v30 }
 0x30c   : > { %v6977_v40 = vpop.f32.mrb[6].mxu1 }
 0x30d   : > { %v6978_v42 = vpop.f32.mrb[7].mxu1 }
 0x30e   : > { %v6979_v44 = vadd.f32 %v6978_v42, %v6977_v40 }
 0x310   : > { %v11926_v45 = vadd.f32 %v6979_v44, %v1599_v37 }
 0x32c   : > { %v1787_v46 = vpop.f32.mrb[8].mxu1 }
 0x32d   : > { %v1789_v47 = vpop.f32.mrb[9].mxu1 }
 0x34c   : > { %v1858_v52 = vpop.f32.mrb[10].mxu1 }
 0x34d   : > { %v7473_v53 = vpop.f32.mrb[11].mxu1  ;;  %v1876_v13 = vadd.f32 %v1858_v52, %v11940_v12 }
 0x38a   : > { %v1387_v60 = vpop.f32.mrb[0].mxu0 }
 0x38b   : > { %v11934_v63 = vadd.f32 %v1387_v60, %v1096_v58  ;;  %v1389_v0 = vpop.f32.mrb[1].mxu0 }
 0x38c   : > { %v11936_v1 = vadd.f32 %v1389_v0, %v1100_v59 }
 0x38d   : > { %v1862_v4 = vadd.f32 %v11934_v63, %v1787_v46 }
 0x38e   : > { %v1869_v56 = vadd.f32 %v11936_v1, %v1789_v47 }
 0x38f   : > { %v6788_v6 = vmul.f32 -1.442695, %v1862_v4 }
 0x390   : > { %v6789_v7 = vmul.f32 -1.442695, %v1869_v56 }
 0x391   : > { %10450 = vpow2.f32 %v6788_v6 }
 0x392   : > { %10452 = vpow2.f32 %v6789_v7 }
 0x39b   : > { %v10451_v8 = vpop.eup %10450 }
 0x39c   : > { %v1866_v3 = vadd.f32 1.0, %v10451_v8  ;;  %v10453_v9 = vpop.eup %10452 }
 0x39d   : > { %v1873_v16 = vadd.f32 1.0, %v10453_v9 }
 0x39e   : > { %10454 = vrcp.f32 %v1866_v3 }
 0x39f   : > { %10456 = vrcp.f32 %v1873_v16 }
 0x3a8   : > { %v10455_v20 = vpop.eup %10454 }
 0x3a9   : > { %v1877_v31 = vmul.f32 %v10455_v20, %v1876_v13  ;;  %v10457_v23 = vpop.eup %10456 }
 0x3aa   : > { %v1880_v27 = vsub.f32 1.0, %v10457_v23  ;;  %v1882_v33 = vmul.f32 0.0, %v10457_v23 }
 0x3ab   : > { %v1878_v22 = vadd.f32 %v1877_v31, %v11926_v45 }
 0x3ad   : > { %10458 = vtanh.f32 %v1878_v22 }
 0x3b7   : > { %v10459_v28 = vpop.eup %10458 }
 0x3b8   : > { %v1881_v30 = vmul.f32 %v10459_v28, %v1880_v27 }
 0x3ba   : > { %v1883_v34 = vadd.f32 %v1882_v33, %v1881_v30 }
 0x3bc   : > { %1884 = vst [vmem:[#allocation2] sm:$0x1] %v1883_v34  ;;  %1950 = vmatmul.mubr.f32.vlgmr.msra.gmra.mrb[12].mxu1 %v1883_v34  ;;  %v2056_v0 = vrot.slane %v1883_v34, 7 }
 0x3bd   : > { %8858 = vmatpush3.bf16.msra.mxu1 %v11848_v14  ;;  %7506 = vmatprep.mubr.msk.f32.mxu1 %vm11231_vm0, %v11229_v50 }
 0x3be   : > { %8859 = vmatprep.subr.bf16.mxu1 %v11230_v15 }
 0x3c1   : > { %8861 = vmatpush3.bf16.msra.mxu1 %v11853_v29 }
 0x3c2   : > { %8862 = vmatprep.subr.bf16.mxu1 %v11230_v15 }
 0x3c5   : > { %8864 = vmatpush3.bf16.msra.mxu1 %v11859_v43 }
 0x3c6   : > { %8865 = vmatprep.subr.bf16.mxu1 %v11230_v15 }
 0x3c9   : > { %8867 = vmatpush3.bf16.msra.mxu1 %v11863_v32 }
 0x3ca   : > { %8868 = vmatprep.subr.bf16.mxu1 %v11230_v15 }
 0x3cd   : > { %8870 = vmatpush3.bf16.msra.mxu1 %v11867_v5 }
 0x3ce   : > { %8871 = vmatprep.subr.bf16.mxu1 %v11230_v15 }
 0x3d1   : > { %8873 = vmatpush3.bf16.msra.mxu1 %v11871_v18 }
 0x3d2   : > { %8874 = vmatprep.subr.bf16.mxu1 %v11230_v15 }
 0x3d5   : > { %8876 = vmatpush3.bf16.msra.mxu1 %v11875_v35 }
 0x3d6   : > { %8877 = vmatprep.subr.bf16.mxu1 %v11230_v15 }
 0x3d9   : > { %8879 = vmatpush3.bf16.msra.mxu1 %v11879_v49 }
 0x3da   : > { %8912 = vmatprep.subr.bf16.mxu1 %v11230_v15 }
 0x3dc   : > { %7507 = vmatmul.mubr.f32.vlgmr.msra.gmra.mrb[14].mxu1 %v1883_v34 }
 0x3dd   : > { %8914 = vmatpush3.bf16.msra.mxu1 %v11848_v14  ;;  %7541 = vmatprep.mubr.msk.f32.mxu1 %vm11231_vm0, %v11229_v50 }
 0x3de   : > { %8915 = vmatprep.subr.bf16.mxu1 %v11230_v15 }
 0x3e1   : > { %8917 = vmatpush3.bf16.msra.mxu1 %v11853_v29 }
 0x3e2   : > { %8918 = vmatprep.subr.bf16.mxu1 %v11230_v15 }
 0x3e5   : > { %8920 = vmatpush3.bf16.msra.mxu1 %v11859_v43 }
 0x3e6   : > { %8921 = vmatprep.subr.bf16.mxu1 %v11230_v15 }
 0x3e9   : > { %8923 = vmatpush3.bf16.msra.mxu1 %v11863_v32 }
 0x3ea   : > { %8924 = vmatprep.subr.bf16.mxu1 %v11230_v15 }
 0x3ed   : > { %8926 = vmatpush3.bf16.msra.mxu1 %v11867_v5 }
 0x3ee   : > { %8927 = vmatprep.subr.bf16.mxu1 %v11230_v15 }
 0x3f1   : > { %8929 = vmatpush3.bf16.msra.mxu1 %v11871_v18 }
 0x3f2   : > { %8930 = vmatprep.subr.bf16.mxu1 %v11230_v15 }
 0x3f5   : > { %8932 = vmatpush3.bf16.msra.mxu1 %v11875_v35 }
 0x3f6   : > { %8933 = vmatprep.subr.bf16.mxu1 %v11230_v15 }
 0x3f9   : > { %8935 = vmatpush3.bf16.msra.mxu1 %v11879_v49 }
 0x3fa   : > { %8968 = vmatprep.subr.bf16.mxu1 %v11230_v15 }
 0x48f   : > { %v1951_v36 = vpop.f32.mrb[12].mxu1 }
 0x490   : > { %v2027_v37 = vrot.slane %v1951_v36, 7  ;;  %v1953_v40 = vpop.f32.mrb[13].mxu1 }
 0x491   : > { %v2037_v42 = vrot.slane %v1953_v40, 7 }
 0x492   : > { %v2029_v44 = vadd.f32 %v11934_v63, %v2027_v37 }
 0x493   : > { %v2039_v46 = vadd.f32 %v11936_v1, %v2037_v42 }
 0x494   : > { %v6790_v47 = vmul.f32 -1.442695, %v2029_v44 }
 0x495   : > { %v6791_v52 = vmul.f32 -1.442695, %v2039_v46 }
 0x497   : > { %10460 = vpow2.f32 %v6791_v52 }
 0x498   : > { %10462 = vpow2.f32 %v6790_v47 }
 0x4a1   : > { %v10461_v53 = vpop.eup %10460 }
 0x4a2   : > { %v10463_v58 = vpop.eup %10462  ;;  %v2043_v59 = vadd.f32 1.0, %v10461_v53 }
 0x4a3   : > { %v2033_v60 = vadd.f32 1.0, %v10463_v58 }
 0x4a4   : > { %10464 = vrcp.f32 %v2043_v59 }
 0x4a5   : > { %10466 = vrcp.f32 %v2033_v60 }
 0x4ae   : > { %v10465_v4 = vpop.eup %10464 }
 0x4af   : > { %v2022_v6 = vpop.f32.mrb[14].mxu1  ;;  %v2058_v56 = vmul.f32 %v10465_v4, %v2056_v0  ;;  %v10467_v9 = vpop.eup %10466  ;;  %v2053_v20 = vsub.f32 1.0, %v10465_v4 }
 0x4b0   : > { %v2046_v7 = vadd.f32 %v2022_v6, %v11940_v12  ;;  %v7508_v8 = vpop.f32.mrb[15].mxu1 }
 0x4b2   : > { %v2048_v3 = vrot.slane %v2046_v7, 7 }
 0x4b4   : > { %v2050_v13 = vmul.f32 %v10467_v9, %v2048_v3 }
 0x4b6   : > { %v2051_v16 = vadd.f32 %v2050_v13, %v11926_v45 }
 0x4b8   : > { %10468 = vtanh.f32 %v2051_v16 }
 0x4c2   : > { %v10469_v31 = vpop.eup %10468 }
 0x4c3   : > { %v2054_v22 = vmul.f32 %v10469_v31, %v2053_v20 }
 0x4c5   : > { %v11984_v23 = vadd.f32 %v2058_v56, %v2054_v22 }
 0x4c7   : > { %2060 = vst [vmem:[#allocation2] sm:$0x2] %v11984_v23  ;;  %v2062_v27 = vrot.slane %v11984_v23, 1  ;;  %v2234_v4 = vrot.slane %v11984_v23, 7 }
 0x4c9   : > { %2129 = vmatmul.mubr.f32.vlgmr.msra.gmra.mrb[2].mxu0 %v2062_v27  ;;  %7542 = vmatmul.mubr.f32.vlgmr.msra.gmra.mrb[16].mxu1 %v2062_v27 }
 0x4ca   : > { %8939 = vmatpush1.bf16.msra.mxu0 %v11799_v38  ;;  %8970 = vmatpush3.bf16.msra.mxu1 %v11848_v14 }
 0x4cb   : > { %8941 = vmatprep.subr.bf16.mxu0 %v11802_v39  ;;  %8971 = vmatprep.subr.bf16.mxu1 %v11230_v15 }
 0x4cc   : > { %2306 = vmatprep.mubr.f32.mxu0 %v11229_v50  ;;  %7576 = vmatprep.mubr.msk.f32.mxu1 %vm11231_vm0, %v11229_v50 }
 0x4ce   : > { %8943 = vmatpush1.bf16.msra.mxu0 %v11807_v19  ;;  %8973 = vmatpush3.bf16.msra.mxu1 %v11853_v29 }
 0x4cf   : > { %8945 = vmatprep.subr.bf16.mxu0 %v11811_v51  ;;  %8974 = vmatprep.subr.bf16.mxu1 %v11230_v15 }
 0x4d2   : > { %8947 = vmatpush1.bf16.msra.mxu0 %v11814_v61  ;;  %8976 = vmatpush3.bf16.msra.mxu1 %v11859_v43 }
 0x4d3   : > { %8949 = vmatprep.subr.bf16.mxu0 %v11817_v62  ;;  %8977 = vmatprep.subr.bf16.mxu1 %v11230_v15 }
 0x4d6   : > { %8951 = vmatpush1.bf16.msra.mxu0 %v11820_v10  ;;  %8979 = vmatpush3.bf16.msra.mxu1 %v11863_v32 }
 0x4d7   : > { %8953 = vmatprep.subr.bf16.mxu0 %v11823_v11  ;;  %8980 = vmatprep.subr.bf16.mxu1 %v11230_v15 }
 0x4da   : > { %8955 = vmatpush1.bf16.msra.mxu0 %v11826_v24  ;;  %8982 = vmatpush3.bf16.msra.mxu1 %v11867_v5 }
 0x4db   : > { %8957 = vmatprep.subr.bf16.mxu0 %v11829_v26  ;;  %8983 = vmatprep.subr.bf16.mxu1 %v11230_v15 }
 0x4de   : > { %8959 = vmatpush1.bf16.msra.mxu0 %v11832_v41  ;;  %8985 = vmatpush3.bf16.msra.mxu1 %v11871_v18 }
 0x4df   : > { %8961 = vmatprep.subr.bf16.mxu0 %v11835_v48  ;;  %8986 = vmatprep.subr.bf16.mxu1 %v11230_v15 }
 0x4e2   : > { %8963 = vmatpush1.bf16.msra.mxu0 %v11838_v55  ;;  %8988 = vmatpush3.bf16.msra.mxu1 %v11875_v35 }
 0x4e3   : > { %8965 = vmatprep.subr.bf16.mxu0 %v11841_v57  ;;  %8989 = vmatprep.subr.bf16.mxu1 %v11230_v15 }
 0x4e6   : > { %8967 = vmatpush1.bf16.msra.mxu0 %v11844_v2  ;;  %8991 = vmatpush3.bf16.msra.mxu1 %v11879_v49 }
 0x4e7   : > { %8993 = vmatprep.subr.bf16.mxu0 %v11793_v25  ;;  %9024 = vmatprep.subr.bf16.mxu1 %v11230_v15 }
 0x59c   : > { %v2130_v28 = vpop.f32.mrb[2].mxu0  ;;  %v2201_v30 = vpop.f32.mrb[16].mxu1 }
 0x59d   : > { %v2206_v33 = vrot.slane %v2130_v28, 6  ;;  %v2132_v34 = vpop.f32.mrb[3].mxu0  ;;  %v7543_v36 = vpop.f32.mrb[17].mxu1  ;;  %v2225_v59 = vadd.f32 %v2201_v30, %v11940_v12 }
 0x59e   : > { %v2216_v37 = vrot.slane %v2132_v34, 6 }
 0x59f   : > { %v2208_v40 = vadd.f32 %v11934_v63, %v2206_v33  ;;  %v2227_v60 = vrot.slane %v2225_v59, 6 }
 0x5a0   : > { %v2218_v42 = vadd.f32 %v11936_v1, %v2216_v37 }
 0x5a1   : > { %v6792_v44 = vmul.f32 -1.442695, %v2208_v40 }
 0x5a2   : > { %v6793_v46 = vmul.f32 -1.442695, %v2218_v42 }
 0x5a3   : > { %10470 = vpow2.f32 %v6792_v44 }
 0x5a4   : > { %10472 = vpow2.f32 %v6793_v46 }
 0x5ad   : > { %v10471_v47 = vpop.eup %10470 }
 0x5ae   : > { %v10473_v52 = vpop.eup %10472  ;;  %v2212_v53 = vadd.f32 1.0, %v10471_v47 }
 0x5af   : > { %v2222_v58 = vadd.f32 1.0, %v10473_v52 }
 0x5b0   : > { %10474 = vrcp.f32 %v2212_v53 }
 0x5b1   : > { %10476 = vrcp.f32 %v2222_v58 }
 0x5ba   : > { %v10475_v0 = vpop.eup %10474 }
 0x5bb   : > { %v10477_v6 = vpop.eup %10476  ;;  %v2229_v56 = vmul.f32 %v10475_v0, %v2227_v60 }
 0x5bc   : > { %v2236_v7 = vmul.f32 %v10477_v6, %v2234_v4  ;;  %v2232_v3 = vsub.f32 1.0, %v10477_v6 }
 0x5bd   : > { %v2230_v8 = vadd.f32 %v2229_v56, %v11926_v45 }
 0x5bf   : > { %10478 = vtanh.f32 %v2230_v8 }
 0x5c9   : > { %v10479_v9 = vpop.eup %10478 }
 0x5ca   : > { %v2233_v13 = vmul.f32 %v10479_v9, %v2232_v3 }
 0x5cc   : > { %v12028_v16 = vadd.f32 %v2236_v7, %v2233_v13 }
 0x5ce   : > { %2238 = vst [vmem:[#allocation2] sm:$0x4] %v12028_v16  ;;  %v2240_v20 = vrot.slane %v12028_v16, 2  ;;  %v2412_v58 = vrot.slane %v12028_v16, 7 }
 0x5d0   : > { %2307 = vmatmul.mubr.f32.vlgmr.msra.gmra.mrb[4].mxu0 %v2240_v20  ;;  %7577 = vmatmul.mubr.f32.vlgmr.msra.gmra.mrb[18].mxu1 %v2240_v20 }
 0x5d1   : > { %8995 = vmatpush1.bf16.msra.mxu0 %v11799_v38  ;;  %9026 = vmatpush3.bf16.msra.mxu1 %v11848_v14 }
 0x5d2   : > { %8997 = vmatprep.subr.bf16.mxu0 %v11802_v39  ;;  %9027 = vmatprep.subr.bf16.mxu1 %v11230_v15 }
 0x5d3   : > { %2484 = vmatprep.mubr.f32.mxu0 %v11229_v50  ;;  %7611 = vmatprep.mubr.msk.f32.mxu1 %vm11231_vm0, %v11229_v50 }
 0x5d5   : > { %8999 = vmatpush1.bf16.msra.mxu0 %v11807_v19  ;;  %9029 = vmatpush3.bf16.msra.mxu1 %v11853_v29 }
 0x5d6   : > { %9001 = vmatprep.subr.bf16.mxu0 %v11811_v51  ;;  %9030 = vmatprep.subr.bf16.mxu1 %v11230_v15 }
 0x5d9   : > { %9003 = vmatpush1.bf16.msra.mxu0 %v11814_v61  ;;  %9032 = vmatpush3.bf16.msra.mxu1 %v11859_v43 }
 0x5da   : > { %9005 = vmatprep.subr.bf16.mxu0 %v11817_v62  ;;  %9033 = vmatprep.subr.bf16.mxu1 %v11230_v15 }
 0x5dd   : > { %9007 = vmatpush1.bf16.msra.mxu0 %v11820_v10  ;;  %9035 = vmatpush3.bf16.msra.mxu1 %v11863_v32 }
 0x5de   : > { %9009 = vmatprep.subr.bf16.mxu0 %v11823_v11  ;;  %9036 = vmatprep.subr.bf16.mxu1 %v11230_v15 }
 0x5e1   : > { %9011 = vmatpush1.bf16.msra.mxu0 %v11826_v24  ;;  %9038 = vmatpush3.bf16.msra.mxu1 %v11867_v5 }
 0x5e2   : > { %9013 = vmatprep.subr.bf16.mxu0 %v11829_v26  ;;  %9039 = vmatprep.subr.bf16.mxu1 %v11230_v15 }
 0x5e5   : > { %9015 = vmatpush1.bf16.msra.mxu0 %v11832_v41  ;;  %9041 = vmatpush3.bf16.msra.mxu1 %v11871_v18 }
 0x5e6   : > { %9017 = vmatprep.subr.bf16.mxu0 %v11835_v48  ;;  %9042 = vmatprep.subr.bf16.mxu1 %v11230_v15 }
 0x5e9   : > { %9019 = vmatpush1.bf16.msra.mxu0 %v11838_v55  ;;  %9044 = vmatpush3.bf16.msra.mxu1 %v11875_v35 }
 0x5ea   : > { %9021 = vmatprep.subr.bf16.mxu0 %v11841_v57  ;;  %9045 = vmatprep.subr.bf16.mxu1 %v11230_v15 }
 0x5ed   : > { %9023 = vmatpush1.bf16.msra.mxu0 %v11844_v2  ;;  %9047 = vmatpush3.bf16.msra.mxu1 %v11879_v49 }
 0x5ee   : > { %9049 = vmatprep.subr.bf16.mxu0 %v11793_v25  ;;  %9080 = vmatprep.subr.bf16.mxu1 %v11230_v15 }
 0x6a3   : > { %v2308_v31 = vpop.f32.mrb[4].mxu0  ;;  %v2379_v22 = vpop.f32.mrb[18].mxu1 }
 0x6a4   : > { %v2384_v23 = vrot.slane %v2308_v31, 5  ;;  %v2310_v27 = vpop.f32.mrb[5].mxu0  ;;  %v7578_v28 = vpop.f32.mrb[19].mxu1  ;;  %v2403_v47 = vadd.f32 %v2379_v22, %v11940_v12 }
 0x6a5   : > { %v2394_v30 = vrot.slane %v2310_v27, 5 }
 0x6a6   : > { %v2386_v33 = vadd.f32 %v11934_v63, %v2384_v23  ;;  %v2405_v52 = vrot.slane %v2403_v47, 5 }
 0x6a7   : > { %v2396_v34 = vadd.f32 %v11936_v1, %v2394_v30 }
 0x6a8   : > { %v6794_v36 = vmul.f32 -1.442695, %v2386_v33 }
 0x6a9   : > { %v6795_v37 = vmul.f32 -1.442695, %v2396_v34 }
 0x6aa   : > { %10480 = vpow2.f32 %v6794_v36 }
 0x6ab   : > { %10482 = vpow2.f32 %v6795_v37 }
 0x6b4   : > { %v10481_v40 = vpop.eup %10480 }
 0x6b5   : > { %v10483_v42 = vpop.eup %10482  ;;  %v2390_v44 = vadd.f32 1.0, %v10481_v40 }
 0x6b6   : > { %v2400_v46 = vadd.f32 1.0, %v10483_v42 }
 0x6b7   : > { %10484 = vrcp.f32 %v2390_v44 }
 0x6b8   : > { %10486 = vrcp.f32 %v2400_v46 }
 0x6c1   : > { %v10485_v53 = vpop.eup %10484 }
 0x6c2   : > { %v10487_v59 = vpop.eup %10486  ;;  %v2407_v60 = vmul.f32 %v10485_v53, %v2405_v52 }
 0x6c3   : > { %v2414_v0 = vmul.f32 %v10487_v59, %v2412_v58  ;;  %v2410_v6 = vsub.f32 1.0, %v10487_v59 }
 0x6c4   : > { %v2408_v4 = vadd.f32 %v2407_v60, %v11926_v45 }
 0x6c6   : > { %10488 = vtanh.f32 %v2408_v4 }
 0x6d0   : > { %v10489_v56 = vpop.eup %10488 }
 0x6d1   : > { %v2411_v7 = vmul.f32 %v10489_v56, %v2410_v6 }
 0x6d3   : > { %v12072_v8 = vadd.f32 %v2414_v0, %v2411_v7 }
 0x6d5   : > { %2416 = vst [vmem:[#allocation2] sm:$0x8] %v12072_v8  ;;  %v2418_v3 = vrot.slane %v12072_v8, 3  ;;  %v2590_v46 = vrot.slane %v12072_v8, 7 }
 0x6d7   : > { %2485 = vmatmul.mubr.f32.vlgmr.msra.gmra.mrb[6].mxu0 %v2418_v3  ;;  %7612 = vmatmul.mubr.f32.vlgmr.msra.gmra.mrb[20].mxu1 %v2418_v3 }
 0x6d8   : > { %9051 = vmatpush1.bf16.msra.mxu0 %v11799_v38  ;;  %9082 = vmatpush3.bf16.msra.mxu1 %v11848_v14 }
 0x6d9   : > { %9053 = vmatprep.subr.bf16.mxu0 %v11802_v39  ;;  %9083 = vmatprep.subr.bf16.mxu1 %v11230_v15 }
 0x6da   : > { %2662 = vmatprep.mubr.f32.mxu0 %v11229_v50  ;;  %7646 = vmatprep.mubr.msk.f32.mxu1 %vm11231_vm0, %v11229_v50 }
 0x6dc   : > { %9055 = vmatpush1.bf16.msra.mxu0 %v11807_v19  ;;  %9085 = vmatpush3.bf16.msra.mxu1 %v11853_v29 }
 0x6dd   : > { %9057 = vmatprep.subr.bf16.mxu0 %v11811_v51  ;;  %9086 = vmatprep.subr.bf16.mxu1 %v11230_v15 }
 0x6e0   : > { %9059 = vmatpush1.bf16.msra.mxu0 %v11814_v61  ;;  %9088 = vmatpush3.bf16.msra.mxu1 %v11859_v43 }
 0x6e1   : > { %9061 = vmatprep.subr.bf16.mxu0 %v11817_v62  ;;  %9089 = vmatprep.subr.bf16.mxu1 %v11230_v15 }
 0x6e4   : > { %9063 = vmatpush1.bf16.msra.mxu0 %v11820_v10  ;;  %9091 = vmatpush3.bf16.msra.mxu1 %v11863_v32 }
 0x6e5   : > { %9065 = vmatprep.subr.bf16.mxu0 %v11823_v11  ;;  %9092 = vmatprep.subr.bf16.mxu1 %v11230_v15 }
 0x6e8   : > { %9067 = vmatpush1.bf16.msra.mxu0 %v11826_v24  ;;  %9094 = vmatpush3.bf16.msra.mxu1 %v11867_v5 }
 0x6e9   : > { %9069 = vmatprep.subr.bf16.mxu0 %v11829_v26  ;;  %9095 = vmatprep.subr.bf16.mxu1 %v11230_v15 }
 0x6ec   : > { %9071 = vmatpush1.bf16.msra.mxu0 %v11832_v41  ;;  %9097 = vmatpush3.bf16.msra.mxu1 %v11871_v18 }
 0x6ed   : > { %9073 = vmatprep.subr.bf16.mxu0 %v11835_v48  ;;  %9098 = vmatprep.subr.bf16.mxu1 %v11230_v15 }
 0x6f0   : > { %9075 = vmatpush1.bf16.msra.mxu0 %v11838_v55  ;;  %9100 = vmatpush3.bf16.msra.mxu1 %v11875_v35 }
 0x6f1   : > { %9077 = vmatprep.subr.bf16.mxu0 %v11841_v57  ;;  %9101 = vmatprep.subr.bf16.mxu1 %v11230_v15 }
 0x6f4   : > { %9079 = vmatpush1.bf16.msra.mxu0 %v11844_v2  ;;  %9103 = vmatpush3.bf16.msra.mxu1 %v11879_v49 }
 0x6f5   : > { %9105 = vmatprep.subr.bf16.mxu0 %v11793_v25  ;;  %9136 = vmatprep.subr.bf16.mxu1 %v11230_v15 }
 0x7aa   : > { %v2486_v9 = vpop.f32.mrb[6].mxu0  ;;  %v2557_v13 = vpop.f32.mrb[20].mxu1 }
 0x7ab   : > { %v2562_v16 = vrot.slane %v2486_v9, 4  ;;  %v2488_v20 = vpop.f32.mrb[7].mxu0  ;;  %v7613_v31 = vpop.f32.mrb[21].mxu1  ;;  %v2581_v40 = vadd.f32 %v2557_v13, %v11940_v12 }
 0x7ac   : > { %v2572_v22 = vrot.slane %v2488_v20, 4 }
 0x7ad   : > { %v2564_v23 = vadd.f32 %v11934_v63, %v2562_v16  ;;  %v2583_v42 = vrot.slane %v2581_v40, 4 }
 0x7ae   : > { %v2574_v27 = vadd.f32 %v11936_v1, %v2572_v22 }
 0x7af   : > { %v6796_v28 = vmul.f32 -1.442695, %v2564_v23 }
 0x7b0   : > { %v6797_v30 = vmul.f32 -1.442695, %v2574_v27 }
 0x7b1   : > { %10490 = vpow2.f32 %v6796_v28 }
 0x7b2   : > { %10492 = vpow2.f32 %v6797_v30 }
 0x7bb   : > { %v10491_v33 = vpop.eup %10490 }
 0x7bc   : > { %v10493_v34 = vpop.eup %10492  ;;  %v2568_v36 = vadd.f32 1.0, %v10491_v33 }
 0x7bd   : > { %v2578_v37 = vadd.f32 1.0, %v10493_v34 }
 0x7be   : > { %10494 = vrcp.f32 %v2568_v36 }
 0x7bf   : > { %10496 = vrcp.f32 %v2578_v37 }
 0x7c8   : > { %v10495_v44 = vpop.eup %10494 }
 0x7c9   : > { %v10497_v47 = vpop.eup %10496  ;;  %v2585_v52 = vmul.f32 %v10495_v44, %v2583_v42 }
 0x7ca   : > { %v2592_v53 = vmul.f32 %v10497_v47, %v2590_v46  ;;  %v2588_v59 = vsub.f32 1.0, %v10497_v47 }
 0x7cb   : > { %v2586_v58 = vadd.f32 %v2585_v52, %v11926_v45 }
 0x7cd   : > { %10498 = vtanh.f32 %v2586_v58 }
 0x7d7   : > { %v10499_v60 = vpop.eup %10498 }
 0x7d8   : > { %v2589_v0 = vmul.f32 %v10499_v60, %v2588_v59 }
 0x7da   : > { %v12116_v4 = vadd.f32 %v2592_v53, %v2589_v0 }
 0x7dc   : > { %2594 = vst [vmem:[#allocation2] sm:$0x10] %v12116_v4  ;;  %v2596_v6 = vrot.slane %v12116_v4, 4  ;;  %v2768_v36 = vrot.slane %v12116_v4, 7 }
 0x7de   : > { %2663 = vmatmul.mubr.f32.vlgmr.msra.gmra.mrb[8].mxu0 %v2596_v6  ;;  %7647 = vmatmul.mubr.f32.vlgmr.msra.gmra.mrb[22].mxu1 %v2596_v6  ;;  %v3134_v6 = vld [vmem:[#allocation13 + $0x20] sm:$0xff] }
 0x7df   : > { %9107 = vmatpush1.bf16.msra.mxu0 %v11799_v38  ;;  %9138 = vmatpush3.bf16.msra.mxu1 %v11848_v14 }
 0x7e0   : > { %9109 = vmatprep.subr.bf16.mxu0 %v11802_v39  ;;  %9139 = vmatprep.subr.bf16.mxu1 %v11230_v15 }
 0x7e1   : > { %2840 = vmatprep.mubr.f32.mxu0 %v11229_v50  ;;  %7681 = vmatprep.mubr.msk.f32.mxu1 %vm11231_vm0, %v11229_v50 }
 0x7e3   : > { %9111 = vmatpush1.bf16.msra.mxu0 %v11807_v19  ;;  %9141 = vmatpush3.bf16.msra.mxu1 %v11853_v29 }
 0x7e4   : > { %9113 = vmatprep.subr.bf16.mxu0 %v11811_v51  ;;  %9142 = vmatprep.subr.bf16.mxu1 %v11230_v15 }
 0x7e7   : > { %9115 = vmatpush1.bf16.msra.mxu0 %v11814_v61  ;;  %9144 = vmatpush3.bf16.msra.mxu1 %v11859_v43 }
 0x7e8   : > { %9117 = vmatprep.subr.bf16.mxu0 %v11817_v62  ;;  %9145 = vmatprep.subr.bf16.mxu1 %v11230_v15 }
 0x7eb   : > { %9119 = vmatpush1.bf16.msra.mxu0 %v11820_v10  ;;  %9147 = vmatpush3.bf16.msra.mxu1 %v11863_v32 }
 0x7ec   : > { %9121 = vmatprep.subr.bf16.mxu0 %v11823_v11  ;;  %9148 = vmatprep.subr.bf16.mxu1 %v11230_v15 }
 0x7ef   : > { %9123 = vmatpush1.bf16.msra.mxu0 %v11826_v24  ;;  %9150 = vmatpush3.bf16.msra.mxu1 %v11867_v5 }
 0x7f0   : > { %9125 = vmatprep.subr.bf16.mxu0 %v11829_v26  ;;  %9151 = vmatprep.subr.bf16.mxu1 %v11230_v15 }
 0x7f3   : > { %9127 = vmatpush1.bf16.msra.mxu0 %v11832_v41  ;;  %9153 = vmatpush3.bf16.msra.mxu1 %v11871_v18 }
 0x7f4   : > { %9129 = vmatprep.subr.bf16.mxu0 %v11835_v48  ;;  %9154 = vmatprep.subr.bf16.mxu1 %v11230_v15 }
 0x7f7   : > { %9131 = vmatpush1.bf16.msra.mxu0 %v11838_v55  ;;  %9156 = vmatpush3.bf16.msra.mxu1 %v11875_v35 }
 0x7f8   : > { %9133 = vmatprep.subr.bf16.mxu0 %v11841_v57  ;;  %9157 = vmatprep.subr.bf16.mxu1 %v11230_v15 }
 0x7fb   : > { %9135 = vmatpush1.bf16.msra.mxu0 %v11844_v2  ;;  %9159 = vmatpush3.bf16.msra.mxu1 %v11879_v49 }
 0x7fc   : > { %9161 = vmatprep.subr.bf16.mxu0 %v11793_v25  ;;  %9192 = vmatprep.subr.bf16.mxu1 %v11230_v15 }
 0x8b1   : > { %v2664_v56 = vpop.f32.mrb[8].mxu0  ;;  %v2735_v7 = vpop.f32.mrb[22].mxu1 }
 0x8b2   : > { %v2740_v8 = vrot.slane %v2664_v56, 3  ;;  %v2666_v3 = vpop.f32.mrb[9].mxu0  ;;  %v7648_v9 = vpop.f32.mrb[23].mxu1  ;;  %v2759_v30 = vadd.f32 %v2735_v7, %v11940_v12  ;;  %v3130_v7 = vld [vmem:[#allocation13] sm:$0xff] }
 0x8b3   : > { %v2750_v13 = vrot.slane %v2666_v3, 3  ;;  %v3132_v9 = vld [vmem:[#allocation13 + $0x10] sm:$0xff] }
 0x8b4   : > { %v2742_v16 = vadd.f32 %v11934_v63, %v2740_v8  ;;  %v2761_v33 = vrot.slane %v2759_v30, 3  ;;  %v3133_v8 = vld [vmem:[#allocation13 + $0x18] sm:$0xff] }
 0x8b5   : > { %v2752_v20 = vadd.f32 %v11936_v1, %v2750_v13  ;;  %v9218_v3 = vpack.c.bf16 %v3133_v8, %v3130_v7  ;;  %v3135_v13 = vld [vmem:[#allocation13 + $0x28] sm:$0xff]  ;;  %v3141_v30 = vld [vmem:[#allocation13 + $0x58] sm:$0xff] }
 0x8b6   : > { %v6798_v31 = vmul.f32 -1.442695, %v2742_v16  ;;  %v9249_v16 = vpack.c.bf16 %v3135_v13, %v3132_v9  ;;  %v3169_v7 = vld [vmem:[#allocation13 + $0x138] sm:$0xff]  ;;  %v3171_v9 = vld [vmem:[#allocation13 + $0x148] sm:$0xff] }
 0x8b7   : > { %v6799_v22 = vmul.f32 -1.442695, %v2752_v20  ;;  %v3137_v20 = vld [vmem:[#allocation13 + $0x38] sm:$0xff] }
 0x8b8   : > { %10500 = vpow2.f32 %v6798_v31  ;;  %v3140_v31 = vld [vmem:[#allocation13 + $0x50] sm:$0xff] }
 0x8b9   : > { %10502 = vpow2.f32 %v6799_v22  ;;  %v9220_v22 = vpack.c.bf16 %v3140_v31, %v3137_v20  ;;  %v3176_v20 = vld [vmem:[#allocation13 + $0x170] sm:$0xff] }
 0x8ba   : > { %v3172_v31 = vld [vmem:[#allocation13 + $0x150] sm:$0xff] }
 0x8c2   : > { %v10501_v23 = vpop.eup %10500 }
 0x8c3   : > { %v10503_v27 = vpop.eup %10502  ;;  %v2746_v28 = vadd.f32 1.0, %v10501_v23  ;;  %v3136_v23 = vld [vmem:[#allocation13 + $0x30] sm:$0xff] }
 0x8c4   : > { %v2756_v25 = vadd.f32 1.0, %v10503_v27  ;;  %v3139_v27 = vld [vmem:[#allocation13 + $0x48] sm:$0xff] }
 0x8c5   : > { %10504 = vrcp.f32 %v2746_v28  ;;  %v9222_v28 = vpack.c.bf16 %v3139_v27, %v3136_v23  ;;  %v3175_v23 = vld [vmem:[#allocation13 + $0x168] sm:$0xff]  ;;  %v3174_v27 = vld [vmem:[#allocation13 + $0x160] sm:$0xff] }
 0x8c6   : > { %10506 = vrcp.f32 %v2756_v25  ;;  %v3138_v25 = vld [vmem:[#allocation13 + $0x40] sm:$0xff] }
 0x8cf   : > { %v10505_v34 = vpop.eup %10504 }
 0x8d0   : > { %v10507_v37 = vpop.eup %10506  ;;  %v2763_v40 = vmul.f32 %v10505_v34, %v2761_v33  ;;  %v9252_v33 = vpack.c.bf16 %v3141_v30, %v3138_v25  ;;  %v3143_v34 = vld [vmem:[#allocation13 + $0x68] sm:$0xff]  ;;  %v9246_v25 = vpack.c.bf16 %v3175_v23, %v3172_v31  ;;  %v3358_v23 = vld [vmem:[#allocation15 + $0xb0] sm:$0xff] }
 0x8d1   : > { %v2770_v42 = vmul.f32 %v10507_v37, %v2768_v36  ;;  %v2766_v46 = vsub.f32 1.0, %v10507_v37  ;;  %v3146_v36 = vld [vmem:[#allocation13 + $0x80] sm:$0xff]  ;;  %v3353_v31 = vld [vmem:[#allocation15 + $0x88] sm:$0xff] }
 0x8d2   : > { %v2764_v44 = vadd.f32 %v2763_v40, %v11926_v45  ;;  %v9224_v37 = vpack.c.bf16 %v3146_v36, %v3143_v34  ;;  %v3142_v40 = vld [vmem:[#allocation13 + $0x60] sm:$0xff] }
 0x8d3   : > { %v3340_v34 = vld [vmem:[#allocation15 + $0x20] sm:$0xff] }
 0x8d4   : > { %10508 = vtanh.f32 %v2764_v44 }
 0x8de   : > { %v10509_v47 = vpop.eup %10508 }
 0x8df   : > { %v2767_v52 = vmul.f32 %v10509_v47, %v2766_v46  ;;  %v3144_v46 = vld [vmem:[#allocation13 + $0x70] sm:$0xff]  ;;  %v3147_v47 = vld [vmem:[#allocation13 + $0x88] sm:$0xff] }
 0x8e1   : > { %v12160_v53 = vadd.f32 %v2770_v42, %v2767_v52  ;;  %v3145_v42 = vld [vmem:[#allocation13 + $0x78] sm:$0xff]  ;;  %v9255_v52 = vpack.c.bf16 %v3147_v47, %v3144_v46 }
 0x8e2   : > { %v9226_v44 = vpack.c.bf16 %v3145_v42, %v3142_v40 }
 0x8e3   : > { %2772 = vst [vmem:[#allocation2] sm:$0x20] %v12160_v53  ;;  %v2774_v58 = vrot.slane %v12160_v53, 5 }
 0x8e5   : > { %2841 = vmatmul.mubr.f32.vlgmr.msra.gmra.mrb[10].mxu0 %v2774_v58  ;;  %7682 = vmatmul.mubr.f32.vlgmr.msra.gmra.mrb[24].mxu1 %v2774_v58  ;;  %v3152_v58 = vld [vmem:[#allocation13 + $0xb0] sm:$0xff] }
 0x8e6   : > { %9163 = vmatpush1.bf16.msra.mxu0 %v11799_v38  ;;  %9194 = vmatpush3.bf16.msra.mxu1 %v11848_v14 }
 0x8e7   : > { %9165 = vmatprep.subr.bf16.mxu0 %v11802_v39  ;;  %9195 = vmatprep.subr.bf16.mxu1 %v11230_v15 }
 0x8e8   : > { %3018 = vmatprep.mubr.f32.mxu0 %v11229_v50  ;;  %7716 = vmatprep.mubr.msk.f32.mxu1 %vm11231_vm0, %v11229_v50 }
 0x8ea   : > { %9167 = vmatpush1.bf16.msra.mxu0 %v11807_v19  ;;  %9197 = vmatpush3.bf16.msra.mxu1 %v11853_v29 }
 0x8eb   : > { %9169 = vmatprep.subr.bf16.mxu0 %v11811_v51  ;;  %9198 = vmatprep.subr.bf16.mxu1 %v11230_v15 }
 0x8ee   : > { %9171 = vmatpush1.bf16.msra.mxu0 %v11814_v61  ;;  %9200 = vmatpush3.bf16.msra.mxu1 %v11859_v43  ;;  %v2946_v43 = vrot.slane %v12160_v53, 7  ;;  %v3149_v53 = vld [vmem:[#allocation13 + $0x98] sm:$0xff] }
 0x8ef   : > { %9173 = vmatprep.subr.bf16.mxu0 %v11817_v62  ;;  %9201 = vmatprep.subr.bf16.mxu1 %v11230_v15 }
 0x8f2   : > { %9175 = vmatpush1.bf16.msra.mxu0 %v11820_v10  ;;  %9203 = vmatpush3.bf16.msra.mxu1 %v11863_v32 }
 0x8f3   : > { %9177 = vmatprep.subr.bf16.mxu0 %v11823_v11  ;;  %9204 = vmatprep.subr.bf16.mxu1 %v11230_v15 }
 0x8f6   : > { %9179 = vmatpush1.bf16.msra.mxu0 %v11826_v24  ;;  %9206 = vmatpush3.bf16.msra.mxu1 %v11867_v5 }
 0x8f7   : > { %9181 = vmatprep.subr.bf16.mxu0 %v11829_v26  ;;  %9207 = vmatprep.subr.bf16.mxu1 %v11230_v15 }
 0x8fa   : > { %9183 = vmatpush1.bf16.msra.mxu0 %v11832_v41  ;;  %9209 = vmatpush3.bf16.msra.mxu1 %v11871_v18 }
 0x8fb   : > { %9185 = vmatprep.subr.bf16.mxu0 %v11835_v48  ;;  %9210 = vmatprep.subr.bf16.mxu1 %v11230_v15 }
 0x8fe   : > { %9187 = vmatpush1.bf16.msra.mxu0 %v11838_v55  ;;  %9212 = vmatpush3.bf16.msra.mxu1 %v11875_v35 }
 0x8ff   : > { %9189 = vmatprep.subr.bf16.mxu0 %v11841_v57  ;;  %9213 = vmatprep.subr.bf16.mxu1 %v11230_v15 }
 0x902   : > { %9191 = vmatpush1.bf16.msra.mxu0 %v11844_v2  ;;  %9215 = vmatpush3.bf16.msra.mxu1 %v11879_v49 }
 0x903   : > { %9248 = vmatprep.subr.bf16.mxu1 %v11230_v15 }
 0x9b8   : > { %v2842_v38 = vpop.f32.mrb[10].mxu0  ;;  %v2913_v39 = vpop.f32.mrb[24].mxu1 }
 0x9b9   : > { %v2918_v19 = vrot.slane %v2842_v38, 2  ;;  %v2844_v51 = vpop.f32.mrb[11].mxu0  ;;  %v7683_v61 = vpop.f32.mrb[25].mxu1  ;;  %v2937_v2 = vadd.f32 %v2913_v39, %v11940_v12  ;;  %v3131_v12 = vld [vmem:[#allocation13 + $0x8] sm:$0xff]  ;;  %v9228_v38 = vpack.c.bf16 %v3152_v58, %v3149_v53  ;;  %v3148_v39 = vld [vmem:[#allocation13 + $0x90] sm:$0xff] }
 0x9ba   : > { %v2928_v62 = vrot.slane %v2844_v51, 2  ;;  %v9216_v56 = vpack.c.bf16 %v3134_v6, %v3131_v12  ;;  %v3150_v61 = vld [vmem:[#allocation13 + $0xa0] sm:$0xff] }
 0x9bb   : > { %v2920_v10 = vadd.f32 %v11934_v63, %v2918_v19  ;;  %v2939_v14 = vrot.slane %v2937_v2, 2  ;;  %v3151_v19 = vld [vmem:[#allocation13 + $0xa8] sm:$0xff]  ;;  %v3170_v12 = vld [vmem:[#allocation13 + $0x140] sm:$0xff] }
 0x9bc   : > { %v2930_v11 = vadd.f32 %v11936_v1, %v2928_v62  ;;  %9217 = vmatprep.subr.bf16.mxu0 %v9216_v56  ;;  %v9230_v51 = vpack.c.bf16 %v3151_v19, %v3148_v39  ;;  %v3153_v62 = vld [vmem:[#allocation13 + $0xb8] sm:$0xff]  ;;  %v3159_v2 = vld [vmem:[#allocation13 + $0xe8] sm:$0xff]  ;;  %v3166_v56 = vld [vmem:[#allocation13 + $0x120] sm:$0xff] }
 0x9bd   : > { %v6800_v24 = vmul.f32 -1.442695, %v2920_v10  ;;  %v9258_v10 = vpack.c.bf16 %v3153_v62, %v3150_v61  ;;  %v9242_v8 = vpack.c.bf16 %v3169_v7, %v3166_v56  ;;  %v10690_v62 = vld [vmem:[#allocation12] sm:$0x1]  ;;  %v3349_v56 = vld [vmem:[#allocation15 + $0x68] sm:$0xff]  ;;  %v3352_v7 = vld [vmem:[#allocation15 + $0x80] sm:$0xff] }
 0x9be   : > { %v6801_v26 = vmul.f32 -1.442695, %v2930_v11  ;;  %v3155_v11 = vld [vmem:[#allocation13 + $0xc8] sm:$0xff] }
 0x9bf   : > { %10510 = vpow2.f32 %v6800_v24  ;;  %v3158_v24 = vld [vmem:[#allocation13 + $0xe0] sm:$0xff] }
 0x9c0   : > { %10512 = vpow2.f32 %v6801_v26  ;;  %v9232_v26 = vpack.c.bf16 %v3158_v24, %v3155_v11 }
 0x9c9   : > { %v10511_v41 = vpop.eup %10510 }
 0x9ca   : > { %v10513_v48 = vpop.eup %10512  ;;  %v2924_v55 = vadd.f32 1.0, %v10511_v41  ;;  %v3154_v41 = vld [vmem:[#allocation13 + $0xc0] sm:$0xff] }
 0x9cb   : > { %v2934_v57 = vadd.f32 1.0, %v10513_v48  ;;  %v3157_v48 = vld [vmem:[#allocation13 + $0xd8] sm:$0xff] }
 0x9cc   : > { %10514 = vrcp.f32 %v2924_v55  ;;  %v9234_v55 = vpack.c.bf16 %v3157_v48, %v3154_v41 }
 0x9cd   : > { %10516 = vrcp.f32 %v2934_v57  ;;  %v3156_v57 = vld [vmem:[#allocation13 + $0xd0] sm:$0xff] }
 0x9d6   : > { %v10515_v29 = vpop.eup %10514 }
 0x9d7   : > { %v10517_v32 = vpop.eup %10516  ;;  %v2941_v5 = vmul.f32 %v10515_v29, %v2939_v14  ;;  %v9261_v14 = vpack.c.bf16 %v3159_v2, %v3156_v57  ;;  %v3161_v29 = vld [vmem:[#allocation13 + $0xf8] sm:$0xff] }
 0x9d8   : > { %v2948_v18 = vmul.f32 %v10517_v32, %v2946_v43  ;;  %v2944_v49 = vsub.f32 1.0, %v10517_v32  ;;  %v3164_v43 = vld [vmem:[#allocation13 + $0x110] sm:$0xff] }
 0x9d9   : > { %v2942_v35 = vadd.f32 %v2941_v5, %v11926_v45  ;;  %v9236_v32 = vpack.c.bf16 %v3164_v43, %v3161_v29  ;;  %v3160_v5 = vld [vmem:[#allocation13 + $0xf0] sm:$0xff]  ;;  %v3336_v29 = vld [vmem:[#allocation15] sm:$0xff]  ;;  %v3339_v43 = vld [vmem:[#allocation15 + $0x18] sm:$0xff] }
 0x9db   : > { %10518 = vtanh.f32 %v2942_v35 }
 0x9e5   : > { %v10519_v59 = vpop.eup %10518 }
 0x9e6   : > { %v2945_v60 = vmul.f32 %v10519_v59, %v2944_v49  ;;  %v3162_v49 = vld [vmem:[#allocation13 + $0x100] sm:$0xff]  ;;  %v3165_v59 = vld [vmem:[#allocation13 + $0x118] sm:$0xff] }
 0x9e8   : > { %v12203_v0 = vadd.f32 %v2948_v18, %v2945_v60  ;;  %v3163_v18 = vld [vmem:[#allocation13 + $0x108] sm:$0xff]  ;;  %v9264_v60 = vpack.c.bf16 %v3165_v59, %v3162_v49  ;;  %v12225_v49 = vpack.c.bf16 %v3339_v43, %v3336_v29  ;;  %v3379_v43 = vld [vmem:[#allocation15 + $0x158] sm:$0xff] }
 0x9e9   : > { %v9238_v35 = vpack.c.bf16 %v3163_v18, %v3160_v5  ;;  %v3341_v5 = vld [vmem:[#allocation15 + $0x28] sm:$0xff]  ;;  %v3343_v18 = vld [vmem:[#allocation15 + $0x38] sm:$0xff] }
 0x9ea   : > { %2950 = vst [vmem:[#allocation2] sm:$0x40] %v12203_v0  ;;  %v2952_v4 = vrot.slane %v12203_v0, 6  ;;  %v3377_v29 = vld [vmem:[#allocation15 + $0x148] sm:$0xff] }
 0x9ec   : > { %3019 = vmatmul.mubr.f32.vlgmr.msra.gmra.mrb[12].mxu0 %v2952_v4  ;;  %7717 = vmatmul.mubr.f32.vlgmr.msra.gmra.mrb[26].mxu1 %v2952_v4  ;;  %v3167_v4 = vld [vmem:[#allocation13 + $0x128] sm:$0xff] }
 0x9ed   : > { %3259 = vmatprep.mubr.f32.mxu0 %v11229_v50  ;;  %7751 = vmatprep.mubr.msk.f32.mxu1 %vm11231_vm0, %v11229_v50  ;;  %v9240_v6 = vpack.c.bf16 %v3170_v12, %v3167_v4  ;;  %v3344_v4 = vld [vmem:[#allocation15 + $0x40] sm:$0xff]  ;;  %v3347_v12 = vld [vmem:[#allocation15 + $0x58] sm:$0xff] }
 0x9ee   : > { %9219 = vmatpush1.bf16.msra.mxu0 %v9218_v3  ;;  %9250 = vmatpush3.bf16.msra.mxu1 %v9249_v16  ;;  %v3168_v3 = vld [vmem:[#allocation13 + $0x130] sm:$0xff]  ;;  %v3173_v16 = vld [vmem:[#allocation13 + $0x158] sm:$0xff] }
 0x9ef   : > { %9251 = vmatprep.subr.bf16.mxu1 %v11230_v15  ;;  %9221 = vmatprep.subr.bf16.mxu0 %v9220_v22  ;;  %v9267_v13 = vpack.c.bf16 %v3171_v9, %v3168_v3  ;;  %v9244_v22 = vpack.c.bf16 %v3176_v20, %v3173_v16  ;;  %v3348_v3 = vld [vmem:[#allocation15 + $0x60] sm:$0xff]  ;;  %v12235_v9 = vpack.c.bf16 %v3347_v12, %v3344_v4  ;;  %v3351_v16 = vld [vmem:[#allocation15 + $0x78] sm:$0xff]  ;;  %v3350_v20 = vld [vmem:[#allocation15 + $0x70] sm:$0xff] }
 0x9f0   : > { %v3380_v4 = vld [vmem:[#allocation15 + $0x160] sm:$0xff]  ;;  %v3383_v12 = vld [vmem:[#allocation15 + $0x178] sm:$0xff] }
 0x9f2   : > { %9223 = vmatpush1.bf16.msra.mxu0 %v9222_v28  ;;  %9253 = vmatpush3.bf16.msra.mxu1 %v9252_v33  ;;  %v3177_v28 = vld [vmem:[#allocation13 + $0x178] sm:$0xff]  ;;  %v3337_v33 = vld [vmem:[#allocation15 + $0x8] sm:$0xff] }
 0x9f3   : > { %9254 = vmatprep.subr.bf16.mxu1 %v11230_v15  ;;  %9225 = vmatprep.subr.bf16.mxu0 %v9224_v37  ;;  %v9270_v30 = vpack.c.bf16 %v3177_v28, %v3174_v27  ;;  %v12217_v36 = vpack.c.bf16 %v3340_v34, %v3337_v33  ;;  %v12245_v27 = vpack.c.bf16 %v3351_v16, %v3348_v3  ;;  %v3354_v28 = vld [vmem:[#allocation15 + $0x90] sm:$0xff]  ;;  %v3357_v33 = vld [vmem:[#allocation15 + $0xa8] sm:$0xff]  ;;  %v3356_v34 = vld [vmem:[#allocation15 + $0xa0] sm:$0xff] }
 0x9f6   : > { %9227 = vmatpush1.bf16.msra.mxu0 %v9226_v44  ;;  %9256 = vmatpush3.bf16.msra.mxu1 %v9255_v52 }
 0x9f7   : > { %9257 = vmatprep.subr.bf16.mxu1 %v11230_v15  ;;  %9229 = vmatprep.subr.bf16.mxu0 %v9228_v38 }
 0x9fa   : > { %9231 = vmatpush1.bf16.msra.mxu0 %v9230_v51  ;;  %9259 = vmatpush3.bf16.msra.mxu1 %v9258_v10 }
 0x9fb   : > { %9260 = vmatprep.subr.bf16.mxu1 %v11230_v15  ;;  %9233 = vmatprep.subr.bf16.mxu0 %v9232_v26  ;;  %v3124_v26 = vrot.slane %v12203_v0, 7  ;;  %v3342_v0 = vld [vmem:[#allocation15 + $0x30] sm:$0xff] }
 0x9fe   : > { %9235 = vmatpush1.bf16.msra.mxu0 %v9234_v55  ;;  %9262 = vmatpush3.bf16.msra.mxu1 %v9261_v14 }
 0x9ff   : > { %9263 = vmatprep.subr.bf16.mxu1 %v11230_v15  ;;  %9237 = vmatprep.subr.bf16.mxu0 %v9236_v32  ;;  %v3338_v32 = vld [vmem:[#allocation15 + $0x10] sm:$0xff] }
 0xa00   : > { %v12227_v59 = vpack.c.bf16 %v3341_v5, %v3338_v32  ;;  %v3382_v32 = vld [vmem:[#allocation15 + $0x170] sm:$0xff] }
 0xa02   : > { %9239 = vmatpush1.bf16.msra.mxu0 %v9238_v35  ;;  %9265 = vmatpush3.bf16.msra.mxu1 %v9264_v60  ;;  %v3346_v35 = vld [vmem:[#allocation15 + $0x50] sm:$0xff] }
 0xa03   : > { %9266 = vmatprep.subr.bf16.mxu1 %v11230_v15  ;;  %9241 = vmatprep.subr.bf16.mxu0 %v9240_v6  ;;  %v12229_v60 = vpack.c.bf16 %v3346_v35, %v3343_v18  ;;  %v3378_v18 = vld [vmem:[#allocation15 + $0x150] sm:$0xff] }
 0xa06   : > { %9243 = vmatpush1.bf16.msra.mxu0 %v9242_v8  ;;  %9268 = vmatpush3.bf16.msra.mxu1 %v9267_v13  ;;  %v12238_v13 = vpack.c.bf16 %v3352_v7, %v3349_v56  ;;  %v12298_v56 = vpack.c.bf16 %v3383_v12, %v3380_v4 }
 0xa07   : > { %9269 = vmatprep.subr.bf16.mxu1 %v11230_v15  ;;  %9245 = vmatprep.subr.bf16.mxu0 %v9244_v22  ;;  %v3355_v22 = vld [vmem:[#allocation15 + $0x98] sm:$0xff] }
 0xa0a   : > { %9247 = vmatpush1.bf16.msra.mxu0 %v9246_v25  ;;  %9271 = vmatpush3.bf16.msra.mxu1 %v9270_v30  ;;  %v12248_v25 = vpack.c.bf16 %v3353_v31, %v3350_v20  ;;  %v12251_v30 = vpack.c.bf16 %v3358_v23, %v3355_v22  ;;  %v3178_v31 = vld [vmem:[#allocation16] sm:$0x7] }
 0xa0b   : > { %9273 = vmatprep.subr.bf16.mxu0 %v12217_v36  ;;  %9304 = vmatprep.subr.bf16.mxu1 %v11230_v15  ;;  %v3183_v22 = vrot.slane %v3178_v31, %v11928_v54  ;;  %v3187_v23 = vrot.slane %v3178_v31, %v11930_v21 }
 0xabf   : > { %v3020_v37 = vpop.f32.mrb[12].mxu0  ;;  %v3091_v40 = vpop.f32.mrb[26].mxu1 }
 0xac0   : > { %v3096_v42 = vrot.slane %v3020_v37, 1  ;;  %v3022_v44 = vpop.f32.mrb[13].mxu0  ;;  %v7718_v46 = vpop.f32.mrb[27].mxu1  ;;  %v3115_v10 = vadd.f32 %v10690_v62, %v3091_v40  ;;  %v3359_v37 = vld [vmem:[#allocation15 + $0xb8] sm:$0xff]  ;;  %v3361_v40 = vld [vmem:[#allocation15 + $0xc8] sm:$0xff] }
 0xac1   : > { %v3106_v47 = vrot.slane %v3022_v44, 1  ;;  %v12255_v44 = vpack.c.bf16 %v3357_v33, %v3354_v28  ;;  %v3360_v46 = vld [vmem:[#allocation15 + $0xc0] sm:$0xff] }
 0xac2   : > { %v3098_v52 = vadd.f32 %v11934_v63, %v3096_v42  ;;  %v3117_v11 = vrot.slane %v3115_v10, 1  ;;  %v3364_v42 = vld [vmem:[#allocation15 + $0xe0] sm:$0xff] }
 0xac3   : > { %v3108_v53 = vadd.f32 %v11936_v1, %v3106_v47  ;;  %v12258_v47 = vpack.c.bf16 %v3359_v37, %v3356_v34 }
 0xac4   : > { %v6802_v58 = vmul.f32 -1.442695, %v3098_v52  ;;  %v12261_v52 = vpack.c.bf16 %v3364_v42, %v3361_v40 }
 0xac5   : > { %v6803_v38 = vmul.f32 -1.442695, %v3108_v53  ;;  %v3363_v53 = vld [vmem:[#allocation15 + $0xd8] sm:$0xff] }
 0xac6   : > { %10520 = vpow2.f32 %v6802_v58  ;;  %v3362_v58 = vld [vmem:[#allocation15 + $0xd0] sm:$0xff] }
 0xac7   : > { %10522 = vpow2.f32 %v6803_v38  ;;  %v3365_v38 = vld [vmem:[#allocation15 + $0xe8] sm:$0xff] }
 0xac8   : > { %v12268_v62 = vpack.c.bf16 %v3365_v38, %v3362_v58 }
 0xad0   : > { %v10521_v39 = vpop.eup %10520 }
 0xad1   : > { %v10523_v19 = vpop.eup %10522  ;;  %v3102_v51 = vadd.f32 1.0, %v10521_v39  ;;  %v3367_v39 = vld [vmem:[#allocation15 + $0xf8] sm:$0xff] }
 0xad2   : > { %v3112_v61 = vadd.f32 1.0, %v10523_v19  ;;  %v3370_v19 = vld [vmem:[#allocation15 + $0x110] sm:$0xff] }
 0xad3   : > { %10524 = vrcp.f32 %v3102_v51  ;;  %v12265_v51 = vpack.c.bf16 %v3363_v53, %v3360_v46  ;;  %v12271_v10 = vpack.c.bf16 %v3370_v19, %v3367_v39 }
 0xad4   : > { %10526 = vrcp.f32 %v3112_v61  ;;  %v3366_v61 = vld [vmem:[#allocation15 + $0xf0] sm:$0xff] }
 0xadd   : > { %v10525_v24 = vpop.eup %10524 }
 0xade   : > { %v10527_v41 = vpop.eup %10526  ;;  %v3119_v63 = vmul.f32 %v10525_v24, %v3117_v11  ;;  %v3369_v11 = vld [vmem:[#allocation15 + $0x108] sm:$0xff]  ;;  %v3368_v24 = vld [vmem:[#allocation15 + $0x100] sm:$0xff] }
 0xadf   : > { %v3126_v48 = vmul.f32 %v10527_v41, %v3124_v26  ;;  %v3122_v55 = vsub.f32 1.0, %v10527_v41  ;;  %v3371_v26 = vld [vmem:[#allocation15 + $0x118] sm:$0xff]  ;;  %v3373_v41 = vld [vmem:[#allocation15 + $0x128] sm:$0xff] }
 0xae0   : > { %v3120_v1 = vadd.f32 %v3119_v63, %v11926_v45  ;;  %v3345_v45 = vld [vmem:[#allocation15 + $0x48] sm:$0xff]  ;;  %v3376_v63 = vld [vmem:[#allocation15 + $0x140] sm:$0xff] }
 0xae1   : > { %v12232_v8 = vpack.c.bf16 %v3345_v45, %v3342_v0  ;;  %v12291_v0 = vpack.c.bf16 %v3382_v32, %v3379_v43  ;;  %v3381_v45 = vld [vmem:[#allocation15 + $0x168] sm:$0xff] }
 0xae2   : > { %10528 = vtanh.f32 %v3120_v1  ;;  %v3372_v1 = vld [vmem:[#allocation15 + $0x120] sm:$0xff] }
 0xaec   : > { %v10529_v57 = vpop.eup %10528 }
 0xaed   : > { %v3123_v2 = vmul.f32 %v10529_v57, %v3122_v55  ;;  %v12278_v55 = vpack.c.bf16 %v3371_v26, %v3368_v24  ;;  %v12281_v57 = vpack.c.bf16 %v3376_v63, %v3373_v41  ;;  %v3191_v24 = vrot.slane %v3178_v31, %v11913_v17 }
 0xaef   : > { %v3127_v14 = vadd.f32 %v3126_v48, %v3123_v2  ;;  %v12275_v48 = vpack.c.bf16 %v3369_v11, %v3366_v61  ;;  %v3375_v2 = vld [vmem:[#allocation15 + $0x138] sm:$0xff]  ;;  %v12351_v11 = vld [vmem:[#allocation18] sm:$0x1] }
 0xaf0   : > { %v12285_v5 = vpack.c.bf16 %v3375_v2, %v3372_v1 }
 0xaf1   : > { %3128 = vst [vmem:[#allocation2] sm:$0x80] %v3127_v14  ;;  %v3374_v14 = vld [vmem:[#allocation15 + $0x130] sm:$0xff] }
 0xaf2   : > { %v12288_v35 = vpack.c.bf16 %v3377_v29, %v3374_v14 }
 0xaf8   : > { %v3129_v6 = vld [vmem:[#allocation2] sm:$0xff] }
 0xaf9   : > { %3260 = vmatmul.mubr.f32.vlgmr.msra.gmra.mrb[14].mxu0 %v3129_v6  ;;  %7752 = vmatmul.mubr.f32.vlgmr.msra.gmra.mrb[28].mxu1 %v3129_v6  ;;  %v12295_v6 = vpack.c.bf16 %v3381_v45, %v3378_v18 }
 0xafa   : > { %9275 = vmatpush1.bf16.msra.mxu0 %v12225_v49  ;;  %9306 = vmatpush3.bf16.msra.mxu1 %v12227_v59 }
 0xafb   : > { %9277 = vmatprep.subr.bf16.mxu0 %v12229_v60  ;;  %9307 = vmatprep.subr.bf16.mxu1 %v11230_v15 }
 0xafc   : > { %3449 = vmatprep.mubr.f32.mxu0 %v11229_v50  ;;  %7786 = vmatprep.mubr.msk.f32.mxu1 %vm11231_vm0, %v11229_v50 }
 0xafe   : > { %9279 = vmatpush1.bf16.msra.mxu0 %v12232_v8  ;;  %9309 = vmatpush3.bf16.msra.mxu1 %v12235_v9 }
 0xaff   : > { %9281 = vmatprep.subr.bf16.mxu0 %v12238_v13  ;;  %9310 = vmatprep.subr.bf16.mxu1 %v11230_v15 }
 0xb02   : > { %9283 = vmatpush1.bf16.msra.mxu0 %v12245_v27  ;;  %9312 = vmatpush3.bf16.msra.mxu1 %v12248_v25 }
 0xb03   : > { %9285 = vmatprep.subr.bf16.mxu0 %v12251_v30  ;;  %9313 = vmatprep.subr.bf16.mxu1 %v11230_v15 }
 0xb06   : > { %9287 = vmatpush1.bf16.msra.mxu0 %v12255_v44  ;;  %9315 = vmatpush3.bf16.msra.mxu1 %v12258_v47 }
 0xb07   : > { %9289 = vmatprep.subr.bf16.mxu0 %v12261_v52  ;;  %9316 = vmatprep.subr.bf16.mxu1 %v11230_v15 }
 0xb0a   : > { %9291 = vmatpush1.bf16.msra.mxu0 %v12265_v51  ;;  %9318 = vmatpush3.bf16.msra.mxu1 %v12268_v62 }
 0xb0b   : > { %9293 = vmatprep.subr.bf16.mxu0 %v12271_v10  ;;  %9319 = vmatprep.subr.bf16.mxu1 %v11230_v15 }
 0xb0e   : > { %9295 = vmatpush1.bf16.msra.mxu0 %v12275_v48  ;;  %9321 = vmatpush3.bf16.msra.mxu1 %v12278_v55 }
 0xb0f   : > { %9297 = vmatprep.subr.bf16.mxu0 %v12281_v57  ;;  %9322 = vmatprep.subr.bf16.mxu1 %v11230_v15 }
 0xb12   : > { %9299 = vmatpush1.bf16.msra.mxu0 %v12285_v5  ;;  %9324 = vmatpush3.bf16.msra.mxu1 %v12288_v35 }
 0xb13   : > { %9301 = vmatprep.subr.bf16.mxu0 %v12291_v0  ;;  %9325 = vmatprep.subr.bf16.mxu1 %v11230_v15 }
 0xb16   : > { %9303 = vmatpush1.bf16.msra.mxu0 %v12295_v6  ;;  %9327 = vmatpush3.bf16.msra.mxu1 %v12298_v56 }
 0xb17   : > { %9329 = vmatprep.subr.bf16.mxu0 %v12217_v36  ;;  %9360 = vmatprep.subr.bf16.mxu1 %v11230_v15 }
 0xb19   : > { %3450 = vmatmul.mubr.f32.vlgmr.msra.gmra.mrb[16].mxu0 %v11229_v50  ;;  %7787 = vmatmul.mubr.f32.vlgmr.msra.gmra.mrb[30].mxu1 %v11229_v50 }
 0xb1a   : > { %9331 = vmatpush1.bf16.msra.mxu0 %v12225_v49  ;;  %9362 = vmatpush3.bf16.msra.mxu1 %v12227_v59 }
 0xb1b   : > { %9333 = vmatprep.subr.bf16.mxu0 %v12229_v60  ;;  %9363 = vmatprep.subr.bf16.mxu1 %v11230_v15 }
 0xb1c   : > { %3613 = vmatprep.mubr.f32.mxu0 %v11229_v50  ;;  %7821 = vmatprep.mubr.msk.f32.mxu1 %vm11231_vm0, %v11229_v50 }
 0xb1e   : > { %9335 = vmatpush1.bf16.msra.mxu0 %v12232_v8  ;;  %9365 = vmatpush3.bf16.msra.mxu1 %v12235_v9 }
 0xb1f   : > { %9337 = vmatprep.subr.bf16.mxu0 %v12238_v13  ;;  %9366 = vmatprep.subr.bf16.mxu1 %v11230_v15 }
 0xb22   : > { %9339 = vmatpush1.bf16.msra.mxu0 %v12245_v27  ;;  %9368 = vmatpush3.bf16.msra.mxu1 %v12248_v25 }
 0xb23   : > { %9341 = vmatprep.subr.bf16.mxu0 %v12251_v30  ;;  %9369 = vmatprep.subr.bf16.mxu1 %v11230_v15 }
 0xb26   : > { %9343 = vmatpush1.bf16.msra.mxu0 %v12255_v44  ;;  %9371 = vmatpush3.bf16.msra.mxu1 %v12258_v47 }
 0xb27   : > { %9345 = vmatprep.subr.bf16.mxu0 %v12261_v52  ;;  %9372 = vmatprep.subr.bf16.mxu1 %v11230_v15 }
 0xb2a   : > { %9347 = vmatpush1.bf16.msra.mxu0 %v12265_v51  ;;  %9374 = vmatpush3.bf16.msra.mxu1 %v12268_v62 }
 0xb2b   : > { %9349 = vmatprep.subr.bf16.mxu0 %v12271_v10  ;;  %9375 = vmatprep.subr.bf16.mxu1 %v11230_v15 }
 0xb2e   : > { %9351 = vmatpush1.bf16.msra.mxu0 %v12275_v48  ;;  %9377 = vmatpush3.bf16.msra.mxu1 %v12278_v55 }
 0xb2f   : > { %9353 = vmatprep.subr.bf16.mxu0 %v12281_v57  ;;  %9378 = vmatprep.subr.bf16.mxu1 %v11230_v15 }
 0xb32   : > { %9355 = vmatpush1.bf16.msra.mxu0 %v12285_v5  ;;  %9380 = vmatpush3.bf16.msra.mxu1 %v12288_v35 }
 0xb33   : > { %9357 = vmatprep.subr.bf16.mxu0 %v12291_v0  ;;  %9381 = vmatprep.subr.bf16.mxu1 %v11230_v15 }
 0xb36   : > { %9359 = vmatpush1.bf16.msra.mxu0 %v12295_v6  ;;  %9383 = vmatpush3.bf16.msra.mxu1 %v12298_v56 }
 0xb37   : > { %9385 = vmatprep.subr.bf16.mxu0 %v12217_v36  ;;  %9416 = vmatprep.subr.bf16.mxu1 %v11230_v15 }
 0xbcc   : > { %v3261_v7 = vpop.f32.mrb[14].mxu0  ;;  %v3332_v3 = vpop.f32.mrb[28].mxu1 }
 0xbcd   : > { %v3263_v16 = vpop.f32.mrb[15].mxu0  ;;  %v7753_v20 = vpop.f32.mrb[29].mxu1  ;;  %v12345_v28 = vadd.f32 %v3261_v7, %v3183_v22  ;;  %v12355_v1 = vadd.f32 %v3332_v3, %v3191_v24 }
 0xbce   : > { %v12348_v46 = vadd.f32 %v3263_v16, %v3187_v23 }
 0xbec   : > { %v3451_v33 = vpop.f32.mrb[16].mxu0  ;;  %v3522_v34 = vpop.f32.mrb[30].mxu1 }
 0xbed   : > { %v3526_v37 = vadd.f32 %v3451_v33, %v12345_v28  ;;  %v3453_v40 = vpop.f32.mrb[17].mxu0  ;;  %v7788_v42 = vpop.f32.mrb[31].mxu1  ;;  %v3540_v41 = vadd.f32 %v3522_v34, %v12351_v11 }
 0xbee   : > { %v3533_v58 = vadd.f32 %v3453_v40, %v12348_v46 }
 0xbef   : > { %v6804_v53 = vmul.f32 -1.442695, %v3526_v37 }
 0xbf0   : > { %v6805_v38 = vmul.f32 -1.442695, %v3533_v58 }
 0xbf1   : > { %10530 = vpow2.f32 %v6804_v53 }
 0xbf2   : > { %10532 = vpow2.f32 %v6805_v38 }
 0xbfb   : > { %v10531_v39 = vpop.eup %10530 }
 0xbfc   : > { %v3530_v19 = vadd.f32 1.0, %v10531_v39  ;;  %v10533_v61 = vpop.eup %10532 }
 0xbfd   : > { %v3537_v26 = vadd.f32 1.0, %v10533_v61 }
 0xbfe   : > { %10534 = vrcp.f32 %v3530_v19 }
 0xbff   : > { %10536 = vrcp.f32 %v3537_v26 }
 0xc08   : > { %v10535_v63 = vpop.eup %10534 }
 0xc09   : > { %v3541_v2 = vmul.f32 %v10535_v63, %v3540_v41  ;;  %v10537_v29 = vpop.eup %10536 }
 0xc0a   : > { %v3544_v43 = vsub.f32 1.0, %v10537_v29  ;;  %v3546_v45 = vmul.f32 0.0, %v10537_v29 }
 0xc0b   : > { %v3542_v14 = vadd.f32 %v3541_v2, %v12355_v1 }
 0xc0d   : > { %10538 = vtanh.f32 %v3542_v14 }
 0xc17   : > { %v10539_v32 = vpop.eup %10538 }
 0xc18   : > { %v3545_v18 = vmul.f32 %v10539_v32, %v3544_v43 }
 0xc1a   : > { %v12358_v4 = vadd.f32 %v3546_v45, %v3545_v18 }
 0xc1c   : > { %3548 = vst [vmem:[#allocation3] sm:$0x1] %v12358_v4  ;;  %3614 = vmatmul.mubr.f32.vlgmr.msra.gmra.mrb[18].mxu0 %v12358_v4  ;;  %7822 = vmatmul.mubr.f32.vlgmr.msra.gmra.mrb[32].mxu1 %v12358_v4  ;;  %v3720_v19 = vrot.slane %v12358_v4, 7 }
 0xc1d   : > { %9387 = vmatpush1.bf16.msra.mxu0 %v12225_v49  ;;  %9418 = vmatpush3.bf16.msra.mxu1 %v12227_v59 }
 0xc1e   : > { %9389 = vmatprep.subr.bf16.mxu0 %v12229_v60  ;;  %9419 = vmatprep.subr.bf16.mxu1 %v11230_v15 }
 0xc1f   : > { %3792 = vmatprep.mubr.f32.mxu0 %v11229_v50  ;;  %7856 = vmatprep.mubr.msk.f32.mxu1 %vm11231_vm0, %v11229_v50 }
 0xc21   : > { %9391 = vmatpush1.bf16.msra.mxu0 %v12232_v8  ;;  %9421 = vmatpush3.bf16.msra.mxu1 %v12235_v9 }
 0xc22   : > { %9393 = vmatprep.subr.bf16.mxu0 %v12238_v13  ;;  %9422 = vmatprep.subr.bf16.mxu1 %v11230_v15 }
 0xc25   : > { %9395 = vmatpush1.bf16.msra.mxu0 %v12245_v27  ;;  %9424 = vmatpush3.bf16.msra.mxu1 %v12248_v25 }
 0xc26   : > { %9397 = vmatprep.subr.bf16.mxu0 %v12251_v30  ;;  %9425 = vmatprep.subr.bf16.mxu1 %v11230_v15 }
 0xc29   : > { %9399 = vmatpush1.bf16.msra.mxu0 %v12255_v44  ;;  %9427 = vmatpush3.bf16.msra.mxu1 %v12258_v47 }
 0xc2a   : > { %9401 = vmatprep.subr.bf16.mxu0 %v12261_v52  ;;  %9428 = vmatprep.subr.bf16.mxu1 %v11230_v15 }
 0xc2d   : > { %9403 = vmatpush1.bf16.msra.mxu0 %v12265_v51  ;;  %9430 = vmatpush3.bf16.msra.mxu1 %v12268_v62 }
 0xc2e   : > { %9405 = vmatprep.subr.bf16.mxu0 %v12271_v10  ;;  %9431 = vmatprep.subr.bf16.mxu1 %v11230_v15 }
 0xc31   : > { %9407 = vmatpush1.bf16.msra.mxu0 %v12275_v48  ;;  %9433 = vmatpush3.bf16.msra.mxu1 %v12278_v55 }
 0xc32   : > { %9409 = vmatprep.subr.bf16.mxu0 %v12281_v57  ;;  %9434 = vmatprep.subr.bf16.mxu1 %v11230_v15 }
 0xc35   : > { %9411 = vmatpush1.bf16.msra.mxu0 %v12285_v5  ;;  %9436 = vmatpush3.bf16.msra.mxu1 %v12288_v35 }
 0xc36   : > { %9413 = vmatprep.subr.bf16.mxu0 %v12291_v0  ;;  %9437 = vmatprep.subr.bf16.mxu1 %v11230_v15 }
 0xc39   : > { %9415 = vmatpush1.bf16.msra.mxu0 %v12295_v6  ;;  %9439 = vmatpush3.bf16.msra.mxu1 %v12298_v56 }
 0xc3a   : > { %9441 = vmatprep.subr.bf16.mxu0 %v12217_v36  ;;  %9472 = vmatprep.subr.bf16.mxu1 %v11230_v15 }
 0xcef   : > { %v3615_v12 = vpop.f32.mrb[18].mxu0  ;;  %v3686_v7 = vpop.f32.mrb[32].mxu1 }
 0xcf0   : > { %v3691_v3 = vrot.slane %v3615_v12, 7  ;;  %v3617_v16 = vpop.f32.mrb[19].mxu0  ;;  %v7823_v20 = vpop.f32.mrb[33].mxu1  ;;  %v3710_v58 = vadd.f32 %v3686_v7, %v12351_v11 }
 0xcf1   : > { %v3701_v31 = vrot.slane %v3617_v16, 7 }
 0xcf2   : > { %v3693_v22 = vadd.f32 %v3691_v3, %v12345_v28  ;;  %v3712_v38 = vrot.slane %v3710_v58, 7 }
 0xcf3   : > { %v3703_v23 = vadd.f32 %v3701_v31, %v12348_v46 }
 0xcf4   : > { %v6806_v33 = vmul.f32 -1.442695, %v3693_v22 }
 0xcf5   : > { %v6807_v34 = vmul.f32 -1.442695, %v3703_v23 }
 0xcf6   : > { %10540 = vpow2.f32 %v6806_v33 }
 0xcf7   : > { %10542 = vpow2.f32 %v6807_v34 }
 0xd00   : > { %v10541_v37 = vpop.eup %10540 }
 0xd01   : > { %v10543_v40 = vpop.eup %10542  ;;  %v3697_v42 = vadd.f32 1.0, %v10541_v37 }
 0xd02   : > { %v3707_v53 = vadd.f32 1.0, %v10543_v40 }
 0xd03   : > { %10544 = vrcp.f32 %v3697_v42 }
 0xd04   : > { %10546 = vrcp.f32 %v3707_v53 }
 0xd0d   : > { %v10545_v39 = vpop.eup %10544 }
 0xd0e   : > { %v10547_v61 = vpop.eup %10546  ;;  %v3714_v24 = vmul.f32 %v10545_v39, %v3712_v38 }
 0xd0f   : > { %v3722_v26 = vmul.f32 %v10547_v61, %v3720_v19  ;;  %v3717_v63 = vsub.f32 1.0, %v10547_v61 }
 0xd10   : > { %v3715_v41 = vadd.f32 %v3714_v24, %v12355_v1 }
 0xd12   : > { %10548 = vtanh.f32 %v3715_v41 }
 0xd1c   : > { %v10549_v2 = vpop.eup %10548 }
 0xd1d   : > { %v3718_v14 = vmul.f32 %v10549_v2, %v3717_v63 }
 0xd1f   : > { %v12403_v29 = vadd.f32 %v3722_v26, %v3718_v14 }
 0xd21   : > { %3724 = vst [vmem:[#allocation3] sm:$0x2] %v12403_v29  ;;  %v3726_v43 = vrot.slane %v12403_v29, 1  ;;  %v3898_v53 = vrot.slane %v12403_v29, 7 }
 0xd23   : > { %3793 = vmatmul.mubr.f32.vlgmr.msra.gmra.mrb[20].mxu0 %v3726_v43  ;;  %7857 = vmatmul.mubr.f32.vlgmr.msra.gmra.mrb[34].mxu1 %v3726_v43 }
 0xd24   : > { %9443 = vmatpush1.bf16.msra.mxu0 %v12225_v49  ;;  %9474 = vmatpush3.bf16.msra.mxu1 %v12227_v59 }
 0xd25   : > { %9445 = vmatprep.subr.bf16.mxu0 %v12229_v60  ;;  %9475 = vmatprep.subr.bf16.mxu1 %v11230_v15 }
 0xd26   : > { %3970 = vmatprep.mubr.f32.mxu0 %v11229_v50  ;;  %7891 = vmatprep.mubr.msk.f32.mxu1 %vm11231_vm0, %v11229_v50 }
 0xd28   : > { %9447 = vmatpush1.bf16.msra.mxu0 %v12232_v8  ;;  %9477 = vmatpush3.bf16.msra.mxu1 %v12235_v9 }
 0xd29   : > { %9449 = vmatprep.subr.bf16.mxu0 %v12238_v13  ;;  %9478 = vmatprep.subr.bf16.mxu1 %v11230_v15 }
 0xd2c   : > { %9451 = vmatpush1.bf16.msra.mxu0 %v12245_v27  ;;  %9480 = vmatpush3.bf16.msra.mxu1 %v12248_v25 }
 0xd2d   : > { %9453 = vmatprep.subr.bf16.mxu0 %v12251_v30  ;;  %9481 = vmatprep.subr.bf16.mxu1 %v11230_v15 }
 0xd30   : > { %9455 = vmatpush1.bf16.msra.mxu0 %v12255_v44  ;;  %9483 = vmatpush3.bf16.msra.mxu1 %v12258_v47 }
 0xd31   : > { %9457 = vmatprep.subr.bf16.mxu0 %v12261_v52  ;;  %9484 = vmatprep.subr.bf16.mxu1 %v11230_v15 }
 0xd34   : > { %9459 = vmatpush1.bf16.msra.mxu0 %v12265_v51  ;;  %9486 = vmatpush3.bf16.msra.mxu1 %v12268_v62 }
 0xd35   : > { %9461 = vmatprep.subr.bf16.mxu0 %v12271_v10  ;;  %9487 = vmatprep.subr.bf16.mxu1 %v11230_v15 }
 0xd38   : > { %9463 = vmatpush1.bf16.msra.mxu0 %v12275_v48  ;;  %9489 = vmatpush3.bf16.msra.mxu1 %v12278_v55 }
 0xd39   : > { %9465 = vmatprep.subr.bf16.mxu0 %v12281_v57  ;;  %9490 = vmatprep.subr.bf16.mxu1 %v11230_v15 }
 0xd3c   : > { %9467 = vmatpush1.bf16.msra.mxu0 %v12285_v5  ;;  %9492 = vmatpush3.bf16.msra.mxu1 %v12288_v35 }
 0xd3d   : > { %9469 = vmatprep.subr.bf16.mxu0 %v12291_v0  ;;  %9493 = vmatprep.subr.bf16.mxu1 %v11230_v15 }
 0xd40   : > { %9471 = vmatpush1.bf16.msra.mxu0 %v12295_v6  ;;  %9495 = vmatpush3.bf16.msra.mxu1 %v12298_v56 }
 0xd41   : > { %9497 = vmatprep.subr.bf16.mxu0 %v12217_v36  ;;  %9528 = vmatprep.subr.bf16.mxu1 %v11230_v15 }
 0xdf6   : > { %v3794_v32 = vpop.f32.mrb[20].mxu0  ;;  %v3865_v18 = vpop.f32.mrb[34].mxu1 }
 0xdf7   : > { %v3870_v45 = vrot.slane %v3794_v32, 6  ;;  %v3796_v4 = vpop.f32.mrb[21].mxu0  ;;  %v7858_v12 = vpop.f32.mrb[35].mxu1  ;;  %v3889_v37 = vadd.f32 %v3865_v18, %v12351_v11 }
 0xdf8   : > { %v3880_v7 = vrot.slane %v3796_v4, 6 }
 0xdf9   : > { %v3872_v3 = vadd.f32 %v3870_v45, %v12345_v28  ;;  %v3891_v40 = vrot.slane %v3889_v37, 6 }
 0xdfa   : > { %v3882_v16 = vadd.f32 %v3880_v7, %v12348_v46 }
 0xdfb   : > { %v6808_v20 = vmul.f32 -1.442695, %v3872_v3 }
 0xdfc   : > { %v6809_v31 = vmul.f32 -1.442695, %v3882_v16 }
 0xdfd   : > { %10550 = vpow2.f32 %v6808_v20 }
 0xdfe   : > { %10552 = vpow2.f32 %v6809_v31 }
 0xe07   : > { %v10551_v22 = vpop.eup %10550 }
 0xe08   : > { %v10553_v23 = vpop.eup %10552  ;;  %v3876_v33 = vadd.f32 1.0, %v10551_v22 }
 0xe09   : > { %v3886_v34 = vadd.f32 1.0, %v10553_v23 }
 0xe0a   : > { %10554 = vrcp.f32 %v3876_v33 }
 0xe0b   : > { %10556 = vrcp.f32 %v3886_v34 }
 0xe14   : > { %v10555_v42 = vpop.eup %10554 }
 0xe15   : > { %v10557_v58 = vpop.eup %10556  ;;  %v3893_v38 = vmul.f32 %v10555_v42, %v3891_v40 }
 0xe16   : > { %v3900_v39 = vmul.f32 %v10557_v58, %v3898_v53  ;;  %v3896_v61 = vsub.f32 1.0, %v10557_v58 }
 0xe17   : > { %v3894_v19 = vadd.f32 %v3893_v38, %v12355_v1 }
 0xe19   : > { %10558 = vtanh.f32 %v3894_v19 }
 0xe23   : > { %v10559_v24 = vpop.eup %10558 }
 0xe24   : > { %v3897_v26 = vmul.f32 %v10559_v24, %v3896_v61 }
 0xe26   : > { %v12447_v41 = vadd.f32 %v3900_v39, %v3897_v26 }
 0xe28   : > { %3902 = vst [vmem:[#allocation3] sm:$0x4] %v12447_v41  ;;  %v3904_v63 = vrot.slane %v12447_v41, 2  ;;  %v4076_v34 = vrot.slane %v12447_v41, 7 }
 0xe2a   : > { %3971 = vmatmul.mubr.f32.vlgmr.msra.gmra.mrb[22].mxu0 %v3904_v63  ;;  %7892 = vmatmul.mubr.f32.vlgmr.msra.gmra.mrb[36].mxu1 %v3904_v63 }
 0xe2b   : > { %9499 = vmatpush1.bf16.msra.mxu0 %v12225_v49  ;;  %9530 = vmatpush3.bf16.msra.mxu1 %v12227_v59 }
 0xe2c   : > { %9501 = vmatprep.subr.bf16.mxu0 %v12229_v60  ;;  %9531 = vmatprep.subr.bf16.mxu1 %v11230_v15 }
 0xe2d   : > { %4148 = vmatprep.mubr.f32.mxu0 %v11229_v50  ;;  %7926 = vmatprep.mubr.msk.f32.mxu1 %vm11231_vm0, %v11229_v50 }
 0xe2f   : > { %9503 = vmatpush1.bf16.msra.mxu0 %v12232_v8  ;;  %9533 = vmatpush3.bf16.msra.mxu1 %v12235_v9 }
 0xe30   : > { %9505 = vmatprep.subr.bf16.mxu0 %v12238_v13  ;;  %9534 = vmatprep.subr.bf16.mxu1 %v11230_v15 }
 0xe33   : > { %9507 = vmatpush1.bf16.msra.mxu0 %v12245_v27  ;;  %9536 = vmatpush3.bf16.msra.mxu1 %v12248_v25 }
 0xe34   : > { %9509 = vmatprep.subr.bf16.mxu0 %v12251_v30  ;;  %9537 = vmatprep.subr.bf16.mxu1 %v11230_v15 }
 0xe37   : > { %9511 = vmatpush1.bf16.msra.mxu0 %v12255_v44  ;;  %9539 = vmatpush3.bf16.msra.mxu1 %v12258_v47 }
 0xe38   : > { %9513 = vmatprep.subr.bf16.mxu0 %v12261_v52  ;;  %9540 = vmatprep.subr.bf16.mxu1 %v11230_v15 }
 0xe3b   : > { %9515 = vmatpush1.bf16.msra.mxu0 %v12265_v51  ;;  %9542 = vmatpush3.bf16.msra.mxu1 %v12268_v62 }
 0xe3c   : > { %9517 = vmatprep.subr.bf16.mxu0 %v12271_v10  ;;  %9543 = vmatprep.subr.bf16.mxu1 %v11230_v15 }
 0xe3f   : > { %9519 = vmatpush1.bf16.msra.mxu0 %v12275_v48  ;;  %9545 = vmatpush3.bf16.msra.mxu1 %v12278_v55 }
 0xe40   : > { %9521 = vmatprep.subr.bf16.mxu0 %v12281_v57  ;;  %9546 = vmatprep.subr.bf16.mxu1 %v11230_v15 }
 0xe43   : > { %9523 = vmatpush1.bf16.msra.mxu0 %v12285_v5  ;;  %9548 = vmatpush3.bf16.msra.mxu1 %v12288_v35 }
 0xe44   : > { %9525 = vmatprep.subr.bf16.mxu0 %v12291_v0  ;;  %9549 = vmatprep.subr.bf16.mxu1 %v11230_v15 }
 0xe47   : > { %9527 = vmatpush1.bf16.msra.mxu0 %v12295_v6  ;;  %9551 = vmatpush3.bf16.msra.mxu1 %v12298_v56 }
 0xe48   : > { %9553 = vmatprep.subr.bf16.mxu0 %v12217_v36  ;;  %9584 = vmatprep.subr.bf16.mxu1 %v11230_v15 }
 0xefd   : > { %v3972_v2 = vpop.f32.mrb[22].mxu0  ;;  %v4043_v14 = vpop.f32.mrb[36].mxu1 }
 0xefe   : > { %v4048_v29 = vrot.slane %v3972_v2, 5  ;;  %v3974_v43 = vpop.f32.mrb[23].mxu0  ;;  %v7893_v32 = vpop.f32.mrb[37].mxu1  ;;  %v4067_v22 = vadd.f32 %v4043_v14, %v12351_v11 }
 0xeff   : > { %v4058_v18 = vrot.slane %v3974_v43, 5 }
 0xf00   : > { %v4050_v45 = vadd.f32 %v4048_v29, %v12345_v28  ;;  %v4069_v23 = vrot.slane %v4067_v22, 5 }
 0xf01   : > { %v4060_v4 = vadd.f32 %v4058_v18, %v12348_v46 }
 0xf02   : > { %v6810_v12 = vmul.f32 -1.442695, %v4050_v45 }
 0xf03   : > { %v6811_v7 = vmul.f32 -1.442695, %v4060_v4 }
 0xf04   : > { %10560 = vpow2.f32 %v6810_v12 }
 0xf05   : > { %10562 = vpow2.f32 %v6811_v7 }
 0xf0e   : > { %v10561_v3 = vpop.eup %10560 }
 0xf0f   : > { %v10563_v16 = vpop.eup %10562  ;;  %v4054_v20 = vadd.f32 1.0, %v10561_v3 }
 0xf10   : > { %v4064_v31 = vadd.f32 1.0, %v10563_v16 }
 0xf11   : > { %10564 = vrcp.f32 %v4054_v20 }
 0xf12   : > { %10566 = vrcp.f32 %v4064_v31 }
 0xf1b   : > { %v10565_v33 = vpop.eup %10564 }
 0xf1c   : > { %v10567_v37 = vpop.eup %10566  ;;  %v4071_v40 = vmul.f32 %v10565_v33, %v4069_v23 }
 0xf1d   : > { %v4078_v42 = vmul.f32 %v10567_v37, %v4076_v34  ;;  %v4074_v58 = vsub.f32 1.0, %v10567_v37 }
 0xf1e   : > { %v4072_v53 = vadd.f32 %v4071_v40, %v12355_v1 }
 0xf20   : > { %10568 = vtanh.f32 %v4072_v53 }
 0xf2a   : > { %v10569_v38 = vpop.eup %10568 }
 0xf2b   : > { %v4075_v39 = vmul.f32 %v10569_v38, %v4074_v58 }
 0xf2d   : > { %v12491_v19 = vadd.f32 %v4078_v42, %v4075_v39 }
 0xf2f   : > { %4080 = vst [vmem:[#allocation3] sm:$0x8] %v12491_v19  ;;  %v4082_v61 = vrot.slane %v12491_v19, 3  ;;  %v4254_v31 = vrot.slane %v12491_v19, 7 }
 0xf31   : > { %4149 = vmatmul.mubr.f32.vlgmr.msra.gmra.mrb[24].mxu0 %v4082_v61  ;;  %7927 = vmatmul.mubr.f32.vlgmr.msra.gmra.mrb[38].mxu1 %v4082_v61 }
 0xf32   : > { %9555 = vmatpush1.bf16.msra.mxu0 %v12225_v49  ;;  %9586 = vmatpush3.bf16.msra.mxu1 %v12227_v59 }
 0xf33   : > { %9557 = vmatprep.subr.bf16.mxu0 %v12229_v60  ;;  %9587 = vmatprep.subr.bf16.mxu1 %v11230_v15 }
 0xf34   : > { %4326 = vmatprep.mubr.f32.mxu0 %v11229_v50  ;;  %7961 = vmatprep.mubr.msk.f32.mxu1 %vm11231_vm0, %v11229_v50 }
 0xf36   : > { %9559 = vmatpush1.bf16.msra.mxu0 %v12232_v8  ;;  %9589 = vmatpush3.bf16.msra.mxu1 %v12235_v9 }
 0xf37   : > { %9561 = vmatprep.subr.bf16.mxu0 %v12238_v13  ;;  %9590 = vmatprep.subr.bf16.mxu1 %v11230_v15 }
 0xf3a   : > { %9563 = vmatpush1.bf16.msra.mxu0 %v12245_v27  ;;  %9592 = vmatpush3.bf16.msra.mxu1 %v12248_v25 }
 0xf3b   : > { %9565 = vmatprep.subr.bf16.mxu0 %v12251_v30  ;;  %9593 = vmatprep.subr.bf16.mxu1 %v11230_v15 }
 0xf3e   : > { %9567 = vmatpush1.bf16.msra.mxu0 %v12255_v44  ;;  %9595 = vmatpush3.bf16.msra.mxu1 %v12258_v47 }
 0xf3f   : > { %9569 = vmatprep.subr.bf16.mxu0 %v12261_v52  ;;  %9596 = vmatprep.subr.bf16.mxu1 %v11230_v15 }
 0xf42   : > { %9571 = vmatpush1.bf16.msra.mxu0 %v12265_v51  ;;  %9598 = vmatpush3.bf16.msra.mxu1 %v12268_v62 }
 0xf43   : > { %9573 = vmatprep.subr.bf16.mxu0 %v12271_v10  ;;  %9599 = vmatprep.subr.bf16.mxu1 %v11230_v15 }
 0xf46   : > { %9575 = vmatpush1.bf16.msra.mxu0 %v12275_v48  ;;  %9601 = vmatpush3.bf16.msra.mxu1 %v12278_v55 }
 0xf47   : > { %9577 = vmatprep.subr.bf16.mxu0 %v12281_v57  ;;  %9602 = vmatprep.subr.bf16.mxu1 %v11230_v15 }
 0xf4a   : > { %9579 = vmatpush1.bf16.msra.mxu0 %v12285_v5  ;;  %9604 = vmatpush3.bf16.msra.mxu1 %v12288_v35 }
 0xf4b   : > { %9581 = vmatprep.subr.bf16.mxu0 %v12291_v0  ;;  %9605 = vmatprep.subr.bf16.mxu1 %v11230_v15 }
 0xf4e   : > { %9583 = vmatpush1.bf16.msra.mxu0 %v12295_v6  ;;  %9607 = vmatpush3.bf16.msra.mxu1 %v12298_v56 }
 0xf4f   : > { %9609 = vmatprep.subr.bf16.mxu0 %v12217_v36  ;;  %9640 = vmatprep.subr.bf16.mxu1 %v11230_v15 }
0x1004   : > { %v4150_v24 = vpop.f32.mrb[24].mxu0  ;;  %v4221_v26 = vpop.f32.mrb[38].mxu1 }
0x1005   : > { %v4226_v41 = vrot.slane %v4150_v24, 4  ;;  %v4152_v63 = vpop.f32.mrb[25].mxu0  ;;  %v7928_v2 = vpop.f32.mrb[39].mxu1  ;;  %v4245_v3 = vadd.f32 %v4221_v26, %v12351_v11 }
0x1006   : > { %v4236_v14 = vrot.slane %v4152_v63, 4 }
0x1007   : > { %v4228_v29 = vadd.f32 %v4226_v41, %v12345_v28  ;;  %v4247_v16 = vrot.slane %v4245_v3, 4 }
0x1008   : > { %v4238_v43 = vadd.f32 %v4236_v14, %v12348_v46 }
0x1009   : > { %v6812_v32 = vmul.f32 -1.442695, %v4228_v29 }
0x100a   : > { %v6813_v18 = vmul.f32 -1.442695, %v4238_v43 }
0x100b   : > { %10570 = vpow2.f32 %v6812_v32 }
0x100c   : > { %10572 = vpow2.f32 %v6813_v18 }
0x1015   : > { %v10571_v45 = vpop.eup %10570 }
0x1016   : > { %v10573_v4 = vpop.eup %10572  ;;  %v4232_v12 = vadd.f32 1.0, %v10571_v45 }
0x1017   : > { %v4242_v7 = vadd.f32 1.0, %v10573_v4 }
0x1018   : > { %10574 = vrcp.f32 %v4232_v12 }
0x1019   : > { %10576 = vrcp.f32 %v4242_v7 }
0x1022   : > { %v10575_v20 = vpop.eup %10574 }
0x1023   : > { %v10577_v22 = vpop.eup %10576  ;;  %v4249_v23 = vmul.f32 %v10575_v20, %v4247_v16 }
0x1024   : > { %v4256_v33 = vmul.f32 %v10577_v22, %v4254_v31  ;;  %v4252_v37 = vsub.f32 1.0, %v10577_v22 }
0x1025   : > { %v4250_v34 = vadd.f32 %v4249_v23, %v12355_v1 }
0x1027   : > { %10578 = vtanh.f32 %v4250_v34 }
0x1031   : > { %v10579_v40 = vpop.eup %10578 }
0x1032   : > { %v4253_v42 = vmul.f32 %v10579_v40, %v4252_v37 }
0x1034   : > { %v12535_v53 = vadd.f32 %v4256_v33, %v4253_v42 }
0x1036   : > { %4258 = vst [vmem:[#allocation3] sm:$0x10] %v12535_v53  ;;  %v4260_v58 = vrot.slane %v12535_v53, 4  ;;  %v4432_v12 = vrot.slane %v12535_v53, 7 }
0x1038   : > { %4327 = vmatmul.mubr.f32.vlgmr.msra.gmra.mrb[26].mxu0 %v4260_v58  ;;  %7962 = vmatmul.mubr.f32.vlgmr.msra.gmra.mrb[40].mxu1 %v4260_v58  ;;  %v4798_v58 = vld [vmem:[#allocation19 + $0x20] sm:$0xff] }
0x1039   : > { %9611 = vmatpush1.bf16.msra.mxu0 %v12225_v49  ;;  %9642 = vmatpush3.bf16.msra.mxu1 %v12227_v59 }
0x103a   : > { %9613 = vmatprep.subr.bf16.mxu0 %v12229_v60  ;;  %9643 = vmatprep.subr.bf16.mxu1 %v11230_v15 }
0x103b   : > { %4504 = vmatprep.mubr.f32.mxu0 %v11229_v50  ;;  %7996 = vmatprep.mubr.msk.f32.mxu1 %vm11231_vm0, %v11229_v50 }
0x103d   : > { %9615 = vmatpush1.bf16.msra.mxu0 %v12232_v8  ;;  %9645 = vmatpush3.bf16.msra.mxu1 %v12235_v9 }
0x103e   : > { %9617 = vmatprep.subr.bf16.mxu0 %v12238_v13  ;;  %9646 = vmatprep.subr.bf16.mxu1 %v11230_v15 }
0x1041   : > { %9619 = vmatpush1.bf16.msra.mxu0 %v12245_v27  ;;  %9648 = vmatpush3.bf16.msra.mxu1 %v12248_v25 }
0x1042   : > { %9621 = vmatprep.subr.bf16.mxu0 %v12251_v30  ;;  %9649 = vmatprep.subr.bf16.mxu1 %v11230_v15 }
0x1045   : > { %9623 = vmatpush1.bf16.msra.mxu0 %v12255_v44  ;;  %9651 = vmatpush3.bf16.msra.mxu1 %v12258_v47 }
0x1046   : > { %9625 = vmatprep.subr.bf16.mxu0 %v12261_v52  ;;  %9652 = vmatprep.subr.bf16.mxu1 %v11230_v15 }
0x1049   : > { %9627 = vmatpush1.bf16.msra.mxu0 %v12265_v51  ;;  %9654 = vmatpush3.bf16.msra.mxu1 %v12268_v62 }
0x104a   : > { %9629 = vmatprep.subr.bf16.mxu0 %v12271_v10  ;;  %9655 = vmatprep.subr.bf16.mxu1 %v11230_v15 }
0x104d   : > { %9631 = vmatpush1.bf16.msra.mxu0 %v12275_v48  ;;  %9657 = vmatpush3.bf16.msra.mxu1 %v12278_v55 }
0x104e   : > { %9633 = vmatprep.subr.bf16.mxu0 %v12281_v57  ;;  %9658 = vmatprep.subr.bf16.mxu1 %v11230_v15 }
0x1051   : > { %9635 = vmatpush1.bf16.msra.mxu0 %v12285_v5  ;;  %9660 = vmatpush3.bf16.msra.mxu1 %v12288_v35 }
0x1052   : > { %9637 = vmatprep.subr.bf16.mxu0 %v12291_v0  ;;  %9661 = vmatprep.subr.bf16.mxu1 %v11230_v15 }
0x1055   : > { %9639 = vmatpush1.bf16.msra.mxu0 %v12295_v6  ;;  %9663 = vmatpush3.bf16.msra.mxu1 %v12298_v56 }
0x1056   : > { %9665 = vmatprep.subr.bf16.mxu0 %v12217_v36  ;;  %9696 = vmatprep.subr.bf16.mxu1 %v11230_v15 }
0x110b   : > { %v4328_v38 = vpop.f32.mrb[26].mxu0  ;;  %v4399_v39 = vpop.f32.mrb[40].mxu1 }
0x110c   : > { %v4404_v19 = vrot.slane %v4328_v38, 3  ;;  %v4330_v61 = vpop.f32.mrb[27].mxu0  ;;  %v7963_v24 = vpop.f32.mrb[41].mxu1  ;;  %v4423_v18 = vadd.f32 %v4399_v39, %v12351_v11  ;;  %v4794_v39 = vld [vmem:[#allocation19] sm:$0xff] }
0x110d   : > { %v4414_v26 = vrot.slane %v4330_v61, 3  ;;  %v4796_v24 = vld [vmem:[#allocation19 + $0x10] sm:$0xff] }
0x110e   : > { %v4406_v41 = vadd.f32 %v4404_v19, %v12345_v28  ;;  %v4425_v45 = vrot.slane %v4423_v18, 3  ;;  %v4797_v19 = vld [vmem:[#allocation19 + $0x18] sm:$0xff] }
0x110f   : > { %v4416_v63 = vadd.f32 %v4414_v26, %v12348_v46  ;;  %v9722_v61 = vpack.c.bf16 %v4797_v19, %v4794_v39  ;;  %v4799_v26 = vld [vmem:[#allocation19 + $0x28] sm:$0xff]  ;;  %v4805_v18 = vld [vmem:[#allocation19 + $0x58] sm:$0xff] }
0x1110   : > { %v6814_v2 = vmul.f32 -1.442695, %v4406_v41  ;;  %v9753_v41 = vpack.c.bf16 %v4799_v26, %v4796_v24  ;;  %v4833_v39 = vld [vmem:[#allocation19 + $0x138] sm:$0xff]  ;;  %v4835_v24 = vld [vmem:[#allocation19 + $0x148] sm:$0xff] }
0x1111   : > { %v6815_v14 = vmul.f32 -1.442695, %v4416_v63  ;;  %v4801_v63 = vld [vmem:[#allocation19 + $0x38] sm:$0xff] }
0x1112   : > { %10580 = vpow2.f32 %v6814_v2  ;;  %v4804_v2 = vld [vmem:[#allocation19 + $0x50] sm:$0xff] }
0x1113   : > { %10582 = vpow2.f32 %v6815_v14  ;;  %v9724_v14 = vpack.c.bf16 %v4804_v2, %v4801_v63  ;;  %v4840_v63 = vld [vmem:[#allocation19 + $0x170] sm:$0xff] }
0x1114   : > { %v4836_v2 = vld [vmem:[#allocation19 + $0x150] sm:$0xff] }
0x111c   : > { %v10581_v29 = vpop.eup %10580 }
0x111d   : > { %v10583_v43 = vpop.eup %10582  ;;  %v4410_v32 = vadd.f32 1.0, %v10581_v29  ;;  %v4800_v29 = vld [vmem:[#allocation19 + $0x30] sm:$0xff] }
0x111e   : > { %v4420_v36 = vadd.f32 1.0, %v10583_v43  ;;  %v4803_v43 = vld [vmem:[#allocation19 + $0x48] sm:$0xff] }
0x111f   : > { %10584 = vrcp.f32 %v4410_v32  ;;  %v9726_v32 = vpack.c.bf16 %v4803_v43, %v4800_v29  ;;  %v4839_v29 = vld [vmem:[#allocation19 + $0x168] sm:$0xff]  ;;  %v4838_v43 = vld [vmem:[#allocation19 + $0x160] sm:$0xff] }
0x1120   : > { %10586 = vrcp.f32 %v4420_v36  ;;  %v4802_v36 = vld [vmem:[#allocation19 + $0x40] sm:$0xff] }
0x1129   : > { %v10585_v4 = vpop.eup %10584 }
0x112a   : > { %v10587_v7 = vpop.eup %10586  ;;  %v4427_v3 = vmul.f32 %v10585_v4, %v4425_v45  ;;  %v9756_v45 = vpack.c.bf16 %v4805_v18, %v4802_v36  ;;  %v4807_v4 = vld [vmem:[#allocation19 + $0x68] sm:$0xff]  ;;  %v9750_v36 = vpack.c.bf16 %v4839_v29, %v4836_v2  ;;  %v5022_v29 = vld [vmem:[#allocation21 + $0xb0] sm:$0xff] }
0x112b   : > { %v4434_v16 = vmul.f32 %v10587_v7, %v4432_v12  ;;  %v4430_v31 = vsub.f32 1.0, %v10587_v7  ;;  %v4810_v12 = vld [vmem:[#allocation19 + $0x80] sm:$0xff]  ;;  %v5017_v2 = vld [vmem:[#allocation21 + $0x88] sm:$0xff] }
0x112c   : > { %v4428_v20 = vadd.f32 %v4427_v3, %v12355_v1  ;;  %v9728_v7 = vpack.c.bf16 %v4810_v12, %v4807_v4  ;;  %v4806_v3 = vld [vmem:[#allocation19 + $0x60] sm:$0xff] }
0x112d   : > { %v5004_v4 = vld [vmem:[#allocation21 + $0x20] sm:$0xff] }
0x112e   : > { %10588 = vtanh.f32 %v4428_v20 }
0x1138   : > { %v10589_v22 = vpop.eup %10588 }
0x1139   : > { %v4431_v23 = vmul.f32 %v10589_v22, %v4430_v31  ;;  %v4808_v31 = vld [vmem:[#allocation19 + $0x70] sm:$0xff]  ;;  %v4811_v22 = vld [vmem:[#allocation19 + $0x88] sm:$0xff] }
0x113b   : > { %v12579_v33 = vadd.f32 %v4434_v16, %v4431_v23  ;;  %v4809_v16 = vld [vmem:[#allocation19 + $0x78] sm:$0xff]  ;;  %v9759_v23 = vpack.c.bf16 %v4811_v22, %v4808_v31 }
0x113c   : > { %v9730_v20 = vpack.c.bf16 %v4809_v16, %v4806_v3 }
0x113d   : > { %4436 = vst [vmem:[#allocation3] sm:$0x20] %v12579_v33  ;;  %v4438_v34 = vrot.slane %v12579_v33, 5 }
0x113f   : > { %4505 = vmatmul.mubr.f32.vlgmr.msra.gmra.mrb[28].mxu0 %v4438_v34  ;;  %7997 = vmatmul.mubr.f32.vlgmr.msra.gmra.mrb[42].mxu1 %v4438_v34  ;;  %v4816_v34 = vld [vmem:[#allocation19 + $0xb0] sm:$0xff] }
0x1140   : > { %9667 = vmatpush1.bf16.msra.mxu0 %v12225_v49  ;;  %9698 = vmatpush3.bf16.msra.mxu1 %v12227_v59 }
0x1141   : > { %9669 = vmatprep.subr.bf16.mxu0 %v12229_v60  ;;  %9699 = vmatprep.subr.bf16.mxu1 %v11230_v15 }
0x1142   : > { %4682 = vmatprep.mubr.f32.mxu0 %v11229_v50  ;;  %8031 = vmatprep.mubr.msk.f32.mxu1 %vm11231_vm0, %v11229_v50 }
0x1144   : > { %9671 = vmatpush1.bf16.msra.mxu0 %v12232_v8  ;;  %9701 = vmatpush3.bf16.msra.mxu1 %v12235_v9 }
0x1145   : > { %9673 = vmatprep.subr.bf16.mxu0 %v12238_v13  ;;  %9702 = vmatprep.subr.bf16.mxu1 %v11230_v15 }
0x1148   : > { %9675 = vmatpush1.bf16.msra.mxu0 %v12245_v27  ;;  %9704 = vmatpush3.bf16.msra.mxu1 %v12248_v25 }
0x1149   : > { %9677 = vmatprep.subr.bf16.mxu0 %v12251_v30  ;;  %9705 = vmatprep.subr.bf16.mxu1 %v11230_v15 }
0x114c   : > { %9679 = vmatpush1.bf16.msra.mxu0 %v12255_v44  ;;  %9707 = vmatpush3.bf16.msra.mxu1 %v12258_v47 }
0x114d   : > { %9681 = vmatprep.subr.bf16.mxu0 %v12261_v52  ;;  %9708 = vmatprep.subr.bf16.mxu1 %v11230_v15 }
0x1150   : > { %9683 = vmatpush1.bf16.msra.mxu0 %v12265_v51  ;;  %9710 = vmatpush3.bf16.msra.mxu1 %v12268_v62 }
0x1151   : > { %9685 = vmatprep.subr.bf16.mxu0 %v12271_v10  ;;  %9711 = vmatprep.subr.bf16.mxu1 %v11230_v15 }
0x1154   : > { %9687 = vmatpush1.bf16.msra.mxu0 %v12275_v48  ;;  %9713 = vmatpush3.bf16.msra.mxu1 %v12278_v55 }
0x1155   : > { %9689 = vmatprep.subr.bf16.mxu0 %v12281_v57  ;;  %9714 = vmatprep.subr.bf16.mxu1 %v11230_v15  ;;  %v4610_v57 = vrot.slane %v12579_v33, 7  ;;  %v4813_v33 = vld [vmem:[#allocation19 + $0x98] sm:$0xff] }
0x1158   : > { %9691 = vmatpush1.bf16.msra.mxu0 %v12285_v5  ;;  %9716 = vmatpush3.bf16.msra.mxu1 %v12288_v35 }
0x1159   : > { %9693 = vmatprep.subr.bf16.mxu0 %v12291_v0  ;;  %9717 = vmatprep.subr.bf16.mxu1 %v11230_v15 }
0x115c   : > { %9695 = vmatpush1.bf16.msra.mxu0 %v12295_v6  ;;  %9719 = vmatpush3.bf16.msra.mxu1 %v12298_v56 }
0x115d   : > { %9752 = vmatprep.subr.bf16.mxu1 %v11230_v15 }
0x1212   : > { %v4506_v49 = vpop.f32.mrb[28].mxu0  ;;  %v4577_v59 = vpop.f32.mrb[42].mxu1 }
0x1213   : > { %v4582_v60 = vrot.slane %v4506_v49, 2  ;;  %v4508_v8 = vpop.f32.mrb[29].mxu0  ;;  %v7998_v9 = vpop.f32.mrb[43].mxu1  ;;  %v4601_v10 = vadd.f32 %v4577_v59, %v12351_v11  ;;  %v4795_v11 = vld [vmem:[#allocation19 + $0x8] sm:$0xff]  ;;  %v9732_v49 = vpack.c.bf16 %v4816_v34, %v4813_v33  ;;  %v4812_v59 = vld [vmem:[#allocation19 + $0x90] sm:$0xff] }
0x1214   : > { %v4592_v13 = vrot.slane %v4508_v8, 2  ;;  %v9720_v38 = vpack.c.bf16 %v4798_v58, %v4795_v11  ;;  %v4814_v9 = vld [vmem:[#allocation19 + $0xa0] sm:$0xff] }
0x1215   : > { %v4584_v27 = vadd.f32 %v4582_v60, %v12345_v28  ;;  %v4603_v48 = vrot.slane %v4601_v10, 2  ;;  %v4815_v60 = vld [vmem:[#allocation19 + $0xa8] sm:$0xff]  ;;  %v4834_v11 = vld [vmem:[#allocation19 + $0x140] sm:$0xff] }
0x1216   : > { %v4594_v25 = vadd.f32 %v4592_v13, %v12348_v46  ;;  %9721 = vmatprep.subr.bf16.mxu0 %v9720_v38  ;;  %v9734_v8 = vpack.c.bf16 %v4815_v60, %v4812_v59  ;;  %v4817_v13 = vld [vmem:[#allocation19 + $0xb8] sm:$0xff]  ;;  %v4823_v10 = vld [vmem:[#allocation19 + $0xe8] sm:$0xff]  ;;  %v4830_v38 = vld [vmem:[#allocation19 + $0x120] sm:$0xff] }
0x1217   : > { %v6816_v30 = vmul.f32 -1.442695, %v4584_v27  ;;  %v9762_v27 = vpack.c.bf16 %v4817_v13, %v4814_v9  ;;  %v9746_v19 = vpack.c.bf16 %v4833_v39, %v4830_v38  ;;  %v10691_v13 = vld [vmem:[#allocation18] sm:$0x1]  ;;  %v5013_v38 = vld [vmem:[#allocation21 + $0x68] sm:$0xff]  ;;  %v5016_v39 = vld [vmem:[#allocation21 + $0x80] sm:$0xff] }
0x1218   : > { %v6817_v44 = vmul.f32 -1.442695, %v4594_v25  ;;  %v4819_v25 = vld [vmem:[#allocation19 + $0xc8] sm:$0xff] }
0x1219   : > { %10590 = vpow2.f32 %v6816_v30  ;;  %v4822_v30 = vld [vmem:[#allocation19 + $0xe0] sm:$0xff] }
0x121a   : > { %10592 = vpow2.f32 %v6817_v44  ;;  %v9736_v44 = vpack.c.bf16 %v4822_v30, %v4819_v25 }
0x1223   : > { %v10591_v47 = vpop.eup %10590 }
0x1224   : > { %v10593_v52 = vpop.eup %10592  ;;  %v4588_v51 = vadd.f32 1.0, %v10591_v47  ;;  %v4818_v47 = vld [vmem:[#allocation19 + $0xc0] sm:$0xff] }
0x1225   : > { %v4598_v62 = vadd.f32 1.0, %v10593_v52  ;;  %v4821_v52 = vld [vmem:[#allocation19 + $0xd8] sm:$0xff] }
0x1226   : > { %10594 = vrcp.f32 %v4588_v51  ;;  %v9738_v51 = vpack.c.bf16 %v4821_v52, %v4818_v47 }
0x1227   : > { %10596 = vrcp.f32 %v4598_v62  ;;  %v4820_v62 = vld [vmem:[#allocation19 + $0xd0] sm:$0xff] }
0x1230   : > { %v10595_v55 = vpop.eup %10594 }
0x1231   : > { %v10597_v5 = vpop.eup %10596  ;;  %v4605_v35 = vmul.f32 %v10595_v55, %v4603_v48  ;;  %v9765_v48 = vpack.c.bf16 %v4823_v10, %v4820_v62  ;;  %v4825_v55 = vld [vmem:[#allocation19 + $0xf8] sm:$0xff] }
0x1232   : > { %v4612_v0 = vmul.f32 %v10597_v5, %v4610_v57  ;;  %v4608_v56 = vsub.f32 1.0, %v10597_v5  ;;  %v4828_v57 = vld [vmem:[#allocation19 + $0x110] sm:$0xff] }
0x1233   : > { %v4606_v6 = vadd.f32 %v4605_v35, %v12355_v1  ;;  %v9740_v5 = vpack.c.bf16 %v4828_v57, %v4825_v55  ;;  %v4824_v35 = vld [vmem:[#allocation19 + $0xf0] sm:$0xff]  ;;  %v5000_v55 = vld [vmem:[#allocation21] sm:$0xff]  ;;  %v5003_v57 = vld [vmem:[#allocation21 + $0x18] sm:$0xff] }
0x1235   : > { %10598 = vtanh.f32 %v4606_v6 }
0x123f   : > { %v10599_v37 = vpop.eup %10598 }
0x1240   : > { %v4609_v40 = vmul.f32 %v10599_v37, %v4608_v56  ;;  %v4826_v56 = vld [vmem:[#allocation19 + $0x100] sm:$0xff]  ;;  %v4829_v37 = vld [vmem:[#allocation19 + $0x118] sm:$0xff] }
0x1242   : > { %v12622_v42 = vadd.f32 %v4612_v0, %v4609_v40  ;;  %v4827_v0 = vld [vmem:[#allocation19 + $0x108] sm:$0xff]  ;;  %v9768_v40 = vpack.c.bf16 %v4829_v37, %v4826_v56  ;;  %v12644_v56 = vpack.c.bf16 %v5003_v57, %v5000_v55  ;;  %v5043_v57 = vld [vmem:[#allocation21 + $0x158] sm:$0xff] }
0x1243   : > { %v9742_v6 = vpack.c.bf16 %v4827_v0, %v4824_v35  ;;  %v5005_v35 = vld [vmem:[#allocation21 + $0x28] sm:$0xff]  ;;  %v5007_v0 = vld [vmem:[#allocation21 + $0x38] sm:$0xff] }
0x1244   : > { %4614 = vst [vmem:[#allocation3] sm:$0x40] %v12622_v42  ;;  %v4616_v53 = vrot.slane %v12622_v42, 6  ;;  %v5041_v55 = vld [vmem:[#allocation21 + $0x148] sm:$0xff] }
0x1246   : > { %4683 = vmatmul.mubr.f32.vlgmr.msra.gmra.mrb[30].mxu0 %v4616_v53  ;;  %8032 = vmatmul.mubr.f32.vlgmr.msra.gmra.mrb[44].mxu1 %v4616_v53  ;;  %v4831_v53 = vld [vmem:[#allocation19 + $0x128] sm:$0xff] }
0x1247   : > { %4923 = vmatprep.mubr.f32.mxu0 %v11229_v50  ;;  %8066 = vmatprep.mubr.msk.f32.mxu1 %vm11231_vm0, %v11229_v50  ;;  %v9744_v58 = vpack.c.bf16 %v4834_v11, %v4831_v53  ;;  %v5008_v53 = vld [vmem:[#allocation21 + $0x40] sm:$0xff]  ;;  %v5011_v11 = vld [vmem:[#allocation21 + $0x58] sm:$0xff] }
0x1248   : > { %9723 = vmatpush1.bf16.msra.mxu0 %v9722_v61  ;;  %9754 = vmatpush3.bf16.msra.mxu1 %v9753_v41  ;;  %v4832_v61 = vld [vmem:[#allocation19 + $0x130] sm:$0xff]  ;;  %v4837_v41 = vld [vmem:[#allocation19 + $0x158] sm:$0xff] }
0x1249   : > { %9755 = vmatprep.subr.bf16.mxu1 %v11230_v15  ;;  %9725 = vmatprep.subr.bf16.mxu0 %v9724_v14  ;;  %v9771_v26 = vpack.c.bf16 %v4835_v24, %v4832_v61  ;;  %v9748_v14 = vpack.c.bf16 %v4840_v63, %v4837_v41  ;;  %v5012_v61 = vld [vmem:[#allocation21 + $0x60] sm:$0xff]  ;;  %v12654_v24 = vpack.c.bf16 %v5011_v11, %v5008_v53  ;;  %v5015_v41 = vld [vmem:[#allocation21 + $0x78] sm:$0xff]  ;;  %v5014_v63 = vld [vmem:[#allocation21 + $0x70] sm:$0xff] }
0x124a   : > { %v5044_v53 = vld [vmem:[#allocation21 + $0x160] sm:$0xff]  ;;  %v5047_v11 = vld [vmem:[#allocation21 + $0x178] sm:$0xff] }
0x124c   : > { %9727 = vmatpush1.bf16.msra.mxu0 %v9726_v32  ;;  %9757 = vmatpush3.bf16.msra.mxu1 %v9756_v45  ;;  %v4841_v32 = vld [vmem:[#allocation19 + $0x178] sm:$0xff]  ;;  %v5001_v45 = vld [vmem:[#allocation21 + $0x8] sm:$0xff] }
0x124d   : > { %9758 = vmatprep.subr.bf16.mxu1 %v11230_v15  ;;  %9729 = vmatprep.subr.bf16.mxu0 %v9728_v7  ;;  %v9774_v18 = vpack.c.bf16 %v4841_v32, %v4838_v43  ;;  %v12636_v12 = vpack.c.bf16 %v5004_v4, %v5001_v45  ;;  %v12664_v43 = vpack.c.bf16 %v5015_v41, %v5012_v61  ;;  %v5018_v32 = vld [vmem:[#allocation21 + $0x90] sm:$0xff]  ;;  %v5021_v45 = vld [vmem:[#allocation21 + $0xa8] sm:$0xff]  ;;  %v5020_v4 = vld [vmem:[#allocation21 + $0xa0] sm:$0xff] }
0x1250   : > { %9731 = vmatpush1.bf16.msra.mxu0 %v9730_v20  ;;  %9760 = vmatpush3.bf16.msra.mxu1 %v9759_v23 }
0x1251   : > { %9761 = vmatprep.subr.bf16.mxu1 %v11230_v15  ;;  %9733 = vmatprep.subr.bf16.mxu0 %v9732_v49 }
0x1254   : > { %9735 = vmatpush1.bf16.msra.mxu0 %v9734_v8  ;;  %9763 = vmatpush3.bf16.msra.mxu1 %v9762_v27 }
0x1255   : > { %9764 = vmatprep.subr.bf16.mxu1 %v11230_v15  ;;  %9737 = vmatprep.subr.bf16.mxu0 %v9736_v44  ;;  %v4788_v44 = vrot.slane %v12622_v42, 7  ;;  %v5006_v42 = vld [vmem:[#allocation21 + $0x30] sm:$0xff] }
0x1258   : > { %9739 = vmatpush1.bf16.msra.mxu0 %v9738_v51  ;;  %9766 = vmatpush3.bf16.msra.mxu1 %v9765_v48 }
0x1259   : > { %9767 = vmatprep.subr.bf16.mxu1 %v11230_v15  ;;  %9741 = vmatprep.subr.bf16.mxu0 %v9740_v5  ;;  %v5002_v5 = vld [vmem:[#allocation21 + $0x10] sm:$0xff] }
0x125a   : > { %v12646_v37 = vpack.c.bf16 %v5005_v35, %v5002_v5  ;;  %v5046_v5 = vld [vmem:[#allocation21 + $0x170] sm:$0xff] }
0x125c   : > { %9743 = vmatpush1.bf16.msra.mxu0 %v9742_v6  ;;  %9769 = vmatpush3.bf16.msra.mxu1 %v9768_v40  ;;  %v5010_v6 = vld [vmem:[#allocation21 + $0x50] sm:$0xff] }
0x125d   : > { %9770 = vmatprep.subr.bf16.mxu1 %v11230_v15  ;;  %9745 = vmatprep.subr.bf16.mxu0 %v9744_v58  ;;  %v12648_v40 = vpack.c.bf16 %v5010_v6, %v5007_v0  ;;  %v5042_v0 = vld [vmem:[#allocation21 + $0x150] sm:$0xff] }
0x1260   : > { %9747 = vmatpush1.bf16.msra.mxu0 %v9746_v19  ;;  %9772 = vmatpush3.bf16.msra.mxu1 %v9771_v26  ;;  %v12657_v26 = vpack.c.bf16 %v5016_v39, %v5013_v38  ;;  %v12717_v38 = vpack.c.bf16 %v5047_v11, %v5044_v53 }
0x1261   : > { %9773 = vmatprep.subr.bf16.mxu1 %v11230_v15  ;;  %9749 = vmatprep.subr.bf16.mxu0 %v9748_v14  ;;  %v5019_v14 = vld [vmem:[#allocation21 + $0x98] sm:$0xff] }
0x1264   : > { %9751 = vmatpush1.bf16.msra.mxu0 %v9750_v36  ;;  %9775 = vmatpush3.bf16.msra.mxu1 %v9774_v18  ;;  %v12667_v36 = vpack.c.bf16 %v5017_v2, %v5014_v63  ;;  %v12670_v18 = vpack.c.bf16 %v5022_v29, %v5019_v14  ;;  %v4842_v2 = vld [vmem:[#allocation22] sm:$0x7] }
0x1265   : > { %9777 = vmatprep.subr.bf16.mxu0 %v12636_v12  ;;  %9808 = vmatprep.subr.bf16.mxu1 %v11230_v15  ;;  %v4847_v14 = vrot.slane %v4842_v2, %v11928_v54  ;;  %v4851_v29 = vrot.slane %v4842_v2, %v11930_v21 }
0x1319   : > { %v4684_v7 = vpop.f32.mrb[30].mxu0  ;;  %v4755_v3 = vpop.f32.mrb[44].mxu1 }
0x131a   : > { %v4760_v16 = vrot.slane %v4684_v7, 1  ;;  %v4686_v20 = vpop.f32.mrb[31].mxu0  ;;  %v8033_v31 = vpop.f32.mrb[45].mxu1  ;;  %v4779_v27 = vadd.f32 %v10691_v13, %v4755_v3  ;;  %v5023_v7 = vld [vmem:[#allocation21 + $0xb8] sm:$0xff]  ;;  %v5025_v3 = vld [vmem:[#allocation21 + $0xc8] sm:$0xff] }
0x131b   : > { %v4770_v22 = vrot.slane %v4686_v20, 1  ;;  %v12674_v20 = vpack.c.bf16 %v5021_v45, %v5018_v32  ;;  %v5024_v31 = vld [vmem:[#allocation21 + $0xc0] sm:$0xff] }
0x131c   : > { %v4762_v23 = vadd.f32 %v4760_v16, %v12345_v28  ;;  %v4781_v25 = vrot.slane %v4779_v27, 1  ;;  %v5028_v16 = vld [vmem:[#allocation21 + $0xe0] sm:$0xff] }
0x131d   : > { %v4772_v33 = vadd.f32 %v4770_v22, %v12348_v46  ;;  %v12677_v22 = vpack.c.bf16 %v5023_v7, %v5020_v4 }
0x131e   : > { %v6818_v34 = vmul.f32 -1.442695, %v4762_v23  ;;  %v12680_v23 = vpack.c.bf16 %v5028_v16, %v5025_v3 }
0x131f   : > { %v6819_v49 = vmul.f32 -1.442695, %v4772_v33  ;;  %v5027_v33 = vld [vmem:[#allocation21 + $0xd8] sm:$0xff] }
0x1320   : > { %10600 = vpow2.f32 %v6818_v34  ;;  %v5026_v34 = vld [vmem:[#allocation21 + $0xd0] sm:$0xff] }
0x1321   : > { %10602 = vpow2.f32 %v6819_v49  ;;  %v5029_v49 = vld [vmem:[#allocation21 + $0xe8] sm:$0xff] }
0x1322   : > { %v12687_v13 = vpack.c.bf16 %v5029_v49, %v5026_v34 }
0x132a   : > { %v10601_v59 = vpop.eup %10600 }
0x132b   : > { %v10603_v60 = vpop.eup %10602  ;;  %v4766_v8 = vadd.f32 1.0, %v10601_v59  ;;  %v5031_v59 = vld [vmem:[#allocation21 + $0xf8] sm:$0xff] }
0x132c   : > { %v4776_v9 = vadd.f32 1.0, %v10603_v60  ;;  %v5034_v60 = vld [vmem:[#allocation21 + $0x110] sm:$0xff] }
0x132d   : > { %10604 = vrcp.f32 %v4766_v8  ;;  %v12684_v8 = vpack.c.bf16 %v5027_v33, %v5024_v31  ;;  %v12690_v27 = vpack.c.bf16 %v5034_v60, %v5031_v59  ;;  %v12770_v60 = vld [vmem:[#allocation24] sm:$0x1] }
0x132e   : > { %10606 = vrcp.f32 %v4776_v9  ;;  %v5030_v9 = vld [vmem:[#allocation21 + $0xf0] sm:$0xff] }
0x1337   : > { %v10605_v30 = vpop.eup %10604 }
0x1338   : > { %v10607_v47 = vpop.eup %10606  ;;  %v4783_v28 = vmul.f32 %v10605_v30, %v4781_v25  ;;  %v5033_v25 = vld [vmem:[#allocation21 + $0x108] sm:$0xff]  ;;  %v5032_v30 = vld [vmem:[#allocation21 + $0x100] sm:$0xff] }
0x1339   : > { %v4790_v52 = vmul.f32 %v10607_v47, %v4788_v44  ;;  %v4786_v51 = vsub.f32 1.0, %v10607_v47  ;;  %v5035_v44 = vld [vmem:[#allocation21 + $0x118] sm:$0xff]  ;;  %v5037_v47 = vld [vmem:[#allocation21 + $0x128] sm:$0xff] }
0x133a   : > { %v4784_v46 = vadd.f32 %v4783_v28, %v12355_v1  ;;  %v5009_v1 = vld [vmem:[#allocation21 + $0x48] sm:$0xff]  ;;  %v5040_v28 = vld [vmem:[#allocation21 + $0x140] sm:$0xff] }
0x133b   : > { %v12651_v19 = vpack.c.bf16 %v5009_v1, %v5006_v42  ;;  %v12710_v42 = vpack.c.bf16 %v5046_v5, %v5043_v57  ;;  %v5045_v1 = vld [vmem:[#allocation21 + $0x168] sm:$0xff] }
0x133c   : > { %10608 = vtanh.f32 %v4784_v46  ;;  %v5036_v46 = vld [vmem:[#allocation21 + $0x120] sm:$0xff] }
0x1346   : > { %v10609_v62 = vpop.eup %10608 }
0x1347   : > { %v4787_v10 = vmul.f32 %v10609_v62, %v4786_v51  ;;  %v12697_v51 = vpack.c.bf16 %v5035_v44, %v5032_v30  ;;  %v12700_v62 = vpack.c.bf16 %v5040_v28, %v5037_v47 }
0x1349   : > { %v4791_v48 = vadd.f32 %v4790_v52, %v4787_v10  ;;  %v12694_v52 = vpack.c.bf16 %v5033_v25, %v5030_v9  ;;  %v5039_v10 = vld [vmem:[#allocation21 + $0x138] sm:$0xff]  ;;  %v4855_v9 = vrot.slane %v4842_v2, %v11913_v17 }
0x134a   : > { %v12704_v35 = vpack.c.bf16 %v5039_v10, %v5036_v46 }
0x134b   : > { %4792 = vst [vmem:[#allocation3] sm:$0x80] %v4791_v48  ;;  %v5038_v48 = vld [vmem:[#allocation21 + $0x130] sm:$0xff] }
0x134c   : > { %v12707_v6 = vpack.c.bf16 %v5041_v55, %v5038_v48 }
0x1352   : > { %v4793_v58 = vld [vmem:[#allocation3] sm:$0xff] }
0x1353   : > { %4924 = vmatmul.mubr.f32.vlgmr.msra.gmra.mrb[32].mxu0 %v4793_v58  ;;  %8067 = vmatmul.mubr.f32.vlgmr.msra.gmra.mrb[46].mxu1 %v4793_v58  ;;  %v12714_v58 = vpack.c.bf16 %v5045_v1, %v5042_v0 }
0x1354   : > { %9779 = vmatpush1.bf16.msra.mxu0 %v12644_v56  ;;  %9810 = vmatpush3.bf16.msra.mxu1 %v12646_v37 }
0x1355   : > { %9781 = vmatprep.subr.bf16.mxu0 %v12648_v40  ;;  %9811 = vmatprep.subr.bf16.mxu1 %v11230_v15 }
0x1356   : > { %5113 = vmatprep.mubr.f32.mxu0 %v11229_v50  ;;  %8101 = vmatprep.mubr.msk.f32.mxu1 %vm11231_vm0, %v11229_v50 }
0x1358   : > { %9783 = vmatpush1.bf16.msra.mxu0 %v12651_v19  ;;  %9813 = vmatpush3.bf16.msra.mxu1 %v12654_v24 }
0x1359   : > { %9785 = vmatprep.subr.bf16.mxu0 %v12657_v26  ;;  %9814 = vmatprep.subr.bf16.mxu1 %v11230_v15 }
0x135c   : > { %9787 = vmatpush1.bf16.msra.mxu0 %v12664_v43  ;;  %9816 = vmatpush3.bf16.msra.mxu1 %v12667_v36 }
0x135d   : > { %9789 = vmatprep.subr.bf16.mxu0 %v12670_v18  ;;  %9817 = vmatprep.subr.bf16.mxu1 %v11230_v15 }
0x1360   : > { %9791 = vmatpush1.bf16.msra.mxu0 %v12674_v20  ;;  %9819 = vmatpush3.bf16.msra.mxu1 %v12677_v22 }
0x1361   : > { %9793 = vmatprep.subr.bf16.mxu0 %v12680_v23  ;;  %9820 = vmatprep.subr.bf16.mxu1 %v11230_v15 }
0x1364   : > { %9795 = vmatpush1.bf16.msra.mxu0 %v12684_v8  ;;  %9822 = vmatpush3.bf16.msra.mxu1 %v12687_v13 }
0x1365   : > { %9797 = vmatprep.subr.bf16.mxu0 %v12690_v27  ;;  %9823 = vmatprep.subr.bf16.mxu1 %v11230_v15 }
0x1368   : > { %9799 = vmatpush1.bf16.msra.mxu0 %v12694_v52  ;;  %9825 = vmatpush3.bf16.msra.mxu1 %v12697_v51 }
0x1369   : > { %9801 = vmatprep.subr.bf16.mxu0 %v12700_v62  ;;  %9826 = vmatprep.subr.bf16.mxu1 %v11230_v15 }
0x136c   : > { %9803 = vmatpush1.bf16.msra.mxu0 %v12704_v35  ;;  %9828 = vmatpush3.bf16.msra.mxu1 %v12707_v6 }
0x136d   : > { %9805 = vmatprep.subr.bf16.mxu0 %v12710_v42  ;;  %9829 = vmatprep.subr.bf16.mxu1 %v11230_v15 }
0x1370   : > { %9807 = vmatpush1.bf16.msra.mxu0 %v12714_v58  ;;  %9831 = vmatpush3.bf16.msra.mxu1 %v12717_v38 }
0x1371   : > { %9833 = vmatprep.subr.bf16.mxu0 %v12636_v12  ;;  %9864 = vmatprep.subr.bf16.mxu1 %v11230_v15 }
0x1373   : > { %5114 = vmatmul.mubr.f32.vlgmr.msra.gmra.mrb[34].mxu0 %v11229_v50  ;;  %8102 = vmatmul.mubr.f32.vlgmr.msra.gmra.mrb[48].mxu1 %v11229_v50 }
0x1374   : > { %9835 = vmatpush1.bf16.msra.mxu0 %v12644_v56  ;;  %9866 = vmatpush3.bf16.msra.mxu1 %v12646_v37 }
0x1375   : > { %9837 = vmatprep.subr.bf16.mxu0 %v12648_v40  ;;  %9867 = vmatprep.subr.bf16.mxu1 %v11230_v15 }
0x1376   : > { %5276 = vmatprep.mubr.f32.mxu0 %v11229_v50  ;;  %8136 = vmatprep.mubr.msk.f32.mxu1 %vm11231_vm0, %v11229_v50 }
0x1378   : > { %9839 = vmatpush1.bf16.msra.mxu0 %v12651_v19  ;;  %9869 = vmatpush3.bf16.msra.mxu1 %v12654_v24 }
0x1379   : > { %9841 = vmatprep.subr.bf16.mxu0 %v12657_v26  ;;  %9870 = vmatprep.subr.bf16.mxu1 %v11230_v15 }
0x137c   : > { %9843 = vmatpush1.bf16.msra.mxu0 %v12664_v43  ;;  %9872 = vmatpush3.bf16.msra.mxu1 %v12667_v36 }
0x137d   : > { %9845 = vmatprep.subr.bf16.mxu0 %v12670_v18  ;;  %9873 = vmatprep.subr.bf16.mxu1 %v11230_v15 }
0x1380   : > { %9847 = vmatpush1.bf16.msra.mxu0 %v12674_v20  ;;  %9875 = vmatpush3.bf16.msra.mxu1 %v12677_v22 }
0x1381   : > { %9849 = vmatprep.subr.bf16.mxu0 %v12680_v23  ;;  %9876 = vmatprep.subr.bf16.mxu1 %v11230_v15 }
0x1384   : > { %9851 = vmatpush1.bf16.msra.mxu0 %v12684_v8  ;;  %9878 = vmatpush3.bf16.msra.mxu1 %v12687_v13 }
0x1385   : > { %9853 = vmatprep.subr.bf16.mxu0 %v12690_v27  ;;  %9879 = vmatprep.subr.bf16.mxu1 %v11230_v15 }
0x1388   : > { %9855 = vmatpush1.bf16.msra.mxu0 %v12694_v52  ;;  %9881 = vmatpush3.bf16.msra.mxu1 %v12697_v51 }
0x1389   : > { %9857 = vmatprep.subr.bf16.mxu0 %v12700_v62  ;;  %9882 = vmatprep.subr.bf16.mxu1 %v11230_v15 }
0x138c   : > { %9859 = vmatpush1.bf16.msra.mxu0 %v12704_v35  ;;  %9884 = vmatpush3.bf16.msra.mxu1 %v12707_v6 }
0x138d   : > { %9861 = vmatprep.subr.bf16.mxu0 %v12710_v42  ;;  %9885 = vmatprep.subr.bf16.mxu1 %v11230_v15 }
0x1390   : > { %9863 = vmatpush1.bf16.msra.mxu0 %v12714_v58  ;;  %9887 = vmatpush3.bf16.msra.mxu1 %v12717_v38 }
0x1391   : > { %9889 = vmatprep.subr.bf16.mxu0 %v12636_v12  ;;  %9920 = vmatprep.subr.bf16.mxu1 %v11230_v15 }
0x1426   : > { %v4925_v39 = vpop.f32.mrb[32].mxu0  ;;  %v4996_v61 = vpop.f32.mrb[46].mxu1 }
0x1427   : > { %v4927_v41 = vpop.f32.mrb[33].mxu0  ;;  %v8068_v63 = vpop.f32.mrb[47].mxu1  ;;  %v12764_v32 = vadd.f32 %v4925_v39, %v4847_v14  ;;  %v12774_v47 = vadd.f32 %v4996_v61, %v4855_v9 }
0x1428   : > { %v12767_v31 = vadd.f32 %v4927_v41, %v4851_v29 }
0x1446   : > { %v5115_v45 = vpop.f32.mrb[34].mxu0  ;;  %v5186_v4 = vpop.f32.mrb[48].mxu1 }
0x1447   : > { %v5190_v7 = vadd.f32 %v5115_v45, %v12764_v32  ;;  %v5117_v3 = vpop.f32.mrb[35].mxu0  ;;  %v8103_v16 = vpop.f32.mrb[49].mxu1  ;;  %v5204_v30 = vadd.f32 %v5186_v4, %v12770_v60 }
0x1448   : > { %v5197_v34 = vadd.f32 %v5117_v3, %v12767_v31 }
0x1449   : > { %v6820_v33 = vmul.f32 -1.442695, %v5190_v7 }
0x144a   : > { %v6821_v49 = vmul.f32 -1.442695, %v5197_v34 }
0x144b   : > { %10610 = vpow2.f32 %v6820_v33 }
0x144c   : > { %10612 = vpow2.f32 %v6821_v49 }
0x1455   : > { %v10611_v59 = vpop.eup %10610 }
0x1456   : > { %v5194_v54 = vadd.f32 1.0, %v10611_v59  ;;  %v10613_v21 = vpop.eup %10612 }
0x1457   : > { %v5201_v25 = vadd.f32 1.0, %v10613_v21 }
0x1458   : > { %10614 = vrcp.f32 %v5194_v54 }
0x1459   : > { %10616 = vrcp.f32 %v5201_v25 }
0x1462   : > { %v10615_v44 = vpop.eup %10614 }
0x1463   : > { %v5205_v28 = vmul.f32 %v10615_v44, %v5204_v30  ;;  %v10617_v10 = vpop.eup %10616 }
0x1464   : > { %v5208_v48 = vsub.f32 1.0, %v10617_v10  ;;  %v5210_v5 = vmul.f32 0.0, %v10617_v10 }
0x1465   : > { %v5206_v46 = vadd.f32 %v5205_v28, %v12774_v47 }
0x1467   : > { %10618 = vtanh.f32 %v5206_v46 }
0x1471   : > { %v10619_v55 = vpop.eup %10618 }
0x1472   : > { %v5209_v57 = vmul.f32 %v10619_v55, %v5208_v48 }
0x1474   : > { %v5211_v0 = vadd.f32 %v5210_v5, %v5209_v57 }
0x1476   : > { %5277 = vmatmul.mubr.f32.vlgmr.msra.gmra.mrb[36].mxu0 %v5211_v0  ;;  %8137 = vmatmul.mubr.f32.vlgmr.msra.gmra.mrb[50].mxu1 %v5211_v0  ;;  %v5383_v34 = vrot.slane %v5211_v0, 7 }
0x1477   : > { %9891 = vmatpush1.bf16.msra.mxu0 %v12644_v56  ;;  %9922 = vmatpush3.bf16.msra.mxu1 %v12646_v37 }
0x1478   : > { %9893 = vmatprep.subr.bf16.mxu0 %v12648_v40  ;;  %9923 = vmatprep.subr.bf16.mxu1 %v11230_v15 }
0x1479   : > { %5454 = vmatprep.mubr.f32.mxu0 %v11229_v50  ;;  %8171 = vmatprep.mubr.msk.f32.mxu1 %vm11231_vm0, %v11229_v50 }
0x147b   : > { %9895 = vmatpush1.bf16.msra.mxu0 %v12651_v19  ;;  %9925 = vmatpush3.bf16.msra.mxu1 %v12654_v24 }
0x147c   : > { %9897 = vmatprep.subr.bf16.mxu0 %v12657_v26  ;;  %9926 = vmatprep.subr.bf16.mxu1 %v11230_v15 }
0x147f   : > { %9899 = vmatpush1.bf16.msra.mxu0 %v12664_v43  ;;  %9928 = vmatpush3.bf16.msra.mxu1 %v12667_v36 }
0x1480   : > { %9901 = vmatprep.subr.bf16.mxu0 %v12670_v18  ;;  %9929 = vmatprep.subr.bf16.mxu1 %v11230_v15 }
0x1483   : > { %9903 = vmatpush1.bf16.msra.mxu0 %v12674_v20  ;;  %9931 = vmatpush3.bf16.msra.mxu1 %v12677_v22 }
0x1484   : > { %9905 = vmatprep.subr.bf16.mxu0 %v12680_v23  ;;  %9932 = vmatprep.subr.bf16.mxu1 %v11230_v15 }
0x1487   : > { %9907 = vmatpush1.bf16.msra.mxu0 %v12684_v8  ;;  %9934 = vmatpush3.bf16.msra.mxu1 %v12687_v13 }
0x1488   : > { %9909 = vmatprep.subr.bf16.mxu0 %v12690_v27  ;;  %9935 = vmatprep.subr.bf16.mxu1 %v11230_v15 }
0x148b   : > { %9911 = vmatpush1.bf16.msra.mxu0 %v12694_v52  ;;  %9937 = vmatpush3.bf16.msra.mxu1 %v12697_v51 }
0x148c   : > { %9913 = vmatprep.subr.bf16.mxu0 %v12700_v62  ;;  %9938 = vmatprep.subr.bf16.mxu1 %v11230_v15 }
0x148f   : > { %9915 = vmatpush1.bf16.msra.mxu0 %v12704_v35  ;;  %9940 = vmatpush3.bf16.msra.mxu1 %v12707_v6 }
0x1490   : > { %9917 = vmatprep.subr.bf16.mxu0 %v12710_v42  ;;  %9941 = vmatprep.subr.bf16.mxu1 %v11230_v15 }
0x1493   : > { %9919 = vmatpush1.bf16.msra.mxu0 %v12714_v58  ;;  %9943 = vmatpush3.bf16.msra.mxu1 %v12717_v38 }
0x1494   : > { %9945 = vmatprep.subr.bf16.mxu0 %v12636_v12  ;;  %9976 = vmatprep.subr.bf16.mxu1 %v11230_v15 }
0x1549   : > { %v5278_v17 = vpop.f32.mrb[36].mxu0  ;;  %v5349_v1 = vpop.f32.mrb[50].mxu1 }
0x154a   : > { %v5354_v53 = vrot.slane %v5278_v17, 7  ;;  %v5280_v11 = vpop.f32.mrb[37].mxu0  ;;  %v8138_v39 = vpop.f32.mrb[51].mxu1  ;;  %v5373_v3 = vadd.f32 %v5349_v1, %v12770_v60 }
0x154b   : > { %v5364_v61 = vrot.slane %v5280_v11, 7 }
0x154c   : > { %v5356_v41 = vadd.f32 %v5354_v53, %v12764_v32  ;;  %v5375_v16 = vrot.slane %v5373_v3, 7 }
0x154d   : > { %v5366_v63 = vadd.f32 %v5364_v61, %v12767_v31 }
0x154e   : > { %v6822_v2 = vmul.f32 -1.442695, %v5356_v41 }
0x154f   : > { %v6823_v14 = vmul.f32 -1.442695, %v5366_v63 }
0x1550   : > { %10620 = vpow2.f32 %v6822_v2 }
0x1551   : > { %10622 = vpow2.f32 %v6823_v14 }
0x155a   : > { %v10621_v29 = vpop.eup %10620 }
0x155b   : > { %v10623_v45 = vpop.eup %10622  ;;  %v5360_v4 = vadd.f32 1.0, %v10621_v29 }
0x155c   : > { %v5370_v7 = vadd.f32 1.0, %v10623_v45 }
0x155d   : > { %10624 = vrcp.f32 %v5360_v4 }
0x155e   : > { %10626 = vrcp.f32 %v5370_v7 }
0x1567   : > { %v10625_v33 = vpop.eup %10624 }
0x1568   : > { %v10627_v49 = vpop.eup %10626  ;;  %v5377_v59 = vmul.f32 %v10625_v33, %v5375_v16 }
0x1569   : > { %v5385_v54 = vmul.f32 %v10627_v49, %v5383_v34  ;;  %v5380_v9 = vsub.f32 1.0, %v10627_v49 }
0x156a   : > { %v5378_v21 = vadd.f32 %v5377_v59, %v12774_v47 }
0x156c   : > { %10628 = vtanh.f32 %v5378_v21 }
0x1576   : > { %v10629_v25 = vpop.eup %10628 }
0x1577   : > { %v5381_v30 = vmul.f32 %v10629_v25, %v5380_v9 }
0x1579   : > { %v12816_v44 = vadd.f32 %v5385_v54, %v5381_v30 }
0x157b   : > { %v5388_v28 = vrot.slane %v12816_v44, 1  ;;  %v5560_v29 = vrot.slane %v12816_v44, 7 }
0x157d   : > { %5455 = vmatmul.mubr.f32.vlgmr.msra.gmra.mrb[38].mxu0 %v5388_v28  ;;  %8172 = vmatmul.mubr.f32.vlgmr.msra.gmra.mrb[52].mxu1 %v5388_v28 }
0x157e   : > { %9947 = vmatpush1.bf16.msra.mxu0 %v12644_v56  ;;  %9978 = vmatpush3.bf16.msra.mxu1 %v12646_v37 }
0x157f   : > { %9949 = vmatprep.subr.bf16.mxu0 %v12648_v40  ;;  %9979 = vmatprep.subr.bf16.mxu1 %v11230_v15 }
0x1580   : > { %5631 = vmatprep.mubr.f32.mxu0 %v11229_v50  ;;  %8206 = vmatprep.mubr.msk.f32.mxu1 %vm11231_vm0, %v11229_v50 }
0x1582   : > { %9951 = vmatpush1.bf16.msra.mxu0 %v12651_v19  ;;  %9981 = vmatpush3.bf16.msra.mxu1 %v12654_v24 }
0x1583   : > { %9953 = vmatprep.subr.bf16.mxu0 %v12657_v26  ;;  %9982 = vmatprep.subr.bf16.mxu1 %v11230_v15 }
0x1586   : > { %9955 = vmatpush1.bf16.msra.mxu0 %v12664_v43  ;;  %9984 = vmatpush3.bf16.msra.mxu1 %v12667_v36 }
0x1587   : > { %9957 = vmatprep.subr.bf16.mxu0 %v12670_v18  ;;  %9985 = vmatprep.subr.bf16.mxu1 %v11230_v15 }
0x158a   : > { %9959 = vmatpush1.bf16.msra.mxu0 %v12674_v20  ;;  %9987 = vmatpush3.bf16.msra.mxu1 %v12677_v22 }
0x158b   : > { %9961 = vmatprep.subr.bf16.mxu0 %v12680_v23  ;;  %9988 = vmatprep.subr.bf16.mxu1 %v11230_v15 }
0x158e   : > { %9963 = vmatpush1.bf16.msra.mxu0 %v12684_v8  ;;  %9990 = vmatpush3.bf16.msra.mxu1 %v12687_v13 }
0x158f   : > { %9965 = vmatprep.subr.bf16.mxu0 %v12690_v27  ;;  %9991 = vmatprep.subr.bf16.mxu1 %v11230_v15 }
0x1592   : > { %9967 = vmatpush1.bf16.msra.mxu0 %v12694_v52  ;;  %9993 = vmatpush3.bf16.msra.mxu1 %v12697_v51 }
0x1593   : > { %9969 = vmatprep.subr.bf16.mxu0 %v12700_v62  ;;  %9994 = vmatprep.subr.bf16.mxu1 %v11230_v15 }
0x1596   : > { %9971 = vmatpush1.bf16.msra.mxu0 %v12704_v35  ;;  %9996 = vmatpush3.bf16.msra.mxu1 %v12707_v6 }
0x1597   : > { %9973 = vmatprep.subr.bf16.mxu0 %v12710_v42  ;;  %9997 = vmatprep.subr.bf16.mxu1 %v11230_v15 }
0x159a   : > { %9975 = vmatpush1.bf16.msra.mxu0 %v12714_v58  ;;  %9999 = vmatpush3.bf16.msra.mxu1 %v12717_v38 }
0x159b   : > { %10001 = vmatprep.subr.bf16.mxu0 %v12636_v12  ;;  %10032 = vmatprep.subr.bf16.mxu1 %v11230_v15 }
0x1650   : > { %v5456_v46 = vpop.f32.mrb[38].mxu0  ;;  %v5527_v10 = vpop.f32.mrb[52].mxu1 }
0x1651   : > { %v5532_v48 = vrot.slane %v5456_v46, 6  ;;  %v5458_v55 = vpop.f32.mrb[39].mxu0  ;;  %v8173_v57 = vpop.f32.mrb[53].mxu1  ;;  %v5551_v63 = vadd.f32 %v5527_v10, %v12770_v60 }
0x1652   : > { %v5542_v5 = vrot.slane %v5458_v55, 6 }
0x1653   : > { %v5534_v0 = vadd.f32 %v5532_v48, %v12764_v32  ;;  %v5553_v2 = vrot.slane %v5551_v63, 6 }
0x1654   : > { %v5544_v17 = vadd.f32 %v5542_v5, %v12767_v31 }
0x1655   : > { %v6824_v1 = vmul.f32 -1.442695, %v5534_v0 }
0x1656   : > { %v6825_v53 = vmul.f32 -1.442695, %v5544_v17 }
0x1657   : > { %10630 = vpow2.f32 %v6824_v1 }
0x1658   : > { %10632 = vpow2.f32 %v6825_v53 }
0x1661   : > { %v10631_v11 = vpop.eup %10630 }
0x1662   : > { %v10633_v39 = vpop.eup %10632  ;;  %v5538_v61 = vadd.f32 1.0, %v10631_v11 }
0x1663   : > { %v5548_v41 = vadd.f32 1.0, %v10633_v39 }
0x1664   : > { %10634 = vrcp.f32 %v5538_v61 }
0x1665   : > { %10636 = vrcp.f32 %v5548_v41 }
0x166e   : > { %v10635_v14 = vpop.eup %10634 }
0x166f   : > { %v10637_v45 = vpop.eup %10636  ;;  %v5555_v4 = vmul.f32 %v10635_v14, %v5553_v2 }
0x1670   : > { %v5562_v7 = vmul.f32 %v10637_v45, %v5560_v29  ;;  %v5558_v16 = vsub.f32 1.0, %v10637_v45 }
0x1671   : > { %v5556_v3 = vadd.f32 %v5555_v4, %v12774_v47 }
0x1673   : > { %10638 = vtanh.f32 %v5556_v3 }
0x167d   : > { %v10639_v33 = vpop.eup %10638 }
0x167e   : > { %v5559_v34 = vmul.f32 %v10639_v33, %v5558_v16 }
0x1680   : > { %v12859_v49 = vadd.f32 %v5562_v7, %v5559_v34 }
0x1682   : > { %v5565_v59 = vrot.slane %v12859_v49, 2  ;;  %v5737_v11 = vrot.slane %v12859_v49, 7 }
0x1684   : > { %5632 = vmatmul.mubr.f32.vlgmr.msra.gmra.mrb[40].mxu0 %v5565_v59  ;;  %8207 = vmatmul.mubr.f32.vlgmr.msra.gmra.mrb[54].mxu1 %v5565_v59 }
0x1685   : > { %10003 = vmatpush1.bf16.msra.mxu0 %v12644_v56  ;;  %10034 = vmatpush3.bf16.msra.mxu1 %v12646_v37 }
0x1686   : > { %10005 = vmatprep.subr.bf16.mxu0 %v12648_v40  ;;  %10035 = vmatprep.subr.bf16.mxu1 %v11230_v15 }
0x1687   : > { %5808 = vmatprep.mubr.f32.mxu0 %v11229_v50  ;;  %8241 = vmatprep.mubr.msk.f32.mxu1 %vm11231_vm0, %v11229_v50 }
0x1689   : > { %10007 = vmatpush1.bf16.msra.mxu0 %v12651_v19  ;;  %10037 = vmatpush3.bf16.msra.mxu1 %v12654_v24 }
0x168a   : > { %10009 = vmatprep.subr.bf16.mxu0 %v12657_v26  ;;  %10038 = vmatprep.subr.bf16.mxu1 %v11230_v15 }
0x168d   : > { %10011 = vmatpush1.bf16.msra.mxu0 %v12664_v43  ;;  %10040 = vmatpush3.bf16.msra.mxu1 %v12667_v36 }
0x168e   : > { %10013 = vmatprep.subr.bf16.mxu0 %v12670_v18  ;;  %10041 = vmatprep.subr.bf16.mxu1 %v11230_v15 }
0x1691   : > { %10015 = vmatpush1.bf16.msra.mxu0 %v12674_v20  ;;  %10043 = vmatpush3.bf16.msra.mxu1 %v12677_v22 }
0x1692   : > { %10017 = vmatprep.subr.bf16.mxu0 %v12680_v23  ;;  %10044 = vmatprep.subr.bf16.mxu1 %v11230_v15 }
0x1695   : > { %10019 = vmatpush1.bf16.msra.mxu0 %v12684_v8  ;;  %10046 = vmatpush3.bf16.msra.mxu1 %v12687_v13 }
0x1696   : > { %10021 = vmatprep.subr.bf16.mxu0 %v12690_v27  ;;  %10047 = vmatprep.subr.bf16.mxu1 %v11230_v15 }
0x1699   : > { %10023 = vmatpush1.bf16.msra.mxu0 %v12694_v52  ;;  %10049 = vmatpush3.bf16.msra.mxu1 %v12697_v51 }
0x169a   : > { %10025 = vmatprep.subr.bf16.mxu0 %v12700_v62  ;;  %10050 = vmatprep.subr.bf16.mxu1 %v11230_v15 }
0x169d   : > { %10027 = vmatpush1.bf16.msra.mxu0 %v12704_v35  ;;  %10052 = vmatpush3.bf16.msra.mxu1 %v12707_v6 }
0x169e   : > { %10029 = vmatprep.subr.bf16.mxu0 %v12710_v42  ;;  %10053 = vmatprep.subr.bf16.mxu1 %v11230_v15 }
0x16a1   : > { %10031 = vmatpush1.bf16.msra.mxu0 %v12714_v58  ;;  %10055 = vmatpush3.bf16.msra.mxu1 %v12717_v38 }
0x16a2   : > { %10057 = vmatprep.subr.bf16.mxu0 %v12636_v12  ;;  %10088 = vmatprep.subr.bf16.mxu1 %v11230_v15 }
0x1757   : > { %v5633_v54 = vpop.f32.mrb[40].mxu0  ;;  %v5704_v21 = vpop.f32.mrb[54].mxu1 }
0x1758   : > { %v5709_v9 = vrot.slane %v5633_v54, 5  ;;  %v5635_v25 = vpop.f32.mrb[41].mxu0  ;;  %v8208_v30 = vpop.f32.mrb[55].mxu1  ;;  %v5728_v17 = vadd.f32 %v5704_v21, %v12770_v60 }
0x1759   : > { %v5719_v44 = vrot.slane %v5635_v25, 5 }
0x175a   : > { %v5711_v28 = vadd.f32 %v5709_v9, %v12764_v32  ;;  %v5730_v1 = vrot.slane %v5728_v17, 5 }
0x175b   : > { %v5721_v46 = vadd.f32 %v5719_v44, %v12767_v31 }
0x175c   : > { %v6826_v10 = vmul.f32 -1.442695, %v5711_v28 }
0x175d   : > { %v6827_v48 = vmul.f32 -1.442695, %v5721_v46 }
0x175e   : > { %10640 = vpow2.f32 %v6826_v10 }
0x175f   : > { %10642 = vpow2.f32 %v6827_v48 }
0x1768   : > { %v10641_v55 = vpop.eup %10640 }
0x1769   : > { %v10643_v57 = vpop.eup %10642  ;;  %v5715_v5 = vadd.f32 1.0, %v10641_v55 }
0x176a   : > { %v5725_v0 = vadd.f32 1.0, %v10643_v57 }
0x176b   : > { %10644 = vrcp.f32 %v5715_v5 }
0x176c   : > { %10646 = vrcp.f32 %v5725_v0 }
0x1775   : > { %v10645_v53 = vpop.eup %10644 }
0x1776   : > { %v10647_v39 = vpop.eup %10646  ;;  %v5732_v61 = vmul.f32 %v10645_v53, %v5730_v1 }
0x1777   : > { %v5739_v41 = vmul.f32 %v10647_v39, %v5737_v11  ;;  %v5735_v2 = vsub.f32 1.0, %v10647_v39 }
0x1778   : > { %v5733_v63 = vadd.f32 %v5732_v61, %v12774_v47 }
0x177a   : > { %10648 = vtanh.f32 %v5733_v63 }
0x1784   : > { %v10649_v14 = vpop.eup %10648 }
0x1785   : > { %v5736_v29 = vmul.f32 %v10649_v14, %v5735_v2 }
0x1787   : > { %v12902_v45 = vadd.f32 %v5739_v41, %v5736_v29 }
0x1789   : > { %v5742_v4 = vrot.slane %v12902_v45, 3  ;;  %v5914_v55 = vrot.slane %v12902_v45, 7 }
0x178b   : > { %5809 = vmatmul.mubr.f32.vlgmr.msra.gmra.mrb[42].mxu0 %v5742_v4  ;;  %8242 = vmatmul.mubr.f32.vlgmr.msra.gmra.mrb[56].mxu1 %v5742_v4 }
0x178c   : > { %10059 = vmatpush1.bf16.msra.mxu0 %v12644_v56  ;;  %10090 = vmatpush3.bf16.msra.mxu1 %v12646_v37 }
0x178d   : > { %10061 = vmatprep.subr.bf16.mxu0 %v12648_v40  ;;  %10091 = vmatprep.subr.bf16.mxu1 %v11230_v15 }
0x178e   : > { %5985 = vmatprep.mubr.f32.mxu0 %v11229_v50  ;;  %8276 = vmatprep.mubr.msk.f32.mxu1 %vm11231_vm0, %v11229_v50 }
0x1790   : > { %10063 = vmatpush1.bf16.msra.mxu0 %v12651_v19  ;;  %10093 = vmatpush3.bf16.msra.mxu1 %v12654_v24 }
0x1791   : > { %10065 = vmatprep.subr.bf16.mxu0 %v12657_v26  ;;  %10094 = vmatprep.subr.bf16.mxu1 %v11230_v15 }
0x1794   : > { %10067 = vmatpush1.bf16.msra.mxu0 %v12664_v43  ;;  %10096 = vmatpush3.bf16.msra.mxu1 %v12667_v36 }
0x1795   : > { %10069 = vmatprep.subr.bf16.mxu0 %v12670_v18  ;;  %10097 = vmatprep.subr.bf16.mxu1 %v11230_v15 }
0x1798   : > { %10071 = vmatpush1.bf16.msra.mxu0 %v12674_v20  ;;  %10099 = vmatpush3.bf16.msra.mxu1 %v12677_v22 }
0x1799   : > { %10073 = vmatprep.subr.bf16.mxu0 %v12680_v23  ;;  %10100 = vmatprep.subr.bf16.mxu1 %v11230_v15 }
0x179c   : > { %10075 = vmatpush1.bf16.msra.mxu0 %v12684_v8  ;;  %10102 = vmatpush3.bf16.msra.mxu1 %v12687_v13 }
0x179d   : > { %10077 = vmatprep.subr.bf16.mxu0 %v12690_v27  ;;  %10103 = vmatprep.subr.bf16.mxu1 %v11230_v15 }
0x17a0   : > { %10079 = vmatpush1.bf16.msra.mxu0 %v12694_v52  ;;  %10105 = vmatpush3.bf16.msra.mxu1 %v12697_v51 }
0x17a1   : > { %10081 = vmatprep.subr.bf16.mxu0 %v12700_v62  ;;  %10106 = vmatprep.subr.bf16.mxu1 %v11230_v15 }
0x17a4   : > { %10083 = vmatpush1.bf16.msra.mxu0 %v12704_v35  ;;  %10108 = vmatpush3.bf16.msra.mxu1 %v12707_v6 }
0x17a5   : > { %10085 = vmatprep.subr.bf16.mxu0 %v12710_v42  ;;  %10109 = vmatprep.subr.bf16.mxu1 %v11230_v15 }
0x17a8   : > { %10087 = vmatpush1.bf16.msra.mxu0 %v12714_v58  ;;  %10111 = vmatpush3.bf16.msra.mxu1 %v12717_v38 }
0x17a9   : > { %10113 = vmatprep.subr.bf16.mxu0 %v12636_v12  ;;  %10144 = vmatprep.subr.bf16.mxu1 %v11230_v15 }
0x185e   : > { %v5810_v7 = vpop.f32.mrb[42].mxu0  ;;  %v5881_v3 = vpop.f32.mrb[56].mxu1 }
0x185f   : > { %v5886_v16 = vrot.slane %v5810_v7, 4  ;;  %v5812_v33 = vpop.f32.mrb[43].mxu0  ;;  %v8243_v34 = vpop.f32.mrb[57].mxu1  ;;  %v5905_v46 = vadd.f32 %v5881_v3, %v12770_v60 }
0x1860   : > { %v5896_v49 = vrot.slane %v5812_v33, 4 }
0x1861   : > { %v5888_v59 = vadd.f32 %v5886_v16, %v12764_v32  ;;  %v5907_v10 = vrot.slane %v5905_v46, 4 }
0x1862   : > { %v5898_v54 = vadd.f32 %v5896_v49, %v12767_v31 }
0x1863   : > { %v6828_v21 = vmul.f32 -1.442695, %v5888_v59 }
0x1864   : > { %v6829_v9 = vmul.f32 -1.442695, %v5898_v54 }
0x1865   : > { %10650 = vpow2.f32 %v6828_v21 }
0x1866   : > { %10652 = vpow2.f32 %v6829_v9 }
0x186f   : > { %v10651_v25 = vpop.eup %10650 }
0x1870   : > { %v10653_v30 = vpop.eup %10652  ;;  %v5892_v44 = vadd.f32 1.0, %v10651_v25 }
0x1871   : > { %v5902_v28 = vadd.f32 1.0, %v10653_v30 }
0x1872   : > { %10654 = vrcp.f32 %v5892_v44 }
0x1873   : > { %10656 = vrcp.f32 %v5902_v28 }
0x187c   : > { %v10655_v48 = vpop.eup %10654 }
0x187d   : > { %v10657_v57 = vpop.eup %10656  ;;  %v5909_v5 = vmul.f32 %v10655_v48, %v5907_v10 }
0x187e   : > { %v5916_v0 = vmul.f32 %v10657_v57, %v5914_v55  ;;  %v5912_v1 = vsub.f32 1.0, %v10657_v57 }
0x187f   : > { %v5910_v17 = vadd.f32 %v5909_v5, %v12774_v47 }
0x1881   : > { %10658 = vtanh.f32 %v5910_v17 }
0x188b   : > { %v10659_v53 = vpop.eup %10658 }
0x188c   : > { %v5913_v11 = vmul.f32 %v10659_v53, %v5912_v1  ;;  %v6449_v53 = vld [vmem:[#allocation25] sm:$0xff] }
0x188e   : > { %v12945_v39 = vadd.f32 %v5916_v0, %v5913_v11  ;;  %v6450_v11 = vld [vmem:[#allocation25 + $0x8] sm:$0xff] }
0x1890   : > { %v5919_v61 = vrot.slane %v12945_v39, 4  ;;  %v6091_v9 = vrot.slane %v12945_v39, 7  ;;  %v10225_v39 = vpack.c.bf16 %v6450_v11, %v6449_v53 }
0x1892   : > { %5986 = vmatmul.mubr.f32.vlgmr.msra.gmra.mrb[44].mxu0 %v5919_v61  ;;  %8277 = vmatmul.mubr.f32.vlgmr.msra.gmra.mrb[58].mxu1 %v5919_v61  ;;  %v6451_v61 = vld [vmem:[#allocation25 + $0x10] sm:$0xff] }
0x1893   : > { %10115 = vmatpush1.bf16.msra.mxu0 %v12644_v56  ;;  %10146 = vmatpush3.bf16.msra.mxu1 %v12646_v37 }
0x1894   : > { %10117 = vmatprep.subr.bf16.mxu0 %v12648_v40  ;;  %10147 = vmatprep.subr.bf16.mxu1 %v11230_v15 }
0x1895   : > { %6162 = vmatprep.mubr.f32.mxu0 %v11229_v50  ;;  %8311 = vmatprep.mubr.msk.f32.mxu1 %vm11231_vm0, %v11229_v50 }
0x1897   : > { %10119 = vmatpush1.bf16.msra.mxu0 %v12651_v19  ;;  %10149 = vmatpush3.bf16.msra.mxu1 %v12654_v24 }
0x1898   : > { %10121 = vmatprep.subr.bf16.mxu0 %v12657_v26  ;;  %10150 = vmatprep.subr.bf16.mxu1 %v11230_v15 }
0x189b   : > { %10123 = vmatpush1.bf16.msra.mxu0 %v12664_v43  ;;  %10152 = vmatpush3.bf16.msra.mxu1 %v12667_v36 }
0x189c   : > { %10125 = vmatprep.subr.bf16.mxu0 %v12670_v18  ;;  %10153 = vmatprep.subr.bf16.mxu1 %v11230_v15 }
0x189f   : > { %10127 = vmatpush1.bf16.msra.mxu0 %v12674_v20  ;;  %10155 = vmatpush3.bf16.msra.mxu1 %v12677_v22 }
0x18a0   : > { %10129 = vmatprep.subr.bf16.mxu0 %v12680_v23  ;;  %10156 = vmatprep.subr.bf16.mxu1 %v11230_v15 }
0x18a3   : > { %10131 = vmatpush1.bf16.msra.mxu0 %v12684_v8  ;;  %10158 = vmatpush3.bf16.msra.mxu1 %v12687_v13 }
0x18a4   : > { %10133 = vmatprep.subr.bf16.mxu0 %v12690_v27  ;;  %10159 = vmatprep.subr.bf16.mxu1 %v11230_v15 }
0x18a7   : > { %10135 = vmatpush1.bf16.msra.mxu0 %v12694_v52  ;;  %10161 = vmatpush3.bf16.msra.mxu1 %v12697_v51 }
0x18a8   : > { %10137 = vmatprep.subr.bf16.mxu0 %v12700_v62  ;;  %10162 = vmatprep.subr.bf16.mxu1 %v11230_v15 }
0x18ab   : > { %10139 = vmatpush1.bf16.msra.mxu0 %v12704_v35  ;;  %10164 = vmatpush3.bf16.msra.mxu1 %v12707_v6 }
0x18ac   : > { %10141 = vmatprep.subr.bf16.mxu0 %v12710_v42  ;;  %10165 = vmatprep.subr.bf16.mxu1 %v11230_v15 }
0x18af   : > { %10143 = vmatpush1.bf16.msra.mxu0 %v12714_v58  ;;  %10167 = vmatpush3.bf16.msra.mxu1 %v12717_v38 }
0x18b0   : > { %10169 = vmatprep.subr.bf16.mxu0 %v12636_v12  ;;  %10200 = vmatprep.subr.bf16.mxu1 %v11230_v15 }
0x1965   : > { %v5987_v41 = vpop.f32.mrb[44].mxu0  ;;  %v6058_v63 = vpop.f32.mrb[58].mxu1 }
0x1966   : > { %v6063_v2 = vrot.slane %v5987_v41, 3  ;;  %v5989_v14 = vpop.f32.mrb[45].mxu0  ;;  %v8278_v29 = vpop.f32.mrb[59].mxu1  ;;  %v6082_v59 = vadd.f32 %v6058_v63, %v12770_v60  ;;  %v6452_v41 = vld [vmem:[#allocation25 + $0x18] sm:$0xff] }
0x1967   : > { %v6073_v45 = vrot.slane %v5989_v14, 3  ;;  %v10228_v63 = vpack.c.bf16 %v6452_v41, %v6451_v61  ;;  %v6454_v14 = vld [vmem:[#allocation25 + $0x28] sm:$0xff] }
0x1968   : > { %v6065_v4 = vadd.f32 %v6063_v2, %v12764_v32  ;;  %v6084_v54 = vrot.slane %v6082_v59, 3  ;;  %v6453_v2 = vld [vmem:[#allocation25 + $0x20] sm:$0xff]  ;;  %v6462_v59 = vld [vmem:[#allocation25 + $0x68] sm:$0xff] }
0x1969   : > { %v6075_v7 = vadd.f32 %v6073_v45, %v12767_v31  ;;  %v10231_v29 = vpack.c.bf16 %v6454_v14, %v6453_v2  ;;  %v6455_v45 = vld [vmem:[#allocation25 + $0x30] sm:$0xff] }
0x196a   : > { %v6830_v3 = vmul.f32 -1.442695, %v6065_v4 }
0x196b   : > { %v6831_v16 = vmul.f32 -1.442695, %v6075_v7  ;;  %v6457_v7 = vld [vmem:[#allocation25 + $0x40] sm:$0xff] }
0x196c   : > { %10660 = vpow2.f32 %v6830_v3  ;;  %v6458_v3 = vld [vmem:[#allocation25 + $0x48] sm:$0xff] }
0x196d   : > { %10662 = vpow2.f32 %v6831_v16  ;;  %v10237_v16 = vpack.c.bf16 %v6458_v3, %v6457_v7 }
0x1976   : > { %v10661_v33 = vpop.eup %10660 }
0x1977   : > { %v10663_v34 = vpop.eup %10662  ;;  %v6069_v49 = vadd.f32 1.0, %v10661_v33  ;;  %v6459_v33 = vld [vmem:[#allocation25 + $0x50] sm:$0xff] }
0x1978   : > { %v6079_v12 = vadd.f32 1.0, %v10663_v34  ;;  %v6460_v34 = vld [vmem:[#allocation25 + $0x58] sm:$0xff] }
0x1979   : > { %10664 = vrcp.f32 %v6069_v49  ;;  %v10240_v49 = vpack.c.bf16 %v6460_v34, %v6459_v33 }
0x197a   : > { %10666 = vrcp.f32 %v6079_v12  ;;  %v6461_v12 = vld [vmem:[#allocation25 + $0x60] sm:$0xff] }
0x1983   : > { %v10665_v21 = vpop.eup %10664 }
0x1984   : > { %v10667_v25 = vpop.eup %10666  ;;  %v6086_v30 = vmul.f32 %v10665_v21, %v6084_v54  ;;  %v10243_v54 = vpack.c.bf16 %v6462_v59, %v6461_v12  ;;  %v6463_v21 = vld [vmem:[#allocation25 + $0x70] sm:$0xff] }
0x1985   : > { %v6093_v44 = vmul.f32 %v10667_v25, %v6091_v9  ;;  %v6089_v46 = vsub.f32 1.0, %v10667_v25  ;;  %v6464_v9 = vld [vmem:[#allocation25 + $0x78] sm:$0xff] }
0x1986   : > { %v6087_v28 = vadd.f32 %v6086_v30, %v12774_v47  ;;  %v10246_v25 = vpack.c.bf16 %v6464_v9, %v6463_v21 }
0x1988   : > { %10668 = vtanh.f32 %v6087_v28 }
0x1992   : > { %v10669_v10 = vpop.eup %10668 }
0x1993   : > { %v6090_v48 = vmul.f32 %v10669_v10, %v6089_v46 }
0x1995   : > { %v6094_v55 = vadd.f32 %v6093_v44, %v6090_v48 }
0x1997   : > { %v6096_v57 = vrot.slane %v6094_v55, 5 }
0x1999   : > { %6163 = vmatmul.mubr.f32.vlgmr.msra.gmra.mrb[46].mxu0 %v6096_v57  ;;  %8312 = vmatmul.mubr.f32.vlgmr.msra.gmra.mrb[60].mxu1 %v6096_v57 }
0x199a   : > { %10171 = vmatpush1.bf16.msra.mxu0 %v12644_v56  ;;  %10202 = vmatpush3.bf16.msra.mxu1 %v12646_v37 }
0x199b   : > { %10173 = vmatprep.subr.bf16.mxu0 %v12648_v40  ;;  %10203 = vmatprep.subr.bf16.mxu1 %v11230_v15 }
0x199c   : > { %6339 = vmatprep.mubr.f32.mxu0 %v11229_v50  ;;  %8346 = vmatprep.mubr.msk.f32.mxu1 %vm11231_vm0, %v11229_v50 }
0x199e   : > { %10175 = vmatpush1.bf16.msra.mxu0 %v12651_v19  ;;  %10205 = vmatpush3.bf16.msra.mxu1 %v12654_v24 }
0x199f   : > { %10177 = vmatprep.subr.bf16.mxu0 %v12657_v26  ;;  %10206 = vmatprep.subr.bf16.mxu1 %v11230_v15 }
0x19a2   : > { %10179 = vmatpush1.bf16.msra.mxu0 %v12664_v43  ;;  %10208 = vmatpush3.bf16.msra.mxu1 %v12667_v36 }
0x19a3   : > { %10181 = vmatprep.subr.bf16.mxu0 %v12670_v18  ;;  %10209 = vmatprep.subr.bf16.mxu1 %v11230_v15 }
0x19a6   : > { %10183 = vmatpush1.bf16.msra.mxu0 %v12674_v20  ;;  %10211 = vmatpush3.bf16.msra.mxu1 %v12677_v22 }
0x19a7   : > { %10185 = vmatprep.subr.bf16.mxu0 %v12680_v23  ;;  %10212 = vmatprep.subr.bf16.mxu1 %v11230_v15 }
0x19aa   : > { %10187 = vmatpush1.bf16.msra.mxu0 %v12684_v8  ;;  %10214 = vmatpush3.bf16.msra.mxu1 %v12687_v13 }
0x19ab   : > { %10189 = vmatprep.subr.bf16.mxu0 %v12690_v27  ;;  %10215 = vmatprep.subr.bf16.mxu1 %v11230_v15 }
0x19ae   : > { %10191 = vmatpush1.bf16.msra.mxu0 %v12694_v52  ;;  %10217 = vmatpush3.bf16.msra.mxu1 %v12697_v51 }
0x19af   : > { %10193 = vmatprep.subr.bf16.mxu0 %v12700_v62  ;;  %10218 = vmatprep.subr.bf16.mxu1 %v11230_v15  ;;  %v6268_v62 = vrot.slane %v6094_v55, 7 }
0x19b2   : > { %10195 = vmatpush1.bf16.msra.mxu0 %v12704_v35  ;;  %10220 = vmatpush3.bf16.msra.mxu1 %v12707_v6 }
0x19b3   : > { %10197 = vmatprep.subr.bf16.mxu0 %v12710_v42  ;;  %10221 = vmatprep.subr.bf16.mxu1 %v11230_v15 }
0x19b6   : > { %10199 = vmatpush1.bf16.msra.mxu0 %v12714_v58  ;;  %10223 = vmatpush3.bf16.msra.mxu1 %v12717_v38 }
0x19b7   : > { %10224 = vmatprep.subr.bf16.mxu0 %v11230_v15 }
0x1a6c   : > { %v6164_v56 = vpop.f32.mrb[46].mxu0  ;;  %v6235_v37 = vpop.f32.mrb[60].mxu1 }
0x1a6d   : > { %v6240_v40 = vrot.slane %v6164_v56, 2  ;;  %v6166_v19 = vpop.f32.mrb[47].mxu0  ;;  %v8313_v24 = vpop.f32.mrb[61].mxu1  ;;  %v6259_v27 = vadd.f32 %v6235_v37, %v12770_v60 }
0x1a6e   : > { %v6250_v26 = vrot.slane %v6166_v19, 2 }
0x1a6f   : > { %v6242_v43 = vadd.f32 %v6240_v40, %v12764_v32  ;;  %v6261_v52 = vrot.slane %v6259_v27, 2 }
0x1a70   : > { %v6252_v36 = vadd.f32 %v6250_v26, %v12767_v31 }
0x1a71   : > { %v6832_v18 = vmul.f32 -1.442695, %v6242_v43 }
0x1a72   : > { %v6833_v20 = vmul.f32 -1.442695, %v6252_v36 }
0x1a73   : > { %10670 = vpow2.f32 %v6832_v18 }
0x1a74   : > { %10672 = vpow2.f32 %v6833_v20 }
0x1a7d   : > { %v10671_v22 = vpop.eup %10670 }
0x1a7e   : > { %v10673_v23 = vpop.eup %10672  ;;  %v6246_v8 = vadd.f32 1.0, %v10671_v22 }
0x1a7f   : > { %v6256_v13 = vadd.f32 1.0, %v10673_v23 }
0x1a80   : > { %10674 = vrcp.f32 %v6246_v8 }
0x1a81   : > { %10676 = vrcp.f32 %v6256_v13 }
0x1a8a   : > { %v10675_v51 = vpop.eup %10674 }
0x1a8b   : > { %v10677_v35 = vpop.eup %10676  ;;  %v6263_v6 = vmul.f32 %v10675_v51, %v6261_v52 }
0x1a8c   : > { %v6270_v42 = vmul.f32 %v10677_v35, %v6268_v62  ;;  %v6266_v38 = vsub.f32 1.0, %v10677_v35 }
0x1a8d   : > { %v6264_v58 = vadd.f32 %v6263_v6, %v12774_v47 }
0x1a8f   : > { %10678 = vtanh.f32 %v6264_v58 }
0x1a99   : > { %v10679_v5 = vpop.eup %10678 }
0x1a9a   : > { %v6267_v0 = vmul.f32 %v10679_v5, %v6266_v38 }
0x1a9c   : > { %v13026_v17 = vadd.f32 %v6270_v42, %v6267_v0 }
0x1a9e   : > { %v6273_v1 = vrot.slane %v13026_v17, 6 }
0x1aa0   : > { %6340 = vmatmul.mubr.f32.vlgmr.msra.gmra.mrb[48].mxu0 %v6273_v1  ;;  %8347 = vmatmul.mubr.f32.vlgmr.msra.gmra.mrb[62].mxu1 %v6273_v1 }
0x1aa1   : > { %8381 = vmatprep.mubr.msk.f32.mxu0 %vm11231_vm0, %v11229_v50  ;;  %10226 = vmatpush3.bf16.msra.mxu0 %v10225_v39  ;;  %v6456_v50 = vld [vmem:[#allocation25 + $0x38] sm:$0xff] }
0x1aa2   : > { %10227 = vmatprep.subr.bf16.mxu0 %v11230_v15  ;;  %v10234_v4 = vpack.c.bf16 %v6456_v50, %v6455_v45 }
0x1aa5   : > { %10229 = vmatpush3.bf16.msra.mxu0 %v10228_v63 }
0x1aa6   : > { %10230 = vmatprep.subr.bf16.mxu0 %v11230_v15 }
0x1aa9   : > { %10232 = vmatpush3.bf16.msra.mxu0 %v10231_v29 }
0x1aaa   : > { %10233 = vmatprep.subr.bf16.mxu0 %v11230_v15 }
0x1aad   : > { %10235 = vmatpush3.bf16.msra.mxu0 %v10234_v4 }
0x1aae   : > { %10236 = vmatprep.subr.bf16.mxu0 %v11230_v15 }
0x1ab1   : > { %10238 = vmatpush3.bf16.msra.mxu0 %v10237_v16 }
0x1ab2   : > { %10239 = vmatprep.subr.bf16.mxu0 %v11230_v15 }
0x1ab5   : > { %10241 = vmatpush3.bf16.msra.mxu0 %v10240_v49 }
0x1ab6   : > { %10242 = vmatprep.subr.bf16.mxu0 %v11230_v15 }
0x1ab9   : > { %10244 = vmatpush3.bf16.msra.mxu0 %v10243_v54 }
0x1aba   : > { %10245 = vmatprep.subr.bf16.mxu0 %v11230_v15 }
0x1abd   : > { %10247 = vmatpush3.bf16.msra.mxu0 %v10246_v25 }
0x1b73   : > { %v6341_v30 = vpop.f32.mrb[48].mxu0  ;;  %v6412_v44 = vpop.f32.mrb[62].mxu1 }
0x1b74   : > { %v6417_v28 = vrot.slane %v6341_v30, 1  ;;  %v6343_v46 = vpop.f32.mrb[49].mxu0  ;;  %v8348_v10 = vpop.f32.mrb[63].mxu1  ;;  %v6436_v15 = vadd.f32 %v6412_v44, %v12770_v60  ;;  %v6465_v60 = vld [vmem:[#allocation27] sm:$0x1] }
0x1b75   : > { %v6427_v48 = vrot.slane %v6343_v46, 1 }
0x1b76   : > { %v6419_v55 = vadd.f32 %v6417_v28, %v12764_v32  ;;  %v6438_v43 = vrot.slane %v6436_v15, 1  ;;  %v6445_v32 = vrot.slane %v13026_v17, 7 }
0x1b77   : > { %v6429_v57 = vadd.f32 %v6427_v48, %v12767_v31 }
0x1b78   : > { %v6834_v56 = vmul.f32 -1.442695, %v6419_v55 }
0x1b79   : > { %v6835_v37 = vmul.f32 -1.442695, %v6429_v57 }
0x1b7a   : > { %10680 = vpow2.f32 %v6834_v56 }
0x1b7b   : > { %10682 = vpow2.f32 %v6835_v37 }
0x1b84   : > { %v10681_v40 = vpop.eup %10680 }
0x1b85   : > { %v10683_v19 = vpop.eup %10682  ;;  %v6423_v24 = vadd.f32 1.0, %v10681_v40 }
0x1b86   : > { %v6433_v26 = vadd.f32 1.0, %v10683_v19 }
0x1b87   : > { %10684 = vrcp.f32 %v6423_v24 }
0x1b88   : > { %10686 = vrcp.f32 %v6433_v26 }
0x1b91   : > { %v10685_v36 = vpop.eup %10684 }
0x1b92   : > { %v10687_v18 = vpop.eup %10686  ;;  %v6440_v31 = vmul.f32 %v10685_v36, %v6438_v43 }
0x1b93   : > { %v6447_v20 = vmul.f32 %v10687_v18, %v6445_v32  ;;  %v6443_v23 = vsub.f32 1.0, %v10687_v18 }
0x1b94   : > { %v6441_v22 = vadd.f32 %v6440_v31, %v12774_v47 }
0x1b96   : > { %10688 = vtanh.f32 %v6441_v22 }
0x1ba0   : > { %v10689_v8 = vpop.eup %10688 }
0x1ba1   : > { %v6444_v13 = vmul.f32 %v10689_v8, %v6443_v23 }
0x1ba3   : > { %v6448_v27 = vadd.f32 %v6447_v20, %v6444_v13 }
0x1ba5   : > { %v6467_v52 = vrot.slane %v6448_v27, 7 }
0x1ba7   : > { %8382 = vmatmul.mubr.f32.vlgmr.msra.gmra.mrb[50].mxu0 %v6467_v52 }
0x1c7a   : > { %v6535_v51 = vpop.f32.mrb[50].mxu0 }
0x1c7b   : > { %v6536_v62 = vadd.f32 %v6535_v51, %v6465_v60  ;;  %v8383_v35 = vpop.f32.mrb[51].mxu0 }
0x1c7d   : > { %6539 = vst [vmem:[%s698_s26] sm:$0x1] %v6536_v62 }
0x1c7e   : > { %11127 = shalt.err (!%p11124_p9)
}
0x1c7f   : > { %s11128_s3 = scalar_lea.hbm %s13048_s30, 16  ;;  %s11132_s15 = scalar_lea.hbm %s13171_s27, 32 }
0x1c80   : > { %p11129_p12 = scmp.ne.s32.totalorder %s13048_s30, %s11128_s3  ;;  %p11133_p3 = scmp.lt.u32.totalorder %s13048_s30, %s13171_s27 }
0x1c81   : > { %p11134_p2 = scmp.lt.u32.totalorder %s11132_s15, %s11128_s3  ;;  %p11136_p4 = scmp.lt.u32.totalorder %s11128_s3, %s13048_s30 }
0x1c82   : > { %p11130_p13 = pnand %p11129_p12, %p13172_p10 }
0x1c83   : > { %p11135_p0 = por %p11134_p2, %p11133_p3 }
0x1c84   : > { %p11131_p1 = pneg %p11130_p13 }
0x1c85   : > { %p11137_p11 = por %p11136_p4, %p11135_p0 }
0x1c87   : > { %p11138_p8 = pnand %p11137_p11, %p11131_p1 }
0x1c89   : > { %11141 = shalt.err (!%p11138_p8)
}
0x1c8a   : > { %10314 = dma.vmem_to_hbm [thread:$0]  (%p13172_p10), %s13050_s22, 16, %s13048_s30, %s6541_s24  }
0x1c8b PF: > { %s13173_s2 = sld [smem:[#allocation38_spill]]  ;;  %p13174_p5 = scmp.ne.s32.totalorder %s13149_s23, 0 }
0x1c8c   : > { %p13175_p7 = scmp.ge.s32.totalorder %s11208_s21, 2 }
0x1c8e   : > { %p10364_p6 = pnand %p13175_p7, %p13174_p5 }
0x1c91   : > { %s6565_s25 = sand.u32 1, %s13173_s2  }
0x1c92   : > { %s6566_s1 = scalar_lea.sflag [#allocation6], %s6565_s25 }
0x1c93   : > { %11191 = dma.done.wait (!%p10364_p6), %s6566_s1, 16  }
0x1c94   : > { %11193 = vsyncadd (!%p10364_p6), %s6566_s1, 4294967280  ;;  %s13176_s18 = sld [smem:[#allocation39_spill]]  ;;  %s13177_s19 = sld [smem:[#allocation40_spill]] }
0x1c95   : > { %p35_p9 = scmp.ge.s32.totalorder %s11652_s28, 4   ;;  %s13178_s20 = smov %s11663_s17 }
0x1c96   : > { %s13179_s21 = smov %s11652_s28 }
0x1c97   :  { %37 = sbr.rel (!%p35_p9) target bundleno = 18 (0x12), region = 181 }
0x1c9e   :  { %6570 = vsyncpa [#allocation5], 1 }
0x1c9f   :  { %6572 = vsyncpa [#allocation5 + $0x1], 1 }
0x1ca0   :  { %6573 = vsyncpa [#allocation8], 1 }
0x1ca1   :  { %6574 = vsyncpa [#allocation11], 1 }
0x1ca2   :  { %6575 = vsyncpa [#allocation14], 1 }
0x1ca3   :  { %6576 = vsyncpa [#allocation17], 1 }
0x1ca4   :  { %6577 = vsyncpa [#allocation20], 1 }
0x1ca5   :  { %6578 = vsyncpa [#allocation23], 1 }
0x1ca6   :  { %6579 = vsyncpa [#allocation26], 1 }
0x1ca7   :  { %6580 = vsyncpa [#allocation6], 1 }
0x1ca8   :  { %6582 = vsyncpa [#allocation6 + $0x1], 1 }

</bundles_post_ra>
